<compile_context>
chip_gen: v5e
topology: v5e:2x2
jax: 0.10.0
libtpu: 0.0.40
codegen_flags: <defaults>
</compile_context>

<pallas_src>
import jax
import jax.numpy as jnp
from jax.experimental import pallas as pl
from jax.experimental.pallas import tpu as pltpu


_TARGET_TILE_M = 2048                    # lanes per M tile (multiple of 128)
_VMEM_LIMIT_BYTES = 48 * 1024 * 1024     # explicit: > v5e 16MiB default, < v7x 64MiB phys
_BN_EPS = 1e-5

# Sub-pixel decomposition of ConvTranspose2d(k=4, s=2, p=1):
#   out[n, 2r+py, 2c+px, co] =
#     sum_{a,b in {0,1}} sum_ci xpad[n, r+py+a, c+px+b, ci] * w[ci, co, 3-2a-py, 3-2b-px]
_PHASES = [(py, px) for py in range(2) for px in range(2)]
_TAPS = [(a, b) for a in range(2) for b in range(2)]


# ----------------------------- Pallas kernels ------------------------------

def _deconv_stats_kernel(w_ref, s_ref, y_ref, st_ref):
    # w_ref : (16, Cout, Cin) bf16  -- row 4*phase + tap
    # s_ref : (9, Cin, TM)    bf16  -- shared 3x3 shifted-tap slab for this tile
    # y_ref : (4, Cout, TM)   bf16  -- pre-BN activations, phase-major
    # st_ref: (1, 2, 4, Cout) f32   -- per-tile (sum, sumsq), lane dim = Cout
    for p, (py, px) in enumerate(_PHASES):
        acc = None
        for j, (a, b) in enumerate(_TAPS):
            t = (py + a) * 3 + (px + b)                      # static tap index
            d = jnp.dot(w_ref[4 * p + j], s_ref[t],
                        preferred_element_type=jnp.float32)  # (Cout, TM) f32
            acc = d if acc is None else acc + d
        y_ref[p] = acc.astype(y_ref.dtype)
        st_ref[0, 0, p] = jnp.sum(acc, axis=1)               # (Cout,) lane-dense
        st_ref[0, 1, p] = jnp.sum(acc * acc, axis=1)


def _deconv_tanh_kernel(w_ref, s_ref, o_ref):
    # Final layer: fuse tanh, write bf16 (halves writeback of largest activation).
    for p, (py, px) in enumerate(_PHASES):
        acc = None
        for j, (a, b) in enumerate(_TAPS):
            t = (py + a) * 3 + (px + b)
            d = jnp.dot(w_ref[4 * p + j], s_ref[t],
                        preferred_element_type=jnp.float32)
            acc = d if acc is None else acc + d
        o_ref[p] = jnp.tanh(acc).astype(o_ref.dtype)


def _bn_relu_kernel(y_ref, sc_ref, sh_ref, o_ref):
    # y_ref: (4, C, TM) bf16; sc/sh: (C, 1) f32 folded scale / shift.
    y = y_ref[...].astype(jnp.float32)
    o_ref[...] = jnp.maximum(y * sc_ref[...] + sh_ref[...], 0.0).astype(o_ref.dtype)


def _proj_bn_relu_kernel(z_ref, w_ref, sel_ref, g_ref, b_ref, o_ref):
    # Layer 0 (1x1 -> 4x4 deconv) fully fused in ONE grid step:
    #   y[n, (oy,ox,co)] = sum_ci z[n,ci] * w[ci, (oy,ox,co)]    (lane dim = 16*Cout)
    # sel_ref (16*Cout, Cout) is a 0/1 selector; it reduces stats per channel and
    # expands scale/shift back to lanes -> no lane-splitting reshape in-kernel.
    y = jnp.dot(z_ref[...], w_ref[...], preferred_element_type=jnp.float32)  # (N,16C)
    count = y.shape[0] * 16.0
    s1 = jnp.dot(jnp.sum(y, axis=0, keepdims=True), sel_ref[...],
                 preferred_element_type=jnp.float32) / count                 # (1, C)
    s2 = jnp.dot(jnp.sum(y * y, axis=0, keepdims=True), sel_ref[...],
                 preferred_element_type=jnp.float32) / count
    var = jnp.maximum(s2 - s1 * s1, 0.0)
    scale = g_ref[...] * jax.lax.rsqrt(var + _BN_EPS)                        # (1, C)
    shift = b_ref[...] - s1 * scale

    def expand(v):                                                            # (1, 16C)
        return jax.lax.dot_general(v, sel_ref[...],
                                   dimension_numbers=(((1,), (1,)), ((), ())),
                                   preferred_element_type=jnp.float32)

    o_ref[...] = jnp.maximum(y * expand(scale) + expand(shift), 0.0).astype(o_ref.dtype)


# --------------------------- pallas_call wrappers ---------------------------

def _compiler_params(n_axes=1):
    return pltpu.CompilerParams(
        dimension_semantics=("parallel",) * n_axes,
        vmem_limit_bytes=_VMEM_LIMIT_BYTES)


def _pick_tile(m_pad, target=_TARGET_TILE_M):
    """Largest 128-multiple dividing m_pad, <= target, preferring >= 2 tiles so
    both v7x TensorCores get work.  m_pad is already a multiple of 128."""
    if m_pad <= 128:
        return m_pad
    cap = min(target, m_pad // 2)
    cand = max(128, cap - cap % 128)
    while cand > 128 and m_pad % cand != 0:
        cand -= 128
    return cand


def _deconv_stats(slab, w_all, tile_m):
    _, cin, m_pad = slab.shape
    cout = w_all.shape[1]
    n_tiles = m_pad // tile_m
    flops = 2 * 16 * cout * cin * m_pad + 6 * 4 * cout * m_pad
    bytes_acc = (slab.size + w_all.size + 4 * cout * m_pad) * 2 + n_tiles * 8 * cout * 4
    return pl.pallas_call(
        _deconv_stats_kernel,
        out_shape=(jax.ShapeDtypeStruct((4, cout, m_pad), jnp.bfloat16),
                   jax.ShapeDtypeStruct((n_tiles, 2, 4, cout), jnp.float32)),
        grid=(n_tiles,),
        in_specs=[
            pl.BlockSpec((16, cout, cin), lambda i: (0, 0, 0)),
            pl.BlockSpec((9, cin, tile_m), lambda i: (0, 0, i)),
        ],
        out_specs=(
            pl.BlockSpec((4, cout, tile_m), lambda i: (0, 0, i)),
            pl.BlockSpec((1, 2, 4, cout), lambda i: (i, 0, 0, 0)),
        ),
        compiler_params=_compiler_params(1),
        cost_estimate=pl.CostEstimate(flops=int(flops), transcendentals=0,
                                      bytes_accessed=int(bytes_acc)),
    )(w_all, slab)


def _deconv_tanh(slab, w_all, tile_m):
    _, cin, m_pad = slab.shape
    cout = w_all.shape[1]
    n_tiles = m_pad // tile_m
    flops = 2 * 16 * cout * cin * m_pad
    bytes_acc = (slab.size + w_all.size + 4 * cout * m_pad) * 2
    return pl.pallas_call(
        _deconv_tanh_kernel,
        out_shape=jax.ShapeDtypeStruct((4, cout, m_pad), jnp.bfloat16),
        grid=(n_tiles,),
        in_specs=[
            pl.BlockSpec((16, cout, cin), lambda i: (0, 0, 0)),
            pl.BlockSpec((9, cin, tile_m), lambda i: (0, 0, i)),
        ],
        out_specs=pl.BlockSpec((4, cout, tile_m), lambda i: (0, 0, i)),
        compiler_params=_compiler_params(1),
        cost_estimate=pl.CostEstimate(flops=int(flops),
                                      transcendentals=int(4 * cout * m_pad),
                                      bytes_accessed=int(bytes_acc)),
    )(w_all, slab)


def _bn_relu(y, scale, shift, tile_m):
    _, cout, m_pad = y.shape
    n_tiles = m_pad // tile_m
    bytes_acc = 2 * y.size * 2 + (scale.size + shift.size) * 4
    return pl.pallas_call(
        _bn_relu_kernel,
        out_shape=jax.ShapeDtypeStruct((4, cout, m_pad), jnp.bfloat16),
        grid=(n_tiles,),
        in_specs=[
            pl.BlockSpec((4, cout, tile_m), lambda i: (0, 0, i)),
            pl.BlockSpec((cout, 1), lambda i: (0, 0)),
            pl.BlockSpec((cout, 1), lambda i: (0, 0)),
        ],
        out_specs=pl.BlockSpec((4, cout, tile_m), lambda i: (0, 0, i)),
        compiler_params=_compiler_params(1),
        cost_estimate=pl.CostEstimate(flops=int(3 * 4 * cout * m_pad), transcendentals=0,
                                      bytes_accessed=int(bytes_acc)),
    )(y, scale, shift)


def _layer0(z, w, gamma, beta):
    """ConvTranspose2d(Cin, Cout, 4, 1, 0) on 1x1 input + BN + ReLU, one kernel."""
    n, cin = z.shape
    cout = w.shape[1]
    wr = jnp.transpose(w, (0, 2, 3, 1)).reshape(cin, 16 * cout).astype(jnp.bfloat16)
    sel = ((jnp.arange(16 * cout) % cout)[:, None]
           == jnp.arange(cout)[None, :]).astype(jnp.float32)        # (16*Cout, Cout)
    out = pl.pallas_call(
        _proj_bn_relu_kernel,
        out_shape=jax.ShapeDtypeStruct((n, 16 * cout), jnp.bfloat16),
        grid=(1,),
        in_specs=[
            pl.BlockSpec((n, cin), lambda i: (0, 0)),
            pl.BlockSpec((cin, 16 * cout), lambda i: (0, 0)),
            pl.BlockSpec((16 * cout, cout), lambda i: (0, 0)),
            pl.BlockSpec((1, cout), lambda i: (0, 0)),
            pl.BlockSpec((1, cout), lambda i: (0, 0)),
        ],
        out_specs=pl.BlockSpec((n, 16 * cout), lambda i: (0, 0)),
        compiler_params=_compiler_params(1),
        cost_estimate=pl.CostEstimate(
            flops=int(2 * n * cin * 16 * cout + 10 * n * 16 * cout
                      + 8 * 16 * cout * cout),
            transcendentals=0,
            bytes_accessed=int((z.size + wr.size + n * 16 * cout) * 2 + sel.size * 4)),
    )(z.astype(jnp.bfloat16), wr, sel,
      gamma.reshape(1, cout).astype(jnp.float32),
      beta.reshape(1, cout).astype(jnp.float32))
    return out.reshape(n, 4, 4, cout)        # contiguous -> free metadata reshape


# ----------------------- operand builders (JAX glue) ------------------------

def _build_tap_slab(x_nhwc, m_pad):
    """x_nhwc (N,H,W,Cin) bf16 -> shared 3x3 shifted-tap slab (9, Cin, m_pad) bf16."""
    n, h, w, cin = x_nhwc.shape
    m = n * h * w
    xp = jnp.pad(x_nhwc, ((0, 0), (1, 1), (1, 1), (0, 0)))
    taps = []
    for dy in range(3):
        for dx in range(3):
            sl = xp[:, dy:dy + h, dx:dx + w, :]                      # (N,H,W,Cin)
            taps.append(jnp.transpose(sl, (3, 0, 1, 2)).reshape(cin, m))
    slab = jnp.stack(taps, axis=0)                                   # (9, Cin, M)
    if m_pad != m:
        slab = jnp.pad(slab, ((0, 0), (0, 0), (0, m_pad - m)))       # zeros: stats-neutral
    return slab


def _build_phase_weights(w):
    """w (Cin, Cout, 4, 4) -> (16, Cout, Cin) bf16, row = 4*phase + tap."""
    rows = []
    for (py, px) in _PHASES:
        for (a, b) in _TAPS:
            rows.append(jnp.transpose(w[:, :, 3 - 2 * a - py, 3 - 2 * b - px]))
    return jnp.stack(rows, axis=0).astype(jnp.bfloat16)


def _bn_affine(stats, gamma, beta, count):
    """Fold BN (batch statistics, eps=1e-5) into per-channel scale/shift (C,1)."""
    s = jnp.sum(stats, axis=(0, 2))                       # (2, Cout)
    mean = s[0] / count
    var = jnp.maximum(s[1] / count - mean * mean, 0.0)    # biased var (training mode)
    scale = gamma.astype(jnp.float32) * jax.lax.rsqrt(var + _BN_EPS)
    shift = beta.astype(jnp.float32) - mean * scale
    return scale.reshape(-1, 1), shift.reshape(-1, 1)


def _reassemble(act, n, h, w):
    """act (4, C, N*H*W) phase-major -> NHWC (N, 2H, 2W, C)."""
    c = act.shape[1]
    a = act.reshape(2, 2, c, n, h, w)
    a = jnp.transpose(a, (3, 4, 0, 5, 1, 2))              # (N, H, py, W, px, C)
    return a.reshape(n, 2 * h, 2 * w, c)


# ------------------------------ forward pass --------------------------------

def generator_forward(z_nchw, params):
    """z_nchw (N, n_z, 1, 1) -> (N, 3, 64, 64), matching the nn.Sequential."""
    n = z_nchw.shape[0]
    nz = z_nchw.shape[1]
    n_layers = len(params["w"])

    # Layer 0: fully fused matmul + BN + ReLU, one grid step.
    x = _layer0(z_nchw.reshape(n, nz), params["w"][0],
                params["gamma"][0], params["beta"][0])    # (N, 4, 4, C0) bf16

    for li in range(1, n_layers):
        w = params["w"][li]
        _, h, ww, _ = x.shape
        m = n * h * ww
        m_pad = ((m + 127) // 128) * 128                  # lane-dense, unmasked stores
        tile_m = _pick_tile(m_pad)
        slab = _build_tap_slab(x, m_pad)
        w_all = _build_phase_weights(w)
        if li < n_layers - 1:
            y, stats = _deconv_stats(slab, w_all, tile_m)
            scale, shift = _bn_affine(stats, params["gamma"][li], params["beta"][li],
                                      float(4 * m))
            act = _bn_relu(y, scale, shift, tile_m)       # (4, Cout, m_pad) bf16
        else:
            act = _deconv_tanh(slab, w_all, tile_m)       # (4, 3, m_pad) bf16
        x = _reassemble(act[:, :, :m], n, h, ww)          # NHWC bf16 for next layer
    return jnp.transpose(x, (0, 3, 1, 2)).astype(jnp.float32)   # NCHW f32


# ------------------------------- driver --------------------------------------

if __name__ == "__main__":
    n_z, n_g_filters, batch = 16, 8, 2
    chans = [n_z, n_g_filters * 8, n_g_filters * 4,
             n_g_filters * 2, n_g_filters, 3]

    key = jax.random.PRNGKey(0)
    kz, k1, k2, k3, k4, k5 = jax.random.split(key, 6)
    wkeys = [k1, k2, k3, k4, k5]

    # Deterministic DCGAN-style init: N(0, 0.02) conv weights, BN gamma=1, beta=0.
    ws = [0.02 * jax.random.normal(wkeys[i], (chans[i], chans[i + 1], 4, 4),
                                   jnp.float32) for i in range(5)]
    gammas = [jnp.ones((chans[i + 1],), jnp.float32) for i in range(4)]
    betas = [jnp.zeros((chans[i + 1],), jnp.float32) for i in range(4)]
    params = {"w": ws, "gamma": gammas, "beta": betas}

    z = jax.random.normal(kz, (batch, n_z, 1, 1), jnp.float32)

    fwd = jax.jit(generator_forward)
    out = fwd(z, params)
    out = jax.block_until_ready(out)
    assert out.shape == (batch, 3, 64, 64), out.shape
    assert bool(jnp.all(jnp.isfinite(out)))
    print("KERNEL_OK")
</pallas_src>

<mosaic_0001>
module attributes {stable_mosaic.version = 11 : i64} {
  func.func @_proj_bn_relu_kernel(%arg0: i32, %arg1: memref<2x16xbf16, #tpu.memory_space<vmem>>, %arg2: memref<16x1024xbf16, #tpu.memory_space<vmem>>, %arg3: memref<1024x64xf32, #tpu.memory_space<vmem>>, %arg4: memref<1x64xf32, #tpu.memory_space<vmem>>, %arg5: memref<1x64xf32, #tpu.memory_space<vmem>>, %arg6: memref<2x1024xbf16, #tpu.memory_space<vmem>>) attributes {dimension_semantics = [#tpu.dimension_semantics<parallel>], iteration_bounds = array<i64: 1>, scalar_prefetch = 0 : i64, scratch_operands = 0 : i64, tpu.core_type = #tpu.core_type<tc>, window_params = [{pipeline_mode = #tpu.pipeline_mode<synchronous>, transform_indices = @transform_0, window_bounds = array<i64: 2, 16>}, {pipeline_mode = #tpu.pipeline_mode<synchronous>, transform_indices = @transform_1, window_bounds = array<i64: 16, 1024>}, {pipeline_mode = #tpu.pipeline_mode<synchronous>, transform_indices = @transform_2, window_bounds = array<i64: 1024, 64>}, {pipeline_mode = #tpu.pipeline_mode<synchronous>, transform_indices = @transform_3, window_bounds = array<i64: 1, 64>}, {pipeline_mode = #tpu.pipeline_mode<synchronous>, transform_indices = @transform_4, window_bounds = array<i64: 1, 64>}, {pipeline_mode = #tpu.pipeline_mode<synchronous>, transform_indices = @transform_5, window_bounds = array<i64: 2, 1024>}]} {
    %c0 = arith.constant 0 : index
    %c0_0 = arith.constant 0 : index
    %0 = vector.load %arg1[%c0, %c0_0] : memref<2x16xbf16, #tpu.memory_space<vmem>>, vector<2x16xbf16>
    %c0_1 = arith.constant 0 : index
    %c0_2 = arith.constant 0 : index
    %1 = vector.load %arg2[%c0_1, %c0_2] : memref<16x1024xbf16, #tpu.memory_space<vmem>>, vector<16x1024xbf16>
    %cst = arith.constant dense<0.000000e+00> : vector<2x1024xf32>
    %2 = tpu.matmul %0, %1, %cst {dimension_numbers = #tpu.dot_dimension_numbers<[1], [0], [0], [1], [0, 0, 1, 1], [], []>} : vector<2x16xbf16>, vector<16x1024xbf16>, vector<2x1024xf32> -> vector<2x1024xf32>
    %cst_3 = arith.constant dense<0.000000e+00> : vector<1024xf32>
    %3 = vector.multi_reduction <add>, %2, %cst_3 [0] : vector<2x1024xf32> to vector<1024xf32>
    %4 = vector.shape_cast %3 : vector<1024xf32> to vector<1x1024xf32>
    %c0_4 = arith.constant 0 : index
    %c0_5 = arith.constant 0 : index
    %5 = vector.load %arg3[%c0_4, %c0_5] : memref<1024x64xf32, #tpu.memory_space<vmem>>, vector<1024x64xf32>
    %cst_6 = arith.constant dense<0.000000e+00> : vector<1x64xf32>
    %6 = tpu.matmul %4, %5, %cst_6 {dimension_numbers = #tpu.dot_dimension_numbers<[1], [0], [0], [1], [0, 0, 1, 1], [], []>} : vector<1x1024xf32>, vector<1024x64xf32>, vector<1x64xf32> -> vector<1x64xf32>
    %cst_7 = arith.constant 3.200000e+01 : f32
    %7 = vector.broadcast %cst_7 : f32 to vector<1x64xf32>
    %8 = arith.divf %6, %7 : vector<1x64xf32>
    %9 = arith.mulf %2, %2 : vector<2x1024xf32>
    %cst_8 = arith.constant dense<0.000000e+00> : vector<1024xf32>
    %10 = vector.multi_reduction <add>, %9, %cst_8 [0] : vector<2x1024xf32> to vector<1024xf32>
    %11 = vector.shape_cast %10 : vector<1024xf32> to vector<1x1024xf32>
    %c0_9 = arith.constant 0 : index
    %c0_10 = arith.constant 0 : index
    %12 = vector.load %arg3[%c0_9, %c0_10] : memref<1024x64xf32, #tpu.memory_space<vmem>>, vector<1024x64xf32>
    %cst_11 = arith.constant dense<0.000000e+00> : vector<1x64xf32>
    %13 = tpu.matmul %11, %12, %cst_11 {dimension_numbers = #tpu.dot_dimension_numbers<[1], [0], [0], [1], [0, 0, 1, 1], [], []>} : vector<1x1024xf32>, vector<1024x64xf32>, vector<1x64xf32> -> vector<1x64xf32>
    %cst_12 = arith.constant 3.200000e+01 : f32
    %14 = vector.broadcast %cst_12 : f32 to vector<1x64xf32>
    %15 = arith.divf %13, %14 : vector<1x64xf32>
    %16 = arith.mulf %8, %8 : vector<1x64xf32>
    %17 = arith.subf %15, %16 : vector<1x64xf32>
    %cst_13 = arith.constant 0.000000e+00 : f32
    %18 = vector.broadcast %cst_13 : f32 to vector<1x64xf32>
    %19 = arith.maximumf %17, %18 : vector<1x64xf32>
    %c0_14 = arith.constant 0 : index
    %c0_15 = arith.constant 0 : index
    %20 = vector.load %arg4[%c0_14, %c0_15] : memref<1x64xf32, #tpu.memory_space<vmem>>, vector<1x64xf32>
    %cst_16 = arith.constant 9.99999974E-6 : f32
    %21 = vector.broadcast %cst_16 : f32 to vector<1x64xf32>
    %22 = arith.addf %19, %21 : vector<1x64xf32>
    %23 = math.rsqrt %22 : vector<1x64xf32>
    %24 = arith.mulf %20, %23 : vector<1x64xf32>
    %c0_17 = arith.constant 0 : index
    %c0_18 = arith.constant 0 : index
    %25 = vector.load %arg5[%c0_17, %c0_18] : memref<1x64xf32, #tpu.memory_space<vmem>>, vector<1x64xf32>
    %26 = arith.mulf %8, %24 : vector<1x64xf32>
    %27 = arith.subf %25, %26 : vector<1x64xf32>
    %c0_19 = arith.constant 0 : index
    %c0_20 = arith.constant 0 : index
    %28 = vector.load %arg3[%c0_19, %c0_20] : memref<1024x64xf32, #tpu.memory_space<vmem>>, vector<1024x64xf32>
    %cst_21 = arith.constant dense<0.000000e+00> : vector<1x1024xf32>
    %29 = tpu.matmul %24, %28, %cst_21 {dimension_numbers = #tpu.dot_dimension_numbers<[1], [1], [0], [0], [0, 0, 1, 0], [], []>} : vector<1x64xf32>, vector<1024x64xf32>, vector<1x1024xf32> -> vector<1x1024xf32>
    %30 = vector.broadcast %29 : vector<1x1024xf32> to vector<2x1024xf32>
    %31 = arith.mulf %2, %30 : vector<2x1024xf32>
    %c0_22 = arith.constant 0 : index
    %c0_23 = arith.constant 0 : index
    %32 = vector.load %arg3[%c0_22, %c0_23] : memref<1024x64xf32, #tpu.memory_space<vmem>>, vector<1024x64xf32>
    %cst_24 = arith.constant dense<0.000000e+00> : vector<1x1024xf32>
    %33 = tpu.matmul %27, %32, %cst_24 {dimension_numbers = #tpu.dot_dimension_numbers<[1], [1], [0], [0], [0, 0, 1, 0], [], []>} : vector<1x64xf32>, vector<1024x64xf32>, vector<1x1024xf32> -> vector<1x1024xf32>
    %34 = vector.broadcast %33 : vector<1x1024xf32> to vector<2x1024xf32>
    %35 = arith.addf %31, %34 : vector<2x1024xf32>
    %cst_25 = arith.constant 0.000000e+00 : f32
    %36 = vector.broadcast %cst_25 : f32 to vector<2x1024xf32>
    %37 = arith.maximumf %35, %36 : vector<2x1024xf32>
    %38 = arith.truncf %37 : vector<2x1024xf32> to vector<2x1024xbf16>
    %c0_26 = arith.constant 0 : index
    %c0_27 = arith.constant 0 : index
    %39 = vector.load %arg6[%c0_26, %c0_27] : memref<2x1024xbf16, #tpu.memory_space<vmem>>, vector<2x1024xbf16>
    tpu.vector_store %arg6[%c0_26, %c0_27], %38 {strides = array<i32>} : memref<2x1024xbf16, #tpu.memory_space<vmem>>, vector<2x1024xbf16>,
    return
  }
  func.func @transform_0(%arg0: i32) -> (i32, i32) {
    %c0_i32 = arith.constant 0 : i32
    %c0_i32_0 = arith.constant 0 : i32
    %c0_i32_1 = arith.constant 0 : i32
    return %c0_i32, %c0_i32_0 : i32, i32
  }
  func.func @transform_1(%arg0: i32) -> (i32, i32) {
    %c0_i32 = arith.constant 0 : i32
    %c0_i32_0 = arith.constant 0 : i32
    %c0_i32_1 = arith.constant 0 : i32
    return %c0_i32, %c0_i32_0 : i32, i32
  }
  func.func @transform_2(%arg0: i32) -> (i32, i32) {
    %c0_i32 = arith.constant 0 : i32
    %c0_i32_0 = arith.constant 0 : i32
    %c0_i32_1 = arith.constant 0 : i32
    return %c0_i32, %c0_i32_0 : i32, i32
  }
  func.func @transform_3(%arg0: i32) -> (i32, i32) {
    %c0_i32 = arith.constant 0 : i32
    %c0_i32_0 = arith.constant 0 : i32
    %c0_i32_1 = arith.constant 0 : i32
    return %c0_i32, %c0_i32_0 : i32, i32
  }
  func.func @transform_4(%arg0: i32) -> (i32, i32) {
    %c0_i32 = arith.constant 0 : i32
    %c0_i32_0 = arith.constant 0 : i32
    %c0_i32_1 = arith.constant 0 : i32
    return %c0_i32, %c0_i32_0 : i32, i32
  }
  func.func @transform_5(%arg0: i32) -> (i32, i32) {
    %c0_i32 = arith.constant 0 : i32
    %c0_i32_0 = arith.constant 0 : i32
    %c0_i32_1 = arith.constant 0 : i32
    return %c0_i32, %c0_i32_0 : i32, i32
  }
}

module attributes {stable_mosaic.version = 11 : i64} {
  func.func @_deconv_stats_kernel(%arg0: i32, %arg1: memref<16x32x64xbf16, #tpu.memory_space<vmem>>, %arg2: memref<9x64x128xbf16, #tpu.memory_space<vmem>>, %arg3: memref<4x32x128xbf16, #tpu.memory_space<vmem>>, %arg4: memref<1x2x4x32xf32, #tpu.memory_space<vmem>>) attributes {dimension_semantics = [#tpu.dimension_semantics<parallel>], iteration_bounds = array<i64: 1>, scalar_prefetch = 0 : i64, scratch_operands = 0 : i64, tpu.core_type = #tpu.core_type<tc>, window_params = [{pipeline_mode = #tpu.pipeline_mode<synchronous>, transform_indices = @transform_0, window_bounds = array<i64: 16, 32, 64>}, {transform_indices = @transform_1, window_bounds = array<i64: 9, 64, 128>}, {transform_indices = @transform_2, window_bounds = array<i64: 4, 32, 128>}, {transform_indices = @transform_3, window_bounds = array<i64: 1, 2, 4, 32>}]} {
    %c0 = arith.constant 0 : index
    %c0_0 = arith.constant 0 : index
    %c0_1 = arith.constant 0 : index
    %0 = vector.load %arg1[%c0, %c0_0, %c0_1] : memref<16x32x64xbf16, #tpu.memory_space<vmem>>, vector<1x32x64xbf16>
    %1 = vector.shape_cast %0 : vector<1x32x64xbf16> to vector<32x64xbf16>
    %c0_2 = arith.constant 0 : index
    %c0_3 = arith.constant 0 : index
    %c0_4 = arith.constant 0 : index
    %2 = vector.load %arg2[%c0_2, %c0_3, %c0_4] : memref<9x64x128xbf16, #tpu.memory_space<vmem>>, vector<1x64x128xbf16>
    %3 = vector.shape_cast %2 : vector<1x64x128xbf16> to vector<64x128xbf16>
    %cst = arith.constant dense<0.000000e+00> : vector<32x128xf32>
    %4 = tpu.matmul %1, %3, %cst {dimension_numbers = #tpu.dot_dimension_numbers<[1], [0], [0], [1], [0, 0, 1, 1], [], []>} : vector<32x64xbf16>, vector<64x128xbf16>, vector<32x128xf32> -> vector<32x128xf32>
    %c1 = arith.constant 1 : index
    %c0_5 = arith.constant 0 : index
    %c0_6 = arith.constant 0 : index
    %5 = vector.load %arg1[%c1, %c0_5, %c0_6] : memref<16x32x64xbf16, #tpu.memory_space<vmem>>, vector<1x32x64xbf16>
    %6 = vector.shape_cast %5 : vector<1x32x64xbf16> to vector<32x64xbf16>
    %c1_7 = arith.constant 1 : index
    %c0_8 = arith.constant 0 : index
    %c0_9 = arith.constant 0 : index
    %7 = vector.load %arg2[%c1_7, %c0_8, %c0_9] : memref<9x64x128xbf16, #tpu.memory_space<vmem>>, vector<1x64x128xbf16>
    %8 = vector.shape_cast %7 : vector<1x64x128xbf16> to vector<64x128xbf16>
    %cst_10 = arith.constant dense<0.000000e+00> : vector<32x128xf32>
    %9 = tpu.matmul %6, %8, %cst_10 {dimension_numbers = #tpu.dot_dimension_numbers<[1], [0], [0], [1], [0, 0, 1, 1], [], []>} : vector<32x64xbf16>, vector<64x128xbf16>, vector<32x128xf32> -> vector<32x128xf32>
    %10 = arith.addf %4, %9 : vector<32x128xf32>
    %c2 = arith.constant 2 : index
    %c0_11 = arith.constant 0 : index
    %c0_12 = arith.constant 0 : index
    %11 = vector.load %arg1[%c2, %c0_11, %c0_12] : memref<16x32x64xbf16, #tpu.memory_space<vmem>>, vector<1x32x64xbf16>
    %12 = vector.shape_cast %11 : vector<1x32x64xbf16> to vector<32x64xbf16>
    %c3 = arith.constant 3 : index
    %c0_13 = arith.constant 0 : index
    %c0_14 = arith.constant 0 : index
    %13 = vector.load %arg2[%c3, %c0_13, %c0_14] : memref<9x64x128xbf16, #tpu.memory_space<vmem>>, vector<1x64x128xbf16>
    %14 = vector.shape_cast %13 : vector<1x64x128xbf16> to vector<64x128xbf16>
    %cst_15 = arith.constant dense<0.000000e+00> : vector<32x128xf32>
    %15 = tpu.matmul %12, %14, %cst_15 {dimension_numbers = #tpu.dot_dimension_numbers<[1], [0], [0], [1], [0, 0, 1, 1], [], []>} : vector<32x64xbf16>, vector<64x128xbf16>, vector<32x128xf32> -> vector<32x128xf32>
    %16 = arith.addf %10, %15 : vector<32x128xf32>
    %c3_16 = arith.constant 3 : index
    %c0_17 = arith.constant 0 : index
    %c0_18 = arith.constant 0 : index
    %17 = vector.load %arg1[%c3_16, %c0_17, %c0_18] : memref<16x32x64xbf16, #tpu.memory_space<vmem>>, vector<1x32x64xbf16>
    %18 = vector.shape_cast %17 : vector<1x32x64xbf16> to vector<32x64xbf16>
    %c4 = arith.constant 4 : index
    %c0_19 = arith.constant 0 : index
    %c0_20 = arith.constant 0 : index
    %19 = vector.load %arg2[%c4, %c0_19, %c0_20] : memref<9x64x128xbf16, #tpu.memory_space<vmem>>, vector<1x64x128xbf16>
    %20 = vector.shape_cast %19 : vector<1x64x128xbf16> to vector<64x128xbf16>
    %cst_21 = arith.constant dense<0.000000e+00> : vector<32x128xf32>
    %21 = tpu.matmul %18, %20, %cst_21 {dimension_numbers = #tpu.dot_dimension_numbers<[1], [0], [0], [1], [0, 0, 1, 1], [], []>} : vector<32x64xbf16>, vector<64x128xbf16>, vector<32x128xf32> -> vector<32x128xf32>
    %22 = arith.addf %16, %21 : vector<32x128xf32>
    %23 = arith.truncf %22 : vector<32x128xf32> to vector<32x128xbf16>
    %c0_22 = arith.constant 0 : index
    %c0_23 = arith.constant 0 : index
    %c0_24 = arith.constant 0 : index
    %24 = vector.load %arg3[%c0_22, %c0_23, %c0_24] : memref<4x32x128xbf16, #tpu.memory_space<vmem>>, vector<1x32x128xbf16>
    %25 = vector.shape_cast %24 : vector<1x32x128xbf16> to vector<32x128xbf16>
    %26 = vector.shape_cast %23 : vector<32x128xbf16> to vector<1x32x128xbf16>
    tpu.vector_store %arg3[%c0_22, %c0_23, %c0_24], %26 {strides = array<i32>} : memref<4x32x128xbf16, #tpu.memory_space<vmem>>, vector<1x32x128xbf16>,
    %cst_25 = arith.constant dense<0.000000e+00> : vector<32xf32>
    %27 = vector.multi_reduction <add>, %22, %cst_25 [1] : vector<32x128xf32> to vector<32xf32>
    %c0_26 = arith.constant 0 : index
    %c0_27 = arith.constant 0 : index
    %c0_28 = arith.constant 0 : index
    %c0_29 = arith.constant 0 : index
    %28 = vector.load %arg4[%c0_26, %c0_27, %c0_28, %c0_29] : memref<1x2x4x32xf32, #tpu.memory_space<vmem>>, vector<1x1x1x32xf32>
    %29 = vector.shape_cast %28 : vector<1x1x1x32xf32> to vector<32xf32>
    %30 = vector.shape_cast %27 : vector<32xf32> to vector<1x1x1x32xf32>
    tpu.vector_store %arg4[%c0_26, %c0_27, %c0_28, %c0_29], %30 {strides = array<i32>} : memref<1x2x4x32xf32, #tpu.memory_space<vmem>>, vector<1x1x1x32xf32>,
    %31 = arith.mulf %22, %22 : vector<32x128xf32>
    %cst_30 = arith.constant dense<0.000000e+00> : vector<32xf32>
    %32 = vector.multi_reduction <add>, %31, %cst_30 [1] : vector<32x128xf32> to vector<32xf32>
    %c0_31 = arith.constant 0 : index
    %c1_32 = arith.constant 1 : index
    %c0_33 = arith.constant 0 : index
    %c0_34 = arith.constant 0 : index
    %33 = vector.load %arg4[%c0_31, %c1_32, %c0_33, %c0_34] : memref<1x2x4x32xf32, #tpu.memory_space<vmem>>, vector<1x1x1x32xf32>
    %34 = vector.shape_cast %33 : vector<1x1x1x32xf32> to vector<32xf32>
    %35 = vector.shape_cast %32 : vector<32xf32> to vector<1x1x1x32xf32>
    tpu.vector_store %arg4[%c0_31, %c1_32, %c0_33, %c0_34], %35 {strides = array<i32>} : memref<1x2x4x32xf32, #tpu.memory_space<vmem>>, vector<1x1x1x32xf32>,
    %c4_35 = arith.constant 4 : index
    %c0_36 = arith.constant 0 : index
    %c0_37 = arith.constant 0 : index
    %36 = vector.load %arg1[%c4_35, %c0_36, %c0_37] : memref<16x32x64xbf16, #tpu.memory_space<vmem>>, vector<1x32x64xbf16>
    %37 = vector.shape_cast %36 : vector<1x32x64xbf16> to vector<32x64xbf16>
    %c1_38 = arith.constant 1 : index
    %c0_39 = arith.constant 0 : index
    %c0_40 = arith.constant 0 : index
    %38 = vector.load %arg2[%c1_38, %c0_39, %c0_40] : memref<9x64x128xbf16, #tpu.memory_space<vmem>>, vector<1x64x128xbf16>
    %39 = vector.shape_cast %38 : vector<1x64x128xbf16> to vector<64x128xbf16>
    %cst_41 = arith.constant dense<0.000000e+00> : vector<32x128xf32>
    %40 = tpu.matmul %37, %39, %cst_41 {dimension_numbers = #tpu.dot_dimension_numbers<[1], [0], [0], [1], [0, 0, 1, 1], [], []>} : vector<32x64xbf16>, vector<64x128xbf16>, vector<32x128xf32> -> vector<32x128xf32>
    %c5 = arith.constant 5 : index
    %c0_42 = arith.constant 0 : index
    %c0_43 = arith.constant 0 : index
    %41 = vector.load %arg1[%c5, %c0_42, %c0_43] : memref<16x32x64xbf16, #tpu.memory_space<vmem>>, vector<1x32x64xbf16>
    %42 = vector.shape_cast %41 : vector<1x32x64xbf16> to vector<32x64xbf16>
    %c2_44 = arith.constant 2 : index
    %c0_45 = arith.constant 0 : index
    %c0_46 = arith.constant 0 : index
    %43 = vector.load %arg2[%c2_44, %c0_45, %c0_46] : memref<9x64x128xbf16, #tpu.memory_space<vmem>>, vector<1x64x128xbf16>
    %44 = vector.shape_cast %43 : vector<1x64x128xbf16> to vector<64x128xbf16>
    %cst_47 = arith.constant dense<0.000000e+00> : vector<32x128xf32>
    %45 = tpu.matmul %42, %44, %cst_47 {dimension_numbers = #tpu.dot_dimension_numbers<[1], [0], [0], [1], [0, 0, 1, 1], [], []>} : vector<32x64xbf16>, vector<64x128xbf16>, vector<32x128xf32> -> vector<32x128xf32>
    %46 = arith.addf %40, %45 : vector<32x128xf32>
    %c6 = arith.constant 6 : index
    %c0_48 = arith.constant 0 : index
    %c0_49 = arith.constant 0 : index
    %47 = vector.load %arg1[%c6, %c0_48, %c0_49] : memref<16x32x64xbf16, #tpu.memory_space<vmem>>, vector<1x32x64xbf16>
    %48 = vector.shape_cast %47 : vector<1x32x64xbf16> to vector<32x64xbf16>
    %c4_50 = arith.constant 4 : index
    %c0_51 = arith.constant 0 : index
    %c0_52 = arith.constant 0 : index
    %49 = vector.load %arg2[%c4_50, %c0_51, %c0_52] : memref<9x64x128xbf16, #tpu.memory_space<vmem>>, vector<1x64x128xbf16>
    %50 = vector.shape_cast %49 : vector<1x64x128xbf16> to vector<64x128xbf16>
    %cst_53 = arith.constant dense<0.000000e+00> : vector<32x128xf32>
    %51 = tpu.matmul %48, %50, %cst_53 {dimension_numbers = #tpu.dot_dimension_numbers<[1], [0], [0], [1], [0, 0, 1, 1], [], []>} : vector<32x64xbf16>, vector<64x128xbf16>, vector<32x128xf32> -> vector<32x128xf32>
    %52 = arith.addf %46, %51 : vector<32x128xf32>
    %c7 = arith.constant 7 : index
    %c0_54 = arith.constant 0 : index
    %c0_55 = arith.constant 0 : index
    %53 = vector.load %arg1[%c7, %c0_54, %c0_55] : memref<16x32x64xbf16, #tpu.memory_space<vmem>>, vector<1x32x64xbf16>
    %54 = vector.shape_cast %53 : vector<1x32x64xbf16> to vector<32x64xbf16>
    %c5_56 = arith.constant 5 : index
    %c0_57 = arith.constant 0 : index
    %c0_58 = arith.constant 0 : index
    %55 = vector.load %arg2[%c5_56, %c0_57, %c0_58] : memref<9x64x128xbf16, #tpu.memory_space<vmem>>, vector<1x64x128xbf16>
    %56 = vector.shape_cast %55 : vector<1x64x128xbf16> to vector<64x128xbf16>
    %cst_59 = arith.constant dense<0.000000e+00> : vector<32x128xf32>
    %57 = tpu.matmul %54, %56, %cst_59 {dimension_numbers = #tpu.dot_dimension_numbers<[1], [0], [0], [1], [0, 0, 1, 1], [], []>} : vector<32x64xbf16>, vector<64x128xbf16>, vector<32x128xf32> -> vector<32x128xf32>
    %58 = arith.addf %52, %57 : vector<32x128xf32>
    %59 = arith.truncf %58 : vector<32x128xf32> to vector<32x128xbf16>
    %c1_60 = arith.constant 1 : index
    %c0_61 = arith.constant 0 : index
    %c0_62 = arith.constant 0 : index
    %60 = vector.load %arg3[%c1_60, %c0_61, %c0_62] : memref<4x32x128xbf16, #tpu.memory_space<vmem>>, vector<1x32x128xbf16>
    %61 = vector.shape_cast %60 : vector<1x32x128xbf16> to vector<32x128xbf16>
    %62 = vector.shape_cast %59 : vector<32x128xbf16> to vector<1x32x128xbf16>
    tpu.vector_store %arg3[%c1_60, %c0_61, %c0_62], %62 {strides = array<i32>} : memref<4x32x128xbf16, #tpu.memory_space<vmem>>, vector<1x32x128xbf16>,
    %cst_63 = arith.constant dense<0.000000e+00> : vector<32xf32>
    %63 = vector.multi_reduction <add>, %58, %cst_63 [1] : vector<32x128xf32> to vector<32xf32>
    %c0_64 = arith.constant 0 : index
    %c0_65 = arith.constant 0 : index
    %c1_66 = arith.constant 1 : index
    %c0_67 = arith.constant 0 : index
    %64 = vector.load %arg4[%c0_64, %c0_65, %c1_66, %c0_67] : memref<1x2x4x32xf32, #tpu.memory_space<vmem>>, vector<1x1x1x32xf32>
    %65 = vector.shape_cast %64 : vector<1x1x1x32xf32> to vector<32xf32>
    %66 = vector.shape_cast %63 : vector<32xf32> to vector<1x1x1x32xf32>
    tpu.vector_store %arg4[%c0_64, %c0_65, %c1_66, %c0_67], %66 {strides = array<i32>} : memref<1x2x4x32xf32, #tpu.memory_space<vmem>>, vector<1x1x1x32xf32>,
    %67 = arith.mulf %58, %58 : vector<32x128xf32>
    %cst_68 = arith.constant dense<0.000000e+00> : vector<32xf32>
    %68 = vector.multi_reduction <add>, %67, %cst_68 [1] : vector<32x128xf32> to vector<32xf32>
    %c0_69 = arith.constant 0 : index
    %c1_70 = arith.constant 1 : index
    %c1_71 = arith.constant 1 : index
    %c0_72 = arith.constant 0 : index
    %69 = vector.load %arg4[%c0_69, %c1_70, %c1_71, %c0_72] : memref<1x2x4x32xf32, #tpu.memory_space<vmem>>, vector<1x1x1x32xf32>
    %70 = vector.shape_cast %69 : vector<1x1x1x32xf32> to vector<32xf32>
    %71 = vector.shape_cast %68 : vector<32xf32> to vector<1x1x1x32xf32>
    tpu.vector_store %arg4[%c0_69, %c1_70, %c1_71, %c0_72], %71 {strides = array<i32>} : memref<1x2x4x32xf32, #tpu.memory_space<vmem>>, vector<1x1x1x32xf32>,
    %c8 = arith.constant 8 : index
    %c0_73 = arith.constant 0 : index
    %c0_74 = arith.constant 0 : index
    %72 = vector.load %arg1[%c8, %c0_73, %c0_74] : memref<16x32x64xbf16, #tpu.memory_space<vmem>>, vector<1x32x64xbf16>
    %73 = vector.shape_cast %72 : vector<1x32x64xbf16> to vector<32x64xbf16>
    %c3_75 = arith.constant 3 : index
    %c0_76 = arith.constant 0 : index
    %c0_77 = arith.constant 0 : index
    %74 = vector.load %arg2[%c3_75, %c0_76, %c0_77] : memref<9x64x128xbf16, #tpu.memory_space<vmem>>, vector<1x64x128xbf16>
    %75 = vector.shape_cast %74 : vector<1x64x128xbf16> to vector<64x128xbf16>
    %cst_78 = arith.constant dense<0.000000e+00> : vector<32x128xf32>
    %76 = tpu.matmul %73, %75, %cst_78 {dimension_numbers = #tpu.dot_dimension_numbers<[1], [0], [0], [1], [0, 0, 1, 1], [], []>} : vector<32x64xbf16>, vector<64x128xbf16>, vector<32x128xf32> -> vector<32x128xf32>
    %c9 = arith.constant 9 : index
    %c0_79 = arith.constant 0 : index
    %c0_80 = arith.constant 0 : index
    %77 = vector.load %arg1[%c9, %c0_79, %c0_80] : memref<16x32x64xbf16, #tpu.memory_space<vmem>>, vector<1x32x64xbf16>
    %78 = vector.shape_cast %77 : vector<1x32x64xbf16> to vector<32x64xbf16>
    %c4_81 = arith.constant 4 : index
    %c0_82 = arith.constant 0 : index
    %c0_83 = arith.constant 0 : index
    %79 = vector.load %arg2[%c4_81, %c0_82, %c0_83] : memref<9x64x128xbf16, #tpu.memory_space<vmem>>, vector<1x64x128xbf16>
    %80 = vector.shape_cast %79 : vector<1x64x128xbf16> to vector<64x128xbf16>
    %cst_84 = arith.constant dense<0.000000e+00> : vector<32x128xf32>
    %81 = tpu.matmul %78, %80, %cst_84 {dimension_numbers = #tpu.dot_dimension_numbers<[1], [0], [0], [1], [0, 0, 1, 1], [], []>} : vector<32x64xbf16>, vector<64x128xbf16>, vector<32x128xf32> -> vector<32x128xf32>
    %82 = arith.addf %76, %81 : vector<32x128xf32>
    %c10 = arith.constant 10 : index
    %c0_85 = arith.constant 0 : index
    %c0_86 = arith.constant 0 : index
    %83 = vector.load %arg1[%c10, %c0_85, %c0_86] : memref<16x32x64xbf16, #tpu.memory_space<vmem>>, vector<1x32x64xbf16>
    %84 = vector.shape_cast %83 : vector<1x32x64xbf16> to vector<32x64xbf16>
    %c6_87 = arith.constant 6 : index
    %c0_88 = arith.constant 0 : index
    %c0_89 = arith.constant 0 : index
    %85 = vector.load %arg2[%c6_87, %c0_88, %c0_89] : memref<9x64x128xbf16, #tpu.memory_space<vmem>>, vector<1x64x128xbf16>
    %86 = vector.shape_cast %85 : vector<1x64x128xbf16> to vector<64x128xbf16>
    %cst_90 = arith.constant dense<0.000000e+00> : vector<32x128xf32>
    %87 = tpu.matmul %84, %86, %cst_90 {dimension_numbers = #tpu.dot_dimension_numbers<[1], [0], [0], [1], [0, 0, 1, 1], [], []>} : vector<32x64xbf16>, vector<64x128xbf16>, vector<32x128xf32> -> vector<32x128xf32>
    %88 = arith.addf %82, %87 : vector<32x128xf32>
    %c11 = arith.constant 11 : index
    %c0_91 = arith.constant 0 : index
    %c0_92 = arith.constant 0 : index
    %89 = vector.load %arg1[%c11, %c0_91, %c0_92] : memref<16x32x64xbf16, #tpu.memory_space<vmem>>, vector<1x32x64xbf16>
    %90 = vector.shape_cast %89 : vector<1x32x64xbf16> to vector<32x64xbf16>
    %c7_93 = arith.constant 7 : index
    %c0_94 = arith.constant 0 : index
    %c0_95 = arith.constant 0 : index
    %91 = vector.load %arg2[%c7_93, %c0_94, %c0_95] : memref<9x64x128xbf16, #tpu.memory_space<vmem>>, vector<1x64x128xbf16>
    %92 = vector.shape_cast %91 : vector<1x64x128xbf16> to vector<64x128xbf16>
    %cst_96 = arith.constant dense<0.000000e+00> : vector<32x128xf32>
    %93 = tpu.matmul %90, %92, %cst_96 {dimension_numbers = #tpu.dot_dimension_numbers<[1], [0], [0], [1], [0, 0, 1, 1], [], []>} : vector<32x64xbf16>, vector<64x128xbf16>, vector<32x128xf32> -> vector<32x128xf32>
    %94 = arith.addf %88, %93 : vector<32x128xf32>
    %95 = arith.truncf %94 : vector<32x128xf32> to vector<32x128xbf16>
    %c2_97 = arith.constant 2 : index
    %c0_98 = arith.constant 0 : index
    %c0_99 = arith.constant 0 : index
    %96 = vector.load %arg3[%c2_97, %c0_98, %c0_99] : memref<4x32x128xbf16, #tpu.memory_space<vmem>>, vector<1x32x128xbf16>
    %97 = vector.shape_cast %96 : vector<1x32x128xbf16> to vector<32x128xbf16>
    %98 = vector.shape_cast %95 : vector<32x128xbf16> to vector<1x32x128xbf16>
    tpu.vector_store %arg3[%c2_97, %c0_98, %c0_99], %98 {strides = array<i32>} : memref<4x32x128xbf16, #tpu.memory_space<vmem>>, vector<1x32x128xbf16>,
    %cst_100 = arith.constant dense<0.000000e+00> : vector<32xf32>
    %99 = vector.multi_reduction <add>, %94, %cst_100 [1] : vector<32x128xf32> to vector<32xf32>
    %c0_101 = arith.constant 0 : index
    %c0_102 = arith.constant 0 : index
    %c2_103 = arith.constant 2 : index
    %c0_104 = arith.constant 0 : index
    %100 = vector.load %arg4[%c0_101, %c0_102, %c2_103, %c0_104] : memref<1x2x4x32xf32, #tpu.memory_space<vmem>>, vector<1x1x1x32xf32>
    %101 = vector.shape_cast %100 : vector<1x1x1x32xf32> to vector<32xf32>
    %102 = vector.shape_cast %99 : vector<32xf32> to vector<1x1x1x32xf32>
    tpu.vector_store %arg4[%c0_101, %c0_102, %c2_103, %c0_104], %102 {strides = array<i32>} : memref<1x2x4x32xf32, #tpu.memory_space<vmem>>, vector<1x1x1x32xf32>,
    %103 = arith.mulf %94, %94 : vector<32x128xf32>
    %cst_105 = arith.constant dense<0.000000e+00> : vector<32xf32>
    %104 = vector.multi_reduction <add>, %103, %cst_105 [1] : vector<32x128xf32> to vector<32xf32>
    %c0_106 = arith.constant 0 : index
    %c1_107 = arith.constant 1 : index
    %c2_108 = arith.constant 2 : index
    %c0_109 = arith.constant 0 : index
    %105 = vector.load %arg4[%c0_106, %c1_107, %c2_108, %c0_109] : memref<1x2x4x32xf32, #tpu.memory_space<vmem>>, vector<1x1x1x32xf32>
    %106 = vector.shape_cast %105 : vector<1x1x1x32xf32> to vector<32xf32>
    %107 = vector.shape_cast %104 : vector<32xf32> to vector<1x1x1x32xf32>
    tpu.vector_store %arg4[%c0_106, %c1_107, %c2_108, %c0_109], %107 {strides = array<i32>} : memref<1x2x4x32xf32, #tpu.memory_space<vmem>>, vector<1x1x1x32xf32>,
    %c12 = arith.constant 12 : index
    %c0_110 = arith.constant 0 : index
    %c0_111 = arith.constant 0 : index
    %108 = vector.load %arg1[%c12, %c0_110, %c0_111] : memref<16x32x64xbf16, #tpu.memory_space<vmem>>, vector<1x32x64xbf16>
    %109 = vector.shape_cast %108 : vector<1x32x64xbf16> to vector<32x64xbf16>
    %c4_112 = arith.constant 4 : index
    %c0_113 = arith.constant 0 : index
    %c0_114 = arith.constant 0 : index
    %110 = vector.load %arg2[%c4_112, %c0_113, %c0_114] : memref<9x64x128xbf16, #tpu.memory_space<vmem>>, vector<1x64x128xbf16>
    %111 = vector.shape_cast %110 : vector<1x64x128xbf16> to vector<64x128xbf16>
    %cst_115 = arith.constant dense<0.000000e+00> : vector<32x128xf32>
    %112 = tpu.matmul %109, %111, %cst_115 {dimension_numbers = #tpu.dot_dimension_numbers<[1], [0], [0], [1], [0, 0, 1, 1], [], []>} : vector<32x64xbf16>, vector<64x128xbf16>, vector<32x128xf32> -> vector<32x128xf32>
    %c13 = arith.constant 13 : index
    %c0_116 = arith.constant 0 : index
    %c0_117 = arith.constant 0 : index
    %113 = vector.load %arg1[%c13, %c0_116, %c0_117] : memref<16x32x64xbf16, #tpu.memory_space<vmem>>, vector<1x32x64xbf16>
    %114 = vector.shape_cast %113 : vector<1x32x64xbf16> to vector<32x64xbf16>
    %c5_118 = arith.constant 5 : index
    %c0_119 = arith.constant 0 : index
    %c0_120 = arith.constant 0 : index
    %115 = vector.load %arg2[%c5_118, %c0_119, %c0_120] : memref<9x64x128xbf16, #tpu.memory_space<vmem>>, vector<1x64x128xbf16>
    %116 = vector.shape_cast %115 : vector<1x64x128xbf16> to vector<64x128xbf16>
    %cst_121 = arith.constant dense<0.000000e+00> : vector<32x128xf32>
    %117 = tpu.matmul %114, %116, %cst_121 {dimension_numbers = #tpu.dot_dimension_numbers<[1], [0], [0], [1], [0, 0, 1, 1], [], []>} : vector<32x64xbf16>, vector<64x128xbf16>, vector<32x128xf32> -> vector<32x128xf32>
    %118 = arith.addf %112, %117 : vector<32x128xf32>
    %c14 = arith.constant 14 : index
    %c0_122 = arith.constant 0 : index
    %c0_123 = arith.constant 0 : index
    %119 = vector.load %arg1[%c14, %c0_122, %c0_123] : memref<16x32x64xbf16, #tpu.memory_space<vmem>>, vector<1x32x64xbf16>
    %120 = vector.shape_cast %119 : vector<1x32x64xbf16> to vector<32x64xbf16>
    %c7_124 = arith.constant 7 : index
    %c0_125 = arith.constant 0 : index
    %c0_126 = arith.constant 0 : index
    %121 = vector.load %arg2[%c7_124, %c0_125, %c0_126] : memref<9x64x128xbf16, #tpu.memory_space<vmem>>, vector<1x64x128xbf16>
    %122 = vector.shape_cast %121 : vector<1x64x128xbf16> to vector<64x128xbf16>
    %cst_127 = arith.constant dense<0.000000e+00> : vector<32x128xf32>
    %123 = tpu.matmul %120, %122, %cst_127 {dimension_numbers = #tpu.dot_dimension_numbers<[1], [0], [0], [1], [0, 0, 1, 1], [], []>} : vector<32x64xbf16>, vector<64x128xbf16>, vector<32x128xf32> -> vector<32x128xf32>
    %124 = arith.addf %118, %123 : vector<32x128xf32>
    %c15 = arith.constant 15 : index
    %c0_128 = arith.constant 0 : index
    %c0_129 = arith.constant 0 : index
    %125 = vector.load %arg1[%c15, %c0_128, %c0_129] : memref<16x32x64xbf16, #tpu.memory_space<vmem>>, vector<1x32x64xbf16>
    %126 = vector.shape_cast %125 : vector<1x32x64xbf16> to vector<32x64xbf16>
    %c8_130 = arith.constant 8 : index
    %c0_131 = arith.constant 0 : index
    %c0_132 = arith.constant 0 : index
    %127 = vector.load %arg2[%c8_130, %c0_131, %c0_132] : memref<9x64x128xbf16, #tpu.memory_space<vmem>>, vector<1x64x128xbf16>
    %128 = vector.shape_cast %127 : vector<1x64x128xbf16> to vector<64x128xbf16>
    %cst_133 = arith.constant dense<0.000000e+00> : vector<32x128xf32>
    %129 = tpu.matmul %126, %128, %cst_133 {dimension_numbers = #tpu.dot_dimension_numbers<[1], [0], [0], [1], [0, 0, 1, 1], [], []>} : vector<32x64xbf16>, vector<64x128xbf16>, vector<32x128xf32> -> vector<32x128xf32>
    %130 = arith.addf %124, %129 : vector<32x128xf32>
    %131 = arith.truncf %130 : vector<32x128xf32> to vector<32x128xbf16>
    %c3_134 = arith.constant 3 : index
    %c0_135 = arith.constant 0 : index
    %c0_136 = arith.constant 0 : index
    %132 = vector.load %arg3[%c3_134, %c0_135, %c0_136] : memref<4x32x128xbf16, #tpu.memory_space<vmem>>, vector<1x32x128xbf16>
    %133 = vector.shape_cast %132 : vector<1x32x128xbf16> to vector<32x128xbf16>
    %134 = vector.shape_cast %131 : vector<32x128xbf16> to vector<1x32x128xbf16>
    tpu.vector_store %arg3[%c3_134, %c0_135, %c0_136], %134 {strides = array<i32>} : memref<4x32x128xbf16, #tpu.memory_space<vmem>>, vector<1x32x128xbf16>,
    %cst_137 = arith.constant dense<0.000000e+00> : vector<32xf32>
    %135 = vector.multi_reduction <add>, %130, %cst_137 [1] : vector<32x128xf32> to vector<32xf32>
    %c0_138 = arith.constant 0 : index
    %c0_139 = arith.constant 0 : index
    %c3_140 = arith.constant 3 : index
    %c0_141 = arith.constant 0 : index
    %136 = vector.load %arg4[%c0_138, %c0_139, %c3_140, %c0_141] : memref<1x2x4x32xf32, #tpu.memory_space<vmem>>, vector<1x1x1x32xf32>
    %137 = vector.shape_cast %136 : vector<1x1x1x32xf32> to vector<32xf32>
    %138 = vector.shape_cast %135 : vector<32xf32> to vector<1x1x1x32xf32>
    tpu.vector_store %arg4[%c0_138, %c0_139, %c3_140, %c0_141], %138 {strides = array<i32>} : memref<1x2x4x32xf32, #tpu.memory_space<vmem>>, vector<1x1x1x32xf32>,
    %139 = arith.mulf %130, %130 : vector<32x128xf32>
    %cst_142 = arith.constant dense<0.000000e+00> : vector<32xf32>
    %140 = vector.multi_reduction <add>, %139, %cst_142 [1] : vector<32x128xf32> to vector<32xf32>
    %c0_143 = arith.constant 0 : index
    %c1_144 = arith.constant 1 : index
    %c3_145 = arith.constant 3 : index
    %c0_146 = arith.constant 0 : index
    %141 = vector.load %arg4[%c0_143, %c1_144, %c3_145, %c0_146] : memref<1x2x4x32xf32, #tpu.memory_space<vmem>>, vector<1x1x1x32xf32>
    %142 = vector.shape_cast %141 : vector<1x1x1x32xf32> to vector<32xf32>
    %143 = vector.shape_cast %140 : vector<32xf32> to vector<1x1x1x32xf32>
    tpu.vector_store %arg4[%c0_143, %c1_144, %c3_145, %c0_146], %143 {strides = array<i32>} : memref<1x2x4x32xf32, #tpu.memory_space<vmem>>, vector<1x1x1x32xf32>,
    return
  }
  func.func @transform_0(%arg0: i32) -> (i32, i32, i32) {
    %c0_i32 = arith.constant 0 : i32
    %c0_i32_0 = arith.constant 0 : i32
    %c0_i32_1 = arith.constant 0 : i32
    %c0_i32_2 = arith.constant 0 : i32
    return %c0_i32, %c0_i32_0, %c0_i32_1 : i32, i32, i32
  }
  func.func @transform_1(%arg0: i32) -> (i32, i32, i32) {
    %c0_i32 = arith.constant 0 : i32
    %c0_i32_0 = arith.constant 0 : i32
    %c0_i32_1 = arith.constant 0 : i32
    return %c0_i32, %c0_i32_0, %arg0 : i32, i32, i32
  }
  func.func @transform_2(%arg0: i32) -> (i32, i32, i32) {
    %c0_i32 = arith.constant 0 : i32
    %c0_i32_0 = arith.constant 0 : i32
    %c0_i32_1 = arith.constant 0 : i32
    return %c0_i32, %c0_i32_0, %arg0 : i32, i32, i32
  }
  func.func @transform_3(%arg0: i32) -> (i32, i32, i32, i32) {
    %c0_i32 = arith.constant 0 : i32
    %c0_i32_0 = arith.constant 0 : i32
    %c0_i32_1 = arith.constant 0 : i32
    %c0_i32_2 = arith.constant 0 : i32
    return %arg0, %c0_i32, %c0_i32_0, %c0_i32_1 : i32, i32, i32, i32
  }
}

module attributes {stable_mosaic.version = 11 : i64} {
  func.func @_bn_relu_kernel(%arg0: i32, %arg1: memref<4x32x128xbf16, #tpu.memory_space<vmem>>, %arg2: memref<32x1xf32, #tpu.memory_space<vmem>>, %arg3: memref<32x1xf32, #tpu.memory_space<vmem>>, %arg4: memref<4x32x128xbf16, #tpu.memory_space<vmem>>) attributes {dimension_semantics = [#tpu.dimension_semantics<parallel>], iteration_bounds = array<i64: 1>, scalar_prefetch = 0 : i64, scratch_operands = 0 : i64, tpu.core_type = #tpu.core_type<tc>, window_params = [{transform_indices = @transform_0, window_bounds = array<i64: 4, 32, 128>}, {pipeline_mode = #tpu.pipeline_mode<synchronous>, transform_indices = @transform_1, window_bounds = array<i64: 32, 1>}, {pipeline_mode = #tpu.pipeline_mode<synchronous>, transform_indices = @transform_2, window_bounds = array<i64: 32, 1>}, {transform_indices = @transform_3, window_bounds = array<i64: 4, 32, 128>}]} {
    %c0 = arith.constant 0 : index
    %c0_0 = arith.constant 0 : index
    %c0_1 = arith.constant 0 : index
    %0 = vector.load %arg1[%c0, %c0_0, %c0_1] : memref<4x32x128xbf16, #tpu.memory_space<vmem>>, vector<4x32x128xbf16>
    %1 = arith.extf %0 : vector<4x32x128xbf16> to vector<4x32x128xf32>
    %c0_2 = arith.constant 0 : index
    %c0_3 = arith.constant 0 : index
    %2 = vector.load %arg2[%c0_2, %c0_3] : memref<32x1xf32, #tpu.memory_space<vmem>>, vector<32x1xf32>
    %3 = vector.shape_cast %2 : vector<32x1xf32> to vector<1x32x1xf32>
    %4 = vector.broadcast %3 : vector<1x32x1xf32> to vector<4x32x128xf32>
    %5 = arith.mulf %1, %4 : vector<4x32x128xf32>
    %c0_4 = arith.constant 0 : index
    %c0_5 = arith.constant 0 : index
    %6 = vector.load %arg3[%c0_4, %c0_5] : memref<32x1xf32, #tpu.memory_space<vmem>>, vector<32x1xf32>
    %7 = vector.shape_cast %6 : vector<32x1xf32> to vector<1x32x1xf32>
    %8 = vector.broadcast %7 : vector<1x32x1xf32> to vector<4x32x128xf32>
    %9 = arith.addf %5, %8 : vector<4x32x128xf32>
    %cst = arith.constant 0.000000e+00 : f32
    %10 = vector.broadcast %cst : f32 to vector<4x32x128xf32>
    %11 = arith.maximumf %9, %10 : vector<4x32x128xf32>
    %12 = arith.truncf %11 : vector<4x32x128xf32> to vector<4x32x128xbf16>
    %c0_6 = arith.constant 0 : index
    %c0_7 = arith.constant 0 : index
    %c0_8 = arith.constant 0 : index
    %13 = vector.load %arg4[%c0_6, %c0_7, %c0_8] : memref<4x32x128xbf16, #tpu.memory_space<vmem>>, vector<4x32x128xbf16>
    tpu.vector_store %arg4[%c0_6, %c0_7, %c0_8], %12 {strides = array<i32>} : memref<4x32x128xbf16, #tpu.memory_space<vmem>>, vector<4x32x128xbf16>,
    return
  }
  func.func @transform_0(%arg0: i32) -> (i32, i32, i32) {
    %c0_i32 = arith.constant 0 : i32
    %c0_i32_0 = arith.constant 0 : i32
    %c0_i32_1 = arith.constant 0 : i32
    return %c0_i32, %c0_i32_0, %arg0 : i32, i32, i32
  }
  func.func @transform_1(%arg0: i32) -> (i32, i32) {
    %c0_i32 = arith.constant 0 : i32
    %c0_i32_0 = arith.constant 0 : i32
    %c0_i32_1 = arith.constant 0 : i32
    return %c0_i32, %c0_i32_0 : i32, i32
  }
  func.func @transform_2(%arg0: i32) -> (i32, i32) {
    %c0_i32 = arith.constant 0 : i32
    %c0_i32_0 = arith.constant 0 : i32
    %c0_i32_1 = arith.constant 0 : i32
    return %c0_i32, %c0_i32_0 : i32, i32
  }
  func.func @transform_3(%arg0: i32) -> (i32, i32, i32) {
    %c0_i32 = arith.constant 0 : i32
    %c0_i32_0 = arith.constant 0 : i32
    %c0_i32_1 = arith.constant 0 : i32
    return %c0_i32, %c0_i32_0, %arg0 : i32, i32, i32
  }
}

module attributes {stable_mosaic.version = 11 : i64} {
  func.func @_deconv_stats_kernel(%arg0: i32, %arg1: memref<16x16x32xbf16, #tpu.memory_space<vmem>>, %arg2: memref<9x32x128xbf16, #tpu.memory_space<vmem>>, %arg3: memref<4x16x128xbf16, #tpu.memory_space<vmem>>, %arg4: memref<1x2x4x16xf32, #tpu.memory_space<vmem>>) attributes {dimension_semantics = [#tpu.dimension_semantics<parallel>], iteration_bounds = array<i64: 1>, scalar_prefetch = 0 : i64, scratch_operands = 0 : i64, tpu.core_type = #tpu.core_type<tc>, window_params = [{pipeline_mode = #tpu.pipeline_mode<synchronous>, transform_indices = @transform_0, window_bounds = array<i64: 16, 16, 32>}, {transform_indices = @transform_1, window_bounds = array<i64: 9, 32, 128>}, {transform_indices = @transform_2, window_bounds = array<i64: 4, 16, 128>}, {transform_indices = @transform_3, window_bounds = array<i64: 1, 2, 4, 16>}]} {
    %c0 = arith.constant 0 : index
    %c0_0 = arith.constant 0 : index
    %c0_1 = arith.constant 0 : index
    %0 = vector.load %arg1[%c0, %c0_0, %c0_1] : memref<16x16x32xbf16, #tpu.memory_space<vmem>>, vector<1x16x32xbf16>
    %1 = vector.shape_cast %0 : vector<1x16x32xbf16> to vector<16x32xbf16>
    %c0_2 = arith.constant 0 : index
    %c0_3 = arith.constant 0 : index
    %c0_4 = arith.constant 0 : index
    %2 = vector.load %arg2[%c0_2, %c0_3, %c0_4] : memref<9x32x128xbf16, #tpu.memory_space<vmem>>, vector<1x32x128xbf16>
    %3 = vector.shape_cast %2 : vector<1x32x128xbf16> to vector<32x128xbf16>
    %cst = arith.constant dense<0.000000e+00> : vector<16x128xf32>
    %4 = tpu.matmul %1, %3, %cst {dimension_numbers = #tpu.dot_dimension_numbers<[1], [0], [0], [1], [0, 0, 1, 1], [], []>} : vector<16x32xbf16>, vector<32x128xbf16>, vector<16x128xf32> -> vector<16x128xf32>
    %c1 = arith.constant 1 : index
    %c0_5 = arith.constant 0 : index
    %c0_6 = arith.constant 0 : index
    %5 = vector.load %arg1[%c1, %c0_5, %c0_6] : memref<16x16x32xbf16, #tpu.memory_space<vmem>>, vector<1x16x32xbf16>
    %6 = vector.shape_cast %5 : vector<1x16x32xbf16> to vector<16x32xbf16>
    %c1_7 = arith.constant 1 : index
    %c0_8 = arith.constant 0 : index
    %c0_9 = arith.constant 0 : index
    %7 = vector.load %arg2[%c1_7, %c0_8, %c0_9] : memref<9x32x128xbf16, #tpu.memory_space<vmem>>, vector<1x32x128xbf16>
    %8 = vector.shape_cast %7 : vector<1x32x128xbf16> to vector<32x128xbf16>
    %cst_10 = arith.constant dense<0.000000e+00> : vector<16x128xf32>
    %9 = tpu.matmul %6, %8, %cst_10 {dimension_numbers = #tpu.dot_dimension_numbers<[1], [0], [0], [1], [0, 0, 1, 1], [], []>} : vector<16x32xbf16>, vector<32x128xbf16>, vector<16x128xf32> -> vector<16x128xf32>
    %10 = arith.addf %4, %9 : vector<16x128xf32>
    %c2 = arith.constant 2 : index
    %c0_11 = arith.constant 0 : index
    %c0_12 = arith.constant 0 : index
    %11 = vector.load %arg1[%c2, %c0_11, %c0_12] : memref<16x16x32xbf16, #tpu.memory_space<vmem>>, vector<1x16x32xbf16>
    %12 = vector.shape_cast %11 : vector<1x16x32xbf16> to vector<16x32xbf16>
    %c3 = arith.constant 3 : index
    %c0_13 = arith.constant 0 : index
    %c0_14 = arith.constant 0 : index
    %13 = vector.load %arg2[%c3, %c0_13, %c0_14] : memref<9x32x128xbf16, #tpu.memory_space<vmem>>, vector<1x32x128xbf16>
    %14 = vector.shape_cast %13 : vector<1x32x128xbf16> to vector<32x128xbf16>
    %cst_15 = arith.constant dense<0.000000e+00> : vector<16x128xf32>
    %15 = tpu.matmul %12, %14, %cst_15 {dimension_numbers = #tpu.dot_dimension_numbers<[1], [0], [0], [1], [0, 0, 1, 1], [], []>} : vector<16x32xbf16>, vector<32x128xbf16>, vector<16x128xf32> -> vector<16x128xf32>
    %16 = arith.addf %10, %15 : vector<16x128xf32>
    %c3_16 = arith.constant 3 : index
    %c0_17 = arith.constant 0 : index
    %c0_18 = arith.constant 0 : index
    %17 = vector.load %arg1[%c3_16, %c0_17, %c0_18] : memref<16x16x32xbf16, #tpu.memory_space<vmem>>, vector<1x16x32xbf16>
    %18 = vector.shape_cast %17 : vector<1x16x32xbf16> to vector<16x32xbf16>
    %c4 = arith.constant 4 : index
    %c0_19 = arith.constant 0 : index
    %c0_20 = arith.constant 0 : index
    %19 = vector.load %arg2[%c4, %c0_19, %c0_20] : memref<9x32x128xbf16, #tpu.memory_space<vmem>>, vector<1x32x128xbf16>
    %20 = vector.shape_cast %19 : vector<1x32x128xbf16> to vector<32x128xbf16>
    %cst_21 = arith.constant dense<0.000000e+00> : vector<16x128xf32>
    %21 = tpu.matmul %18, %20, %cst_21 {dimension_numbers = #tpu.dot_dimension_numbers<[1], [0], [0], [1], [0, 0, 1, 1], [], []>} : vector<16x32xbf16>, vector<32x128xbf16>, vector<16x128xf32> -> vector<16x128xf32>
    %22 = arith.addf %16, %21 : vector<16x128xf32>
    %23 = arith.truncf %22 : vector<16x128xf32> to vector<16x128xbf16>
    %c0_22 = arith.constant 0 : index
    %c0_23 = arith.constant 0 : index
    %c0_24 = arith.constant 0 : index
    %24 = vector.load %arg3[%c0_22, %c0_23, %c0_24] : memref<4x16x128xbf16, #tpu.memory_space<vmem>>, vector<1x16x128xbf16>
    %25 = vector.shape_cast %24 : vector<1x16x128xbf16> to vector<16x128xbf16>
    %26 = vector.shape_cast %23 : vector<16x128xbf16> to vector<1x16x128xbf16>
    tpu.vector_store %arg3[%c0_22, %c0_23, %c0_24], %26 {strides = array<i32>} : memref<4x16x128xbf16, #tpu.memory_space<vmem>>, vector<1x16x128xbf16>,
    %cst_25 = arith.constant dense<0.000000e+00> : vector<16xf32>
    %27 = vector.multi_reduction <add>, %22, %cst_25 [1] : vector<16x128xf32> to vector<16xf32>
    %c0_26 = arith.constant 0 : index
    %c0_27 = arith.constant 0 : index
    %c0_28 = arith.constant 0 : index
    %c0_29 = arith.constant 0 : index
    %28 = vector.load %arg4[%c0_26, %c0_27, %c0_28, %c0_29] : memref<1x2x4x16xf32, #tpu.memory_space<vmem>>, vector<1x1x1x16xf32>
    %29 = vector.shape_cast %28 : vector<1x1x1x16xf32> to vector<16xf32>
    %30 = vector.shape_cast %27 : vector<16xf32> to vector<1x1x1x16xf32>
    tpu.vector_store %arg4[%c0_26, %c0_27, %c0_28, %c0_29], %30 {strides = array<i32>} : memref<1x2x4x16xf32, #tpu.memory_space<vmem>>, vector<1x1x1x16xf32>,
    %31 = arith.mulf %22, %22 : vector<16x128xf32>
    %cst_30 = arith.constant dense<0.000000e+00> : vector<16xf32>
    %32 = vector.multi_reduction <add>, %31, %cst_30 [1] : vector<16x128xf32> to vector<16xf32>
    %c0_31 = arith.constant 0 : index
    %c1_32 = arith.constant 1 : index
    %c0_33 = arith.constant 0 : index
    %c0_34 = arith.constant 0 : index
    %33 = vector.load %arg4[%c0_31, %c1_32, %c0_33, %c0_34] : memref<1x2x4x16xf32, #tpu.memory_space<vmem>>, vector<1x1x1x16xf32>
    %34 = vector.shape_cast %33 : vector<1x1x1x16xf32> to vector<16xf32>
    %35 = vector.shape_cast %32 : vector<16xf32> to vector<1x1x1x16xf32>
    tpu.vector_store %arg4[%c0_31, %c1_32, %c0_33, %c0_34], %35 {strides = array<i32>} : memref<1x2x4x16xf32, #tpu.memory_space<vmem>>, vector<1x1x1x16xf32>,
    %c4_35 = arith.constant 4 : index
    %c0_36 = arith.constant 0 : index
    %c0_37 = arith.constant 0 : index
    %36 = vector.load %arg1[%c4_35, %c0_36, %c0_37] : memref<16x16x32xbf16, #tpu.memory_space<vmem>>, vector<1x16x32xbf16>
    %37 = vector.shape_cast %36 : vector<1x16x32xbf16> to vector<16x32xbf16>
    %c1_38 = arith.constant 1 : index
    %c0_39 = arith.constant 0 : index
    %c0_40 = arith.constant 0 : index
    %38 = vector.load %arg2[%c1_38, %c0_39, %c0_40] : memref<9x32x128xbf16, #tpu.memory_space<vmem>>, vector<1x32x128xbf16>
    %39 = vector.shape_cast %38 : vector<1x32x128xbf16> to vector<32x128xbf16>
    %cst_41 = arith.constant dense<0.000000e+00> : vector<16x128xf32>
    %40 = tpu.matmul %37, %39, %cst_41 {dimension_numbers = #tpu.dot_dimension_numbers<[1], [0], [0], [1], [0, 0, 1, 1], [], []>} : vector<16x32xbf16>, vector<32x128xbf16>, vector<16x128xf32> -> vector<16x128xf32>
    %c5 = arith.constant 5 : index
    %c0_42 = arith.constant 0 : index
    %c0_43 = arith.constant 0 : index
    %41 = vector.load %arg1[%c5, %c0_42, %c0_43] : memref<16x16x32xbf16, #tpu.memory_space<vmem>>, vector<1x16x32xbf16>
    %42 = vector.shape_cast %41 : vector<1x16x32xbf16> to vector<16x32xbf16>
    %c2_44 = arith.constant 2 : index
    %c0_45 = arith.constant 0 : index
    %c0_46 = arith.constant 0 : index
    %43 = vector.load %arg2[%c2_44, %c0_45, %c0_46] : memref<9x32x128xbf16, #tpu.memory_space<vmem>>, vector<1x32x128xbf16>
    %44 = vector.shape_cast %43 : vector<1x32x128xbf16> to vector<32x128xbf16>
    %cst_47 = arith.constant dense<0.000000e+00> : vector<16x128xf32>
    %45 = tpu.matmul %42, %44, %cst_47 {dimension_numbers = #tpu.dot_dimension_numbers<[1], [0], [0], [1], [0, 0, 1, 1], [], []>} : vector<16x32xbf16>, vector<32x128xbf16>, vector<16x128xf32> -> vector<16x128xf32>
    %46 = arith.addf %40, %45 : vector<16x128xf32>
    %c6 = arith.constant 6 : index
    %c0_48 = arith.constant 0 : index
    %c0_49 = arith.constant 0 : index
    %47 = vector.load %arg1[%c6, %c0_48, %c0_49] : memref<16x16x32xbf16, #tpu.memory_space<vmem>>, vector<1x16x32xbf16>
    %48 = vector.shape_cast %47 : vector<1x16x32xbf16> to vector<16x32xbf16>
    %c4_50 = arith.constant 4 : index
    %c0_51 = arith.constant 0 : index
    %c0_52 = arith.constant 0 : index
    %49 = vector.load %arg2[%c4_50, %c0_51, %c0_52] : memref<9x32x128xbf16, #tpu.memory_space<vmem>>, vector<1x32x128xbf16>
    %50 = vector.shape_cast %49 : vector<1x32x128xbf16> to vector<32x128xbf16>
    %cst_53 = arith.constant dense<0.000000e+00> : vector<16x128xf32>
    %51 = tpu.matmul %48, %50, %cst_53 {dimension_numbers = #tpu.dot_dimension_numbers<[1], [0], [0], [1], [0, 0, 1, 1], [], []>} : vector<16x32xbf16>, vector<32x128xbf16>, vector<16x128xf32> -> vector<16x128xf32>
    %52 = arith.addf %46, %51 : vector<16x128xf32>
    %c7 = arith.constant 7 : index
    %c0_54 = arith.constant 0 : index
    %c0_55 = arith.constant 0 : index
    %53 = vector.load %arg1[%c7, %c0_54, %c0_55] : memref<16x16x32xbf16, #tpu.memory_space<vmem>>, vector<1x16x32xbf16>
    %54 = vector.shape_cast %53 : vector<1x16x32xbf16> to vector<16x32xbf16>
    %c5_56 = arith.constant 5 : index
    %c0_57 = arith.constant 0 : index
    %c0_58 = arith.constant 0 : index
    %55 = vector.load %arg2[%c5_56, %c0_57, %c0_58] : memref<9x32x128xbf16, #tpu.memory_space<vmem>>, vector<1x32x128xbf16>
    %56 = vector.shape_cast %55 : vector<1x32x128xbf16> to vector<32x128xbf16>
    %cst_59 = arith.constant dense<0.000000e+00> : vector<16x128xf32>
    %57 = tpu.matmul %54, %56, %cst_59 {dimension_numbers = #tpu.dot_dimension_numbers<[1], [0], [0], [1], [0, 0, 1, 1], [], []>} : vector<16x32xbf16>, vector<32x128xbf16>, vector<16x128xf32> -> vector<16x128xf32>
    %58 = arith.addf %52, %57 : vector<16x128xf32>
    %59 = arith.truncf %58 : vector<16x128xf32> to vector<16x128xbf16>
    %c1_60 = arith.constant 1 : index
    %c0_61 = arith.constant 0 : index
    %c0_62 = arith.constant 0 : index
    %60 = vector.load %arg3[%c1_60, %c0_61, %c0_62] : memref<4x16x128xbf16, #tpu.memory_space<vmem>>, vector<1x16x128xbf16>
    %61 = vector.shape_cast %60 : vector<1x16x128xbf16> to vector<16x128xbf16>
    %62 = vector.shape_cast %59 : vector<16x128xbf16> to vector<1x16x128xbf16>
    tpu.vector_store %arg3[%c1_60, %c0_61, %c0_62], %62 {strides = array<i32>} : memref<4x16x128xbf16, #tpu.memory_space<vmem>>, vector<1x16x128xbf16>,
    %cst_63 = arith.constant dense<0.000000e+00> : vector<16xf32>
    %63 = vector.multi_reduction <add>, %58, %cst_63 [1] : vector<16x128xf32> to vector<16xf32>
    %c0_64 = arith.constant 0 : index
    %c0_65 = arith.constant 0 : index
    %c1_66 = arith.constant 1 : index
    %c0_67 = arith.constant 0 : index
    %64 = vector.load %arg4[%c0_64, %c0_65, %c1_66, %c0_67] : memref<1x2x4x16xf32, #tpu.memory_space<vmem>>, vector<1x1x1x16xf32>
    %65 = vector.shape_cast %64 : vector<1x1x1x16xf32> to vector<16xf32>
    %66 = vector.shape_cast %63 : vector<16xf32> to vector<1x1x1x16xf32>
    tpu.vector_store %arg4[%c0_64, %c0_65, %c1_66, %c0_67], %66 {strides = array<i32>} : memref<1x2x4x16xf32, #tpu.memory_space<vmem>>, vector<1x1x1x16xf32>,
    %67 = arith.mulf %58, %58 : vector<16x128xf32>
    %cst_68 = arith.constant dense<0.000000e+00> : vector<16xf32>
    %68 = vector.multi_reduction <add>, %67, %cst_68 [1] : vector<16x128xf32> to vector<16xf32>
    %c0_69 = arith.constant 0 : index
    %c1_70 = arith.constant 1 : index
    %c1_71 = arith.constant 1 : index
    %c0_72 = arith.constant 0 : index
    %69 = vector.load %arg4[%c0_69, %c1_70, %c1_71, %c0_72] : memref<1x2x4x16xf32, #tpu.memory_space<vmem>>, vector<1x1x1x16xf32>
    %70 = vector.shape_cast %69 : vector<1x1x1x16xf32> to vector<16xf32>
    %71 = vector.shape_cast %68 : vector<16xf32> to vector<1x1x1x16xf32>
    tpu.vector_store %arg4[%c0_69, %c1_70, %c1_71, %c0_72], %71 {strides = array<i32>} : memref<1x2x4x16xf32, #tpu.memory_space<vmem>>, vector<1x1x1x16xf32>,
    %c8 = arith.constant 8 : index
    %c0_73 = arith.constant 0 : index
    %c0_74 = arith.constant 0 : index
    %72 = vector.load %arg1[%c8, %c0_73, %c0_74] : memref<16x16x32xbf16, #tpu.memory_space<vmem>>, vector<1x16x32xbf16>
    %73 = vector.shape_cast %72 : vector<1x16x32xbf16> to vector<16x32xbf16>
    %c3_75 = arith.constant 3 : index
    %c0_76 = arith.constant 0 : index
    %c0_77 = arith.constant 0 : index
    %74 = vector.load %arg2[%c3_75, %c0_76, %c0_77] : memref<9x32x128xbf16, #tpu.memory_space<vmem>>, vector<1x32x128xbf16>
    %75 = vector.shape_cast %74 : vector<1x32x128xbf16> to vector<32x128xbf16>
    %cst_78 = arith.constant dense<0.000000e+00> : vector<16x128xf32>
    %76 = tpu.matmul %73, %75, %cst_78 {dimension_numbers = #tpu.dot_dimension_numbers<[1], [0], [0], [1], [0, 0, 1, 1], [], []>} : vector<16x32xbf16>, vector<32x128xbf16>, vector<16x128xf32> -> vector<16x128xf32>
    %c9 = arith.constant 9 : index
    %c0_79 = arith.constant 0 : index
    %c0_80 = arith.constant 0 : index
    %77 = vector.load %arg1[%c9, %c0_79, %c0_80] : memref<16x16x32xbf16, #tpu.memory_space<vmem>>, vector<1x16x32xbf16>
    %78 = vector.shape_cast %77 : vector<1x16x32xbf16> to vector<16x32xbf16>
    %c4_81 = arith.constant 4 : index
    %c0_82 = arith.constant 0 : index
    %c0_83 = arith.constant 0 : index
    %79 = vector.load %arg2[%c4_81, %c0_82, %c0_83] : memref<9x32x128xbf16, #tpu.memory_space<vmem>>, vector<1x32x128xbf16>
    %80 = vector.shape_cast %79 : vector<1x32x128xbf16> to vector<32x128xbf16>
    %cst_84 = arith.constant dense<0.000000e+00> : vector<16x128xf32>
    %81 = tpu.matmul %78, %80, %cst_84 {dimension_numbers = #tpu.dot_dimension_numbers<[1], [0], [0], [1], [0, 0, 1, 1], [], []>} : vector<16x32xbf16>, vector<32x128xbf16>, vector<16x128xf32> -> vector<16x128xf32>
    %82 = arith.addf %76, %81 : vector<16x128xf32>
    %c10 = arith.constant 10 : index
    %c0_85 = arith.constant 0 : index
    %c0_86 = arith.constant 0 : index
    %83 = vector.load %arg1[%c10, %c0_85, %c0_86] : memref<16x16x32xbf16, #tpu.memory_space<vmem>>, vector<1x16x32xbf16>
    %84 = vector.shape_cast %83 : vector<1x16x32xbf16> to vector<16x32xbf16>
    %c6_87 = arith.constant 6 : index
    %c0_88 = arith.constant 0 : index
    %c0_89 = arith.constant 0 : index
    %85 = vector.load %arg2[%c6_87, %c0_88, %c0_89] : memref<9x32x128xbf16, #tpu.memory_space<vmem>>, vector<1x32x128xbf16>
    %86 = vector.shape_cast %85 : vector<1x32x128xbf16> to vector<32x128xbf16>
    %cst_90 = arith.constant dense<0.000000e+00> : vector<16x128xf32>
    %87 = tpu.matmul %84, %86, %cst_90 {dimension_numbers = #tpu.dot_dimension_numbers<[1], [0], [0], [1], [0, 0, 1, 1], [], []>} : vector<16x32xbf16>, vector<32x128xbf16>, vector<16x128xf32> -> vector<16x128xf32>
    %88 = arith.addf %82, %87 : vector<16x128xf32>
    %c11 = arith.constant 11 : index
    %c0_91 = arith.constant 0 : index
    %c0_92 = arith.constant 0 : index
    %89 = vector.load %arg1[%c11, %c0_91, %c0_92] : memref<16x16x32xbf16, #tpu.memory_space<vmem>>, vector<1x16x32xbf16>
    %90 = vector.shape_cast %89 : vector<1x16x32xbf16> to vector<16x32xbf16>
    %c7_93 = arith.constant 7 : index
    %c0_94 = arith.constant 0 : index
    %c0_95 = arith.constant 0 : index
    %91 = vector.load %arg2[%c7_93, %c0_94, %c0_95] : memref<9x32x128xbf16, #tpu.memory_space<vmem>>, vector<1x32x128xbf16>
    %92 = vector.shape_cast %91 : vector<1x32x128xbf16> to vector<32x128xbf16>
    %cst_96 = arith.constant dense<0.000000e+00> : vector<16x128xf32>
    %93 = tpu.matmul %90, %92, %cst_96 {dimension_numbers = #tpu.dot_dimension_numbers<[1], [0], [0], [1], [0, 0, 1, 1], [], []>} : vector<16x32xbf16>, vector<32x128xbf16>, vector<16x128xf32> -> vector<16x128xf32>
    %94 = arith.addf %88, %93 : vector<16x128xf32>
    %95 = arith.truncf %94 : vector<16x128xf32> to vector<16x128xbf16>
    %c2_97 = arith.constant 2 : index
    %c0_98 = arith.constant 0 : index
    %c0_99 = arith.constant 0 : index
    %96 = vector.load %arg3[%c2_97, %c0_98, %c0_99] : memref<4x16x128xbf16, #tpu.memory_space<vmem>>, vector<1x16x128xbf16>
    %97 = vector.shape_cast %96 : vector<1x16x128xbf16> to vector<16x128xbf16>
    %98 = vector.shape_cast %95 : vector<16x128xbf16> to vector<1x16x128xbf16>
    tpu.vector_store %arg3[%c2_97, %c0_98, %c0_99], %98 {strides = array<i32>} : memref<4x16x128xbf16, #tpu.memory_space<vmem>>, vector<1x16x128xbf16>,
    %cst_100 = arith.constant dense<0.000000e+00> : vector<16xf32>
    %99 = vector.multi_reduction <add>, %94, %cst_100 [1] : vector<16x128xf32> to vector<16xf32>
    %c0_101 = arith.constant 0 : index
    %c0_102 = arith.constant 0 : index
    %c2_103 = arith.constant 2 : index
    %c0_104 = arith.constant 0 : index
    %100 = vector.load %arg4[%c0_101, %c0_102, %c2_103, %c0_104] : memref<1x2x4x16xf32, #tpu.memory_space<vmem>>, vector<1x1x1x16xf32>
    %101 = vector.shape_cast %100 : vector<1x1x1x16xf32> to vector<16xf32>
    %102 = vector.shape_cast %99 : vector<16xf32> to vector<1x1x1x16xf32>
    tpu.vector_store %arg4[%c0_101, %c0_102, %c2_103, %c0_104], %102 {strides = array<i32>} : memref<1x2x4x16xf32, #tpu.memory_space<vmem>>, vector<1x1x1x16xf32>,
    %103 = arith.mulf %94, %94 : vector<16x128xf32>
    %cst_105 = arith.constant dense<0.000000e+00> : vector<16xf32>
    %104 = vector.multi_reduction <add>, %103, %cst_105 [1] : vector<16x128xf32> to vector<16xf32>
    %c0_106 = arith.constant 0 : index
    %c1_107 = arith.constant 1 : index
    %c2_108 = arith.constant 2 : index
    %c0_109 = arith.constant 0 : index
    %105 = vector.load %arg4[%c0_106, %c1_107, %c2_108, %c0_109] : memref<1x2x4x16xf32, #tpu.memory_space<vmem>>, vector<1x1x1x16xf32>
    %106 = vector.shape_cast %105 : vector<1x1x1x16xf32> to vector<16xf32>
    %107 = vector.shape_cast %104 : vector<16xf32> to vector<1x1x1x16xf32>
    tpu.vector_store %arg4[%c0_106, %c1_107, %c2_108, %c0_109], %107 {strides = array<i32>} : memref<1x2x4x16xf32, #tpu.memory_space<vmem>>, vector<1x1x1x16xf32>,
    %c12 = arith.constant 12 : index
    %c0_110 = arith.constant 0 : index
    %c0_111 = arith.constant 0 : index
    %108 = vector.load %arg1[%c12, %c0_110, %c0_111] : memref<16x16x32xbf16, #tpu.memory_space<vmem>>, vector<1x16x32xbf16>
    %109 = vector.shape_cast %108 : vector<1x16x32xbf16> to vector<16x32xbf16>
    %c4_112 = arith.constant 4 : index
    %c0_113 = arith.constant 0 : index
    %c0_114 = arith.constant 0 : index
    %110 = vector.load %arg2[%c4_112, %c0_113, %c0_114] : memref<9x32x128xbf16, #tpu.memory_space<vmem>>, vector<1x32x128xbf16>
    %111 = vector.shape_cast %110 : vector<1x32x128xbf16> to vector<32x128xbf16>
    %cst_115 = arith.constant dense<0.000000e+00> : vector<16x128xf32>
    %112 = tpu.matmul %109, %111, %cst_115 {dimension_numbers = #tpu.dot_dimension_numbers<[1], [0], [0], [1], [0, 0, 1, 1], [], []>} : vector<16x32xbf16>, vector<32x128xbf16>, vector<16x128xf32> -> vector<16x128xf32>
    %c13 = arith.constant 13 : index
    %c0_116 = arith.constant 0 : index
    %c0_117 = arith.constant 0 : index
    %113 = vector.load %arg1[%c13, %c0_116, %c0_117] : memref<16x16x32xbf16, #tpu.memory_space<vmem>>, vector<1x16x32xbf16>
    %114 = vector.shape_cast %113 : vector<1x16x32xbf16> to vector<16x32xbf16>
    %c5_118 = arith.constant 5 : index
    %c0_119 = arith.constant 0 : index
    %c0_120 = arith.constant 0 : index
    %115 = vector.load %arg2[%c5_118, %c0_119, %c0_120] : memref<9x32x128xbf16, #tpu.memory_space<vmem>>, vector<1x32x128xbf16>
    %116 = vector.shape_cast %115 : vector<1x32x128xbf16> to vector<32x128xbf16>
    %cst_121 = arith.constant dense<0.000000e+00> : vector<16x128xf32>
    %117 = tpu.matmul %114, %116, %cst_121 {dimension_numbers = #tpu.dot_dimension_numbers<[1], [0], [0], [1], [0, 0, 1, 1], [], []>} : vector<16x32xbf16>, vector<32x128xbf16>, vector<16x128xf32> -> vector<16x128xf32>
    %118 = arith.addf %112, %117 : vector<16x128xf32>
    %c14 = arith.constant 14 : index
    %c0_122 = arith.constant 0 : index
    %c0_123 = arith.constant 0 : index
    %119 = vector.load %arg1[%c14, %c0_122, %c0_123] : memref<16x16x32xbf16, #tpu.memory_space<vmem>>, vector<1x16x32xbf16>
    %120 = vector.shape_cast %119 : vector<1x16x32xbf16> to vector<16x32xbf16>
    %c7_124 = arith.constant 7 : index
    %c0_125 = arith.constant 0 : index
    %c0_126 = arith.constant 0 : index
    %121 = vector.load %arg2[%c7_124, %c0_125, %c0_126] : memref<9x32x128xbf16, #tpu.memory_space<vmem>>, vector<1x32x128xbf16>
    %122 = vector.shape_cast %121 : vector<1x32x128xbf16> to vector<32x128xbf16>
    %cst_127 = arith.constant dense<0.000000e+00> : vector<16x128xf32>
    %123 = tpu.matmul %120, %122, %cst_127 {dimension_numbers = #tpu.dot_dimension_numbers<[1], [0], [0], [1], [0, 0, 1, 1], [], []>} : vector<16x32xbf16>, vector<32x128xbf16>, vector<16x128xf32> -> vector<16x128xf32>
    %124 = arith.addf %118, %123 : vector<16x128xf32>
    %c15 = arith.constant 15 : index
    %c0_128 = arith.constant 0 : index
    %c0_129 = arith.constant 0 : index
    %125 = vector.load %arg1[%c15, %c0_128, %c0_129] : memref<16x16x32xbf16, #tpu.memory_space<vmem>>, vector<1x16x32xbf16>
    %126 = vector.shape_cast %125 : vector<1x16x32xbf16> to vector<16x32xbf16>
    %c8_130 = arith.constant 8 : index
    %c0_131 = arith.constant 0 : index
    %c0_132 = arith.constant 0 : index
    %127 = vector.load %arg2[%c8_130, %c0_131, %c0_132] : memref<9x32x128xbf16, #tpu.memory_space<vmem>>, vector<1x32x128xbf16>
    %128 = vector.shape_cast %127 : vector<1x32x128xbf16> to vector<32x128xbf16>
    %cst_133 = arith.constant dense<0.000000e+00> : vector<16x128xf32>
    %129 = tpu.matmul %126, %128, %cst_133 {dimension_numbers = #tpu.dot_dimension_numbers<[1], [0], [0], [1], [0, 0, 1, 1], [], []>} : vector<16x32xbf16>, vector<32x128xbf16>, vector<16x128xf32> -> vector<16x128xf32>
    %130 = arith.addf %124, %129 : vector<16x128xf32>
    %131 = arith.truncf %130 : vector<16x128xf32> to vector<16x128xbf16>
    %c3_134 = arith.constant 3 : index
    %c0_135 = arith.constant 0 : index
    %c0_136 = arith.constant 0 : index
    %132 = vector.load %arg3[%c3_134, %c0_135, %c0_136] : memref<4x16x128xbf16, #tpu.memory_space<vmem>>, vector<1x16x128xbf16>
    %133 = vector.shape_cast %132 : vector<1x16x128xbf16> to vector<16x128xbf16>
    %134 = vector.shape_cast %131 : vector<16x128xbf16> to vector<1x16x128xbf16>
    tpu.vector_store %arg3[%c3_134, %c0_135, %c0_136], %134 {strides = array<i32>} : memref<4x16x128xbf16, #tpu.memory_space<vmem>>, vector<1x16x128xbf16>,
    %cst_137 = arith.constant dense<0.000000e+00> : vector<16xf32>
    %135 = vector.multi_reduction <add>, %130, %cst_137 [1] : vector<16x128xf32> to vector<16xf32>
    %c0_138 = arith.constant 0 : index
    %c0_139 = arith.constant 0 : index
    %c3_140 = arith.constant 3 : index
    %c0_141 = arith.constant 0 : index
    %136 = vector.load %arg4[%c0_138, %c0_139, %c3_140, %c0_141] : memref<1x2x4x16xf32, #tpu.memory_space<vmem>>, vector<1x1x1x16xf32>
    %137 = vector.shape_cast %136 : vector<1x1x1x16xf32> to vector<16xf32>
    %138 = vector.shape_cast %135 : vector<16xf32> to vector<1x1x1x16xf32>
    tpu.vector_store %arg4[%c0_138, %c0_139, %c3_140, %c0_141], %138 {strides = array<i32>} : memref<1x2x4x16xf32, #tpu.memory_space<vmem>>, vector<1x1x1x16xf32>,
    %139 = arith.mulf %130, %130 : vector<16x128xf32>
    %cst_142 = arith.constant dense<0.000000e+00> : vector<16xf32>
    %140 = vector.multi_reduction <add>, %139, %cst_142 [1] : vector<16x128xf32> to vector<16xf32>
    %c0_143 = arith.constant 0 : index
    %c1_144 = arith.constant 1 : index
    %c3_145 = arith.constant 3 : index
    %c0_146 = arith.constant 0 : index
    %141 = vector.load %arg4[%c0_143, %c1_144, %c3_145, %c0_146] : memref<1x2x4x16xf32, #tpu.memory_space<vmem>>, vector<1x1x1x16xf32>
    %142 = vector.shape_cast %141 : vector<1x1x1x16xf32> to vector<16xf32>
    %143 = vector.shape_cast %140 : vector<16xf32> to vector<1x1x1x16xf32>
    tpu.vector_store %arg4[%c0_143, %c1_144, %c3_145, %c0_146], %143 {strides = array<i32>} : memref<1x2x4x16xf32, #tpu.memory_space<vmem>>, vector<1x1x1x16xf32>,
    return
  }
  func.func @transform_0(%arg0: i32) -> (i32, i32, i32) {
    %c0_i32 = arith.constant 0 : i32
    %c0_i32_0 = arith.constant 0 : i32
    %c0_i32_1 = arith.constant 0 : i32
    %c0_i32_2 = arith.constant 0 : i32
    return %c0_i32, %c0_i32_0, %c0_i32_1 : i32, i32, i32
  }
  func.func @transform_1(%arg0: i32) -> (i32, i32, i32) {
    %c0_i32 = arith.constant 0 : i32
    %c0_i32_0 = arith.constant 0 : i32
    %c0_i32_1 = arith.constant 0 : i32
    return %c0_i32, %c0_i32_0, %arg0 : i32, i32, i32
  }
  func.func @transform_2(%arg0: i32) -> (i32, i32, i32) {
    %c0_i32 = arith.constant 0 : i32
    %c0_i32_0 = arith.constant 0 : i32
    %c0_i32_1 = arith.constant 0 : i32
    return %c0_i32, %c0_i32_0, %arg0 : i32, i32, i32
  }
  func.func @transform_3(%arg0: i32) -> (i32, i32, i32, i32) {
    %c0_i32 = arith.constant 0 : i32
    %c0_i32_0 = arith.constant 0 : i32
    %c0_i32_1 = arith.constant 0 : i32
    %c0_i32_2 = arith.constant 0 : i32
    return %arg0, %c0_i32, %c0_i32_0, %c0_i32_1 : i32, i32, i32, i32
  }
}

module attributes {stable_mosaic.version = 11 : i64} {
  func.func @_bn_relu_kernel(%arg0: i32, %arg1: memref<4x16x128xbf16, #tpu.memory_space<vmem>>, %arg2: memref<16x1xf32, #tpu.memory_space<vmem>>, %arg3: memref<16x1xf32, #tpu.memory_space<vmem>>, %arg4: memref<4x16x128xbf16, #tpu.memory_space<vmem>>) attributes {dimension_semantics = [#tpu.dimension_semantics<parallel>], iteration_bounds = array<i64: 1>, scalar_prefetch = 0 : i64, scratch_operands = 0 : i64, tpu.core_type = #tpu.core_type<tc>, window_params = [{transform_indices = @transform_0, window_bounds = array<i64: 4, 16, 128>}, {pipeline_mode = #tpu.pipeline_mode<synchronous>, transform_indices = @transform_1, window_bounds = array<i64: 16, 1>}, {pipeline_mode = #tpu.pipeline_mode<synchronous>, transform_indices = @transform_2, window_bounds = array<i64: 16, 1>}, {transform_indices = @transform_3, window_bounds = array<i64: 4, 16, 128>}]} {
    %c0 = arith.constant 0 : index
    %c0_0 = arith.constant 0 : index
    %c0_1 = arith.constant 0 : index
    %0 = vector.load %arg1[%c0, %c0_0, %c0_1] : memref<4x16x128xbf16, #tpu.memory_space<vmem>>, vector<4x16x128xbf16>
    %1 = arith.extf %0 : vector<4x16x128xbf16> to vector<4x16x128xf32>
    %c0_2 = arith.constant 0 : index
    %c0_3 = arith.constant 0 : index
    %2 = vector.load %arg2[%c0_2, %c0_3] : memref<16x1xf32, #tpu.memory_space<vmem>>, vector<16x1xf32>
    %3 = vector.shape_cast %2 : vector<16x1xf32> to vector<1x16x1xf32>
    %4 = vector.broadcast %3 : vector<1x16x1xf32> to vector<4x16x128xf32>
    %5 = arith.mulf %1, %4 : vector<4x16x128xf32>
    %c0_4 = arith.constant 0 : index
    %c0_5 = arith.constant 0 : index
    %6 = vector.load %arg3[%c0_4, %c0_5] : memref<16x1xf32, #tpu.memory_space<vmem>>, vector<16x1xf32>
    %7 = vector.shape_cast %6 : vector<16x1xf32> to vector<1x16x1xf32>
    %8 = vector.broadcast %7 : vector<1x16x1xf32> to vector<4x16x128xf32>
    %9 = arith.addf %5, %8 : vector<4x16x128xf32>
    %cst = arith.constant 0.000000e+00 : f32
    %10 = vector.broadcast %cst : f32 to vector<4x16x128xf32>
    %11 = arith.maximumf %9, %10 : vector<4x16x128xf32>
    %12 = arith.truncf %11 : vector<4x16x128xf32> to vector<4x16x128xbf16>
    %c0_6 = arith.constant 0 : index
    %c0_7 = arith.constant 0 : index
    %c0_8 = arith.constant 0 : index
    %13 = vector.load %arg4[%c0_6, %c0_7, %c0_8] : memref<4x16x128xbf16, #tpu.memory_space<vmem>>, vector<4x16x128xbf16>
    tpu.vector_store %arg4[%c0_6, %c0_7, %c0_8], %12 {strides = array<i32>} : memref<4x16x128xbf16, #tpu.memory_space<vmem>>, vector<4x16x128xbf16>,
    return
  }
  func.func @transform_0(%arg0: i32) -> (i32, i32, i32) {
    %c0_i32 = arith.constant 0 : i32
    %c0_i32_0 = arith.constant 0 : i32
    %c0_i32_1 = arith.constant 0 : i32
    return %c0_i32, %c0_i32_0, %arg0 : i32, i32, i32
  }
  func.func @transform_1(%arg0: i32) -> (i32, i32) {
    %c0_i32 = arith.constant 0 : i32
    %c0_i32_0 = arith.constant 0 : i32
    %c0_i32_1 = arith.constant 0 : i32
    return %c0_i32, %c0_i32_0 : i32, i32
  }
  func.func @transform_2(%arg0: i32) -> (i32, i32) {
    %c0_i32 = arith.constant 0 : i32
    %c0_i32_0 = arith.constant 0 : i32
    %c0_i32_1 = arith.constant 0 : i32
    return %c0_i32, %c0_i32_0 : i32, i32
  }
  func.func @transform_3(%arg0: i32) -> (i32, i32, i32) {
    %c0_i32 = arith.constant 0 : i32
    %c0_i32_0 = arith.constant 0 : i32
    %c0_i32_1 = arith.constant 0 : i32
    return %c0_i32, %c0_i32_0, %arg0 : i32, i32, i32
  }
}

module attributes {stable_mosaic.version = 11 : i64} {
  func.func @_bn_relu_kernel(%arg0: i32, %arg1: memref<4x8x256xbf16, #tpu.memory_space<vmem>>, %arg2: memref<8x1xf32, #tpu.memory_space<vmem>>, %arg3: memref<8x1xf32, #tpu.memory_space<vmem>>, %arg4: memref<4x8x256xbf16, #tpu.memory_space<vmem>>) attributes {dimension_semantics = [#tpu.dimension_semantics<parallel>], iteration_bounds = array<i64: 2>, scalar_prefetch = 0 : i64, scratch_operands = 0 : i64, tpu.core_type = #tpu.core_type<tc>, window_params = [{transform_indices = @transform_0, window_bounds = array<i64: 4, 8, 256>}, {pipeline_mode = #tpu.pipeline_mode<synchronous>, transform_indices = @transform_1, window_bounds = array<i64: 8, 1>}, {pipeline_mode = #tpu.pipeline_mode<synchronous>, transform_indices = @transform_2, window_bounds = array<i64: 8, 1>}, {transform_indices = @transform_3, window_bounds = array<i64: 4, 8, 256>}]} {
    %c0 = arith.constant 0 : index
    %c0_0 = arith.constant 0 : index
    %c0_1 = arith.constant 0 : index
    %0 = vector.load %arg1[%c0, %c0_0, %c0_1] : memref<4x8x256xbf16, #tpu.memory_space<vmem>>, vector<4x8x256xbf16>
    %1 = arith.extf %0 : vector<4x8x256xbf16> to vector<4x8x256xf32>
    %c0_2 = arith.constant 0 : index
    %c0_3 = arith.constant 0 : index
    %2 = vector.load %arg2[%c0_2, %c0_3] : memref<8x1xf32, #tpu.memory_space<vmem>>, vector<8x1xf32>
    %3 = vector.shape_cast %2 : vector<8x1xf32> to vector<1x8x1xf32>
    %4 = vector.broadcast %3 : vector<1x8x1xf32> to vector<4x8x256xf32>
    %5 = arith.mulf %1, %4 : vector<4x8x256xf32>
    %c0_4 = arith.constant 0 : index
    %c0_5 = arith.constant 0 : index
    %6 = vector.load %arg3[%c0_4, %c0_5] : memref<8x1xf32, #tpu.memory_space<vmem>>, vector<8x1xf32>
    %7 = vector.shape_cast %6 : vector<8x1xf32> to vector<1x8x1xf32>
    %8 = vector.broadcast %7 : vector<1x8x1xf32> to vector<4x8x256xf32>
    %9 = arith.addf %5, %8 : vector<4x8x256xf32>
    %cst = arith.constant 0.000000e+00 : f32
    %10 = vector.broadcast %cst : f32 to vector<4x8x256xf32>
    %11 = arith.maximumf %9, %10 : vector<4x8x256xf32>
    %12 = arith.truncf %11 : vector<4x8x256xf32> to vector<4x8x256xbf16>
    %c0_6 = arith.constant 0 : index
    %c0_7 = arith.constant 0 : index
    %c0_8 = arith.constant 0 : index
    %13 = vector.load %arg4[%c0_6, %c0_7, %c0_8] : memref<4x8x256xbf16, #tpu.memory_space<vmem>>, vector<4x8x256xbf16>
    tpu.vector_store %arg4[%c0_6, %c0_7, %c0_8], %12 {strides = array<i32>} : memref<4x8x256xbf16, #tpu.memory_space<vmem>>, vector<4x8x256xbf16>,
    return
  }
  func.func @transform_0(%arg0: i32) -> (i32, i32, i32) {
    %c0_i32 = arith.constant 0 : i32
    %c0_i32_0 = arith.constant 0 : i32
    %c0_i32_1 = arith.constant 0 : i32
    return %c0_i32, %c0_i32_0, %arg0 : i32, i32, i32
  }
  func.func @transform_1(%arg0: i32) -> (i32, i32) {
    %c0_i32 = arith.constant 0 : i32
    %c0_i32_0 = arith.constant 0 : i32
    %c0_i32_1 = arith.constant 0 : i32
    return %c0_i32, %c0_i32_0 : i32, i32
  }
  func.func @transform_2(%arg0: i32) -> (i32, i32) {
    %c0_i32 = arith.constant 0 : i32
    %c0_i32_0 = arith.constant 0 : i32
    %c0_i32_1 = arith.constant 0 : i32
    return %c0_i32, %c0_i32_0 : i32, i32
  }
  func.func @transform_3(%arg0: i32) -> (i32, i32, i32) {
    %c0_i32 = arith.constant 0 : i32
    %c0_i32_0 = arith.constant 0 : i32
    %c0_i32_1 = arith.constant 0 : i32
    return %c0_i32, %c0_i32_0, %arg0 : i32, i32, i32
  }
}

module attributes {stable_mosaic.version = 11 : i64} {
  func.func @_deconv_stats_kernel(%arg0: i32, %arg1: memref<16x8x16xbf16, #tpu.memory_space<vmem>>, %arg2: memref<9x16x256xbf16, #tpu.memory_space<vmem>>, %arg3: memref<4x8x256xbf16, #tpu.memory_space<vmem>>, %arg4: memref<1x2x4x8xf32, #tpu.memory_space<vmem>>) attributes {dimension_semantics = [#tpu.dimension_semantics<parallel>], iteration_bounds = array<i64: 2>, scalar_prefetch = 0 : i64, scratch_operands = 0 : i64, tpu.core_type = #tpu.core_type<tc>, window_params = [{pipeline_mode = #tpu.pipeline_mode<synchronous>, transform_indices = @transform_0, window_bounds = array<i64: 16, 8, 16>}, {transform_indices = @transform_1, window_bounds = array<i64: 9, 16, 256>}, {transform_indices = @transform_2, window_bounds = array<i64: 4, 8, 256>}, {transform_indices = @transform_3, window_bounds = array<i64: 1, 2, 4, 8>}]} {
    %c0 = arith.constant 0 : index
    %c0_0 = arith.constant 0 : index
    %c0_1 = arith.constant 0 : index
    %0 = vector.load %arg1[%c0, %c0_0, %c0_1] : memref<16x8x16xbf16, #tpu.memory_space<vmem>>, vector<1x8x16xbf16>
    %1 = vector.shape_cast %0 : vector<1x8x16xbf16> to vector<8x16xbf16>
    %c0_2 = arith.constant 0 : index
    %c0_3 = arith.constant 0 : index
    %c0_4 = arith.constant 0 : index
    %2 = vector.load %arg2[%c0_2, %c0_3, %c0_4] : memref<9x16x256xbf16, #tpu.memory_space<vmem>>, vector<1x16x256xbf16>
    %3 = vector.shape_cast %2 : vector<1x16x256xbf16> to vector<16x256xbf16>
    %cst = arith.constant dense<0.000000e+00> : vector<8x256xf32>
    %4 = tpu.matmul %1, %3, %cst {dimension_numbers = #tpu.dot_dimension_numbers<[1], [0], [0], [1], [0, 0, 1, 1], [], []>} : vector<8x16xbf16>, vector<16x256xbf16>, vector<8x256xf32> -> vector<8x256xf32>
    %c1 = arith.constant 1 : index
    %c0_5 = arith.constant 0 : index
    %c0_6 = arith.constant 0 : index
    %5 = vector.load %arg1[%c1, %c0_5, %c0_6] : memref<16x8x16xbf16, #tpu.memory_space<vmem>>, vector<1x8x16xbf16>
    %6 = vector.shape_cast %5 : vector<1x8x16xbf16> to vector<8x16xbf16>
    %c1_7 = arith.constant 1 : index
    %c0_8 = arith.constant 0 : index
    %c0_9 = arith.constant 0 : index
    %7 = vector.load %arg2[%c1_7, %c0_8, %c0_9] : memref<9x16x256xbf16, #tpu.memory_space<vmem>>, vector<1x16x256xbf16>
    %8 = vector.shape_cast %7 : vector<1x16x256xbf16> to vector<16x256xbf16>
    %cst_10 = arith.constant dense<0.000000e+00> : vector<8x256xf32>
    %9 = tpu.matmul %6, %8, %cst_10 {dimension_numbers = #tpu.dot_dimension_numbers<[1], [0], [0], [1], [0, 0, 1, 1], [], []>} : vector<8x16xbf16>, vector<16x256xbf16>, vector<8x256xf32> -> vector<8x256xf32>
    %10 = arith.addf %4, %9 : vector<8x256xf32>
    %c2 = arith.constant 2 : index
    %c0_11 = arith.constant 0 : index
    %c0_12 = arith.constant 0 : index
    %11 = vector.load %arg1[%c2, %c0_11, %c0_12] : memref<16x8x16xbf16, #tpu.memory_space<vmem>>, vector<1x8x16xbf16>
    %12 = vector.shape_cast %11 : vector<1x8x16xbf16> to vector<8x16xbf16>
    %c3 = arith.constant 3 : index
    %c0_13 = arith.constant 0 : index
    %c0_14 = arith.constant 0 : index
    %13 = vector.load %arg2[%c3, %c0_13, %c0_14] : memref<9x16x256xbf16, #tpu.memory_space<vmem>>, vector<1x16x256xbf16>
    %14 = vector.shape_cast %13 : vector<1x16x256xbf16> to vector<16x256xbf16>
    %cst_15 = arith.constant dense<0.000000e+00> : vector<8x256xf32>
    %15 = tpu.matmul %12, %14, %cst_15 {dimension_numbers = #tpu.dot_dimension_numbers<[1], [0], [0], [1], [0, 0, 1, 1], [], []>} : vector<8x16xbf16>, vector<16x256xbf16>, vector<8x256xf32> -> vector<8x256xf32>
    %16 = arith.addf %10, %15 : vector<8x256xf32>
    %c3_16 = arith.constant 3 : index
    %c0_17 = arith.constant 0 : index
    %c0_18 = arith.constant 0 : index
    %17 = vector.load %arg1[%c3_16, %c0_17, %c0_18] : memref<16x8x16xbf16, #tpu.memory_space<vmem>>, vector<1x8x16xbf16>
    %18 = vector.shape_cast %17 : vector<1x8x16xbf16> to vector<8x16xbf16>
    %c4 = arith.constant 4 : index
    %c0_19 = arith.constant 0 : index
    %c0_20 = arith.constant 0 : index
    %19 = vector.load %arg2[%c4, %c0_19, %c0_20] : memref<9x16x256xbf16, #tpu.memory_space<vmem>>, vector<1x16x256xbf16>
    %20 = vector.shape_cast %19 : vector<1x16x256xbf16> to vector<16x256xbf16>
    %cst_21 = arith.constant dense<0.000000e+00> : vector<8x256xf32>
    %21 = tpu.matmul %18, %20, %cst_21 {dimension_numbers = #tpu.dot_dimension_numbers<[1], [0], [0], [1], [0, 0, 1, 1], [], []>} : vector<8x16xbf16>, vector<16x256xbf16>, vector<8x256xf32> -> vector<8x256xf32>
    %22 = arith.addf %16, %21 : vector<8x256xf32>
    %23 = arith.truncf %22 : vector<8x256xf32> to vector<8x256xbf16>
    %c0_22 = arith.constant 0 : index
    %c0_23 = arith.constant 0 : index
    %c0_24 = arith.constant 0 : index
    %24 = vector.load %arg3[%c0_22, %c0_23, %c0_24] : memref<4x8x256xbf16, #tpu.memory_space<vmem>>, vector<1x8x256xbf16>
    %25 = vector.shape_cast %24 : vector<1x8x256xbf16> to vector<8x256xbf16>
    %26 = vector.shape_cast %23 : vector<8x256xbf16> to vector<1x8x256xbf16>
    tpu.vector_store %arg3[%c0_22, %c0_23, %c0_24], %26 {strides = array<i32>} : memref<4x8x256xbf16, #tpu.memory_space<vmem>>, vector<1x8x256xbf16>,
    %cst_25 = arith.constant dense<0.000000e+00> : vector<8xf32>
    %27 = vector.multi_reduction <add>, %22, %cst_25 [1] : vector<8x256xf32> to vector<8xf32>
    %c0_26 = arith.constant 0 : index
    %c0_27 = arith.constant 0 : index
    %c0_28 = arith.constant 0 : index
    %c0_29 = arith.constant 0 : index
    %28 = vector.load %arg4[%c0_26, %c0_27, %c0_28, %c0_29] : memref<1x2x4x8xf32, #tpu.memory_space<vmem>>, vector<1x1x1x8xf32>
    %29 = vector.shape_cast %28 : vector<1x1x1x8xf32> to vector<8xf32>
    %30 = vector.shape_cast %27 : vector<8xf32> to vector<1x1x1x8xf32>
    tpu.vector_store %arg4[%c0_26, %c0_27, %c0_28, %c0_29], %30 {strides = array<i32>} : memref<1x2x4x8xf32, #tpu.memory_space<vmem>>, vector<1x1x1x8xf32>,
    %31 = arith.mulf %22, %22 : vector<8x256xf32>
    %cst_30 = arith.constant dense<0.000000e+00> : vector<8xf32>
    %32 = vector.multi_reduction <add>, %31, %cst_30 [1] : vector<8x256xf32> to vector<8xf32>
    %c0_31 = arith.constant 0 : index
    %c1_32 = arith.constant 1 : index
    %c0_33 = arith.constant 0 : index
    %c0_34 = arith.constant 0 : index
    %33 = vector.load %arg4[%c0_31, %c1_32, %c0_33, %c0_34] : memref<1x2x4x8xf32, #tpu.memory_space<vmem>>, vector<1x1x1x8xf32>
    %34 = vector.shape_cast %33 : vector<1x1x1x8xf32> to vector<8xf32>
    %35 = vector.shape_cast %32 : vector<8xf32> to vector<1x1x1x8xf32>
    tpu.vector_store %arg4[%c0_31, %c1_32, %c0_33, %c0_34], %35 {strides = array<i32>} : memref<1x2x4x8xf32, #tpu.memory_space<vmem>>, vector<1x1x1x8xf32>,
    %c4_35 = arith.constant 4 : index
    %c0_36 = arith.constant 0 : index
    %c0_37 = arith.constant 0 : index
    %36 = vector.load %arg1[%c4_35, %c0_36, %c0_37] : memref<16x8x16xbf16, #tpu.memory_space<vmem>>, vector<1x8x16xbf16>
    %37 = vector.shape_cast %36 : vector<1x8x16xbf16> to vector<8x16xbf16>
    %c1_38 = arith.constant 1 : index
    %c0_39 = arith.constant 0 : index
    %c0_40 = arith.constant 0 : index
    %38 = vector.load %arg2[%c1_38, %c0_39, %c0_40] : memref<9x16x256xbf16, #tpu.memory_space<vmem>>, vector<1x16x256xbf16>
    %39 = vector.shape_cast %38 : vector<1x16x256xbf16> to vector<16x256xbf16>
    %cst_41 = arith.constant dense<0.000000e+00> : vector<8x256xf32>
    %40 = tpu.matmul %37, %39, %cst_41 {dimension_numbers = #tpu.dot_dimension_numbers<[1], [0], [0], [1], [0, 0, 1, 1], [], []>} : vector<8x16xbf16>, vector<16x256xbf16>, vector<8x256xf32> -> vector<8x256xf32>
    %c5 = arith.constant 5 : index
    %c0_42 = arith.constant 0 : index
    %c0_43 = arith.constant 0 : index
    %41 = vector.load %arg1[%c5, %c0_42, %c0_43] : memref<16x8x16xbf16, #tpu.memory_space<vmem>>, vector<1x8x16xbf16>
    %42 = vector.shape_cast %41 : vector<1x8x16xbf16> to vector<8x16xbf16>
    %c2_44 = arith.constant 2 : index
    %c0_45 = arith.constant 0 : index
    %c0_46 = arith.constant 0 : index
    %43 = vector.load %arg2[%c2_44, %c0_45, %c0_46] : memref<9x16x256xbf16, #tpu.memory_space<vmem>>, vector<1x16x256xbf16>
    %44 = vector.shape_cast %43 : vector<1x16x256xbf16> to vector<16x256xbf16>
    %cst_47 = arith.constant dense<0.000000e+00> : vector<8x256xf32>
    %45 = tpu.matmul %42, %44, %cst_47 {dimension_numbers = #tpu.dot_dimension_numbers<[1], [0], [0], [1], [0, 0, 1, 1], [], []>} : vector<8x16xbf16>, vector<16x256xbf16>, vector<8x256xf32> -> vector<8x256xf32>
    %46 = arith.addf %40, %45 : vector<8x256xf32>
    %c6 = arith.constant 6 : index
    %c0_48 = arith.constant 0 : index
    %c0_49 = arith.constant 0 : index
    %47 = vector.load %arg1[%c6, %c0_48, %c0_49] : memref<16x8x16xbf16, #tpu.memory_space<vmem>>, vector<1x8x16xbf16>
    %48 = vector.shape_cast %47 : vector<1x8x16xbf16> to vector<8x16xbf16>
    %c4_50 = arith.constant 4 : index
    %c0_51 = arith.constant 0 : index
    %c0_52 = arith.constant 0 : index
    %49 = vector.load %arg2[%c4_50, %c0_51, %c0_52] : memref<9x16x256xbf16, #tpu.memory_space<vmem>>, vector<1x16x256xbf16>
    %50 = vector.shape_cast %49 : vector<1x16x256xbf16> to vector<16x256xbf16>
    %cst_53 = arith.constant dense<0.000000e+00> : vector<8x256xf32>
    %51 = tpu.matmul %48, %50, %cst_53 {dimension_numbers = #tpu.dot_dimension_numbers<[1], [0], [0], [1], [0, 0, 1, 1], [], []>} : vector<8x16xbf16>, vector<16x256xbf16>, vector<8x256xf32> -> vector<8x256xf32>
    %52 = arith.addf %46, %51 : vector<8x256xf32>
    %c7 = arith.constant 7 : index
    %c0_54 = arith.constant 0 : index
    %c0_55 = arith.constant 0 : index
    %53 = vector.load %arg1[%c7, %c0_54, %c0_55] : memref<16x8x16xbf16, #tpu.memory_space<vmem>>, vector<1x8x16xbf16>
    %54 = vector.shape_cast %53 : vector<1x8x16xbf16> to vector<8x16xbf16>
    %c5_56 = arith.constant 5 : index
    %c0_57 = arith.constant 0 : index
    %c0_58 = arith.constant 0 : index
    %55 = vector.load %arg2[%c5_56, %c0_57, %c0_58] : memref<9x16x256xbf16, #tpu.memory_space<vmem>>, vector<1x16x256xbf16>
    %56 = vector.shape_cast %55 : vector<1x16x256xbf16> to vector<16x256xbf16>
    %cst_59 = arith.constant dense<0.000000e+00> : vector<8x256xf32>
    %57 = tpu.matmul %54, %56, %cst_59 {dimension_numbers = #tpu.dot_dimension_numbers<[1], [0], [0], [1], [0, 0, 1, 1], [], []>} : vector<8x16xbf16>, vector<16x256xbf16>, vector<8x256xf32> -> vector<8x256xf32>
    %58 = arith.addf %52, %57 : vector<8x256xf32>
    %59 = arith.truncf %58 : vector<8x256xf32> to vector<8x256xbf16>
    %c1_60 = arith.constant 1 : index
    %c0_61 = arith.constant 0 : index
    %c0_62 = arith.constant 0 : index
    %60 = vector.load %arg3[%c1_60, %c0_61, %c0_62] : memref<4x8x256xbf16, #tpu.memory_space<vmem>>, vector<1x8x256xbf16>
    %61 = vector.shape_cast %60 : vector<1x8x256xbf16> to vector<8x256xbf16>
    %62 = vector.shape_cast %59 : vector<8x256xbf16> to vector<1x8x256xbf16>
    tpu.vector_store %arg3[%c1_60, %c0_61, %c0_62], %62 {strides = array<i32>} : memref<4x8x256xbf16, #tpu.memory_space<vmem>>, vector<1x8x256xbf16>,
    %cst_63 = arith.constant dense<0.000000e+00> : vector<8xf32>
    %63 = vector.multi_reduction <add>, %58, %cst_63 [1] : vector<8x256xf32> to vector<8xf32>
    %c0_64 = arith.constant 0 : index
    %c0_65 = arith.constant 0 : index
    %c1_66 = arith.constant 1 : index
    %c0_67 = arith.constant 0 : index
    %64 = vector.load %arg4[%c0_64, %c0_65, %c1_66, %c0_67] : memref<1x2x4x8xf32, #tpu.memory_space<vmem>>, vector<1x1x1x8xf32>
    %65 = vector.shape_cast %64 : vector<1x1x1x8xf32> to vector<8xf32>
    %66 = vector.shape_cast %63 : vector<8xf32> to vector<1x1x1x8xf32>
    tpu.vector_store %arg4[%c0_64, %c0_65, %c1_66, %c0_67], %66 {strides = array<i32>} : memref<1x2x4x8xf32, #tpu.memory_space<vmem>>, vector<1x1x1x8xf32>,
    %67 = arith.mulf %58, %58 : vector<8x256xf32>
    %cst_68 = arith.constant dense<0.000000e+00> : vector<8xf32>
    %68 = vector.multi_reduction <add>, %67, %cst_68 [1] : vector<8x256xf32> to vector<8xf32>
    %c0_69 = arith.constant 0 : index
    %c1_70 = arith.constant 1 : index
    %c1_71 = arith.constant 1 : index
    %c0_72 = arith.constant 0 : index
    %69 = vector.load %arg4[%c0_69, %c1_70, %c1_71, %c0_72] : memref<1x2x4x8xf32, #tpu.memory_space<vmem>>, vector<1x1x1x8xf32>
    %70 = vector.shape_cast %69 : vector<1x1x1x8xf32> to vector<8xf32>
    %71 = vector.shape_cast %68 : vector<8xf32> to vector<1x1x1x8xf32>
    tpu.vector_store %arg4[%c0_69, %c1_70, %c1_71, %c0_72], %71 {strides = array<i32>} : memref<1x2x4x8xf32, #tpu.memory_space<vmem>>, vector<1x1x1x8xf32>,
    %c8 = arith.constant 8 : index
    %c0_73 = arith.constant 0 : index
    %c0_74 = arith.constant 0 : index
    %72 = vector.load %arg1[%c8, %c0_73, %c0_74] : memref<16x8x16xbf16, #tpu.memory_space<vmem>>, vector<1x8x16xbf16>
    %73 = vector.shape_cast %72 : vector<1x8x16xbf16> to vector<8x16xbf16>
    %c3_75 = arith.constant 3 : index
    %c0_76 = arith.constant 0 : index
    %c0_77 = arith.constant 0 : index
    %74 = vector.load %arg2[%c3_75, %c0_76, %c0_77] : memref<9x16x256xbf16, #tpu.memory_space<vmem>>, vector<1x16x256xbf16>
    %75 = vector.shape_cast %74 : vector<1x16x256xbf16> to vector<16x256xbf16>
    %cst_78 = arith.constant dense<0.000000e+00> : vector<8x256xf32>
    %76 = tpu.matmul %73, %75, %cst_78 {dimension_numbers = #tpu.dot_dimension_numbers<[1], [0], [0], [1], [0, 0, 1, 1], [], []>} : vector<8x16xbf16>, vector<16x256xbf16>, vector<8x256xf32> -> vector<8x256xf32>
    %c9 = arith.constant 9 : index
    %c0_79 = arith.constant 0 : index
    %c0_80 = arith.constant 0 : index
    %77 = vector.load %arg1[%c9, %c0_79, %c0_80] : memref<16x8x16xbf16, #tpu.memory_space<vmem>>, vector<1x8x16xbf16>
    %78 = vector.shape_cast %77 : vector<1x8x16xbf16> to vector<8x16xbf16>
    %c4_81 = arith.constant 4 : index
    %c0_82 = arith.constant 0 : index
    %c0_83 = arith.constant 0 : index
    %79 = vector.load %arg2[%c4_81, %c0_82, %c0_83] : memref<9x16x256xbf16, #tpu.memory_space<vmem>>, vector<1x16x256xbf16>
    %80 = vector.shape_cast %79 : vector<1x16x256xbf16> to vector<16x256xbf16>
    %cst_84 = arith.constant dense<0.000000e+00> : vector<8x256xf32>
    %81 = tpu.matmul %78, %80, %cst_84 {dimension_numbers = #tpu.dot_dimension_numbers<[1], [0], [0], [1], [0, 0, 1, 1], [], []>} : vector<8x16xbf16>, vector<16x256xbf16>, vector<8x256xf32> -> vector<8x256xf32>
    %82 = arith.addf %76, %81 : vector<8x256xf32>
    %c10 = arith.constant 10 : index
    %c0_85 = arith.constant 0 : index
    %c0_86 = arith.constant 0 : index
    %83 = vector.load %arg1[%c10, %c0_85, %c0_86] : memref<16x8x16xbf16, #tpu.memory_space<vmem>>, vector<1x8x16xbf16>
    %84 = vector.shape_cast %83 : vector<1x8x16xbf16> to vector<8x16xbf16>
    %c6_87 = arith.constant 6 : index
    %c0_88 = arith.constant 0 : index
    %c0_89 = arith.constant 0 : index
    %85 = vector.load %arg2[%c6_87, %c0_88, %c0_89] : memref<9x16x256xbf16, #tpu.memory_space<vmem>>, vector<1x16x256xbf16>
    %86 = vector.shape_cast %85 : vector<1x16x256xbf16> to vector<16x256xbf16>
    %cst_90 = arith.constant dense<0.000000e+00> : vector<8x256xf32>
    %87 = tpu.matmul %84, %86, %cst_90 {dimension_numbers = #tpu.dot_dimension_numbers<[1], [0], [0], [1], [0, 0, 1, 1], [], []>} : vector<8x16xbf16>, vector<16x256xbf16>, vector<8x256xf32> -> vector<8x256xf32>
    %88 = arith.addf %82, %87 : vector<8x256xf32>
    %c11 = arith.constant 11 : index
    %c0_91 = arith.constant 0 : index
    %c0_92 = arith.constant 0 : index
    %89 = vector.load %arg1[%c11, %c0_91, %c0_92] : memref<16x8x16xbf16, #tpu.memory_space<vmem>>, vector<1x8x16xbf16>
    %90 = vector.shape_cast %89 : vector<1x8x16xbf16> to vector<8x16xbf16>
    %c7_93 = arith.constant 7 : index
    %c0_94 = arith.constant 0 : index
    %c0_95 = arith.constant 0 : index
    %91 = vector.load %arg2[%c7_93, %c0_94, %c0_95] : memref<9x16x256xbf16, #tpu.memory_space<vmem>>, vector<1x16x256xbf16>
    %92 = vector.shape_cast %91 : vector<1x16x256xbf16> to vector<16x256xbf16>
    %cst_96 = arith.constant dense<0.000000e+00> : vector<8x256xf32>
    %93 = tpu.matmul %90, %92, %cst_96 {dimension_numbers = #tpu.dot_dimension_numbers<[1], [0], [0], [1], [0, 0, 1, 1], [], []>} : vector<8x16xbf16>, vector<16x256xbf16>, vector<8x256xf32> -> vector<8x256xf32>
    %94 = arith.addf %88, %93 : vector<8x256xf32>
    %95 = arith.truncf %94 : vector<8x256xf32> to vector<8x256xbf16>
    %c2_97 = arith.constant 2 : index
    %c0_98 = arith.constant 0 : index
    %c0_99 = arith.constant 0 : index
    %96 = vector.load %arg3[%c2_97, %c0_98, %c0_99] : memref<4x8x256xbf16, #tpu.memory_space<vmem>>, vector<1x8x256xbf16>
    %97 = vector.shape_cast %96 : vector<1x8x256xbf16> to vector<8x256xbf16>
    %98 = vector.shape_cast %95 : vector<8x256xbf16> to vector<1x8x256xbf16>
    tpu.vector_store %arg3[%c2_97, %c0_98, %c0_99], %98 {strides = array<i32>} : memref<4x8x256xbf16, #tpu.memory_space<vmem>>, vector<1x8x256xbf16>,
    %cst_100 = arith.constant dense<0.000000e+00> : vector<8xf32>
    %99 = vector.multi_reduction <add>, %94, %cst_100 [1] : vector<8x256xf32> to vector<8xf32>
    %c0_101 = arith.constant 0 : index
    %c0_102 = arith.constant 0 : index
    %c2_103 = arith.constant 2 : index
    %c0_104 = arith.constant 0 : index
    %100 = vector.load %arg4[%c0_101, %c0_102, %c2_103, %c0_104] : memref<1x2x4x8xf32, #tpu.memory_space<vmem>>, vector<1x1x1x8xf32>
    %101 = vector.shape_cast %100 : vector<1x1x1x8xf32> to vector<8xf32>
    %102 = vector.shape_cast %99 : vector<8xf32> to vector<1x1x1x8xf32>
    tpu.vector_store %arg4[%c0_101, %c0_102, %c2_103, %c0_104], %102 {strides = array<i32>} : memref<1x2x4x8xf32, #tpu.memory_space<vmem>>, vector<1x1x1x8xf32>,
    %103 = arith.mulf %94, %94 : vector<8x256xf32>
    %cst_105 = arith.constant dense<0.000000e+00> : vector<8xf32>
    %104 = vector.multi_reduction <add>, %103, %cst_105 [1] : vector<8x256xf32> to vector<8xf32>
    %c0_106 = arith.constant 0 : index
    %c1_107 = arith.constant 1 : index
    %c2_108 = arith.constant 2 : index
    %c0_109 = arith.constant 0 : index
    %105 = vector.load %arg4[%c0_106, %c1_107, %c2_108, %c0_109] : memref<1x2x4x8xf32, #tpu.memory_space<vmem>>, vector<1x1x1x8xf32>
    %106 = vector.shape_cast %105 : vector<1x1x1x8xf32> to vector<8xf32>
    %107 = vector.shape_cast %104 : vector<8xf32> to vector<1x1x1x8xf32>
    tpu.vector_store %arg4[%c0_106, %c1_107, %c2_108, %c0_109], %107 {strides = array<i32>} : memref<1x2x4x8xf32, #tpu.memory_space<vmem>>, vector<1x1x1x8xf32>,
    %c12 = arith.constant 12 : index
    %c0_110 = arith.constant 0 : index
    %c0_111 = arith.constant 0 : index
    %108 = vector.load %arg1[%c12, %c0_110, %c0_111] : memref<16x8x16xbf16, #tpu.memory_space<vmem>>, vector<1x8x16xbf16>
    %109 = vector.shape_cast %108 : vector<1x8x16xbf16> to vector<8x16xbf16>
    %c4_112 = arith.constant 4 : index
    %c0_113 = arith.constant 0 : index
    %c0_114 = arith.constant 0 : index
    %110 = vector.load %arg2[%c4_112, %c0_113, %c0_114] : memref<9x16x256xbf16, #tpu.memory_space<vmem>>, vector<1x16x256xbf16>
    %111 = vector.shape_cast %110 : vector<1x16x256xbf16> to vector<16x256xbf16>
    %cst_115 = arith.constant dense<0.000000e+00> : vector<8x256xf32>
    %112 = tpu.matmul %109, %111, %cst_115 {dimension_numbers = #tpu.dot_dimension_numbers<[1], [0], [0], [1], [0, 0, 1, 1], [], []>} : vector<8x16xbf16>, vector<16x256xbf16>, vector<8x256xf32> -> vector<8x256xf32>
    %c13 = arith.constant 13 : index
    %c0_116 = arith.constant 0 : index
    %c0_117 = arith.constant 0 : index
    %113 = vector.load %arg1[%c13, %c0_116, %c0_117] : memref<16x8x16xbf16, #tpu.memory_space<vmem>>, vector<1x8x16xbf16>
    %114 = vector.shape_cast %113 : vector<1x8x16xbf16> to vector<8x16xbf16>
    %c5_118 = arith.constant 5 : index
    %c0_119 = arith.constant 0 : index
    %c0_120 = arith.constant 0 : index
    %115 = vector.load %arg2[%c5_118, %c0_119, %c0_120] : memref<9x16x256xbf16, #tpu.memory_space<vmem>>, vector<1x16x256xbf16>
    %116 = vector.shape_cast %115 : vector<1x16x256xbf16> to vector<16x256xbf16>
    %cst_121 = arith.constant dense<0.000000e+00> : vector<8x256xf32>
    %117 = tpu.matmul %114, %116, %cst_121 {dimension_numbers = #tpu.dot_dimension_numbers<[1], [0], [0], [1], [0, 0, 1, 1], [], []>} : vector<8x16xbf16>, vector<16x256xbf16>, vector<8x256xf32> -> vector<8x256xf32>
    %118 = arith.addf %112, %117 : vector<8x256xf32>
    %c14 = arith.constant 14 : index
    %c0_122 = arith.constant 0 : index
    %c0_123 = arith.constant 0 : index
    %119 = vector.load %arg1[%c14, %c0_122, %c0_123] : memref<16x8x16xbf16, #tpu.memory_space<vmem>>, vector<1x8x16xbf16>
    %120 = vector.shape_cast %119 : vector<1x8x16xbf16> to vector<8x16xbf16>
    %c7_124 = arith.constant 7 : index
    %c0_125 = arith.constant 0 : index
    %c0_126 = arith.constant 0 : index
    %121 = vector.load %arg2[%c7_124, %c0_125, %c0_126] : memref<9x16x256xbf16, #tpu.memory_space<vmem>>, vector<1x16x256xbf16>
    %122 = vector.shape_cast %121 : vector<1x16x256xbf16> to vector<16x256xbf16>
    %cst_127 = arith.constant dense<0.000000e+00> : vector<8x256xf32>
    %123 = tpu.matmul %120, %122, %cst_127 {dimension_numbers = #tpu.dot_dimension_numbers<[1], [0], [0], [1], [0, 0, 1, 1], [], []>} : vector<8x16xbf16>, vector<16x256xbf16>, vector<8x256xf32> -> vector<8x256xf32>
    %124 = arith.addf %118, %123 : vector<8x256xf32>
    %c15 = arith.constant 15 : index
    %c0_128 = arith.constant 0 : index
    %c0_129 = arith.constant 0 : index
    %125 = vector.load %arg1[%c15, %c0_128, %c0_129] : memref<16x8x16xbf16, #tpu.memory_space<vmem>>, vector<1x8x16xbf16>
    %126 = vector.shape_cast %125 : vector<1x8x16xbf16> to vector<8x16xbf16>
    %c8_130 = arith.constant 8 : index
    %c0_131 = arith.constant 0 : index
    %c0_132 = arith.constant 0 : index
    %127 = vector.load %arg2[%c8_130, %c0_131, %c0_132] : memref<9x16x256xbf16, #tpu.memory_space<vmem>>, vector<1x16x256xbf16>
    %128 = vector.shape_cast %127 : vector<1x16x256xbf16> to vector<16x256xbf16>
    %cst_133 = arith.constant dense<0.000000e+00> : vector<8x256xf32>
    %129 = tpu.matmul %126, %128, %cst_133 {dimension_numbers = #tpu.dot_dimension_numbers<[1], [0], [0], [1], [0, 0, 1, 1], [], []>} : vector<8x16xbf16>, vector<16x256xbf16>, vector<8x256xf32> -> vector<8x256xf32>
    %130 = arith.addf %124, %129 : vector<8x256xf32>
    %131 = arith.truncf %130 : vector<8x256xf32> to vector<8x256xbf16>
    %c3_134 = arith.constant 3 : index
    %c0_135 = arith.constant 0 : index
    %c0_136 = arith.constant 0 : index
    %132 = vector.load %arg3[%c3_134, %c0_135, %c0_136] : memref<4x8x256xbf16, #tpu.memory_space<vmem>>, vector<1x8x256xbf16>
    %133 = vector.shape_cast %132 : vector<1x8x256xbf16> to vector<8x256xbf16>
    %134 = vector.shape_cast %131 : vector<8x256xbf16> to vector<1x8x256xbf16>
    tpu.vector_store %arg3[%c3_134, %c0_135, %c0_136], %134 {strides = array<i32>} : memref<4x8x256xbf16, #tpu.memory_space<vmem>>, vector<1x8x256xbf16>,
    %cst_137 = arith.constant dense<0.000000e+00> : vector<8xf32>
    %135 = vector.multi_reduction <add>, %130, %cst_137 [1] : vector<8x256xf32> to vector<8xf32>
    %c0_138 = arith.constant 0 : index
    %c0_139 = arith.constant 0 : index
    %c3_140 = arith.constant 3 : index
    %c0_141 = arith.constant 0 : index
    %136 = vector.load %arg4[%c0_138, %c0_139, %c3_140, %c0_141] : memref<1x2x4x8xf32, #tpu.memory_space<vmem>>, vector<1x1x1x8xf32>
    %137 = vector.shape_cast %136 : vector<1x1x1x8xf32> to vector<8xf32>
    %138 = vector.shape_cast %135 : vector<8xf32> to vector<1x1x1x8xf32>
    tpu.vector_store %arg4[%c0_138, %c0_139, %c3_140, %c0_141], %138 {strides = array<i32>} : memref<1x2x4x8xf32, #tpu.memory_space<vmem>>, vector<1x1x1x8xf32>,
    %139 = arith.mulf %130, %130 : vector<8x256xf32>
    %cst_142 = arith.constant dense<0.000000e+00> : vector<8xf32>
    %140 = vector.multi_reduction <add>, %139, %cst_142 [1] : vector<8x256xf32> to vector<8xf32>
    %c0_143 = arith.constant 0 : index
    %c1_144 = arith.constant 1 : index
    %c3_145 = arith.constant 3 : index
    %c0_146 = arith.constant 0 : index
    %141 = vector.load %arg4[%c0_143, %c1_144, %c3_145, %c0_146] : memref<1x2x4x8xf32, #tpu.memory_space<vmem>>, vector<1x1x1x8xf32>
    %142 = vector.shape_cast %141 : vector<1x1x1x8xf32> to vector<8xf32>
    %143 = vector.shape_cast %140 : vector<8xf32> to vector<1x1x1x8xf32>
    tpu.vector_store %arg4[%c0_143, %c1_144, %c3_145, %c0_146], %143 {strides = array<i32>} : memref<1x2x4x8xf32, #tpu.memory_space<vmem>>, vector<1x1x1x8xf32>,
    return
  }
  func.func @transform_0(%arg0: i32) -> (i32, i32, i32) {
    %c0_i32 = arith.constant 0 : i32
    %c0_i32_0 = arith.constant 0 : i32
    %c0_i32_1 = arith.constant 0 : i32
    %c0_i32_2 = arith.constant 0 : i32
    return %c0_i32, %c0_i32_0, %c0_i32_1 : i32, i32, i32
  }
  func.func @transform_1(%arg0: i32) -> (i32, i32, i32) {
    %c0_i32 = arith.constant 0 : i32
    %c0_i32_0 = arith.constant 0 : i32
    %c0_i32_1 = arith.constant 0 : i32
    return %c0_i32, %c0_i32_0, %arg0 : i32, i32, i32
  }
  func.func @transform_2(%arg0: i32) -> (i32, i32, i32) {
    %c0_i32 = arith.constant 0 : i32
    %c0_i32_0 = arith.constant 0 : i32
    %c0_i32_1 = arith.constant 0 : i32
    return %c0_i32, %c0_i32_0, %arg0 : i32, i32, i32
  }
  func.func @transform_3(%arg0: i32) -> (i32, i32, i32, i32) {
    %c0_i32 = arith.constant 0 : i32
    %c0_i32_0 = arith.constant 0 : i32
    %c0_i32_1 = arith.constant 0 : i32
    %c0_i32_2 = arith.constant 0 : i32
    return %arg0, %c0_i32, %c0_i32_0, %c0_i32_1 : i32, i32, i32, i32
  }
}

module attributes {stable_mosaic.version = 11 : i64} {
  func.func @_deconv_tanh_kernel(%arg0: i32, %arg1: memref<16x3x8xbf16, #tpu.memory_space<vmem>>, %arg2: memref<9x8x1024xbf16, #tpu.memory_space<vmem>>, %arg3: memref<4x3x1024xbf16, #tpu.memory_space<vmem>>) attributes {dimension_semantics = [#tpu.dimension_semantics<parallel>], iteration_bounds = array<i64: 2>, scalar_prefetch = 0 : i64, scratch_operands = 0 : i64, tpu.core_type = #tpu.core_type<tc>, window_params = [{pipeline_mode = #tpu.pipeline_mode<synchronous>, transform_indices = @transform_0, window_bounds = array<i64: 16, 3, 8>}, {transform_indices = @transform_1, window_bounds = array<i64: 9, 8, 1024>}, {transform_indices = @transform_2, window_bounds = array<i64: 4, 3, 1024>}]} {
    %c0 = arith.constant 0 : index
    %c0_0 = arith.constant 0 : index
    %c0_1 = arith.constant 0 : index
    %0 = vector.load %arg1[%c0, %c0_0, %c0_1] : memref<16x3x8xbf16, #tpu.memory_space<vmem>>, vector<1x3x8xbf16>
    %1 = vector.shape_cast %0 : vector<1x3x8xbf16> to vector<3x8xbf16>
    %c0_2 = arith.constant 0 : index
    %c0_3 = arith.constant 0 : index
    %c0_4 = arith.constant 0 : index
    %2 = vector.load %arg2[%c0_2, %c0_3, %c0_4] : memref<9x8x1024xbf16, #tpu.memory_space<vmem>>, vector<1x8x1024xbf16>
    %3 = vector.shape_cast %2 : vector<1x8x1024xbf16> to vector<8x1024xbf16>
    %cst = arith.constant dense<0.000000e+00> : vector<3x1024xf32>
    %4 = tpu.matmul %1, %3, %cst {dimension_numbers = #tpu.dot_dimension_numbers<[1], [0], [0], [1], [0, 0, 1, 1], [], []>} : vector<3x8xbf16>, vector<8x1024xbf16>, vector<3x1024xf32> -> vector<3x1024xf32>
    %c1 = arith.constant 1 : index
    %c0_5 = arith.constant 0 : index
    %c0_6 = arith.constant 0 : index
    %5 = vector.load %arg1[%c1, %c0_5, %c0_6] : memref<16x3x8xbf16, #tpu.memory_space<vmem>>, vector<1x3x8xbf16>
    %6 = vector.shape_cast %5 : vector<1x3x8xbf16> to vector<3x8xbf16>
    %c1_7 = arith.constant 1 : index
    %c0_8 = arith.constant 0 : index
    %c0_9 = arith.constant 0 : index
    %7 = vector.load %arg2[%c1_7, %c0_8, %c0_9] : memref<9x8x1024xbf16, #tpu.memory_space<vmem>>, vector<1x8x1024xbf16>
    %8 = vector.shape_cast %7 : vector<1x8x1024xbf16> to vector<8x1024xbf16>
    %cst_10 = arith.constant dense<0.000000e+00> : vector<3x1024xf32>
    %9 = tpu.matmul %6, %8, %cst_10 {dimension_numbers = #tpu.dot_dimension_numbers<[1], [0], [0], [1], [0, 0, 1, 1], [], []>} : vector<3x8xbf16>, vector<8x1024xbf16>, vector<3x1024xf32> -> vector<3x1024xf32>
    %10 = arith.addf %4, %9 : vector<3x1024xf32>
    %c2 = arith.constant 2 : index
    %c0_11 = arith.constant 0 : index
    %c0_12 = arith.constant 0 : index
    %11 = vector.load %arg1[%c2, %c0_11, %c0_12] : memref<16x3x8xbf16, #tpu.memory_space<vmem>>, vector<1x3x8xbf16>
    %12 = vector.shape_cast %11 : vector<1x3x8xbf16> to vector<3x8xbf16>
    %c3 = arith.constant 3 : index
    %c0_13 = arith.constant 0 : index
    %c0_14 = arith.constant 0 : index
    %13 = vector.load %arg2[%c3, %c0_13, %c0_14] : memref<9x8x1024xbf16, #tpu.memory_space<vmem>>, vector<1x8x1024xbf16>
    %14 = vector.shape_cast %13 : vector<1x8x1024xbf16> to vector<8x1024xbf16>
    %cst_15 = arith.constant dense<0.000000e+00> : vector<3x1024xf32>
    %15 = tpu.matmul %12, %14, %cst_15 {dimension_numbers = #tpu.dot_dimension_numbers<[1], [0], [0], [1], [0, 0, 1, 1], [], []>} : vector<3x8xbf16>, vector<8x1024xbf16>, vector<3x1024xf32> -> vector<3x1024xf32>
    %16 = arith.addf %10, %15 : vector<3x1024xf32>
    %c3_16 = arith.constant 3 : index
    %c0_17 = arith.constant 0 : index
    %c0_18 = arith.constant 0 : index
    %17 = vector.load %arg1[%c3_16, %c0_17, %c0_18] : memref<16x3x8xbf16, #tpu.memory_space<vmem>>, vector<1x3x8xbf16>
    %18 = vector.shape_cast %17 : vector<1x3x8xbf16> to vector<3x8xbf16>
    %c4 = arith.constant 4 : index
    %c0_19 = arith.constant 0 : index
    %c0_20 = arith.constant 0 : index
    %19 = vector.load %arg2[%c4, %c0_19, %c0_20] : memref<9x8x1024xbf16, #tpu.memory_space<vmem>>, vector<1x8x1024xbf16>
    %20 = vector.shape_cast %19 : vector<1x8x1024xbf16> to vector<8x1024xbf16>
    %cst_21 = arith.constant dense<0.000000e+00> : vector<3x1024xf32>
    %21 = tpu.matmul %18, %20, %cst_21 {dimension_numbers = #tpu.dot_dimension_numbers<[1], [0], [0], [1], [0, 0, 1, 1], [], []>} : vector<3x8xbf16>, vector<8x1024xbf16>, vector<3x1024xf32> -> vector<3x1024xf32>
    %22 = arith.addf %16, %21 : vector<3x1024xf32>
    %23 = math.tanh %22 : vector<3x1024xf32>
    %24 = arith.truncf %23 : vector<3x1024xf32> to vector<3x1024xbf16>
    %c0_22 = arith.constant 0 : index
    %c0_23 = arith.constant 0 : index
    %c0_24 = arith.constant 0 : index
    %25 = vector.load %arg3[%c0_22, %c0_23, %c0_24] : memref<4x3x1024xbf16, #tpu.memory_space<vmem>>, vector<1x3x1024xbf16>
    %26 = vector.shape_cast %25 : vector<1x3x1024xbf16> to vector<3x1024xbf16>
    %27 = vector.shape_cast %24 : vector<3x1024xbf16> to vector<1x3x1024xbf16>
    tpu.vector_store %arg3[%c0_22, %c0_23, %c0_24], %27 {strides = array<i32>} : memref<4x3x1024xbf16, #tpu.memory_space<vmem>>, vector<1x3x1024xbf16>,
    %c4_25 = arith.constant 4 : index
    %c0_26 = arith.constant 0 : index
    %c0_27 = arith.constant 0 : index
    %28 = vector.load %arg1[%c4_25, %c0_26, %c0_27] : memref<16x3x8xbf16, #tpu.memory_space<vmem>>, vector<1x3x8xbf16>
    %29 = vector.shape_cast %28 : vector<1x3x8xbf16> to vector<3x8xbf16>
    %c1_28 = arith.constant 1 : index
    %c0_29 = arith.constant 0 : index
    %c0_30 = arith.constant 0 : index
    %30 = vector.load %arg2[%c1_28, %c0_29, %c0_30] : memref<9x8x1024xbf16, #tpu.memory_space<vmem>>, vector<1x8x1024xbf16>
    %31 = vector.shape_cast %30 : vector<1x8x1024xbf16> to vector<8x1024xbf16>
    %cst_31 = arith.constant dense<0.000000e+00> : vector<3x1024xf32>
    %32 = tpu.matmul %29, %31, %cst_31 {dimension_numbers = #tpu.dot_dimension_numbers<[1], [0], [0], [1], [0, 0, 1, 1], [], []>} : vector<3x8xbf16>, vector<8x1024xbf16>, vector<3x1024xf32> -> vector<3x1024xf32>
    %c5 = arith.constant 5 : index
    %c0_32 = arith.constant 0 : index
    %c0_33 = arith.constant 0 : index
    %33 = vector.load %arg1[%c5, %c0_32, %c0_33] : memref<16x3x8xbf16, #tpu.memory_space<vmem>>, vector<1x3x8xbf16>
    %34 = vector.shape_cast %33 : vector<1x3x8xbf16> to vector<3x8xbf16>
    %c2_34 = arith.constant 2 : index
    %c0_35 = arith.constant 0 : index
    %c0_36 = arith.constant 0 : index
    %35 = vector.load %arg2[%c2_34, %c0_35, %c0_36] : memref<9x8x1024xbf16, #tpu.memory_space<vmem>>, vector<1x8x1024xbf16>
    %36 = vector.shape_cast %35 : vector<1x8x1024xbf16> to vector<8x1024xbf16>
    %cst_37 = arith.constant dense<0.000000e+00> : vector<3x1024xf32>
    %37 = tpu.matmul %34, %36, %cst_37 {dimension_numbers = #tpu.dot_dimension_numbers<[1], [0], [0], [1], [0, 0, 1, 1], [], []>} : vector<3x8xbf16>, vector<8x1024xbf16>, vector<3x1024xf32> -> vector<3x1024xf32>
    %38 = arith.addf %32, %37 : vector<3x1024xf32>
    %c6 = arith.constant 6 : index
    %c0_38 = arith.constant 0 : index
    %c0_39 = arith.constant 0 : index
    %39 = vector.load %arg1[%c6, %c0_38, %c0_39] : memref<16x3x8xbf16, #tpu.memory_space<vmem>>, vector<1x3x8xbf16>
    %40 = vector.shape_cast %39 : vector<1x3x8xbf16> to vector<3x8xbf16>
    %c4_40 = arith.constant 4 : index
    %c0_41 = arith.constant 0 : index
    %c0_42 = arith.constant 0 : index
    %41 = vector.load %arg2[%c4_40, %c0_41, %c0_42] : memref<9x8x1024xbf16, #tpu.memory_space<vmem>>, vector<1x8x1024xbf16>
    %42 = vector.shape_cast %41 : vector<1x8x1024xbf16> to vector<8x1024xbf16>
    %cst_43 = arith.constant dense<0.000000e+00> : vector<3x1024xf32>
    %43 = tpu.matmul %40, %42, %cst_43 {dimension_numbers = #tpu.dot_dimension_numbers<[1], [0], [0], [1], [0, 0, 1, 1], [], []>} : vector<3x8xbf16>, vector<8x1024xbf16>, vector<3x1024xf32> -> vector<3x1024xf32>
    %44 = arith.addf %38, %43 : vector<3x1024xf32>
    %c7 = arith.constant 7 : index
    %c0_44 = arith.constant 0 : index
    %c0_45 = arith.constant 0 : index
    %45 = vector.load %arg1[%c7, %c0_44, %c0_45] : memref<16x3x8xbf16, #tpu.memory_space<vmem>>, vector<1x3x8xbf16>
    %46 = vector.shape_cast %45 : vector<1x3x8xbf16> to vector<3x8xbf16>
    %c5_46 = arith.constant 5 : index
    %c0_47 = arith.constant 0 : index
    %c0_48 = arith.constant 0 : index
    %47 = vector.load %arg2[%c5_46, %c0_47, %c0_48] : memref<9x8x1024xbf16, #tpu.memory_space<vmem>>, vector<1x8x1024xbf16>
    %48 = vector.shape_cast %47 : vector<1x8x1024xbf16> to vector<8x1024xbf16>
    %cst_49 = arith.constant dense<0.000000e+00> : vector<3x1024xf32>
    %49 = tpu.matmul %46, %48, %cst_49 {dimension_numbers = #tpu.dot_dimension_numbers<[1], [0], [0], [1], [0, 0, 1, 1], [], []>} : vector<3x8xbf16>, vector<8x1024xbf16>, vector<3x1024xf32> -> vector<3x1024xf32>
    %50 = arith.addf %44, %49 : vector<3x1024xf32>
    %51 = math.tanh %50 : vector<3x1024xf32>
    %52 = arith.truncf %51 : vector<3x1024xf32> to vector<3x1024xbf16>
    %c1_50 = arith.constant 1 : index
    %c0_51 = arith.constant 0 : index
    %c0_52 = arith.constant 0 : index
    %53 = vector.load %arg3[%c1_50, %c0_51, %c0_52] : memref<4x3x1024xbf16, #tpu.memory_space<vmem>>, vector<1x3x1024xbf16>
    %54 = vector.shape_cast %53 : vector<1x3x1024xbf16> to vector<3x1024xbf16>
    %55 = vector.shape_cast %52 : vector<3x1024xbf16> to vector<1x3x1024xbf16>
    tpu.vector_store %arg3[%c1_50, %c0_51, %c0_52], %55 {strides = array<i32>} : memref<4x3x1024xbf16, #tpu.memory_space<vmem>>, vector<1x3x1024xbf16>,
    %c8 = arith.constant 8 : index
    %c0_53 = arith.constant 0 : index
    %c0_54 = arith.constant 0 : index
    %56 = vector.load %arg1[%c8, %c0_53, %c0_54] : memref<16x3x8xbf16, #tpu.memory_space<vmem>>, vector<1x3x8xbf16>
    %57 = vector.shape_cast %56 : vector<1x3x8xbf16> to vector<3x8xbf16>
    %c3_55 = arith.constant 3 : index
    %c0_56 = arith.constant 0 : index
    %c0_57 = arith.constant 0 : index
    %58 = vector.load %arg2[%c3_55, %c0_56, %c0_57] : memref<9x8x1024xbf16, #tpu.memory_space<vmem>>, vector<1x8x1024xbf16>
    %59 = vector.shape_cast %58 : vector<1x8x1024xbf16> to vector<8x1024xbf16>
    %cst_58 = arith.constant dense<0.000000e+00> : vector<3x1024xf32>
    %60 = tpu.matmul %57, %59, %cst_58 {dimension_numbers = #tpu.dot_dimension_numbers<[1], [0], [0], [1], [0, 0, 1, 1], [], []>} : vector<3x8xbf16>, vector<8x1024xbf16>, vector<3x1024xf32> -> vector<3x1024xf32>
    %c9 = arith.constant 9 : index
    %c0_59 = arith.constant 0 : index
    %c0_60 = arith.constant 0 : index
    %61 = vector.load %arg1[%c9, %c0_59, %c0_60] : memref<16x3x8xbf16, #tpu.memory_space<vmem>>, vector<1x3x8xbf16>
    %62 = vector.shape_cast %61 : vector<1x3x8xbf16> to vector<3x8xbf16>
    %c4_61 = arith.constant 4 : index
    %c0_62 = arith.constant 0 : index
    %c0_63 = arith.constant 0 : index
    %63 = vector.load %arg2[%c4_61, %c0_62, %c0_63] : memref<9x8x1024xbf16, #tpu.memory_space<vmem>>, vector<1x8x1024xbf16>
    %64 = vector.shape_cast %63 : vector<1x8x1024xbf16> to vector<8x1024xbf16>
    %cst_64 = arith.constant dense<0.000000e+00> : vector<3x1024xf32>
    %65 = tpu.matmul %62, %64, %cst_64 {dimension_numbers = #tpu.dot_dimension_numbers<[1], [0], [0], [1], [0, 0, 1, 1], [], []>} : vector<3x8xbf16>, vector<8x1024xbf16>, vector<3x1024xf32> -> vector<3x1024xf32>
    %66 = arith.addf %60, %65 : vector<3x1024xf32>
    %c10 = arith.constant 10 : index
    %c0_65 = arith.constant 0 : index
    %c0_66 = arith.constant 0 : index
    %67 = vector.load %arg1[%c10, %c0_65, %c0_66] : memref<16x3x8xbf16, #tpu.memory_space<vmem>>, vector<1x3x8xbf16>
    %68 = vector.shape_cast %67 : vector<1x3x8xbf16> to vector<3x8xbf16>
    %c6_67 = arith.constant 6 : index
    %c0_68 = arith.constant 0 : index
    %c0_69 = arith.constant 0 : index
    %69 = vector.load %arg2[%c6_67, %c0_68, %c0_69] : memref<9x8x1024xbf16, #tpu.memory_space<vmem>>, vector<1x8x1024xbf16>
    %70 = vector.shape_cast %69 : vector<1x8x1024xbf16> to vector<8x1024xbf16>
    %cst_70 = arith.constant dense<0.000000e+00> : vector<3x1024xf32>
    %71 = tpu.matmul %68, %70, %cst_70 {dimension_numbers = #tpu.dot_dimension_numbers<[1], [0], [0], [1], [0, 0, 1, 1], [], []>} : vector<3x8xbf16>, vector<8x1024xbf16>, vector<3x1024xf32> -> vector<3x1024xf32>
    %72 = arith.addf %66, %71 : vector<3x1024xf32>
    %c11 = arith.constant 11 : index
    %c0_71 = arith.constant 0 : index
    %c0_72 = arith.constant 0 : index
    %73 = vector.load %arg1[%c11, %c0_71, %c0_72] : memref<16x3x8xbf16, #tpu.memory_space<vmem>>, vector<1x3x8xbf16>
    %74 = vector.shape_cast %73 : vector<1x3x8xbf16> to vector<3x8xbf16>
    %c7_73 = arith.constant 7 : index
    %c0_74 = arith.constant 0 : index
    %c0_75 = arith.constant 0 : index
    %75 = vector.load %arg2[%c7_73, %c0_74, %c0_75] : memref<9x8x1024xbf16, #tpu.memory_space<vmem>>, vector<1x8x1024xbf16>
    %76 = vector.shape_cast %75 : vector<1x8x1024xbf16> to vector<8x1024xbf16>
    %cst_76 = arith.constant dense<0.000000e+00> : vector<3x1024xf32>
    %77 = tpu.matmul %74, %76, %cst_76 {dimension_numbers = #tpu.dot_dimension_numbers<[1], [0], [0], [1], [0, 0, 1, 1], [], []>} : vector<3x8xbf16>, vector<8x1024xbf16>, vector<3x1024xf32> -> vector<3x1024xf32>
    %78 = arith.addf %72, %77 : vector<3x1024xf32>
    %79 = math.tanh %78 : vector<3x1024xf32>
    %80 = arith.truncf %79 : vector<3x1024xf32> to vector<3x1024xbf16>
    %c2_77 = arith.constant 2 : index
    %c0_78 = arith.constant 0 : index
    %c0_79 = arith.constant 0 : index
    %81 = vector.load %arg3[%c2_77, %c0_78, %c0_79] : memref<4x3x1024xbf16, #tpu.memory_space<vmem>>, vector<1x3x1024xbf16>
    %82 = vector.shape_cast %81 : vector<1x3x1024xbf16> to vector<3x1024xbf16>
    %83 = vector.shape_cast %80 : vector<3x1024xbf16> to vector<1x3x1024xbf16>
    tpu.vector_store %arg3[%c2_77, %c0_78, %c0_79], %83 {strides = array<i32>} : memref<4x3x1024xbf16, #tpu.memory_space<vmem>>, vector<1x3x1024xbf16>,
    %c12 = arith.constant 12 : index
    %c0_80 = arith.constant 0 : index
    %c0_81 = arith.constant 0 : index
    %84 = vector.load %arg1[%c12, %c0_80, %c0_81] : memref<16x3x8xbf16, #tpu.memory_space<vmem>>, vector<1x3x8xbf16>
    %85 = vector.shape_cast %84 : vector<1x3x8xbf16> to vector<3x8xbf16>
    %c4_82 = arith.constant 4 : index
    %c0_83 = arith.constant 0 : index
    %c0_84 = arith.constant 0 : index
    %86 = vector.load %arg2[%c4_82, %c0_83, %c0_84] : memref<9x8x1024xbf16, #tpu.memory_space<vmem>>, vector<1x8x1024xbf16>
    %87 = vector.shape_cast %86 : vector<1x8x1024xbf16> to vector<8x1024xbf16>
    %cst_85 = arith.constant dense<0.000000e+00> : vector<3x1024xf32>
    %88 = tpu.matmul %85, %87, %cst_85 {dimension_numbers = #tpu.dot_dimension_numbers<[1], [0], [0], [1], [0, 0, 1, 1], [], []>} : vector<3x8xbf16>, vector<8x1024xbf16>, vector<3x1024xf32> -> vector<3x1024xf32>
    %c13 = arith.constant 13 : index
    %c0_86 = arith.constant 0 : index
    %c0_87 = arith.constant 0 : index
    %89 = vector.load %arg1[%c13, %c0_86, %c0_87] : memref<16x3x8xbf16, #tpu.memory_space<vmem>>, vector<1x3x8xbf16>
    %90 = vector.shape_cast %89 : vector<1x3x8xbf16> to vector<3x8xbf16>
    %c5_88 = arith.constant 5 : index
    %c0_89 = arith.constant 0 : index
    %c0_90 = arith.constant 0 : index
    %91 = vector.load %arg2[%c5_88, %c0_89, %c0_90] : memref<9x8x1024xbf16, #tpu.memory_space<vmem>>, vector<1x8x1024xbf16>
    %92 = vector.shape_cast %91 : vector<1x8x1024xbf16> to vector<8x1024xbf16>
    %cst_91 = arith.constant dense<0.000000e+00> : vector<3x1024xf32>
    %93 = tpu.matmul %90, %92, %cst_91 {dimension_numbers = #tpu.dot_dimension_numbers<[1], [0], [0], [1], [0, 0, 1, 1], [], []>} : vector<3x8xbf16>, vector<8x1024xbf16>, vector<3x1024xf32> -> vector<3x1024xf32>
    %94 = arith.addf %88, %93 : vector<3x1024xf32>
    %c14 = arith.constant 14 : index
    %c0_92 = arith.constant 0 : index
    %c0_93 = arith.constant 0 : index
    %95 = vector.load %arg1[%c14, %c0_92, %c0_93] : memref<16x3x8xbf16, #tpu.memory_space<vmem>>, vector<1x3x8xbf16>
    %96 = vector.shape_cast %95 : vector<1x3x8xbf16> to vector<3x8xbf16>
    %c7_94 = arith.constant 7 : index
    %c0_95 = arith.constant 0 : index
    %c0_96 = arith.constant 0 : index
    %97 = vector.load %arg2[%c7_94, %c0_95, %c0_96] : memref<9x8x1024xbf16, #tpu.memory_space<vmem>>, vector<1x8x1024xbf16>
    %98 = vector.shape_cast %97 : vector<1x8x1024xbf16> to vector<8x1024xbf16>
    %cst_97 = arith.constant dense<0.000000e+00> : vector<3x1024xf32>
    %99 = tpu.matmul %96, %98, %cst_97 {dimension_numbers = #tpu.dot_dimension_numbers<[1], [0], [0], [1], [0, 0, 1, 1], [], []>} : vector<3x8xbf16>, vector<8x1024xbf16>, vector<3x1024xf32> -> vector<3x1024xf32>
    %100 = arith.addf %94, %99 : vector<3x1024xf32>
    %c15 = arith.constant 15 : index
    %c0_98 = arith.constant 0 : index
    %c0_99 = arith.constant 0 : index
    %101 = vector.load %arg1[%c15, %c0_98, %c0_99] : memref<16x3x8xbf16, #tpu.memory_space<vmem>>, vector<1x3x8xbf16>
    %102 = vector.shape_cast %101 : vector<1x3x8xbf16> to vector<3x8xbf16>
    %c8_100 = arith.constant 8 : index
    %c0_101 = arith.constant 0 : index
    %c0_102 = arith.constant 0 : index
    %103 = vector.load %arg2[%c8_100, %c0_101, %c0_102] : memref<9x8x1024xbf16, #tpu.memory_space<vmem>>, vector<1x8x1024xbf16>
    %104 = vector.shape_cast %103 : vector<1x8x1024xbf16> to vector<8x1024xbf16>
    %cst_103 = arith.constant dense<0.000000e+00> : vector<3x1024xf32>
    %105 = tpu.matmul %102, %104, %cst_103 {dimension_numbers = #tpu.dot_dimension_numbers<[1], [0], [0], [1], [0, 0, 1, 1], [], []>} : vector<3x8xbf16>, vector<8x1024xbf16>, vector<3x1024xf32> -> vector<3x1024xf32>
    %106 = arith.addf %100, %105 : vector<3x1024xf32>
    %107 = math.tanh %106 : vector<3x1024xf32>
    %108 = arith.truncf %107 : vector<3x1024xf32> to vector<3x1024xbf16>
    %c3_104 = arith.constant 3 : index
    %c0_105 = arith.constant 0 : index
    %c0_106 = arith.constant 0 : index
    %109 = vector.load %arg3[%c3_104, %c0_105, %c0_106] : memref<4x3x1024xbf16, #tpu.memory_space<vmem>>, vector<1x3x1024xbf16>
    %110 = vector.shape_cast %109 : vector<1x3x1024xbf16> to vector<3x1024xbf16>
    %111 = vector.shape_cast %108 : vector<3x1024xbf16> to vector<1x3x1024xbf16>
    tpu.vector_store %arg3[%c3_104, %c0_105, %c0_106], %111 {strides = array<i32>} : memref<4x3x1024xbf16, #tpu.memory_space<vmem>>, vector<1x3x1024xbf16>,
    return
  }
  func.func @transform_0(%arg0: i32) -> (i32, i32, i32) {
    %c0_i32 = arith.constant 0 : i32
    %c0_i32_0 = arith.constant 0 : i32
    %c0_i32_1 = arith.constant 0 : i32
    %c0_i32_2 = arith.constant 0 : i32
    return %c0_i32, %c0_i32_0, %c0_i32_1 : i32, i32, i32
  }
  func.func @transform_1(%arg0: i32) -> (i32, i32, i32) {
    %c0_i32 = arith.constant 0 : i32
    %c0_i32_0 = arith.constant 0 : i32
    %c0_i32_1 = arith.constant 0 : i32
    return %c0_i32, %c0_i32_0, %arg0 : i32, i32, i32
  }
  func.func @transform_2(%arg0: i32) -> (i32, i32, i32) {
    %c0_i32 = arith.constant 0 : i32
    %c0_i32_0 = arith.constant 0 : i32
    %c0_i32_1 = arith.constant 0 : i32
    return %c0_i32, %c0_i32_0, %arg0 : i32, i32, i32
  }
}

</mosaic_0001>

<bundles_post_ra>
// kernel: generator_forward.10
= control target key start
LH: loop header
LB: loop body
LE: loop exit
PB: predicated region body
PF: predicated region fallthrough
CT: control target
= control target key end

     0   :  { %v268_v0 = vmov 0   ;;  %s367_s1 = inlined_call_operand.vmem [shape: f32[32,1], index: 1, kind: input, shape index: {}]   ;;  %s368_s2 = inlined_call_operand.vmem [shape: f32[32,1], index: 2, kind: input, shape index: {}]   ;;  %s369_s0 = inlined_call_operand.vmem [shape: bf16[4,32,128], index: 0, kind: input, shape index: {}]   ;;  %s370_s3 = inlined_call_operand.vmem [shape: bf16[4,32,128], index: 3, kind: output, shape index: {}]  }
   0x1   :  { %266 = vset.pattern.permute.xlu1 %v268_v0  ;;  %265 = vset.pattern.permute.xlu0 %v268_v0  ;;  %v48_v1 = vld [vmem:[%s367_s1 + $0x10] sm:$0xff]  ;;  %v46_v2 = vld [vmem:[%s367_s1] sm:$0xff]  ;;  %v49_v4 = vld [vmem:[%s367_s1 + $0x18] sm:$0xff] }
   0x2   :  { %62 = vperm.xlu1 %266, %v48_v1   ;;  %52 = vperm.xlu0 %265, %v46_v2   ;;  %v86_v3 = vld [vmem:[%s368_s2] sm:$0xff]  ;;  %v47_v5 = vld [vmem:[%s367_s1 + $0x8] sm:$0xff]  ;;  %v89_v7 = vld [vmem:[%s368_s2 + $0x18] sm:$0xff] }
   0x3   :  { %267 = vset.pattern.permute.xlu2 %v268_v0  ;;  %v87_v6 = vld [vmem:[%s368_s2 + $0x8] sm:$0xff]  ;;  %v88_v8 = vld [vmem:[%s368_s2 + $0x10] sm:$0xff]  ;;  %v179_v9 = vld [vmem:[%s369_s0] sm:$0xff]  }
   0x4   :  { %92 = vperm.xlu2 %267, %v86_v3   ;;  %v251_v10 = vld [vmem:[%s369_s0 + $0x10] sm:$0xff]   ;;  %v253_v11 = vld [vmem:[%s369_s0 + $0x20] sm:$0xff]   ;;  %v180_v16 = vunpack.c.l.bf16 %v179_v9  ;;  %v250_v20 = vld [vmem:[%s369_s0 + $0x8] sm:$0xff]   ;;  %v181_v27 = vunpack.c.h.bf16 %v179_v9 }
   0x5   :  { %v255_v13 = vld [vmem:[%s369_s0 + $0x30] sm:$0xff]   ;;  %v188_v17 = vunpack.c.l.bf16 %v251_v10  ;;  %v196_v18 = vunpack.c.l.bf16 %v253_v11  ;;  %v252_v24 = vld [vmem:[%s369_s0 + $0x18] sm:$0xff]   ;;  %v254_v25 = vld [vmem:[%s369_s0 + $0x28] sm:$0xff]   ;;  %v189_v28 = vunpack.c.h.bf16 %v251_v10  ;;  %v197_v29 = vunpack.c.h.bf16 %v253_v11 }
   0x6   :  { %v204_v19 = vunpack.c.l.bf16 %v255_v13  ;;  %v256_v26 = vld [vmem:[%s369_s0 + $0x38] sm:$0xff]   ;;  %v205_v30 = vunpack.c.h.bf16 %v255_v13  ;;  %v184_v32 = vunpack.c.l.bf16 %v250_v20  ;;  %v192_v33 = vunpack.c.l.bf16 %v252_v24 }
   0x7   :  { %v200_v34 = vunpack.c.l.bf16 %v254_v25  ;;  %v208_v35 = vunpack.c.l.bf16 %v256_v26  ;;  %v185_v41 = vunpack.c.h.bf16 %v250_v20  ;;  %v193_v48 = vunpack.c.h.bf16 %v252_v24 }
   0x8   :  { %v201_v49 = vunpack.c.h.bf16 %v254_v25  ;;  %v209_v50 = vunpack.c.h.bf16 %v256_v26 }
   0xa   :  { %67 = vperm.xlu1 %266, %v49_v4   ;;  %57 = vperm.xlu0 %265, %v47_v5  }
   0xc   :  { %97 = vperm.xlu2 %267, %v87_v6  }
  0x12   :  { %107 = vperm.xlu1 %266, %v89_v7   ;;  %102 = vperm.xlu0 %265, %v88_v8  }
  0x5e   :  { %v93_v12 = vpop.permute.xlu2 %92 }
  0x66   :  { %v98_v47 = vpop.permute.xlu2 %97 }
  0x74   :  { %v325_v14 = vpop.permute.xlu1 %62  ;;  %v53_v15 = vpop.permute.xlu0 %52 }
  0x75   :  { %v70_v21 = vmul.f32 %v180_v16, %v53_v15  ;;  %v74_v22 = vmul.f32 %v188_v17, %v53_v15  ;;  %v78_v23 = vmul.f32 %v196_v18, %v53_v15  ;;  %v82_v31 = vmul.f32 %v204_v19, %v53_v15 }
  0x76   :  { %v72_v58 = vmul.f32 %v184_v32, %v325_v14  ;;  %v76_v10 = vmul.f32 %v192_v33, %v325_v14  ;;  %v80_v11 = vmul.f32 %v200_v34, %v325_v14 }
  0x77   :  { %v110_v36 = vadd.f32 %v93_v12, %v70_v21  ;;  %v114_v37 = vadd.f32 %v93_v12, %v74_v22  ;;  %v118_v38 = vadd.f32 %v93_v12, %v78_v23  ;;  %v122_v46 = vadd.f32 %v93_v12, %v82_v31 }
  0x78   :  { %v84_v12 = vmul.f32 %v208_v35, %v325_v14 }
  0x79   :  { %v126_v55 = vmax.f32 %v110_v36, 0.0  ;;  %v130_v56 = vmax.f32 %v114_v37, 0.0  ;;  %v134_v57 = vmax.f32 %v118_v38, 0.0  ;;  %v138_v63 = vmax.f32 %v122_v46, 0.0 }
  0x7c   :  { %v68_v39 = vpop.permute.xlu1 %67  ;;  %v58_v40 = vpop.permute.xlu0 %57 }
  0x7d   :  { %v71_v42 = vmul.f32 %v181_v27, %v58_v40  ;;  %v75_v43 = vmul.f32 %v189_v28, %v58_v40  ;;  %v79_v44 = vmul.f32 %v197_v29, %v58_v40  ;;  %v83_v45 = vmul.f32 %v205_v30, %v58_v40 }
  0x7e   :  { %v73_v0 = vmul.f32 %v185_v41, %v68_v39  ;;  %v77_v1 = vmul.f32 %v193_v48, %v68_v39  ;;  %v81_v2 = vmul.f32 %v201_v49, %v68_v39  ;;  %v85_v6 = vmul.f32 %v209_v50, %v68_v39 }
  0x7f   :  { %v111_v51 = vadd.f32 %v98_v47, %v71_v42  ;;  %v115_v52 = vadd.f32 %v98_v47, %v75_v43  ;;  %v119_v53 = vadd.f32 %v98_v47, %v79_v44  ;;  %v123_v54 = vadd.f32 %v98_v47, %v83_v45 }
  0x81   :  { %v127_v59 = vmax.f32 %v111_v51, 0.0  ;;  %v131_v60 = vmax.f32 %v115_v52, 0.0  ;;  %v135_v61 = vmax.f32 %v119_v53, 0.0  ;;  %v139_v62 = vmax.f32 %v123_v54, 0.0 }
  0x83   :  { %v213_v3 = vpack.c.bf16 %v127_v59, %v126_v55  ;;  %v223_v4 = vpack.c.bf16 %v131_v60, %v130_v56  ;;  %v233_v5 = vpack.c.bf16 %v135_v61, %v134_v57  ;;  %v243_v7 = vpack.c.bf16 %v139_v62, %v138_v63 }
  0x84   :  { %v108_v8 = vpop.permute.xlu1 %107  ;;  %v103_v9 = vpop.permute.xlu0 %102 }
  0x85   :  { %214 = vst [vmem:[%s370_s3] sm:$0xff] %v213_v3   ;;  %v113_v13 = vadd.f32 %v108_v8, %v73_v0  ;;  %v117_v15 = vadd.f32 %v108_v8, %v77_v1  ;;  %v121_v16 = vadd.f32 %v108_v8, %v81_v2  ;;  %v125_v17 = vadd.f32 %v108_v8, %v85_v6 }
  0x86   :  { %258 = vst [vmem:[%s370_s3 + $0x10] sm:$0xff] %v223_v4   ;;  %v112_v18 = vadd.f32 %v103_v9, %v72_v58  ;;  %v116_v19 = vadd.f32 %v103_v9, %v76_v10  ;;  %v120_v20 = vadd.f32 %v103_v9, %v80_v11  ;;  %v124_v21 = vadd.f32 %v103_v9, %v84_v12 }
  0x87   :  { %260 = vst [vmem:[%s370_s3 + $0x20] sm:$0xff] %v233_v5   ;;  %v129_v14 = vmax.f32 %v113_v13, 0.0  ;;  %v133_v22 = vmax.f32 %v117_v15, 0.0  ;;  %v137_v23 = vmax.f32 %v121_v16, 0.0  ;;  %v141_v24 = vmax.f32 %v125_v17, 0.0 }
  0x88   :  { %262 = vst [vmem:[%s370_s3 + $0x30] sm:$0xff] %v243_v7   ;;  %v128_v25 = vmax.f32 %v112_v18, 0.0  ;;  %v132_v26 = vmax.f32 %v116_v19, 0.0  ;;  %v136_v27 = vmax.f32 %v120_v20, 0.0  ;;  %v140_v28 = vmax.f32 %v124_v21, 0.0 }
  0x8a   :  { %v218_v29 = vpack.c.bf16 %v129_v14, %v128_v25  ;;  %v228_v30 = vpack.c.bf16 %v133_v22, %v132_v26  ;;  %v238_v31 = vpack.c.bf16 %v137_v23, %v136_v27  ;;  %v248_v32 = vpack.c.bf16 %v141_v24, %v140_v28 }
  0x8c   :  { %257 = vst [vmem:[%s370_s3 + $0x8] sm:$0xff] %v218_v29  }
  0x8d   :  { %259 = vst [vmem:[%s370_s3 + $0x18] sm:$0xff] %v228_v30  }
  0x8e   :  { %261 = vst [vmem:[%s370_s3 + $0x28] sm:$0xff] %v238_v31  }
  0x8f   :  { %263 = vst [vmem:[%s370_s3 + $0x38] sm:$0xff] %v248_v32  }

// kernel: generator_forward.8
= control target key start
LH: loop header
LB: loop body
LE: loop exit
PB: predicated region body
PF: predicated region fallthrough
CT: control target
= control target key end

     0   :  { %10 = vsyncpa [#allocation3], 0  ;;  %s4083_s0 = inlined_call_operand.vmem [shape: bf16[2,16], index: 0, kind: input, shape index: {}]   ;;  %s4084_s1 = inlined_call_operand.vmem [shape: bf16[16,1024], index: 1, kind: input, shape index: {}]   ;;  %s4085_s2 = inlined_call_operand.vmem [shape: f32[1024,64], index: 2, kind: input, shape index: {}]   ;;  %s4086_s3 = inlined_call_operand.hbm [shape: f32[1,64], index: 3, kind: input, shape index: {}]   ;;  %s4087_s4 = inlined_call_operand.hbm [shape: f32[1,64], index: 4, kind: input, shape index: {}]   ;;  %s4088_s5 = inlined_call_operand.vmem [shape: bf16[2,1024], index: 5, kind: output, shape index: {}]  }
   0x1   :  { %s23_s20 = sshll.u32 %s4086_s3, 4  ;;  %s24_s20 = int_to_ptr.hbm [resolvable:$true] %s23_s20 }
   0x2   :  { %11 = vsyncpa [#allocation5], 0  ;;  %s2105_s21 = smov [#allocation2]   ;;  %s34_s25 = sshll.u32 %s4087_s4, 4  ;;  %s35_s25 = int_to_ptr.hbm [resolvable:$true] %s34_s25 }
   0x3   :  { %s25_s22 = sshll.u32 %s2105_s21, 4  ;;  %s2106_s26 = smov [#allocation4]   ;;  %s26_s22 = int_to_ptr.vmem [resolvable:$true] %s25_s22 }
   0x4   :  { %28 = dma.hbm_to_vmem [thread:$0]  %s24_s20, 16, %s26_s22, [#allocation3]  }
   0x5   :  { %s36_s27 = sshll.u32 %s2106_s26, 4  ;;  %s37_s27 = int_to_ptr.vmem [resolvable:$true] %s36_s27 }
   0x6   :  { %39 = dma.hbm_to_vmem [thread:$0]  %s35_s25, 16, %s37_s27, [#allocation5]  }
   0x7   :  { %2101 = dma.done.wait [#allocation3], 16  }
   0x8   :  { %2102 = vsyncadd [#allocation3], 4294967280 }
   0x9   :  { %2103 = dma.done.wait [#allocation5], 16  }
   0xa   :  { %2104 = vsyncadd [#allocation5], 4294967280  ;;  %vm98_vm0 = vcmask 130048   ;;  %v1600_v0 = vld [vmem:[%s4084_s1] sm:$0xf]  ;;  %v2206_v25 = vld [vmem:[%s4085_s2 + $0x78] sm:$0xff] }
   0xb   :  { %v1914_v1 = vld [vmem:[%s4084_s1 + $0x1c] sm:$0xf0]  ;;  %v1910_v2 = vld [vmem:[%s4084_s1 + $0x4] sm:$0xf]  ;;  %v1608_v5 = vld [vmem:[%s4084_s1 + $0x8] sm:$0xf] }
   0xc   :  { %v1601_v3 = vor.u32 %v1914_v1, %v1600_v0  ;;  %v1602_v4 = vld [vmem:[%s4084_s1 + $0x20] sm:$0xf0]  ;;  %v1915_v6 = vld [vmem:[%s4084_s1 + $0x24] sm:$0xf0]  ;;  %v1911_v9 = vld [vmem:[%s4084_s1 + $0xc] sm:$0xf] }
   0xd   :  { %v1605_v7 = vor.u32 %v1910_v2, %v1602_v4  ;;  %v1609_v8 = vor.u32 %v1915_v6, %v1608_v5  ;;  %v1610_v10 = vld [vmem:[%s4084_s1 + $0x28] sm:$0xf0]  ;;  %v2171_v11 = vld [vmem:[%s4083_s0] sm:$0x1]  ;;  %v1616_v13 = vld [vmem:[%s4084_s1 + $0x10] sm:$0xf] }
   0xe   :  { %109 = vmatpush.bf16.msra.mxu0 %v1601_v3  ;;  %v1613_v12 = vor.u32 %v1911_v9, %v1610_v10  ;;  %v1916_v14 = vld [vmem:[%s4084_s1 + $0x2c] sm:$0xf0]  ;;  %v1624_v15 = vld [vmem:[%s4084_s1 + $0x18] sm:$0xf]  ;;  %v1912_v18 = vld [vmem:[%s4084_s1 + $0x14] sm:$0xf] }
   0xf   :  { %122 = vmatpush.bf16.msra.mxu1 %v1605_v7  ;;  %135 = vmatpush.bf16.msra.mxu2 %v1609_v8  ;;  %v1617_v16 = vor.u32 %v1916_v14, %v1616_v13  ;;  %v1917_v17 = vld [vmem:[%s4084_s1 + $0x34] sm:$0xf0]  ;;  %v1618_v19 = vld [vmem:[%s4084_s1 + $0x30] sm:$0xf0]  ;;  %v1913_v22 = vld [vmem:[%s4084_s1 + $0x1c] sm:$0xf] }
  0x10   :  { %148 = vmatpush.bf16.msra.mxu3 %v1613_v12  ;;  %v1625_v20 = vor.u32 %v1917_v17, %v1624_v15  ;;  %v1621_v21 = vor.u32 %v1912_v18, %v1618_v19  ;;  %v1626_v23 = vld [vmem:[%s4084_s1 + $0x38] sm:$0xf0]  ;;  %v2223_v28 = vld [vmem:[%s4085_s2 + $0x70] sm:$0xff]  ;;  %v2245_v32 = vld [vmem:[%s4085_s2 + $0x68] sm:$0xff]  ;;  %vm206_vm1 = vcmask 1041408   ;;  %vm803_vm2 = vcmask 523264  }
  0x11   :  { %1630 = vmatmul.msk.bf16.vlgmr.msra.gmra.mxu0 %vm98_vm0, %v2171_v11  ;;  %v1629_v24 = vor.u32 %v1913_v22, %v1626_v23  ;;  %v2213_v26 = vld [vmem:[%s4085_s2 + $0xf8] sm:$0xff]  ;;  %v2234_v30 = vld [vmem:[%s4085_s2 + $0xf0] sm:$0xff]  ;;  %v2257_v34 = vld [vmem:[%s4085_s2 + $0xe8] sm:$0xff]  ;;  %vm1573_vm7 = vcmask 1042434   ;;  %vm1569_vm8 = vcmask 1040384   ;;  %vm1578_vm9 = vcmask 1044484  }
  0x12   :  { %1631 = vmatmul.msk.bf16.vlgmr.msra.gmra.mxu1 %vm98_vm0, %v2171_v11  ;;  %1632 = vmatmul.msk.bf16.vlgmr.msra.gmra.mxu2 %vm98_vm0, %v2171_v11  ;;  %v2218_v27 = vld [vmem:[%s4085_s2 + $0x178] sm:$0xff]  ;;  %v2239_v31 = vld [vmem:[%s4085_s2 + $0x170] sm:$0xff]  ;;  %v2263_v35 = vld [vmem:[%s4085_s2 + $0x168] sm:$0xff]  ;;  %vm1582_vm10 = vcmask 1046534   ;;  %vm1586_vm11 = vcmask 1045508   ;;  %vm1588_vm12 = vcmask 1043456  }
  0x13   :  { %1633 = vmatmul.msk.bf16.vlgmr.msra.gmra.mxu3 %vm98_vm0, %v2171_v11  ;;  %161 = vmatpush.bf16.msrb.mxu0 %v1617_v16  ;;  %v2228_v29 = vld [vmem:[%s4085_s2 + $0x1f8] sm:$0xff]  ;;  %v2251_v33 = vld [vmem:[%s4085_s2 + $0x1f0] sm:$0xff]  ;;  %v2269_v36 = vld [vmem:[%s4085_s2 + $0x60] sm:$0xff] }
  0x14   :  { %187 = vmatpush.bf16.msrb.mxu2 %v1625_v20  ;;  %174 = vmatpush.bf16.msrb.mxu1 %v1621_v21  ;;  %v2275_v37 = vld [vmem:[%s4085_s2 + $0x1e8] sm:$0xff]  ;;  %v2281_v38 = vld [vmem:[%s4085_s2 + $0xe0] sm:$0xff]  ;;  %v2293_v40 = vld [vmem:[%s4085_s2 + $0x58] sm:$0xff] }
  0x15   :  { %200 = vmatpush.bf16.msrb.mxu3 %v1629_v24  ;;  %v2287_v39 = vld [vmem:[%s4085_s2 + $0x160] sm:$0xff]  ;;  %v2305_v42 = vld [vmem:[%s4085_s2 + $0xd8] sm:$0xff]  ;;  %v2317_v44 = vld [vmem:[%s4085_s2 + $0x50] sm:$0xff] }
  0x16   :  { %v2299_v41 = vld [vmem:[%s4085_s2 + $0x1e0] sm:$0xff]  ;;  %v2311_v43 = vld [vmem:[%s4085_s2 + $0x158] sm:$0xff]  ;;  %v2329_v46 = vld [vmem:[%s4085_s2 + $0xd0] sm:$0xff] }
  0x17   :  { %391 = vmatpush.msra.mxu0 %v2206_v25  ;;  %v2323_v45 = vld [vmem:[%s4085_s2 + $0x1d8] sm:$0xff]  ;;  %v2335_v47 = vld [vmem:[%s4085_s2 + $0x150] sm:$0xff]  ;;  %v2350_v49 = vld [vmem:[%s4085_s2 + $0x48] sm:$0xff] }
  0x18   :  { %411 = vmatpush.msra.mxu1 %v2213_v26  ;;  %431 = vmatpush.msra.mxu2 %v2218_v27  ;;  %v2342_v48 = vld [vmem:[%s4085_s2 + $0x1d0] sm:$0xff]  ;;  %v2358_v50 = vld [vmem:[%s4085_s2 + $0xc8] sm:$0xff]  ;;  %v2373_v52 = vld [vmem:[%s4085_s2 + $0x40] sm:$0xff] }
  0x19   :  { %392 = vmatpush.msra.mxu0 %v2223_v28  ;;  %451 = vmatpush.msra.mxu3 %v2228_v29  ;;  %v2364_v51 = vld [vmem:[%s4085_s2 + $0x148] sm:$0xff]  ;;  %v2386_v54 = vld [vmem:[%s4085_s2 + $0xc0] sm:$0xff]  ;;  %v2397_v56 = vld [vmem:[%s4085_s2 + $0x38] sm:$0xff] }
  0x1a   :  { %412 = vmatpush.msra.mxu1 %v2234_v30  ;;  %432 = vmatpush.msra.mxu2 %v2239_v31  ;;  %v2378_v53 = vld [vmem:[%s4085_s2 + $0x1c8] sm:$0xff]  ;;  %v2391_v55 = vld [vmem:[%s4085_s2 + $0x140] sm:$0xff]  ;;  %v2409_v58 = vld [vmem:[%s4085_s2 + $0xb8] sm:$0xff] }
  0x1b   :  { %393 = vmatpush.msra.mxu0 %v2245_v32  ;;  %452 = vmatpush.msra.mxu3 %v2251_v33  ;;  %v2403_v57 = vld [vmem:[%s4085_s2 + $0x1c0] sm:$0xff]  ;;  %v2415_v59 = vld [vmem:[%s4085_s2 + $0x138] sm:$0xff]  ;;  %v2421_v60 = vld [vmem:[%s4085_s2 + $0x30] sm:$0xff] }
  0x1c   :  { %413 = vmatpush.msra.mxu1 %v2257_v34  ;;  %433 = vmatpush.msra.mxu2 %v2263_v35  ;;  %4297 = vst [vmem:[#allocation8_spill] sm:$0xff] %v2415_v59  ;;  %v2427_v61 = vld [vmem:[%s4085_s2 + $0x1b8] sm:$0xff]  ;;  %v2433_v62 = vld [vmem:[%s4085_s2 + $0xb0] sm:$0xff]  ;;  %v2445_v0 = vld [vmem:[%s4085_s2 + $0x28] sm:$0xff] }
  0x1d   :  { %394 = vmatpush.msra.mxu0 %v2269_v36  ;;  %453 = vmatpush.msra.mxu3 %v2275_v37  ;;  %4298 = vst [vmem:[#allocation9_spill] sm:$0xff] %v2427_v61  ;;  %v2439_v63 = vld [vmem:[%s4085_s2 + $0x130] sm:$0xff]  ;;  %v2457_v2 = vld [vmem:[%s4085_s2 + $0xa8] sm:$0xff]  ;;  %v2469_v4 = vld [vmem:[%s4085_s2 + $0x20] sm:$0xff] }
  0x1e   :  { %414 = vmatpush.msra.mxu1 %v2281_v38  ;;  %434 = vmatpush.msra.mxu2 %v2287_v39  ;;  %4299 = vst [vmem:[#allocation10_spill] sm:$0xff] %v2439_v63  ;;  %v2451_v1 = vld [vmem:[%s4085_s2 + $0x1b0] sm:$0xff]  ;;  %v2463_v3 = vld [vmem:[%s4085_s2 + $0x128] sm:$0xff]  ;;  %v2481_v6 = vld [vmem:[%s4085_s2 + $0xa0] sm:$0xff] }
  0x1f   :  { %395 = vmatpush.msra.mxu0 %v2293_v40  ;;  %454 = vmatpush.msra.mxu3 %v2299_v41  ;;  %4300 = vst [vmem:[#allocation11_spill] sm:$0xff] %v2451_v1  ;;  %v2475_v5 = vld [vmem:[%s4085_s2 + $0x1a8] sm:$0xff]  ;;  %v2487_v7 = vld [vmem:[%s4085_s2 + $0x120] sm:$0xff]  ;;  %v2493_v8 = vld [vmem:[%s4085_s2 + $0x18] sm:$0xff] }
  0x20   :  { %415 = vmatpush.msra.mxu1 %v2305_v42  ;;  %435 = vmatpush.msra.mxu2 %v2311_v43  ;;  %4301 = vst [vmem:[#allocation12_spill] sm:$0xff] %v2463_v3  ;;  %v2499_v9 = vld [vmem:[%s4085_s2 + $0x1a0] sm:$0xff]  ;;  %v2505_v10 = vld [vmem:[%s4085_s2 + $0x98] sm:$0xff]  ;;  %v2517_v12 = vld [vmem:[%s4085_s2 + $0x10] sm:$0xff] }
  0x21   :  { %396 = vmatpush.msra.mxu0 %v2317_v44  ;;  %455 = vmatpush.msra.mxu3 %v2323_v45  ;;  %4302 = vst [vmem:[#allocation13_spill] sm:$0xff] %v2475_v5  ;;  %v2523_v13 = vld [vmem:[%s4085_s2 + $0x198] sm:$0xff]  ;;  %v2529_v14 = vld [vmem:[%s4085_s2 + $0x90] sm:$0xff]  ;;  %v2541_v16 = vld [vmem:[%s4085_s2 + $0x8] sm:$0xff] }
  0x22   :  { %416 = vmatpush.msra.mxu1 %v2329_v46  ;;  %436 = vmatpush.msra.mxu2 %v2335_v47  ;;  %4303 = vst [vmem:[#allocation14_spill] sm:$0xff] %v2487_v7  ;;  %v2535_v15 = vld [vmem:[%s4085_s2 + $0x110] sm:$0xff]  ;;  %v2553_v18 = vld [vmem:[%s4085_s2 + $0x88] sm:$0xff]  ;;  %v2565_v20 = vld [vmem:[%s4085_s2] sm:$0xff] }
  0x23   :  { %1634 = vmatmul.msk.bf16.vlgmr.msrb.gmra.mxu0 %vm98_vm0, %v2171_v11  ;;  %456 = vmatpush.msra.mxu3 %v2342_v48  ;;  %4304 = vst [vmem:[#allocation15_spill] sm:$0xff] %v2493_v8  ;;  %v2547_v17 = vld [vmem:[%s4085_s2 + $0x190] sm:$0xff]  ;;  %v2559_v19 = vld [vmem:[%s4085_s2 + $0x108] sm:$0xff]  ;;  %v2577_v22 = vld [vmem:[%s4085_s2 + $0x80] sm:$0xff] }
  0x24   :  { %1636 = vmatmul.msk.bf16.vlgmr.msrb.gmra.mxu2 %vm98_vm0, %v2171_v11  ;;  %1635 = vmatmul.msk.bf16.vlgmr.msrb.gmra.mxu1 %vm98_vm0, %v2171_v11  ;;  %4305 = vst [vmem:[#allocation16_spill] sm:$0xff] %v2499_v9  ;;  %v2571_v21 = vld [vmem:[%s4085_s2 + $0x188] sm:$0xff]  ;;  %v2582_v23 = vld [vmem:[%s4085_s2 + $0x278] sm:$0xff] }
  0x25   :  { %1637 = vmatmul.msk.bf16.vlgmr.msrb.gmra.mxu3 %vm98_vm0, %v2171_v11  ;;  %397 = vmatpush.msra.mxu0 %v2350_v49  ;;  %4306 = vst [vmem:[#allocation17_spill] sm:$0xff] %v2505_v10  ;;  %v2511_v11 = vld [vmem:[%s4085_s2 + $0x118] sm:$0xff] }
  0x26   :  { %417 = vmatpush.msra.mxu1 %v2358_v50  ;;  %437 = vmatpush.msra.mxu2 %v2364_v51  ;;  %4307 = vst [vmem:[#allocation18_spill] sm:$0xff] %v2511_v11  ;;  %v2589_v24 = vld [vmem:[%s4085_s2 + $0x2f8] sm:$0xff] }
  0x27   :  { %398 = vmatpush.msra.mxu0 %v2373_v52  ;;  %457 = vmatpush.msra.mxu3 %v2378_v53  ;;  %4308 = vst [vmem:[#allocation19_spill] sm:$0xff] %v2517_v12 }
  0x28   :  { %418 = vmatpush.msra.mxu1 %v2386_v54  ;;  %438 = vmatpush.msra.mxu2 %v2391_v55  ;;  %4309 = vst [vmem:[#allocation20_spill] sm:$0xff] %v2523_v13 }
  0x29   :  { %399 = vmatpush.msra.mxu0 %v2397_v56  ;;  %458 = vmatpush.msra.mxu3 %v2403_v57  ;;  %4310 = vst [vmem:[#allocation21_spill] sm:$0xff] %v2529_v14 }
  0x2a   :  { %419 = vmatpush.msra.mxu1 %v2409_v58  ;;  %439 = vmatpush.msra.mxu2 %v2415_v59  ;;  %4311 = vst [vmem:[#allocation22_spill] sm:$0xff] %v2535_v15 }
  0x2b   :  { %400 = vmatpush.msra.mxu0 %v2421_v60  ;;  %459 = vmatpush.msra.mxu3 %v2427_v61  ;;  %4312 = vst [vmem:[#allocation23_spill] sm:$0xff] %v2541_v16 }
  0x2c   :  { %420 = vmatpush.msra.mxu1 %v2433_v62  ;;  %440 = vmatpush.msra.mxu2 %v2439_v63  ;;  %4313 = vst [vmem:[#allocation24_spill] sm:$0xff] %v2547_v17 }
  0x2d   :  { %401 = vmatpush.msra.mxu0 %v2445_v0  ;;  %460 = vmatpush.msra.mxu3 %v2451_v1  ;;  %4314 = vst [vmem:[#allocation25_spill] sm:$0xff] %v2553_v18 }
  0x2e   :  { %421 = vmatpush.msra.mxu1 %v2457_v2  ;;  %441 = vmatpush.msra.mxu2 %v2463_v3  ;;  %4315 = vst [vmem:[#allocation26_spill] sm:$0xff] %v2559_v19 }
  0x2f   :  { %402 = vmatpush.msra.mxu0 %v2469_v4  ;;  %461 = vmatpush.msra.mxu3 %v2475_v5  ;;  %4316 = vst [vmem:[#allocation27_spill] sm:$0xff] %v2565_v20 }
  0x30   :  { %422 = vmatpush.msra.mxu1 %v2481_v6  ;;  %442 = vmatpush.msra.mxu2 %v2487_v7  ;;  %4317 = vst [vmem:[#allocation28_spill] sm:$0xff] %v2571_v21 }
  0x31   :  { %403 = vmatpush.msra.mxu0 %v2493_v8  ;;  %462 = vmatpush.msra.mxu3 %v2499_v9  ;;  %4318 = vst [vmem:[#allocation29_spill] sm:$0xff] %v2577_v22 }
  0x32   :  { %423 = vmatpush.msra.mxu1 %v2505_v10  ;;  %443 = vmatpush.msra.mxu2 %v2511_v11  ;;  %4319 = vst [vmem:[#allocation30_spill] sm:$0xff] %v2582_v23  ;;  %v2619_v11 = vld [vmem:[%s4085_s2 + $0x378] sm:$0xff] }
  0x33   :  { %404 = vmatpush.msra.mxu0 %v2517_v12  ;;  %463 = vmatpush.msra.mxu3 %v2523_v13  ;;  %4320 = vst [vmem:[#allocation31_spill] sm:$0xff] %v2589_v24  ;;  %v2607_v13 = vld [vmem:[%s4085_s2 + $0x180] sm:$0xff] }
  0x34   :  { %424 = vmatpush.msra.mxu1 %v2529_v14  ;;  %444 = vmatpush.msra.mxu2 %v2535_v15  ;;  %v2595_v15 = vld [vmem:[%s4085_s2 + $0x100] sm:$0xff]  ;;  %4323 = vst [vmem:[#allocation34_spill] sm:$0xff] %v2607_v13 }
  0x35   :  { %405 = vmatpush.msra.mxu0 %v2541_v16  ;;  %464 = vmatpush.msra.mxu3 %v2547_v17  ;;  %4321 = vst [vmem:[#allocation32_spill] sm:$0xff] %v2595_v15  ;;  %v2601_v17 = vld [vmem:[%s4085_s2 + $0x270] sm:$0xff] }
  0x36   :  { %425 = vmatpush.msra.mxu1 %v2553_v18  ;;  %445 = vmatpush.msra.mxu2 %v2559_v19  ;;  %4322 = vst [vmem:[#allocation33_spill] sm:$0xff] %v2601_v17  ;;  %v2614_v19 = vld [vmem:[%s4085_s2 + $0x2f0] sm:$0xff] }
  0x37   :  { %406 = vmatpush.msra.mxu0 %v2565_v20  ;;  %465 = vmatpush.msra.mxu3 %v2571_v21  ;;  %4324 = vst [vmem:[#allocation35_spill] sm:$0xff] %v2614_v19  ;;  %v2625_v21 = vld [vmem:[%s4085_s2 + $0x268] sm:$0xff] }
  0x38   :  { %426 = vmatpush.msra.mxu1 %v2577_v22  ;;  %4325 = vst [vmem:[#allocation36_spill] sm:$0xff] %v2619_v11  ;;  %446 = vmatpush.msra.mxu2 %v2595_v15  ;;  %v2637_v22 = vld [vmem:[%s4085_s2 + $0x2e8] sm:$0xff]  ;;  %v2649_v15 = vld [vmem:[%s4085_s2 + $0x260] sm:$0xff] }
  0x39   :  { %471 = vmatpush.msrb.mxu0 %v2582_v23  ;;  %4326 = vst [vmem:[#allocation37_spill] sm:$0xff] %v2625_v21  ;;  %v2631_v23 = vld [vmem:[%s4085_s2 + $0x3f8] sm:$0xff]  ;;  %466 = vmatpush.msra.mxu3 %v2607_v13  ;;  %v2661_v13 = vld [vmem:[%s4085_s2 + $0x2e0] sm:$0xff] }
  0x3a   :  { %491 = vmatpush.msrb.mxu1 %v2589_v24  ;;  %4327 = vst [vmem:[#allocation38_spill] sm:$0xff] %v2631_v23  ;;  %v2643_v24 = vld [vmem:[%s4085_s2 + $0x370] sm:$0xff]  ;;  %511 = vmatpush.msrb.mxu2 %v2619_v11  ;;  %v2673_v11 = vld [vmem:[%s4085_s2 + $0x258] sm:$0xff] }
  0x3b   :  { %472 = vmatpush.msrb.mxu0 %v2601_v17  ;;  %4328 = vst [vmem:[#allocation39_spill] sm:$0xff] %v2637_v22  ;;  %v2655_v17 = vld [vmem:[%s4085_s2 + $0x3f0] sm:$0xff]  ;;  %531 = vmatpush.msrb.mxu3 %v2631_v23  ;;  %v2685_v23 = vld [vmem:[%s4085_s2 + $0x2d8] sm:$0xff] }
  0x3c   :  { %4329 = vst [vmem:[#allocation40_spill] sm:$0xff] %v2643_v24  ;;  %492 = vmatpush.msrb.mxu1 %v2614_v19  ;;  %v2667_v19 = vld [vmem:[%s4085_s2 + $0x368] sm:$0xff]  ;;  %512 = vmatpush.msrb.mxu2 %v2643_v24  ;;  %v2697_v24 = vld [vmem:[%s4085_s2 + $0x250] sm:$0xff] }
  0x3d   :  { %4330 = vst [vmem:[#allocation41_spill] sm:$0xff] %v2649_v15  ;;  %473 = vmatpush.msrb.mxu0 %v2625_v21  ;;  %v2679_v21 = vld [vmem:[%s4085_s2 + $0x3e8] sm:$0xff]  ;;  %532 = vmatpush.msrb.mxu3 %v2655_v17 }
  0x3e   :  { %4331 = vst [vmem:[#allocation42_spill] sm:$0xff] %v2655_v17  ;;  %493 = vmatpush.msrb.mxu1 %v2637_v22  ;;  %v2691_v22 = vld [vmem:[%s4085_s2 + $0x360] sm:$0xff]  ;;  %513 = vmatpush.msrb.mxu2 %v2667_v19  ;;  %v2709_v17 = vld [vmem:[%s4085_s2 + $0x2d0] sm:$0xff] }
  0x3f   :  { %4332 = vst [vmem:[#allocation43_spill] sm:$0xff] %v2661_v13  ;;  %474 = vmatpush.msrb.mxu0 %v2649_v15  ;;  %v2703_v15 = vld [vmem:[%s4085_s2 + $0x3e0] sm:$0xff]  ;;  %533 = vmatpush.msrb.mxu3 %v2679_v21 }
  0x40   :  { %4333 = vst [vmem:[#allocation44_spill] sm:$0xff] %v2667_v19  ;;  %494 = vmatpush.msrb.mxu1 %v2661_v13  ;;  %v2715_v13 = vld [vmem:[%s4085_s2 + $0x358] sm:$0xff]  ;;  %v2721_v19 = vld [vmem:[%s4085_s2 + $0x248] sm:$0xff]  ;;  %514 = vmatpush.msrb.mxu2 %v2691_v22 }
  0x41   :  { %4334 = vst [vmem:[#allocation45_spill] sm:$0xff] %v2673_v11  ;;  %475 = vmatpush.msrb.mxu0 %v2673_v11  ;;  %v2727_v11 = vld [vmem:[%s4085_s2 + $0x3d8] sm:$0xff]  ;;  %534 = vmatpush.msrb.mxu3 %v2703_v15 }
  0x42   :  { %4335 = vst [vmem:[#allocation46_spill] sm:$0xff] %v2679_v21  ;;  %495 = vmatpush.msrb.mxu1 %v2685_v23  ;;  %v2733_v21 = vld [vmem:[%s4085_s2 + $0x2c8] sm:$0xff]  ;;  %515 = vmatpush.msrb.mxu2 %v2715_v13 }
  0x43   :  { %4336 = vst [vmem:[#allocation47_spill] sm:$0xff] %v2685_v23  ;;  %476 = vmatpush.msrb.mxu0 %v2697_v24  ;;  %v2739_v23 = vld [vmem:[%s4085_s2 + $0x350] sm:$0xff]  ;;  %535 = vmatpush.msrb.mxu3 %v2727_v11 }
  0x44   :  { %4337 = vst [vmem:[#allocation48_spill] sm:$0xff] %v2691_v22  ;;  %496 = vmatpush.msrb.mxu1 %v2709_v17  ;;  %v2745_v22 = vld [vmem:[%s4085_s2 + $0x240] sm:$0xff]  ;;  %516 = vmatpush.msrb.mxu2 %v2739_v23 }
  0x45   :  { %4338 = vst [vmem:[#allocation49_spill] sm:$0xff] %v2697_v24  ;;  %v2751_v24 = vld [vmem:[%s4085_s2 + $0x3d0] sm:$0xff]  ;;  %477 = vmatpush.msrb.mxu0 %v2721_v19 }
  0x46   :  { %4339 = vst [vmem:[#allocation50_spill] sm:$0xff] %v2703_v15  ;;  %v2757_v15 = vld [vmem:[%s4085_s2 + $0x2c0] sm:$0xff]  ;;  %497 = vmatpush.msrb.mxu1 %v2733_v21  ;;  %536 = vmatpush.msrb.mxu3 %v2751_v24 }
  0x47   :  { %4340 = vst [vmem:[#allocation51_spill] sm:$0xff] %v2709_v17  ;;  %478 = vmatpush.msrb.mxu0 %v2745_v22 }
  0x48   :  { %4341 = vst [vmem:[#allocation52_spill] sm:$0xff] %v2715_v13  ;;  %v2764_v13 = vld [vmem:[%s4085_s2 + $0x238] sm:$0xff]  ;;  %498 = vmatpush.msrb.mxu1 %v2757_v15 }
  0x49   :  { %4342 = vst [vmem:[#allocation53_spill] sm:$0xff] %v2721_v19  ;;  %v2771_v19 = vld [vmem:[%s4085_s2 + $0x2b8] sm:$0xff]  ;;  %479 = vmatpush.msrb.mxu0 %v2764_v13 }
  0x4a   :  { %4343 = vst [vmem:[#allocation54_spill] sm:$0xff] %v2727_v11  ;;  %499 = vmatpush.msrb.mxu1 %v2771_v19  ;;  %v2780_v11 = vld [vmem:[%s4085_s2 + $0x230] sm:$0xff] }
  0x4b   :  { %4344 = vst [vmem:[#allocation55_spill] sm:$0xff] %v2733_v21  ;;  %480 = vmatpush.msrb.mxu0 %v2780_v11 }
  0x4c   :  { %4345 = vst [vmem:[#allocation56_spill] sm:$0xff] %v2739_v23  ;;  %v2785_v23 = vld [vmem:[%s4085_s2 + $0x2b0] sm:$0xff] }
  0x4d   :  { %4346 = vst [vmem:[#allocation57_spill] sm:$0xff] %v2745_v22  ;;  %500 = vmatpush.msrb.mxu1 %v2785_v23 }
  0x4e   :  { %4347 = vst [vmem:[#allocation58_spill] sm:$0xff] %v2751_v24  ;;  %v2790_v24 = vld [vmem:[%s4085_s2 + $0x348] sm:$0xff] }
  0x4f   :  { %4348 = vst [vmem:[#allocation59_spill] sm:$0xff] %v2757_v15  ;;  %517 = vmatpush.msrb.mxu2 %v2790_v24 }
  0x50   :  { %4349 = vst [vmem:[#allocation60_spill] sm:$0xff] %v2764_v13  ;;  %v2804_v13 = vld [vmem:[%s4085_s2 + $0x228] sm:$0xff] }
  0x51   :  { %4350 = vst [vmem:[#allocation61_spill] sm:$0xff] %v2771_v19  ;;  %v2797_v19 = vld [vmem:[%s4085_s2 + $0x3c8] sm:$0xff]  ;;  %481 = vmatpush.msrb.mxu0 %v2804_v13 }
  0x52   :  { %4351 = vst [vmem:[#allocation62_spill] sm:$0xff] %v2780_v11  ;;  %537 = vmatpush.msrb.mxu3 %v2797_v19  ;;  %v2809_v11 = vld [vmem:[%s4085_s2 + $0x2a8] sm:$0xff] }
  0x53   :  { %4352 = vst [vmem:[#allocation63_spill] sm:$0xff] %v2785_v23  ;;  %v2814_v23 = vld [vmem:[%s4085_s2 + $0x340] sm:$0xff]  ;;  %501 = vmatpush.msrb.mxu1 %v2809_v11 }
  0x54   :  { %4353 = vst [vmem:[#allocation64_spill] sm:$0xff] %v2790_v24  ;;  %518 = vmatpush.msrb.mxu2 %v2814_v23  ;;  %v2828_v24 = vld [vmem:[%s4085_s2 + $0x220] sm:$0xff] }
  0x55   :  { %4354 = vst [vmem:[#allocation65_spill] sm:$0xff] %v2797_v19  ;;  %v2821_v19 = vld [vmem:[%s4085_s2 + $0x3c0] sm:$0xff]  ;;  %482 = vmatpush.msrb.mxu0 %v2828_v24 }
  0x56   :  { %4355 = vst [vmem:[#allocation66_spill] sm:$0xff] %v2804_v13  ;;  %538 = vmatpush.msrb.mxu3 %v2821_v19  ;;  %v2833_v13 = vld [vmem:[%s4085_s2 + $0x2a0] sm:$0xff] }
  0x57   :  { %4356 = vst [vmem:[#allocation67_spill] sm:$0xff] %v2809_v11  ;;  %v2838_v11 = vld [vmem:[%s4085_s2 + $0x338] sm:$0xff]  ;;  %502 = vmatpush.msrb.mxu1 %v2833_v13 }
  0x58   :  { %4357 = vst [vmem:[#allocation68_spill] sm:$0xff] %v2814_v23  ;;  %519 = vmatpush.msrb.mxu2 %v2838_v11  ;;  %v2852_v23 = vld [vmem:[%s4085_s2 + $0x218] sm:$0xff] }
  0x59   :  { %4358 = vst [vmem:[#allocation69_spill] sm:$0xff] %v2821_v19  ;;  %v2845_v19 = vld [vmem:[%s4085_s2 + $0x3b8] sm:$0xff]  ;;  %483 = vmatpush.msrb.mxu0 %v2852_v23 }
  0x5a   :  { %4359 = vst [vmem:[#allocation70_spill] sm:$0xff] %v2828_v24  ;;  %539 = vmatpush.msrb.mxu3 %v2845_v19  ;;  %v2857_v24 = vld [vmem:[%s4085_s2 + $0x298] sm:$0xff] }
  0x5b   :  { %4360 = vst [vmem:[#allocation71_spill] sm:$0xff] %v2833_v13  ;;  %v2862_v13 = vld [vmem:[%s4085_s2 + $0x330] sm:$0xff]  ;;  %503 = vmatpush.msrb.mxu1 %v2857_v24 }
  0x5c   :  { %4361 = vst [vmem:[#allocation72_spill] sm:$0xff] %v2838_v11  ;;  %520 = vmatpush.msrb.mxu2 %v2862_v13  ;;  %v2876_v11 = vld [vmem:[%s4085_s2 + $0x210] sm:$0xff] }
  0x5d   :  { %4362 = vst [vmem:[#allocation73_spill] sm:$0xff] %v2845_v19  ;;  %v2869_v19 = vld [vmem:[%s4085_s2 + $0x3b0] sm:$0xff]  ;;  %484 = vmatpush.msrb.mxu0 %v2876_v11 }
  0x5e   :  { %4363 = vst [vmem:[#allocation74_spill] sm:$0xff] %v2852_v23  ;;  %540 = vmatpush.msrb.mxu3 %v2869_v19  ;;  %v2881_v23 = vld [vmem:[%s4085_s2 + $0x290] sm:$0xff] }
  0x5f   :  { %4364 = vst [vmem:[#allocation75_spill] sm:$0xff] %v2857_v24  ;;  %v2886_v24 = vld [vmem:[%s4085_s2 + $0x328] sm:$0xff]  ;;  %504 = vmatpush.msrb.mxu1 %v2881_v23 }
  0x60   :  { %4365 = vst [vmem:[#allocation76_spill] sm:$0xff] %v2862_v13  ;;  %521 = vmatpush.msrb.mxu2 %v2886_v24  ;;  %v2900_v13 = vld [vmem:[%s4085_s2 + $0x208] sm:$0xff] }
  0x61   :  { %4366 = vst [vmem:[#allocation77_spill] sm:$0xff] %v2869_v19  ;;  %v2893_v19 = vld [vmem:[%s4085_s2 + $0x3a8] sm:$0xff]  ;;  %485 = vmatpush.msrb.mxu0 %v2900_v13 }
  0x62   :  { %4367 = vst [vmem:[#allocation78_spill] sm:$0xff] %v2876_v11  ;;  %541 = vmatpush.msrb.mxu3 %v2893_v19  ;;  %v2905_v11 = vld [vmem:[%s4085_s2 + $0x288] sm:$0xff] }
  0x63   :  { %4368 = vst [vmem:[#allocation79_spill] sm:$0xff] %v2881_v23  ;;  %v2910_v23 = vld [vmem:[%s4085_s2 + $0x320] sm:$0xff]  ;;  %505 = vmatpush.msrb.mxu1 %v2905_v11 }
  0x64   :  { %4369 = vst [vmem:[#allocation80_spill] sm:$0xff] %v2886_v24  ;;  %522 = vmatpush.msrb.mxu2 %v2910_v23  ;;  %v2924_v24 = vld [vmem:[%s4085_s2 + $0x200] sm:$0xff] }
  0x65   :  { %4370 = vst [vmem:[#allocation81_spill] sm:$0xff] %v2893_v19  ;;  %v2917_v19 = vld [vmem:[%s4085_s2 + $0x3a0] sm:$0xff]  ;;  %486 = vmatpush.msrb.mxu0 %v2924_v24 }
  0x66   :  { %4371 = vst [vmem:[#allocation82_spill] sm:$0xff] %v2900_v13  ;;  %542 = vmatpush.msrb.mxu3 %v2917_v19  ;;  %v2929_v13 = vld [vmem:[%s4085_s2 + $0x280] sm:$0xff] }
  0x67   :  { %4372 = vst [vmem:[#allocation83_spill] sm:$0xff] %v2905_v11  ;;  %v2934_v11 = vld [vmem:[%s4085_s2 + $0x318] sm:$0xff]  ;;  %506 = vmatpush.msrb.mxu1 %v2929_v13 }
  0x68   :  { %4373 = vst [vmem:[#allocation84_spill] sm:$0xff] %v2910_v23  ;;  %523 = vmatpush.msrb.mxu2 %v2934_v11  ;;  %v2948_v23 = vld [vmem:[%s4085_s2 + $0x310] sm:$0xff] }
  0x69   :  { %4374 = vst [vmem:[#allocation85_spill] sm:$0xff] %v2917_v19  ;;  %v2941_v19 = vld [vmem:[%s4085_s2 + $0x398] sm:$0xff] }
  0x6a   :  { %4375 = vst [vmem:[#allocation86_spill] sm:$0xff] %v2924_v24  ;;  %543 = vmatpush.msrb.mxu3 %v2941_v19  ;;  %v2953_v24 = vld [vmem:[%s4085_s2 + $0x390] sm:$0xff]  ;;  %524 = vmatpush.msrb.mxu2 %v2948_v23 }
  0x6b   :  { %4376 = vst [vmem:[#allocation87_spill] sm:$0xff] %v2929_v13 }
  0x6c   :  { %4377 = vst [vmem:[#allocation88_spill] sm:$0xff] %v2934_v11  ;;  %544 = vmatpush.msrb.mxu3 %v2953_v24  ;;  %v2960_v11 = vld [vmem:[%s4085_s2 + $0x308] sm:$0xff] }
  0x6d   :  { %4378 = vst [vmem:[#allocation89_spill] sm:$0xff] %v2941_v19  ;;  %v2965_v19 = vld [vmem:[%s4085_s2 + $0x388] sm:$0xff]  ;;  %525 = vmatpush.msrb.mxu2 %v2960_v11 }
  0x6e   :  { %4379 = vst [vmem:[#allocation90_spill] sm:$0xff] %v2948_v23  ;;  %545 = vmatpush.msrb.mxu3 %v2965_v19  ;;  %v2972_v23 = vld [vmem:[%s4085_s2 + $0x300] sm:$0xff] }
  0x6f   :  { %4380 = vst [vmem:[#allocation91_spill] sm:$0xff] %v2953_v24  ;;  %v2977_v24 = vld [vmem:[%s4085_s2 + $0x380] sm:$0xff]  ;;  %526 = vmatpush.msrb.mxu2 %v2972_v23 }
  0x70   :  { %4381 = vst [vmem:[#allocation92_spill] sm:$0xff] %v2960_v11  ;;  %546 = vmatpush.msrb.mxu3 %v2977_v24 }
  0x71   :  { %4382 = vst [vmem:[#allocation93_spill] sm:$0xff] %v2965_v19 }
  0x72   :  { %4383 = vst [vmem:[#allocation94_spill] sm:$0xff] %v2972_v23 }
  0x73   :  { %4384 = vst [vmem:[#allocation95_spill] sm:$0xff] %v2977_v24 }
  0x8e   :  { %v2981_v13 = vpop.f32.mrf.mxu0 }
  0x8f   :  { %4385 = vst [vmem:[#allocation96_spill] sm:$0xff] %v2981_v13  ;;  %v207_v19 = vsel %vm206_vm1, %v2981_v13, 0.0  ;;  %v2985_v11 = vpop.f32.mrf.mxu1 }
  0x90   :  { %4386 = vst [vmem:[#allocation97_spill] sm:$0xff] %v2985_v11  ;;  %v208_v15 = vrot.slane %v207_v19, 4  ;;  %v214_v22 = vsel %vm206_vm1, %v2985_v11, 0.0 }
  0x91   :  { %v215_v21 = vrot.slane %v214_v22, 4 }
  0x92   :  { %v209_v17 = vadd.f32 %v208_v15, %v207_v19 }
  0x93   :  { %v216_v20 = vadd.f32 %v215_v21, %v214_v22 }
  0x94   :  { %v210_v9 = vrot.slane %v209_v17, 2 }
  0x95   :  { %v217_v7 = vrot.slane %v216_v20, 2  ;;  %v2989_v23 = vpop.f32.mrf.mxu2 }
  0x96   :  { %4387 = vst [vmem:[#allocation98_spill] sm:$0xff] %v2989_v23  ;;  %v211_v24 = vadd.f32 %v210_v9, %v209_v17  ;;  %v221_v18 = vsel %vm206_vm1, %v2989_v23, 0.0  ;;  %v2993_v16 = vpop.f32.mrf.mxu3  ;;  %v113_v5 = vpop.f32.mrf.mxu0 }
  0x97   :  { %4388 = vst [vmem:[#allocation99_spill] sm:$0xff] %v2993_v16  ;;  %v218_v3 = vadd.f32 %v217_v7, %v216_v20  ;;  %v222_v14 = vrot.slane %v221_v18, 4  ;;  %v228_v12 = vsel %vm206_vm1, %v2993_v16, 0.0  ;;  %v126_v1 = vpop.f32.mrf.mxu1 }
  0x98   :  { %v212_v63 = vrot.slane %v211_v24, 1  ;;  %v229_v15 = vrot.slane %v228_v12, 4 }
  0x99   :  { %v219_v19 = vrot.slane %v218_v3, 1  ;;  %v223_v21 = vadd.f32 %v222_v14, %v221_v18  ;;  %v560_v18 = vmul.f32 %v2985_v11, %v2985_v11  ;;  %v4437_v11 = vld [vmem:[#allocation48_spill] sm:$0xff] }
  0x9a   :  { %v230_v22 = vadd.f32 %v229_v15, %v228_v12  ;;  %v213_v10 = vadd.f32 %v212_v63, %v211_v24 }
  0x9b   :  { %v224_v8 = vrot.slane %v223_v21, 2  ;;  %v220_v9 = vadd.f32 %v219_v19, %v218_v3 }
  0x9c   :  { %v231_v17 = vrot.slane %v230_v22, 2  ;;  %407 = vmatmul.f32.vlgmr.msra.gmra.mxu0 %v213_v10  ;;  %v559_v10 = vmul.f32 %v2981_v13, %v2981_v13  ;;  %v4438_v13 = vld [vmem:[#allocation50_spill] sm:$0xff] }
  0x9d   :  { %v225_v61 = vadd.f32 %v224_v8, %v223_v21  ;;  %v139_v59 = vpop.f32.mrf.mxu2  ;;  %427 = vmatmul.f32.vlgmr.msra.gmra.mxu1 %v220_v9  ;;  %623 = vmatpush.msra.mxu0 %v2206_v25  ;;  %v574_v21 = vsel %vm206_vm1, %v560_v18, 0.0 }
  0x9e   :  { %v232_v5 = vadd.f32 %v231_v17, %v230_v22  ;;  %v152_v7 = vpop.f32.mrf.mxu3  ;;  %643 = vmatpush.msra.mxu1 %v2213_v26 }
  0x9f   :  { %v226_v20 = vrot.slane %v225_v61, 1  ;;  %624 = vmatpush.msra.mxu0 %v2223_v28 }
  0xa0   :  { %v2999_v1 = vpop.f32.mrf.mxu0  ;;  %v233_v3 = vrot.slane %v232_v5, 1  ;;  %644 = vmatpush.msra.mxu1 %v2234_v30 }
  0xa1   :  { %4389 = vst [vmem:[#allocation100_spill] sm:$0xff] %v2999_v1  ;;  %v235_v12 = vsel %vm206_vm1, %v2999_v1, 0.0  ;;  %v3004_v63 = vpop.f32.mrf.mxu1  ;;  %625 = vmatpush.msra.mxu0 %v2245_v32  ;;  %v227_v26 = vadd.f32 %v226_v20, %v225_v61  ;;  %v562_v20 = vmul.f32 %v2993_v16, %v2993_v16 }
  0xa2   :  { %4390 = vst [vmem:[#allocation101_spill] sm:$0xff] %v3004_v63  ;;  %v236_v8 = vrot.slane %v235_v12, 4  ;;  %v242_v25 = vsel %vm206_vm1, %v3004_v63, 0.0  ;;  %645 = vmatpush.msra.mxu1 %v2257_v34  ;;  %v234_v28 = vadd.f32 %v233_v3, %v232_v5  ;;  %v567_v34 = vsel %vm206_vm1, %v559_v10, 0.0 }
  0xa3   :  { %v243_v59 = vrot.slane %v242_v25, 4  ;;  %447 = vmatmul.f32.vlgmr.msra.gmra.mxu2 %v227_v26  ;;  %626 = vmatpush.msra.mxu0 %v2269_v36 }
  0xa4   :  { %v237_v14 = vadd.f32 %v236_v8, %v235_v12  ;;  %467 = vmatmul.f32.vlgmr.msra.gmra.mxu3 %v234_v28  ;;  %646 = vmatpush.msra.mxu1 %v2281_v38 }
  0xa5   :  { %v244_v24 = vadd.f32 %v243_v59, %v242_v25  ;;  %663 = vmatpush.msra.mxu2 %v2218_v27  ;;  %683 = vmatpush.msra.mxu3 %v2228_v29 }
  0xa6   :  { %v238_v30 = vrot.slane %v237_v14, 2  ;;  %627 = vmatpush.msra.mxu0 %v2293_v40  ;;  %647 = vmatpush.msra.mxu1 %v2305_v42  ;;  %v568_v40 = vrot.slane %v567_v34, 4 }
  0xa7   :  { %v245_v32 = vrot.slane %v244_v24, 2  ;;  %v3019_v61 = vpop.f32.mrf.mxu2  ;;  %664 = vmatpush.msra.mxu2 %v2239_v31  ;;  %684 = vmatpush.msra.mxu3 %v2251_v33  ;;  %v575_v31 = vrot.slane %v574_v21, 4  ;;  %v561_v33 = vmul.f32 %v2989_v23, %v2989_v23 }
  0xa8   :  { %4391 = vst [vmem:[#allocation102_spill] sm:$0xff] %v3019_v61  ;;  %v239_v15 = vadd.f32 %v238_v30, %v237_v14  ;;  %v249_v19 = vsel %vm206_vm1, %v3019_v61, 0.0  ;;  %v3026_v36 = vpop.f32.mrf.mxu3  ;;  %v165_v38 = vpop.f32.mrf.mxu0  ;;  %628 = vmatpush.msra.mxu0 %v2317_v44  ;;  %648 = vmatpush.msra.mxu1 %v2329_v46  ;;  %v569_v3 = vadd.f32 %v568_v40, %v567_v34  ;;  %v4397_v34 = vld [vmem:[#allocation10_spill] sm:$0xff] }
  0xa9   :  { %4392 = vst [vmem:[#allocation103_spill] sm:$0xff] %v3026_v36  ;;  %v246_v27 = vadd.f32 %v245_v32, %v244_v24  ;;  %v250_v22 = vrot.slane %v249_v19, 4  ;;  %v256_v29 = vsel %vm206_vm1, %v3026_v36, 0.0  ;;  %v178_v9 = vpop.f32.mrf.mxu1  ;;  %665 = vmatpush.msra.mxu2 %v2263_v35  ;;  %685 = vmatpush.msra.mxu3 %v2275_v37  ;;  %v581_v25 = vsel %vm206_vm1, %v561_v33, 0.0  ;;  %v4395_v24 = vld [vmem:[#allocation15_spill] sm:$0xff]  ;;  %v4400_v38 = vld [vmem:[#allocation21_spill] sm:$0xff] }
  0xaa   :  { %v240_v17 = vrot.slane %v239_v15, 1  ;;  %v257_v5 = vrot.slane %v256_v29, 4  ;;  %629 = vmatpush.msra.mxu0 %v2350_v49  ;;  %649 = vmatpush.msra.mxu1 %v2358_v50  ;;  %v576_v50 = vadd.f32 %v575_v31, %v574_v21  ;;  %v570_v10 = vrot.slane %v569_v3, 2  ;;  %v4403_v9 = vld [vmem:[#allocation23_spill] sm:$0xff]  ;;  %v4408_v33 = vld [vmem:[#allocation29_spill] sm:$0xff] }
  0xab   :  { %v247_v42 = vrot.slane %v246_v27, 1  ;;  %v251_v7 = vadd.f32 %v250_v22, %v249_v19  ;;  %666 = vmatpush.msra.mxu2 %v2287_v39  ;;  %686 = vmatpush.msra.mxu3 %v2299_v41  ;;  %v588_v39 = vsel %vm206_vm1, %v562_v20, 0.0  ;;  %v4399_v19 = vld [vmem:[#allocation19_spill] sm:$0xff]  ;;  %v4401_v22 = vld [vmem:[#allocation12_spill] sm:$0xff] }
  0xac   :  { %v258_v12 = vadd.f32 %v257_v5, %v256_v29  ;;  %v241_v35 = vadd.f32 %v240_v17, %v239_v15  ;;  %630 = vmatpush.msra.mxu0 %v2373_v52  ;;  %650 = vmatpush.msra.mxu1 %v2386_v54  ;;  %v577_v14 = vrot.slane %v576_v50, 2  ;;  %v571_v28 = vadd.f32 %v570_v10, %v569_v3  ;;  %v4398_v15 = vld [vmem:[#allocation11_spill] sm:$0xff]  ;;  %v4402_v29 = vld [vmem:[#allocation13_spill] sm:$0xff] }
  0xad   :  { %v252_v44 = vrot.slane %v251_v7, 2  ;;  %v248_v37 = vadd.f32 %v247_v42, %v246_v27  ;;  %667 = vmatpush.msra.mxu2 %v2311_v43  ;;  %687 = vmatpush.msra.mxu3 %v2323_v45  ;;  %v582_v43 = vrot.slane %v581_v25, 4  ;;  %v589_v45 = vrot.slane %v588_v39, 4  ;;  %v4404_v17 = vld [vmem:[#allocation25_spill] sm:$0xff]  ;;  %v4405_v42 = vld [vmem:[#allocation14_spill] sm:$0xff]  ;;  %v4407_v31 = vld [vmem:[#allocation27_spill] sm:$0xff] }
  0xae   :  { %v259_v46 = vrot.slane %v258_v12, 2  ;;  %487 = vmatmul.f32.vlgmr.msrb.gmra.mxu0 %v241_v35  ;;  %651 = vmatpush.msra.mxu1 %v2409_v58  ;;  %v578_v18 = vadd.f32 %v577_v14, %v576_v50  ;;  %v572_v21 = vrot.slane %v571_v28, 1  ;;  %v4410_v35 = vld [vmem:[#allocation20_spill] sm:$0xff] }
  0xaf   :  { %v253_v8 = vadd.f32 %v252_v44, %v251_v7  ;;  %v191_v49 = vpop.f32.mrf.mxu2  ;;  %631 = vmatpush.msra.mxu0 %v2397_v56  ;;  %668 = vmatpush.msra.mxu2 %v2335_v47  ;;  %v590_v56 = vadd.f32 %v589_v45, %v588_v39  ;;  %v4406_v7 = vld [vmem:[#allocation16_spill] sm:$0xff]  ;;  %v4409_v44 = vld [vmem:[#allocation18_spill] sm:$0xff]  ;;  %v4416_v39 = vld [vmem:[#allocation35_spill] sm:$0xff] }
  0xb0   :  { %v260_v41 = vadd.f32 %v259_v46, %v258_v12  ;;  %v204_v52 = vpop.f32.mrf.mxu3  ;;  %688 = vmatpush.msra.mxu3 %v2342_v48  ;;  %507 = vmatmul.f32.vlgmr.msrb.gmra.mxu1 %v248_v37  ;;  %v583_v48 = vadd.f32 %v582_v43, %v581_v25  ;;  %v579_v27 = vrot.slane %v578_v18, 1  ;;  %v573_v20 = vadd.f32 %v572_v21, %v571_v28  ;;  %v4411_v46 = vld [vmem:[#allocation30_spill] sm:$0xff]  ;;  %v4412_v37 = vld [vmem:[#allocation31_spill] sm:$0xff]  ;;  %v4414_v50 = vld [vmem:[#allocation24_spill] sm:$0xff] }
  0xb1   :  { %v254_v59 = vrot.slane %v253_v8, 1  ;;  %632 = vmatpush.msra.mxu0 %v2421_v60  ;;  %652 = vmatpush.msra.mxu1 %v2433_v62  ;;  %v591_v32 = vrot.slane %v590_v56, 2  ;;  %v4413_v49 = vld [vmem:[#allocation22_spill] sm:$0xff]  ;;  %v4415_v25 = vld [vmem:[#allocation33_spill] sm:$0xff]  ;;  %v4420_v45 = vld [vmem:[#allocation39_spill] sm:$0xff] }
  0xb2   :  { %v261_v54 = vrot.slane %v260_v41, 1  ;;  %669 = vmatpush.msra.mxu2 %v2364_v51  ;;  %689 = vmatpush.msra.mxu3 %v2378_v53  ;;  %v4393_v51 = vld [vmem:[#allocation8_spill] sm:$0xff]  ;;  %v4394_v53 = vld [vmem:[#allocation9_spill] sm:$0xff]  ;;  %v584_v30 = vrot.slane %v583_v48, 2  ;;  %v580_v12 = vadd.f32 %v579_v27, %v578_v18  ;;  %v4417_v52 = vld [vmem:[#allocation26_spill] sm:$0xff] }
  0xb3   :  { %v255_v26 = vadd.f32 %v254_v59, %v253_v8  ;;  %633 = vmatpush.msra.mxu0 %v2445_v0  ;;  %653 = vmatpush.msra.mxu1 %v2457_v2  ;;  %v592_v40 = vadd.f32 %v591_v32, %v590_v56  ;;  %v4418_v59 = vld [vmem:[#allocation28_spill] sm:$0xff]  ;;  %v4419_v43 = vld [vmem:[#allocation37_spill] sm:$0xff]  ;;  %v4424_v56 = vld [vmem:[#allocation43_spill] sm:$0xff] }
  0xb4   :  { %670 = vmatpush.msra.mxu2 %v2391_v55  ;;  %690 = vmatpush.msra.mxu3 %v2403_v57  ;;  %v262_v47 = vadd.f32 %v261_v54, %v260_v41  ;;  %v4396_v55 = vld [vmem:[#allocation17_spill] sm:$0xff]  ;;  %v585_v5 = vadd.f32 %v584_v30, %v583_v48  ;;  %v563_v41 = vmul.f32 %v2999_v1, %v2999_v1  ;;  %v4421_v14 = vld [vmem:[#allocation32_spill] sm:$0xff]  ;;  %v4426_v32 = vld [vmem:[#allocation38_spill] sm:$0xff] }
  0xb5   :  { %527 = vmatmul.f32.vlgmr.msrb.gmra.mxu2 %v255_v26  ;;  %634 = vmatpush.msra.mxu0 %v2469_v4  ;;  %v593_v8 = vrot.slane %v592_v40, 1  ;;  %v564_v54 = vmul.f32 %v3004_v63, %v3004_v63  ;;  %v4423_v48 = vld [vmem:[#allocation41_spill] sm:$0xff]  ;;  %v4425_v30 = vld [vmem:[#allocation36_spill] sm:$0xff]  ;;  %v4428_v27 = vld [vmem:[#allocation47_spill] sm:$0xff] }
  0xb6   :  { %654 = vmatpush.msra.mxu1 %v2481_v6  ;;  %671 = vmatpush.msra.mxu2 %v4393_v51  ;;  %v586_v3 = vrot.slane %v585_v5, 1  ;;  %v595_v28 = vsel %vm206_vm1, %v563_v41, 0.0  ;;  %v4427_v21 = vld [vmem:[#allocation45_spill] sm:$0xff] }
  0xb7   :  { %691 = vmatpush.msra.mxu3 %v4394_v53  ;;  %635 = vmatpush.msra.mxu0 %v4395_v24  ;;  %v594_v10 = vadd.f32 %v593_v8, %v592_v40  ;;  %v602_v18 = vsel %vm206_vm1, %v564_v54, 0.0  ;;  %v566_v40 = vmul.f32 %v3026_v36, %v3026_v36  ;;  %v4431_v41 = vld [vmem:[#allocation49_spill] sm:$0xff]  ;;  %v4432_v54 = vld [vmem:[#allocation51_spill] sm:$0xff] }
  0xb8   :  { %547 = vmatmul.f32.vlgmr.msrb.gmra.mxu3 %v262_v47  ;;  %655 = vmatpush.msra.mxu1 %v4396_v55  ;;  %v587_v26 = vadd.f32 %v586_v3, %v585_v5  ;;  %v4422_v47 = vld [vmem:[#allocation34_spill] sm:$0xff]  ;;  %v565_v5 = vmul.f32 %v3019_v61, %v3019_v61  ;;  %v596_v3 = vrot.slane %v595_v28, 4  ;;  %v603_v8 = vrot.slane %v602_v18, 4  ;;  %v4435_v63 = vld [vmem:[#allocation53_spill] sm:$0xff]  ;;  %v4436_v61 = vld [vmem:[#allocation55_spill] sm:$0xff] }
  0xb9   :  { %672 = vmatpush.msra.mxu2 %v4397_v34  ;;  %692 = vmatpush.msra.mxu3 %v4398_v15  ;;  %v616_v1 = vsel %vm206_vm1, %v566_v40, 0.0  ;;  %v4445_v40 = vld [vmem:[#allocation56_spill] sm:$0xff] }
  0xba   :  { %636 = vmatpush.msra.mxu0 %v4399_v19  ;;  %656 = vmatpush.msra.mxu1 %v4400_v38  ;;  %v609_v36 = vsel %vm206_vm1, %v565_v5, 0.0  ;;  %v597_v16 = vadd.f32 %v596_v3, %v595_v28  ;;  %v604_v23 = vadd.f32 %v603_v8, %v602_v18  ;;  %v4444_v5 = vld [vmem:[#allocation61_spill] sm:$0xff]  ;;  %v4447_v3 = vld [vmem:[#allocation62_spill] sm:$0xff]  ;;  %v4448_v8 = vld [vmem:[#allocation63_spill] sm:$0xff] }
  0xbb   :  { %673 = vmatpush.msra.mxu2 %v4401_v22  ;;  %693 = vmatpush.msra.mxu3 %v4402_v29 }
  0xbc   :  { %637 = vmatpush.msra.mxu0 %v4403_v9  ;;  %657 = vmatpush.msra.mxu1 %v4404_v17  ;;  %v598_v28 = vrot.slane %v597_v16, 2  ;;  %v605_v18 = vrot.slane %v604_v23, 2 }
  0xbd   :  { %674 = vmatpush.msra.mxu2 %v4405_v42  ;;  %694 = vmatpush.msra.mxu3 %v4406_v7 }
  0xbe   :  { %638 = vmatpush.msra.mxu0 %v4407_v31  ;;  %658 = vmatpush.msra.mxu1 %v4408_v33 }
  0xbf   :  { %675 = vmatpush.msra.mxu2 %v4409_v44  ;;  %695 = vmatpush.msra.mxu3 %v4410_v35 }
  0xc0   :  { %639 = vmatmul.f32.vlgmr.msra.gmra.mxu0 %v573_v20  ;;  %659 = vmatmul.f32.vlgmr.msra.gmra.mxu1 %v580_v12  ;;  %v4429_v20 = vld [vmem:[#allocation40_spill] sm:$0xff]  ;;  %v4430_v12 = vld [vmem:[#allocation42_spill] sm:$0xff] }
  0xc1   :  { %703 = vmatpush.msrb.mxu0 %v4411_v46  ;;  %723 = vmatpush.msrb.mxu1 %v4412_v37 }
  0xc2   :  { %676 = vmatpush.msra.mxu2 %v4413_v49  ;;  %696 = vmatpush.msra.mxu3 %v4414_v50 }
  0xc3   :  { %704 = vmatpush.msrb.mxu0 %v4415_v25  ;;  %724 = vmatpush.msrb.mxu1 %v4416_v39 }
  0xc4   :  { %677 = vmatpush.msra.mxu2 %v4417_v52  ;;  %697 = vmatpush.msra.mxu3 %v4418_v59 }
  0xc5   :  { %705 = vmatpush.msrb.mxu0 %v4419_v43  ;;  %725 = vmatpush.msrb.mxu1 %v4420_v45 }
  0xc6   :  { %678 = vmatpush.msra.mxu2 %v4421_v14  ;;  %698 = vmatpush.msra.mxu3 %v4422_v47 }
  0xc7   :  { %679 = vmatmul.f32.vlgmr.msra.gmra.mxu2 %v587_v26  ;;  %699 = vmatmul.f32.vlgmr.msra.gmra.mxu3 %v594_v10  ;;  %v4433_v26 = vld [vmem:[#allocation44_spill] sm:$0xff]  ;;  %v4434_v10 = vld [vmem:[#allocation46_spill] sm:$0xff] }
  0xc8   :  { %706 = vmatpush.msrb.mxu0 %v4423_v48  ;;  %726 = vmatpush.msrb.mxu1 %v4424_v56  ;;  %v4443_v56 = vld [vmem:[#allocation60_spill] sm:$0xff]  ;;  %v606_v48 = vadd.f32 %v605_v18, %v604_v23  ;;  %v4464_v23 = vld [vmem:[#allocation79_spill] sm:$0xff] }
  0xc9   :  { %743 = vmatpush.msrb.mxu2 %v4425_v30  ;;  %763 = vmatpush.msrb.mxu3 %v4426_v32 }
  0xca   :  { %707 = vmatpush.msrb.mxu0 %v4427_v21  ;;  %727 = vmatpush.msrb.mxu1 %v4428_v27  ;;  %v4441_v27 = vld [vmem:[#allocation52_spill] sm:$0xff]  ;;  %v4442_v21 = vld [vmem:[#allocation54_spill] sm:$0xff]  ;;  %v607_v18 = vrot.slane %v606_v48, 1 }
  0xcb   :  { %744 = vmatpush.msrb.mxu2 %v4429_v20  ;;  %764 = vmatpush.msrb.mxu3 %v4430_v12 }
  0xcc   :  { %708 = vmatpush.msrb.mxu0 %v4431_v41  ;;  %728 = vmatpush.msrb.mxu1 %v4432_v54  ;;  %v4439_v41 = vld [vmem:[#allocation57_spill] sm:$0xff]  ;;  %v4440_v54 = vld [vmem:[#allocation59_spill] sm:$0xff] }
  0xcd   :  { %745 = vmatpush.msrb.mxu2 %v4433_v26  ;;  %765 = vmatpush.msrb.mxu3 %v4434_v10  ;;  %v4455_v10 = vld [vmem:[#allocation70_spill] sm:$0xff] }
  0xce   :  { %709 = vmatpush.msrb.mxu0 %v4435_v63  ;;  %729 = vmatpush.msrb.mxu1 %v4436_v61  ;;  %v610_v63 = vrot.slane %v609_v36, 4  ;;  %v617_v61 = vrot.slane %v616_v1, 4 }
  0xcf   :  { %746 = vmatpush.msrb.mxu2 %v4437_v11  ;;  %766 = vmatpush.msrb.mxu3 %v4438_v13  ;;  %v4446_v11 = vld [vmem:[#allocation58_spill] sm:$0xff] }
  0xd0   :  { %710 = vmatpush.msrb.mxu0 %v4439_v41  ;;  %730 = vmatpush.msrb.mxu1 %v4440_v54  ;;  %v4449_v54 = vld [vmem:[#allocation64_spill] sm:$0xff]  ;;  %v4450_v41 = vld [vmem:[#allocation65_spill] sm:$0xff]  ;;  %v4451_v13 = vld [vmem:[#allocation66_spill] sm:$0xff] }
  0xd1   :  { %747 = vmatpush.msrb.mxu2 %v4441_v27  ;;  %767 = vmatpush.msrb.mxu3 %v4442_v21  ;;  %v611_v21 = vadd.f32 %v610_v63, %v609_v36  ;;  %v618_v27 = vadd.f32 %v617_v61, %v616_v1  ;;  %v4459_v61 = vld [vmem:[#allocation74_spill] sm:$0xff]  ;;  %v4460_v36 = vld [vmem:[#allocation75_spill] sm:$0xff] }
  0xd2   :  { %711 = vmatpush.msrb.mxu0 %v4443_v56  ;;  %731 = vmatpush.msrb.mxu1 %v4444_v5  ;;  %v4452_v56 = vld [vmem:[#allocation67_spill] sm:$0xff]  ;;  %v4453_v5 = vld [vmem:[#allocation68_spill] sm:$0xff] }
  0xd3   :  { %748 = vmatpush.msrb.mxu2 %v4445_v40  ;;  %768 = vmatpush.msrb.mxu3 %v4446_v11  ;;  %v4454_v40 = vld [vmem:[#allocation69_spill] sm:$0xff]  ;;  %v599_v11 = vadd.f32 %v598_v28, %v597_v16  ;;  %v612_v63 = vrot.slane %v611_v21, 2  ;;  %v619_v1 = vrot.slane %v618_v27, 2  ;;  %v4463_v16 = vld [vmem:[#allocation78_spill] sm:$0xff] }
  0xd4   :  { %712 = vmatpush.msrb.mxu0 %v4447_v3  ;;  %732 = vmatpush.msrb.mxu1 %v4448_v8  ;;  %v4456_v3 = vld [vmem:[#allocation71_spill] sm:$0xff]  ;;  %v4457_v8 = vld [vmem:[#allocation72_spill] sm:$0xff] }
  0xd5   :  { %749 = vmatpush.msrb.mxu2 %v4449_v54  ;;  %769 = vmatpush.msrb.mxu3 %v4450_v41  ;;  %v4458_v54 = vld [vmem:[#allocation73_spill] sm:$0xff]  ;;  %v600_v28 = vrot.slane %v599_v11, 1  ;;  %v4473_v41 = vld [vmem:[#allocation88_spill] sm:$0xff] }
  0xd6   :  { %713 = vmatpush.msrb.mxu0 %v4451_v13  ;;  %733 = vmatpush.msrb.mxu1 %v4452_v56  ;;  %v4461_v56 = vld [vmem:[#allocation76_spill] sm:$0xff]  ;;  %v4462_v13 = vld [vmem:[#allocation77_spill] sm:$0xff] }
  0xd7   :  { %750 = vmatpush.msrb.mxu2 %v4453_v5  ;;  %770 = vmatpush.msrb.mxu3 %v4454_v40  ;;  %v4467_v40 = vld [vmem:[#allocation82_spill] sm:$0xff]  ;;  %v608_v5 = vadd.f32 %v607_v18, %v606_v48  ;;  %v4479_v48 = vld [vmem:[#allocation92_spill] sm:$0xff] }
  0xd8   :  { %714 = vmatpush.msrb.mxu0 %v4455_v10  ;;  %734 = vmatpush.msrb.mxu1 %v4456_v3  ;;  %v4465_v3 = vld [vmem:[#allocation80_spill] sm:$0xff]  ;;  %v4466_v10 = vld [vmem:[#allocation81_spill] sm:$0xff]  ;;  %v4481_v18 = vld [vmem:[#allocation94_spill] sm:$0xff] }
  0xd9   :  { %751 = vmatpush.msrb.mxu2 %v4457_v8  ;;  %771 = vmatpush.msrb.mxu3 %v4458_v54  ;;  %v613_v54 = vadd.f32 %v612_v63, %v611_v21  ;;  %v620_v8 = vadd.f32 %v619_v1, %v618_v27  ;;  %v4475_v63 = vld [vmem:[#allocation90_spill] sm:$0xff]  ;;  %v4476_v1 = vld [vmem:[#allocation91_spill] sm:$0xff] }
  0xda   :  { %715 = vmatpush.msrb.mxu0 %v4459_v61  ;;  %735 = vmatpush.msrb.mxu1 %v4460_v36  ;;  %v4468_v61 = vld [vmem:[#allocation83_spill] sm:$0xff]  ;;  %v4469_v36 = vld [vmem:[#allocation84_spill] sm:$0xff] }
  0xdb   :  { %752 = vmatpush.msrb.mxu2 %v4461_v56  ;;  %772 = vmatpush.msrb.mxu3 %v4462_v13  ;;  %v4470_v56 = vld [vmem:[#allocation85_spill] sm:$0xff]  ;;  %v4471_v13 = vld [vmem:[#allocation86_spill] sm:$0xff]  ;;  %v614_v21 = vrot.slane %v613_v54, 1  ;;  %v621_v27 = vrot.slane %v620_v8, 1 }
  0xdc   :  { %716 = vmatpush.msrb.mxu0 %v4463_v16  ;;  %736 = vmatpush.msrb.mxu1 %v4464_v23  ;;  %v4472_v16 = vld [vmem:[#allocation87_spill] sm:$0xff]  ;;  %v601_v23 = vadd.f32 %v600_v28, %v599_v11 }
  0xdd   :  { %753 = vmatpush.msrb.mxu2 %v4465_v3  ;;  %773 = vmatpush.msrb.mxu3 %v4466_v10  ;;  %v4474_v3 = vld [vmem:[#allocation89_spill] sm:$0xff]  ;;  %v3171_v11 = vld [vmem:[%s4085_s2 + $0xf8] sm:$0xff]  ;;  %v622_v28 = vadd.f32 %v621_v27, %v620_v8 }
  0xde   :  { %717 = vmatpush.msrb.mxu0 %v4467_v40  ;;  %737 = vmatpush.msrb.mxu1 %v4468_v61  ;;  %4478 = vst [vmem:[#allocation9_spill] sm:$0xff] %v3171_v11  ;;  %v3203_v8 = vld [vmem:[%s4085_s2 + $0xf0] sm:$0xff] }
  0xdf   :  { %754 = vmatpush.msrb.mxu2 %v4469_v36  ;;  %774 = vmatpush.msrb.mxu3 %v4470_v56  ;;  %v3217_v27 = vld [vmem:[%s4085_s2 + $0x1f0] sm:$0xff] }
  0xe0   :  { %718 = vmatpush.msrb.mxu0 %v4471_v13  ;;  %738 = vmatpush.msrb.mxu1 %v4472_v16  ;;  %v3164_v13 = vld [vmem:[%s4085_s2 + $0x78] sm:$0xff]  ;;  %4483 = vst [vmem:[#allocation15_spill] sm:$0xff] %v3217_v27 }
  0xe1   :  { %755 = vmatpush.msrb.mxu2 %v4473_v41  ;;  %775 = vmatpush.msrb.mxu3 %v4474_v3  ;;  %4477 = vst [vmem:[#allocation8_spill] sm:$0xff] %v3164_v13  ;;  %v4482_v16 = vld [vmem:[#allocation95_spill] sm:$0xff] }
  0xe2   :  { %719 = vmatmul.f32.vlgmr.msrb.gmra.mxu0 %v601_v23  ;;  %739 = vmatmul.f32.vlgmr.msrb.gmra.mxu1 %v608_v5  ;;  %v4480_v5 = vld [vmem:[#allocation93_spill] sm:$0xff]  ;;  %v615_v23 = vadd.f32 %v614_v21, %v613_v54 }
  0xe3   :  { %756 = vmatpush.msrb.mxu2 %v4475_v63  ;;  %776 = vmatpush.msrb.mxu3 %v4476_v1  ;;  %v3196_v54 = vld [vmem:[%s4085_s2 + $0x70] sm:$0xff] }
  0xe4   :  { %1638 = vmatpush.xpose.msk.msra.mxu0 %vm803_vm2, %v3164_v13  ;;  %1655 = vmatpush.xpose.msk.msra.mxu1 %vm803_vm2, %v3171_v11  ;;  %v3182_v13 = vld [vmem:[%s4085_s2 + $0x178] sm:$0xff]  ;;  %v3210_v21 = vld [vmem:[%s4085_s2 + $0x170] sm:$0xff] }
  0xe5   :  { %757 = vmatpush.msrb.mxu2 %v4479_v48  ;;  %777 = vmatpush.msrb.mxu3 %v4480_v5  ;;  %v3189_v11 = vld [vmem:[%s4085_s2 + $0x1f8] sm:$0xff] }
  0xe7   :  { %758 = vmatpush.msrb.mxu2 %v4481_v18  ;;  %778 = vmatpush.msrb.mxu3 %v4482_v16 }
  0xe8   :  { %759 = vmatmul.f32.vlgmr.msrb.gmra.mxu2 %v615_v23  ;;  %779 = vmatmul.f32.vlgmr.msrb.gmra.mxu3 %v622_v28  ;;  %v3224_v23 = vld [vmem:[%s4085_s2 + $0x68] sm:$0xff] }
  0xe9   :  { %1672 = vmatpush.xpose.msk.msra.mxu2 %vm803_vm2, %v3182_v13  ;;  %1689 = vmatpush.xpose.msk.msra.mxu3 %vm803_vm2, %v3189_v11  ;;  %4484 = vst [vmem:[#allocation17_spill] sm:$0xff] %v3224_v23  ;;  %v3231_v28 = vld [vmem:[%s4085_s2 + $0xe8] sm:$0xff] }
  0xea   :  { %1639 = vmatpush.xpose.msk.msra.mxu0 %vm803_vm2, %v3196_v54  ;;  %1656 = vmatpush.xpose.msk.msra.mxu1 %vm803_vm2, %v3203_v8  ;;  %4485 = vst [vmem:[#allocation10_spill] sm:$0xff] %v3231_v28 }
  0xed   :  { %1673 = vmatpush.xpose.msk.msra.mxu2 %vm803_vm2, %v3210_v21  ;;  %1690 = vmatpush.xpose.msk.msra.mxu3 %vm803_vm2, %v3217_v27  ;;  %v3238_v27 = vld [vmem:[%s4085_s2 + $0x168] sm:$0xff] }
  0xee   :  { %1640 = vmatpush.xpose.msk.msra.mxu0 %vm803_vm2, %v3224_v23  ;;  %1657 = vmatpush.xpose.msk.msra.mxu1 %vm803_vm2, %v3231_v28  ;;  %4486 = vst [vmem:[#allocation11_spill] sm:$0xff] %v3238_v27  ;;  %v3245_v23 = vld [vmem:[%s4085_s2 + $0x1e8] sm:$0xff]  ;;  %v3252_v28 = vld [vmem:[%s4085_s2 + $0x60] sm:$0xff] }
  0xef   :  { %4487 = vst [vmem:[#allocation19_spill] sm:$0xff] %v3245_v23 }
  0xf0   :  { %4488 = vst [vmem:[#allocation21_spill] sm:$0xff] %v3252_v28 }
  0xf1   :  { %1674 = vmatpush.xpose.msk.msra.mxu2 %vm803_vm2, %v3238_v27  ;;  %1691 = vmatpush.xpose.msk.msra.mxu3 %vm803_vm2, %v3245_v23  ;;  %v3259_v27 = vld [vmem:[%s4085_s2 + $0xe0] sm:$0xff] }
  0xf2   :  { %1641 = vmatpush.xpose.msk.msra.mxu0 %vm803_vm2, %v3252_v28  ;;  %4489 = vst [vmem:[#allocation12_spill] sm:$0xff] %v3259_v27  ;;  %1658 = vmatpush.xpose.msk.msra.mxu1 %vm803_vm2, %v3259_v27  ;;  %v3266_v23 = vld [vmem:[%s4085_s2 + $0x160] sm:$0xff]  ;;  %v3280_v27 = vld [vmem:[%s4085_s2 + $0x58] sm:$0xff] }
  0xf3   :  { %4490 = vst [vmem:[#allocation13_spill] sm:$0xff] %v3266_v23  ;;  %v3273_v28 = vld [vmem:[%s4085_s2 + $0x1e0] sm:$0xff] }
  0xf4   :  { %4491 = vst [vmem:[#allocation23_spill] sm:$0xff] %v3273_v28 }
  0xf5   :  { %1675 = vmatpush.xpose.msk.msra.mxu2 %vm803_vm2, %v3266_v23  ;;  %1692 = vmatpush.xpose.msk.msra.mxu3 %vm803_vm2, %v3273_v28  ;;  %4492 = vst [vmem:[#allocation25_spill] sm:$0xff] %v3280_v27  ;;  %v3287_v23 = vld [vmem:[%s4085_s2 + $0xd8] sm:$0xff] }
  0xf6   :  { %1642 = vmatpush.xpose.msk.msra.mxu0 %vm803_vm2, %v3280_v27  ;;  %4493 = vst [vmem:[#allocation14_spill] sm:$0xff] %v3287_v23  ;;  %1659 = vmatpush.xpose.msk.msra.mxu1 %vm803_vm2, %v3287_v23  ;;  %v3294_v28 = vld [vmem:[%s4085_s2 + $0x158] sm:$0xff]  ;;  %v3308_v23 = vld [vmem:[%s4085_s2 + $0x50] sm:$0xff] }
  0xf7   :  { %4494 = vst [vmem:[#allocation16_spill] sm:$0xff] %v3294_v28  ;;  %v3301_v27 = vld [vmem:[%s4085_s2 + $0x1d8] sm:$0xff] }
  0xf8   :  { %4495 = vst [vmem:[#allocation27_spill] sm:$0xff] %v3301_v27 }
  0xf9   :  { %1676 = vmatpush.xpose.msk.msra.mxu2 %vm803_vm2, %v3294_v28  ;;  %1693 = vmatpush.xpose.msk.msra.mxu3 %vm803_vm2, %v3301_v27  ;;  %4496 = vst [vmem:[#allocation29_spill] sm:$0xff] %v3308_v23  ;;  %v3315_v28 = vld [vmem:[%s4085_s2 + $0xd0] sm:$0xff] }
  0xfa   :  { %1643 = vmatpush.xpose.msk.msra.mxu0 %vm803_vm2, %v3308_v23  ;;  %4497 = vst [vmem:[#allocation18_spill] sm:$0xff] %v3315_v28  ;;  %1660 = vmatpush.xpose.msk.msra.mxu1 %vm803_vm2, %v3315_v28  ;;  %v3322_v27 = vld [vmem:[%s4085_s2 + $0x150] sm:$0xff]  ;;  %v3336_v28 = vld [vmem:[%s4085_s2 + $0x48] sm:$0xff] }
  0xfb   :  { %4498 = vst [vmem:[#allocation20_spill] sm:$0xff] %v3322_v27  ;;  %v3329_v23 = vld [vmem:[%s4085_s2 + $0x1d0] sm:$0xff] }
  0xfc   :  { %4499 = vst [vmem:[#allocation30_spill] sm:$0xff] %v3329_v23 }
  0xfd   :  { %1677 = vmatpush.xpose.msk.msra.mxu2 %vm803_vm2, %v3322_v27  ;;  %1694 = vmatpush.xpose.msk.msra.mxu3 %vm803_vm2, %v3329_v23  ;;  %4500 = vst [vmem:[#allocation31_spill] sm:$0xff] %v3336_v28  ;;  %v3343_v27 = vld [vmem:[%s4085_s2 + $0xc8] sm:$0xff] }
  0xfe   :  { %1644 = vmatpush.xpose.msk.msra.mxu0 %vm803_vm2, %v3336_v28  ;;  %4501 = vst [vmem:[#allocation22_spill] sm:$0xff] %v3343_v27  ;;  %1661 = vmatpush.xpose.msk.msra.mxu1 %vm803_vm2, %v3343_v27  ;;  %v3350_v23 = vld [vmem:[%s4085_s2 + $0x148] sm:$0xff]  ;;  %v3364_v27 = vld [vmem:[%s4085_s2 + $0x40] sm:$0xff] }
  0xff   :  { %4502 = vst [vmem:[#allocation24_spill] sm:$0xff] %v3350_v23  ;;  %v3357_v28 = vld [vmem:[%s4085_s2 + $0x1c8] sm:$0xff] }
 0x100   :  { %4503 = vst [vmem:[#allocation33_spill] sm:$0xff] %v3357_v28 }
 0x101   :  { %1678 = vmatpush.xpose.msk.msra.mxu2 %vm803_vm2, %v3350_v23  ;;  %1695 = vmatpush.xpose.msk.msra.mxu3 %vm803_vm2, %v3357_v28  ;;  %4504 = vst [vmem:[#allocation35_spill] sm:$0xff] %v3364_v27  ;;  %v3371_v23 = vld [vmem:[%s4085_s2 + $0xc0] sm:$0xff] }
 0x102   :  { %1645 = vmatpush.xpose.msk.msra.mxu0 %vm803_vm2, %v3364_v27  ;;  %1662 = vmatpush.xpose.msk.msra.mxu1 %vm803_vm2, %v3371_v23  ;;  %v3378_v28 = vld [vmem:[%s4085_s2 + $0x140] sm:$0xff]  ;;  %v3387_v27 = vld [vmem:[%s4085_s2 + $0x38] sm:$0xff] }
 0x105   :  { %1679 = vmatpush.xpose.msk.msra.mxu2 %vm803_vm2, %v3378_v28  ;;  %1696 = vmatpush.xpose.msk.msra.mxu3 %vm803_vm2, %v2403_v57  ;;  %v4505_v57 = vld [vmem:[#allocation46_spill] sm:$0xff] }
 0x106   :  { %1646 = vmatpush.xpose.msk.msra.mxu0 %vm803_vm2, %v3387_v27  ;;  %1663 = vmatpush.xpose.msk.msra.mxu1 %vm803_vm2, %v2409_v58  ;;  %v4506_v58 = vld [vmem:[#allocation41_spill] sm:$0xff] }
 0x109   :  { %1680 = vmatpush.xpose.msk.msra.mxu2 %vm803_vm2, %v4393_v51  ;;  %1697 = vmatpush.xpose.msk.msra.mxu3 %vm803_vm2, %v4394_v53  ;;  %v4513_v51 = vld [vmem:[#allocation54_spill] sm:$0xff]  ;;  %v4514_v53 = vld [vmem:[#allocation49_spill] sm:$0xff] }
 0x10a   :  { %1647 = vmatpush.xpose.msk.msra.mxu0 %vm803_vm2, %v2421_v60  ;;  %1664 = vmatpush.xpose.msk.msra.mxu1 %vm803_vm2, %v2433_v62  ;;  %v4507_v60 = vld [vmem:[#allocation43_spill] sm:$0xff]  ;;  %v4508_v62 = vld [vmem:[#allocation48_spill] sm:$0xff] }
 0x10d   :  { %1681 = vmatpush.xpose.msk.msra.mxu2 %vm803_vm2, %v4397_v34  ;;  %1698 = vmatpush.xpose.msk.msra.mxu3 %vm803_vm2, %v4398_v15  ;;  %v4517_v34 = vld [vmem:[#allocation58_spill] sm:$0xff]  ;;  %v4518_v15 = vld [vmem:[#allocation53_spill] sm:$0xff] }
 0x10e   :  { %1648 = vmatpush.xpose.msk.msra.mxu0 %vm803_vm2, %v2445_v0  ;;  %1665 = vmatpush.xpose.msk.msra.mxu1 %vm803_vm2, %v2457_v2  ;;  %v4509_v0 = vld [vmem:[#allocation50_spill] sm:$0xff]  ;;  %v4510_v2 = vld [vmem:[#allocation45_spill] sm:$0xff] }
 0x111   :  { %1682 = vmatpush.xpose.msk.msra.mxu2 %vm803_vm2, %v4401_v22  ;;  %1699 = vmatpush.xpose.msk.msra.mxu3 %vm803_vm2, %v4402_v29  ;;  %v4521_v22 = vld [vmem:[#allocation65_spill] sm:$0xff] }
 0x112   :  { %1649 = vmatpush.xpose.msk.msra.mxu0 %vm803_vm2, %v2469_v4  ;;  %1666 = vmatpush.xpose.msk.msra.mxu1 %vm803_vm2, %v2481_v6  ;;  %v4511_v4 = vld [vmem:[#allocation47_spill] sm:$0xff]  ;;  %v4512_v6 = vld [vmem:[#allocation52_spill] sm:$0xff]  ;;  %v4522_v29 = vld [vmem:[#allocation57_spill] sm:$0xff] }
 0x115   :  { %1683 = vmatpush.xpose.msk.msra.mxu2 %vm803_vm2, %v4405_v42  ;;  %1700 = vmatpush.xpose.msk.msra.mxu3 %vm803_vm2, %v4406_v7  ;;  %v4525_v42 = vld [vmem:[#allocation69_spill] sm:$0xff]  ;;  %v4526_v7 = vld [vmem:[#allocation60_spill] sm:$0xff] }
 0x116   :  { %1650 = vmatpush.xpose.msk.msra.mxu0 %vm803_vm2, %v4395_v24  ;;  %1667 = vmatpush.xpose.msk.msra.mxu1 %vm803_vm2, %v4396_v55  ;;  %v4515_v24 = vld [vmem:[#allocation51_spill] sm:$0xff]  ;;  %v4516_v55 = vld [vmem:[#allocation56_spill] sm:$0xff] }
 0x119   :  { %1684 = vmatpush.xpose.msk.msra.mxu2 %vm803_vm2, %v4409_v44  ;;  %1701 = vmatpush.xpose.msk.msra.mxu3 %vm803_vm2, %v4410_v35  ;;  %v4529_v44 = vld [vmem:[#allocation73_spill] sm:$0xff]  ;;  %v4530_v35 = vld [vmem:[#allocation62_spill] sm:$0xff] }
 0x11a   :  { %1651 = vmatpush.xpose.msk.msra.mxu0 %vm803_vm2, %v4399_v19  ;;  %1668 = vmatpush.xpose.msk.msra.mxu1 %vm803_vm2, %v4400_v38  ;;  %v4519_v19 = vld [vmem:[#allocation55_spill] sm:$0xff]  ;;  %v4520_v38 = vld [vmem:[#allocation64_spill] sm:$0xff] }
 0x11d   :  { %1685 = vmatpush.xpose.msk.msra.mxu2 %vm803_vm2, %v4413_v49  ;;  %1702 = vmatpush.xpose.msk.msra.mxu3 %vm803_vm2, %v4414_v50  ;;  %v4533_v49 = vld [vmem:[#allocation77_spill] sm:$0xff]  ;;  %v408_v50 = vpop.f32.mrf.mxu0 }
 0x11e   :  { %1652 = vmatpush.xpose.msk.msra.mxu0 %vm803_vm2, %v4403_v9  ;;  %1669 = vmatpush.xpose.msk.msra.mxu1 %vm803_vm2, %v4404_v17  ;;  %v4523_v9 = vld [vmem:[#allocation59_spill] sm:$0xff]  ;;  %v4524_v17 = vld [vmem:[#allocation68_spill] sm:$0xff] }
 0x121   :  { %1686 = vmatpush.xpose.msk.msra.mxu2 %vm803_vm2, %v4417_v52  ;;  %1703 = vmatpush.xpose.msk.msra.mxu3 %vm803_vm2, %v4418_v59  ;;  %v4535_v52 = vld [vmem:[#allocation67_spill] sm:$0xff] }
 0x122   :  { %1653 = vmatpush.xpose.msk.msra.mxu0 %vm803_vm2, %v4407_v31  ;;  %1670 = vmatpush.xpose.msk.msra.mxu1 %vm803_vm2, %v4408_v33  ;;  %v4527_v31 = vld [vmem:[#allocation61_spill] sm:$0xff]  ;;  %v4528_v33 = vld [vmem:[#allocation72_spill] sm:$0xff] }
 0x125   :  { %1687 = vmatpush.xpose.msk.msra.mxu2 %vm803_vm2, %v4421_v14  ;;  %1704 = vmatpush.xpose.msk.msra.mxu3 %vm803_vm2, %v4422_v47  ;;  %v4538_v14 = vld [vmem:[#allocation71_spill] sm:$0xff]  ;;  %v2107_v47 = vmov 32.0  }
 0x126   :  { %1706 = vmatpush.xpose.msk.msrb.mxu0 %vm803_vm2, %v4411_v46  ;;  %1723 = vmatpush.xpose.msk.msrb.mxu1 %vm803_vm2, %v4412_v37  ;;  %v4531_v46 = vld [vmem:[#allocation63_spill] sm:$0xff]  ;;  %v4532_v37 = vld [vmem:[#allocation76_spill] sm:$0xff]  ;;  %v448_v59 = vpop.f32.mrf.mxu2  ;;  %1921 = vrcp.f32 %v2107_v47  ;;  %v4546_v47 = vld [vmem:[#allocation9_spill] sm:$0xff] }
 0x129   :  { %1740 = vmatpush.xpose.msk.msrb.mxu2 %vm803_vm2, %v4425_v30  ;;  %1757 = vmatpush.xpose.msk.msrb.mxu3 %vm803_vm2, %v4426_v32  ;;  %v468_v30 = vpop.f32.mrf.mxu3 }
 0x12a   :  { %1707 = vmatpush.xpose.msk.msrb.mxu0 %vm803_vm2, %v4415_v25  ;;  %1724 = vmatpush.xpose.msk.msrb.mxu1 %vm803_vm2, %v4416_v39  ;;  %v428_v25 = vpop.f32.mrf.mxu1  ;;  %v4534_v39 = vld [vmem:[#allocation66_spill] sm:$0xff] }
 0x12b   :  { %v488_v32 = vpop.f32.mrf.mxu0 }
 0x12d   :  { %1741 = vmatpush.xpose.msk.msrb.mxu2 %vm803_vm2, %v4429_v20  ;;  %1758 = vmatpush.xpose.msk.msrb.mxu3 %vm803_vm2, %v4430_v12  ;;  %v4539_v12 = vld [vmem:[#allocation74_spill] sm:$0xff] }
 0x12e   :  { %1708 = vmatpush.xpose.msk.msrb.mxu0 %vm803_vm2, %v4419_v43  ;;  %1725 = vmatpush.xpose.msk.msrb.mxu1 %vm803_vm2, %v4420_v45  ;;  %v4536_v43 = vld [vmem:[#allocation80_spill] sm:$0xff]  ;;  %v4537_v45 = vld [vmem:[#allocation70_spill] sm:$0xff] }
 0x131   :  { %1742 = vmatpush.xpose.msk.msrb.mxu2 %vm803_vm2, %v4433_v26  ;;  %1759 = vmatpush.xpose.msk.msrb.mxu3 %vm803_vm2, %v4505_v57  ;;  %v4540_v26 = vld [vmem:[#allocation75_spill] sm:$0xff] }
 0x132   :  { %1709 = vmatpush.xpose.msk.msrb.mxu0 %vm803_vm2, %v4506_v58  ;;  %1726 = vmatpush.xpose.msk.msrb.mxu1 %vm803_vm2, %v4507_v60  ;;  %v508_v20 = vpop.f32.mrf.mxu1  ;;  %v1922_v58 = vpop.eup %1921 }
 0x133   :  { %vm556_vm3 = vweird.f32 %v1922_v58 }
 0x135   :  { %1743 = vmatpush.xpose.msk.msrb.mxu2 %vm803_vm2, %v4508_v62  ;;  %1760 = vmatpush.xpose.msk.msrb.mxu3 %vm803_vm2, %v4509_v0  ;;  %v552_v62 = vmul.f32 32.0, %v1922_v58 }
 0x136   :  { %1710 = vmatpush.xpose.msk.msrb.mxu0 %vm803_vm2, %v4510_v2  ;;  %1727 = vmatpush.xpose.msk.msrb.mxu1 %vm803_vm2, %v4511_v4 }
 0x138   :  { %v528_v57 = vpop.f32.mrf.mxu2 }
 0x139   :  { %1744 = vmatpush.xpose.msk.msrb.mxu2 %vm803_vm2, %v4512_v6  ;;  %1761 = vmatpush.xpose.msk.msrb.mxu3 %vm803_vm2, %v4513_v51 }
 0x13a   :  { %1711 = vmatpush.xpose.msk.msrb.mxu0 %vm803_vm2, %v4514_v53  ;;  %1728 = vmatpush.xpose.msk.msrb.mxu1 %vm803_vm2, %v4515_v24 }
 0x13b   :  { %v548_v2 = vpop.f32.mrf.mxu3 }
 0x13d   :  { %1745 = vmatpush.xpose.msk.msrb.mxu2 %vm803_vm2, %v4516_v55  ;;  %1762 = vmatpush.xpose.msk.msrb.mxu3 %vm803_vm2, %v4517_v34  ;;  %v640_v4 = vpop.f32.mrf.mxu0 }
 0x13e   :  { %1712 = vmatpush.xpose.msk.msrb.mxu0 %vm803_vm2, %v4518_v15  ;;  %1729 = vmatpush.xpose.msk.msrb.mxu1 %vm803_vm2, %v4519_v19 }
 0x141   :  { %1746 = vmatpush.xpose.msk.msrb.mxu2 %vm803_vm2, %v4520_v38  ;;  %1763 = vmatpush.xpose.msk.msrb.mxu3 %vm803_vm2, %v4521_v22 }
 0x142   :  { %1713 = vmatpush.xpose.msk.msrb.mxu0 %vm803_vm2, %v4522_v29  ;;  %1730 = vmatpush.xpose.msk.msrb.mxu1 %vm803_vm2, %v4523_v9 }
 0x145   :  { %1747 = vmatpush.xpose.msk.msrb.mxu2 %vm803_vm2, %v4524_v17  ;;  %1764 = vmatpush.xpose.msk.msrb.mxu3 %vm803_vm2, %v4525_v42 }
 0x146   :  { %1714 = vmatpush.xpose.msk.msrb.mxu0 %vm803_vm2, %v4526_v7  ;;  %1731 = vmatpush.xpose.msk.msrb.mxu1 %vm803_vm2, %v4527_v31 }
 0x149   :  { %1748 = vmatpush.xpose.msk.msrb.mxu2 %vm803_vm2, %v4528_v33  ;;  %1765 = vmatpush.xpose.msk.msrb.mxu3 %vm803_vm2, %v4529_v44 }
 0x14a   :  { %1715 = vmatpush.xpose.msk.msrb.mxu0 %vm803_vm2, %v4530_v35  ;;  %1732 = vmatpush.xpose.msk.msrb.mxu1 %vm803_vm2, %v4531_v46  ;;  %v680_v6 = vpop.f32.mrf.mxu2 }
 0x14d   :  { %1749 = vmatpush.xpose.msk.msrb.mxu2 %vm803_vm2, %v4532_v37  ;;  %1766 = vmatpush.xpose.msk.msrb.mxu3 %vm803_vm2, %v4533_v49 }
 0x14e   :  { %1716 = vmatpush.xpose.msk.msrb.mxu0 %vm803_vm2, %v4534_v39  ;;  %1733 = vmatpush.xpose.msk.msrb.mxu1 %vm803_vm2, %v4535_v52  ;;  %v787_v52 = vld [vmem:[#allocation2] sm:$0x1] }
 0x151   :  { %1750 = vmatpush.xpose.msk.msrb.mxu2 %vm803_vm2, %v4536_v43  ;;  %1767 = vmatpush.xpose.msk.msrb.mxu3 %vm803_vm2, %v4466_v10  ;;  %v429_v10 = vadd.f32 %v428_v25, %v408_v50 }
 0x152   :  { %1717 = vmatpush.xpose.msk.msrb.mxu0 %vm803_vm2, %v4537_v45  ;;  %1734 = vmatpush.xpose.msk.msrb.mxu1 %vm803_vm2, %v4538_v14  ;;  %v4545_v14 = vld [vmem:[#allocation8_spill] sm:$0xff] }
 0x153   :  { %v449_v60 = vadd.f32 %v448_v59, %v429_v10  ;;  %v4557_v10 = vld [vmem:[#allocation14_spill] sm:$0xff] }
 0x155   :  { %1751 = vmatpush.xpose.msk.msrb.mxu2 %vm803_vm2, %v4469_v36  ;;  %1768 = vmatpush.xpose.msk.msrb.mxu3 %vm803_vm2, %v4470_v56  ;;  %v4541_v36 = vld [vmem:[#allocation78_spill] sm:$0xff]  ;;  %v4542_v56 = vld [vmem:[#allocation79_spill] sm:$0xff]  ;;  %v469_v0 = vadd.f32 %v468_v30, %v449_v60  ;;  %v4560_v60 = vld [vmem:[#allocation29_spill] sm:$0xff] }
 0x156   :  { %1718 = vmatpush.xpose.msk.msrb.mxu0 %vm803_vm2, %v4539_v12  ;;  %1735 = vmatpush.xpose.msk.msrb.mxu1 %vm803_vm2, %v4540_v26  ;;  %v4547_v30 = vld [vmem:[#allocation15_spill] sm:$0xff]  ;;  %v4556_v26 = vld [vmem:[#allocation25_spill] sm:$0xff] }
 0x157   :  { %v489_v51 = vadd.f32 %v488_v32, %v469_v0  ;;  %v4553_v32 = vld [vmem:[#allocation12_spill] sm:$0xff]  ;;  %v4555_v12 = vld [vmem:[#allocation23_spill] sm:$0xff] }
 0x158   :  { %v4564_v0 = vld [vmem:[#allocation31_spill] sm:$0xff] }
 0x159   :  { %1752 = vmatpush.xpose.msk.msrb.mxu2 %vm803_vm2, %v4473_v41  ;;  %1769 = vmatpush.xpose.msk.msrb.mxu3 %vm803_vm2, %v4474_v3  ;;  %v660_v41 = vpop.f32.mrf.mxu1  ;;  %v553_v3 = vsub.f32 1.0, %v552_v62  ;;  %v509_v55 = vadd.f32 %v508_v20, %v489_v51  ;;  %v4554_v20 = vld [vmem:[#allocation13_spill] sm:$0xff]  ;;  %v4563_v62 = vld [vmem:[#allocation30_spill] sm:$0xff] }
 0x15a   :  { %1719 = vmatpush.xpose.msk.msrb.mxu0 %vm803_vm2, %v4541_v36  ;;  %1736 = vmatpush.xpose.msk.msrb.mxu1 %vm803_vm2, %v4542_v56  ;;  %v661_v53 = vadd.f32 %v660_v41, %v640_v4  ;;  %v4561_v36 = vld [vmem:[#allocation18_spill] sm:$0xff]  ;;  %v4562_v56 = vld [vmem:[#allocation20_spill] sm:$0xff]  ;;  %v4567_v41 = vld [vmem:[#allocation33_spill] sm:$0xff] }
 0x15b   :  { %v554_v24 = vmul.f32 %v1922_v58, %v553_v3  ;;  %v529_v34 = vadd.f32 %v528_v57, %v509_v55  ;;  %v4558_v57 = vld [vmem:[#allocation16_spill] sm:$0xff]  ;;  %v4568_v3 = vld [vmem:[#allocation35_spill] sm:$0xff] }
 0x15c   :  { %v4566_v4 = vld [vmem:[#allocation24_spill] sm:$0xff]  ;;  %v1958_v51 = vld [vmem:[%s4085_s2 + $0xb8] sm:$0xff] }
 0x15d   :  { %1753 = vmatpush.xpose.msk.msrb.mxu2 %vm803_vm2, %v4475_v63  ;;  %1770 = vmatpush.xpose.msk.msrb.mxu3 %vm803_vm2, %v4476_v1  ;;  %v4543_v63 = vld [vmem:[#allocation86_spill] sm:$0xff]  ;;  %v4544_v1 = vld [vmem:[#allocation87_spill] sm:$0xff]  ;;  %v549_v38 = vadd.f32 %v548_v2, %v529_v34  ;;  %v1967_v55 = vld [vmem:[%s4085_s2 + $0x128] sm:$0xff] }
 0x15e   :  { %1720 = vmatpush.xpose.msk.msrb.mxu0 %vm803_vm2, %v4467_v40  ;;  %1737 = vmatpush.xpose.msk.msrb.mxu1 %vm803_vm2, %v4468_v61  ;;  %v681_v40 = vadd.f32 %v680_v6, %v661_v53  ;;  %v700_v61 = vpop.f32.mrf.mxu3  ;;  %v4565_v2 = vld [vmem:[#allocation22_spill] sm:$0xff]  ;;  %v1957_v6 = vld [vmem:[%s4085_s2 + $0x1c0] sm:$0xff] }
 0x15f   :  { %v1962_v53 = vld [vmem:[%s4085_s2 + $0xb0] sm:$0xff]  ;;  %v1970_v34 = vld [vmem:[%s4085_s2 + $0xa0] sm:$0xff] }
 0x160   :  { %v701_v15 = vadd.f32 %v700_v61, %v681_v40  ;;  %v1965_v40 = vld [vmem:[%s4085_s2 + $0x28] sm:$0xff] }
 0x161   :  { %1754 = vmatpush.xpose.msk.msrb.mxu2 %vm803_vm2, %v4479_v48  ;;  %1771 = vmatpush.xpose.msk.msrb.mxu3 %vm803_vm2, %v4480_v5  ;;  %v720_v48 = vpop.f32.mrf.mxu0  ;;  %v555_v5 = vadd.f32 %v1922_v58, %v554_v24  ;;  %v740_v29 = vpop.f32.mrf.mxu1  ;;  %v1966_v24 = vld [vmem:[%s4085_s2 + $0xa8] sm:$0xff] }
 0x162   :  { %1721 = vmatpush.xpose.msk.msrb.mxu0 %vm803_vm2, %v4543_v63  ;;  %1738 = vmatpush.xpose.msk.msrb.mxu1 %vm803_vm2, %v4544_v1  ;;  %v721_v19 = vadd.f32 %v720_v48, %v701_v15  ;;  %v1963_v63 = vld [vmem:[%s4085_s2 + $0x130] sm:$0xff]  ;;  %v1968_v61 = vld [vmem:[%s4085_s2 + $0x1a8] sm:$0xff]  ;;  %v1969_v48 = vld [vmem:[%s4085_s2 + $0x20] sm:$0xff] }
 0x163   :  { %v557_v22 = vsel %vm556_vm3, %v1922_v58, %v555_v5  ;;  %v4559_v58 = vld [vmem:[#allocation27_spill] sm:$0xff]  ;;  %v1964_v1 = vld [vmem:[%s4085_s2 + $0x1b0] sm:$0xff] }
 0x164   :  { %v741_v9 = vadd.f32 %v740_v29, %v721_v19  ;;  %v3581_v42 = vmul.f32 %v557_v22, %v549_v38  ;;  %v1971_v15 = vld [vmem:[%s4085_s2 + $0x120] sm:$0xff]  ;;  %v1973_v19 = vld [vmem:[%s4085_s2 + $0x18] sm:$0xff] }
 0x165   :  { %1755 = vmatpush.xpose.msk.msrb.mxu2 %vm803_vm2, %v4481_v18  ;;  %1772 = vmatpush.xpose.msk.msrb.mxu3 %vm803_vm2, %v4482_v16  ;;  %v1972_v5 = vld [vmem:[%s4085_s2 + $0x1a0] sm:$0xff]  ;;  %v1974_v38 = vld [vmem:[%s4085_s2 + $0x98] sm:$0xff] }
 0x166   :  { %v784_v16 = vmul.f32 %v3581_v42, %v3581_v42  ;;  %v1976_v29 = vld [vmem:[%s4085_s2 + $0x198] sm:$0xff] }
 0x16b   :  { %v760_v17 = vpop.f32.mrf.mxu2  ;;  %v780_v31 = vpop.f32.mrf.mxu3 }
 0x16c   :  { %v761_v7 = vadd.f32 %v760_v17, %v741_v9  ;;  %v1977_v9 = vld [vmem:[%s4085_s2 + $0x10] sm:$0xff] }
 0x16d   :  { %v1978_v17 = vld [vmem:[%s4085_s2 + $0x90] sm:$0xff] }
 0x16e   :  { %v781_v18 = vadd.f32 %v780_v31, %v761_v7  ;;  %v1979_v7 = vld [vmem:[%s4085_s2 + $0x110] sm:$0xff] }
 0x16f   :  { %v1980_v31 = vld [vmem:[%s4085_s2 + $0x190] sm:$0xff] }
 0x170   :  { %v783_v33 = vmul.f32 %v781_v18, %v557_v22  ;;  %v1975_v22 = vld [vmem:[%s4085_s2 + $0x118] sm:$0xff]  ;;  %v1981_v18 = vld [vmem:[%s4085_s2 + $0x8] sm:$0xff] }
 0x172   :  { %v785_v44 = vsub.f32 %v783_v33, %v784_v16  ;;  %v1982_v16 = vld [vmem:[%s4085_s2 + $0x88] sm:$0xff] }
 0x173   :  { %v1983_v33 = vld [vmem:[%s4085_s2 + $0x108] sm:$0xff] }
 0x174   :  { %v786_v35 = vmax.f32 %v785_v44, 0.0  ;;  %v1984_v44 = vld [vmem:[%s4085_s2 + $0x188] sm:$0xff] }
 0x176   :  { %v788_v46 = vadd.f32 1e-05, %v786_v35 }
 0x178   :  { %1923 = vrsqrt.f32 %v788_v46  ;;  %vm795_vm5 = vweird.f32 %v788_v46 }
 0x17e   :  { %v1924_v37 = vpop.eup %1923 }
 0x17f   :  { %v790_v49 = vmul.f32 %v1924_v37, %v788_v46  ;;  %vm796_vm4 = vweird.f32 %v1924_v37  ;;  %v800_v46 = vld [vmem:[#allocation4] sm:$0x1] }
 0x180   :  { %vm797_vm6 = vmor %vm795_vm5, %vm796_vm4 }
 0x181   :  { %v791_v50 = vmul.f32 %v1924_v37, %v790_v49  ;;  %v1986_v49 = vld [vmem:[%s4085_s2 + $0x80] sm:$0xff] }
 0x183   :  { %v792_v25 = vmul.f32 0.5, %v791_v50  ;;  %v1987_v50 = vld [vmem:[%s4085_s2 + $0x100] sm:$0xff] }
 0x185   :  { %v793_v39 = vsub.f32 1.5, %v792_v25  ;;  %v1989_v25 = vld [vmem:[%s4085_s2 + $0x278] sm:$0xff] }
 0x187   :  { %v794_v59 = vmul.f32 %v1924_v37, %v793_v39  ;;  %v1990_v39 = vld [vmem:[%s4085_s2 + $0x2f8] sm:$0xff] }
 0x189   :  { %v798_v43 = vsel %vm797_vm6, %v1924_v37, %v794_v59  ;;  %v1985_v37 = vld [vmem:[%s4085_s2] sm:$0xff]  ;;  %v1991_v59 = vld [vmem:[%s4085_s2 + $0x378] sm:$0xff] }
 0x18a   :  { %v3585_v45 = vmul.f32 %v798_v43, %v787_v52  ;;  %v1992_v43 = vld [vmem:[%s4085_s2 + $0x3f8] sm:$0xff] }
 0x18c   :  { %1654 = vmatmul.msk.f32.vlgmr.msra.gmra.mxu0 %vm803_vm2, %v3585_v45  ;;  %1671 = vmatmul.msk.f32.vlgmr.msra.gmra.mxu1 %vm803_vm2, %v3585_v45  ;;  %v801_v35 = vmul.f32 %v3585_v45, %v3581_v42  ;;  %v1988_v42 = vld [vmem:[%s4085_s2 + $0x180] sm:$0xff] }
 0x18d   :  { %1688 = vmatmul.msk.f32.vlgmr.msra.gmra.mxu2 %vm803_vm2, %v3585_v45  ;;  %1705 = vmatmul.msk.f32.vlgmr.msra.gmra.mxu3 %vm803_vm2, %v3585_v45 }
 0x18e   :  { %1774 = vmatpush.xpose.msk.msra.mxu0 %vm803_vm2, %v4545_v14  ;;  %1791 = vmatpush.xpose.msk.msra.mxu1 %vm803_vm2, %v4546_v47  ;;  %v3805_v52 = vsub.f32 %v800_v46, %v801_v35  ;;  %v1994_v14 = vld [vmem:[%s4085_s2 + $0x2f0] sm:$0xff]  ;;  %v2046_v35 = vld [vmem:[%s4085_s2 + $0x288] sm:$0xff] }
 0x18f   :  { %1808 = vmatpush.xpose.msk.msra.mxu2 %vm803_vm2, %v3182_v13  ;;  %1825 = vmatpush.xpose.msk.msra.mxu3 %vm803_vm2, %v3189_v11  ;;  %v4548_v13 = vld [vmem:[#allocation17_spill] sm:$0xff]  ;;  %v4549_v11 = vld [vmem:[#allocation10_spill] sm:$0xff] }
 0x190   :  { %v1995_v47 = vld [vmem:[%s4085_s2 + $0x370] sm:$0xff]  ;;  %v2047_v46 = vld [vmem:[%s4085_s2 + $0x308] sm:$0xff] }
 0x192   :  { %1775 = vmatpush.xpose.msk.msra.mxu0 %vm803_vm2, %v3196_v54  ;;  %1792 = vmatpush.xpose.msk.msra.mxu1 %vm803_vm2, %v3203_v8  ;;  %v4550_v54 = vld [vmem:[#allocation11_spill] sm:$0xff] }
 0x193   :  { %1809 = vmatpush.xpose.msk.msra.mxu2 %vm803_vm2, %v3210_v21  ;;  %1826 = vmatpush.xpose.msk.msra.mxu3 %vm803_vm2, %v4547_v30  ;;  %v4551_v8 = vld [vmem:[#allocation19_spill] sm:$0xff]  ;;  %v4552_v21 = vld [vmem:[#allocation21_spill] sm:$0xff] }
 0x194   :  { %1722 = vmatmul.msk.f32.vlgmr.msrb.gmra.mxu0 %vm803_vm2, %v3585_v45  ;;  %1739 = vmatmul.msk.f32.vlgmr.msrb.gmra.mxu1 %vm803_vm2, %v3585_v45  ;;  %v1996_v30 = vld [vmem:[%s4085_s2 + $0x3f0] sm:$0xff] }
 0x195   :  { %1756 = vmatmul.msk.f32.vlgmr.msrb.gmra.mxu2 %vm803_vm2, %v3585_v45  ;;  %1773 = vmatmul.msk.f32.vlgmr.msrb.gmra.mxu3 %vm803_vm2, %v3585_v45  ;;  %v1993_v45 = vld [vmem:[%s4085_s2 + $0x270] sm:$0xff] }
 0x196   :  { %1776 = vmatpush.xpose.msk.msra.mxu0 %vm803_vm2, %v4548_v13  ;;  %1793 = vmatpush.xpose.msk.msra.mxu1 %vm803_vm2, %v4549_v11  ;;  %v1997_v13 = vld [vmem:[%s4085_s2 + $0x268] sm:$0xff] }
 0x197   :  { %1810 = vmatpush.xpose.msk.msra.mxu2 %vm803_vm2, %v4550_v54  ;;  %1827 = vmatpush.xpose.msk.msra.mxu3 %vm803_vm2, %v4551_v8  ;;  %v1998_v11 = vld [vmem:[%s4085_s2 + $0x2e8] sm:$0xff] }
 0x198   :  { %v1999_v54 = vld [vmem:[%s4085_s2 + $0x368] sm:$0xff] }
 0x199   :  { %v2000_v8 = vld [vmem:[%s4085_s2 + $0x3e8] sm:$0xff] }
 0x19a   :  { %1777 = vmatpush.xpose.msk.msra.mxu0 %vm803_vm2, %v4552_v21  ;;  %1794 = vmatpush.xpose.msk.msra.mxu1 %vm803_vm2, %v4553_v32  ;;  %v2001_v21 = vld [vmem:[%s4085_s2 + $0x260] sm:$0xff] }
 0x19b   :  { %1811 = vmatpush.xpose.msk.msra.mxu2 %vm803_vm2, %v4554_v20  ;;  %1828 = vmatpush.xpose.msk.msra.mxu3 %vm803_vm2, %v4555_v12  ;;  %v2002_v32 = vld [vmem:[%s4085_s2 + $0x2e0] sm:$0xff] }
 0x19c   :  { %v2003_v20 = vld [vmem:[%s4085_s2 + $0x360] sm:$0xff] }
 0x19d   :  { %v2004_v12 = vld [vmem:[%s4085_s2 + $0x3e0] sm:$0xff] }
 0x19e   :  { %1778 = vmatpush.xpose.msk.msra.mxu0 %vm803_vm2, %v4556_v26  ;;  %1795 = vmatpush.xpose.msk.msra.mxu1 %vm803_vm2, %v4557_v10  ;;  %v2005_v26 = vld [vmem:[%s4085_s2 + $0x258] sm:$0xff] }
 0x19f   :  { %1812 = vmatpush.xpose.msk.msra.mxu2 %vm803_vm2, %v4558_v57  ;;  %1829 = vmatpush.xpose.msk.msra.mxu3 %vm803_vm2, %v4559_v58  ;;  %v2006_v10 = vld [vmem:[%s4085_s2 + $0x2d8] sm:$0xff] }
 0x1a0   :  { %v2007_v57 = vld [vmem:[%s4085_s2 + $0x358] sm:$0xff] }
 0x1a1   :  { %v2008_v58 = vld [vmem:[%s4085_s2 + $0x3d8] sm:$0xff] }
 0x1a2   :  { %1779 = vmatpush.xpose.msk.msra.mxu0 %vm803_vm2, %v4560_v60  ;;  %1796 = vmatpush.xpose.msk.msra.mxu1 %vm803_vm2, %v4561_v36  ;;  %v2009_v60 = vld [vmem:[%s4085_s2 + $0x250] sm:$0xff] }
 0x1a3   :  { %1813 = vmatpush.xpose.msk.msra.mxu2 %vm803_vm2, %v4562_v56  ;;  %1830 = vmatpush.xpose.msk.msra.mxu3 %vm803_vm2, %v4563_v62  ;;  %v2010_v36 = vld [vmem:[%s4085_s2 + $0x2d0] sm:$0xff] }
 0x1a4   :  { %v2011_v56 = vld [vmem:[%s4085_s2 + $0x350] sm:$0xff] }
 0x1a5   :  { %v2012_v62 = vld [vmem:[%s4085_s2 + $0x3d0] sm:$0xff] }
 0x1a6   :  { %1780 = vmatpush.xpose.msk.msra.mxu0 %vm803_vm2, %v4564_v0  ;;  %1797 = vmatpush.xpose.msk.msra.mxu1 %vm803_vm2, %v4565_v2  ;;  %v2013_v0 = vld [vmem:[%s4085_s2 + $0x248] sm:$0xff] }
 0x1a7   :  { %1814 = vmatpush.xpose.msk.msra.mxu2 %vm803_vm2, %v4566_v4  ;;  %1831 = vmatpush.xpose.msk.msra.mxu3 %vm803_vm2, %v4567_v41  ;;  %v2014_v2 = vld [vmem:[%s4085_s2 + $0x2c8] sm:$0xff] }
 0x1a8   :  { %v2015_v4 = vld [vmem:[%s4085_s2 + $0x348] sm:$0xff] }
 0x1a9   :  { %v2016_v41 = vld [vmem:[%s4085_s2 + $0x3c8] sm:$0xff] }
 0x1aa   :  { %1781 = vmatpush.xpose.msk.msra.mxu0 %vm803_vm2, %v4568_v3  ;;  %1798 = vmatpush.xpose.msk.msra.mxu1 %vm803_vm2, %v3371_v23  ;;  %v1959_v23 = vld [vmem:[%s4085_s2 + $0x138] sm:$0xff]  ;;  %v2017_v3 = vld [vmem:[%s4085_s2 + $0x240] sm:$0xff] }
 0x1ab   :  { %1815 = vmatpush.xpose.msk.msra.mxu2 %vm803_vm2, %v3378_v28  ;;  %1832 = vmatpush.xpose.msk.msra.mxu3 %vm803_vm2, %v1957_v6  ;;  %v1960_v28 = vld [vmem:[%s4085_s2 + $0x1b8] sm:$0xff]  ;;  %v2018_v6 = vld [vmem:[%s4085_s2 + $0x2c0] sm:$0xff] }
 0x1ae   :  { %1782 = vmatpush.xpose.msk.msra.mxu0 %vm803_vm2, %v3387_v27  ;;  %1799 = vmatpush.xpose.msk.msra.mxu1 %vm803_vm2, %v1958_v51  ;;  %v1961_v27 = vld [vmem:[%s4085_s2 + $0x30] sm:$0xff]  ;;  %v2019_v51 = vld [vmem:[%s4085_s2 + $0x340] sm:$0xff] }
 0x1af   :  { %1816 = vmatpush.xpose.msk.msra.mxu2 %vm803_vm2, %v1959_v23  ;;  %1833 = vmatpush.xpose.msk.msra.mxu3 %vm803_vm2, %v1960_v28  ;;  %v2020_v23 = vld [vmem:[%s4085_s2 + $0x3c0] sm:$0xff]  ;;  %v2021_v28 = vld [vmem:[%s4085_s2 + $0x238] sm:$0xff] }
 0x1b2   :  { %1783 = vmatpush.xpose.msk.msra.mxu0 %vm803_vm2, %v1961_v27  ;;  %1800 = vmatpush.xpose.msk.msra.mxu1 %vm803_vm2, %v1962_v53  ;;  %v2022_v27 = vld [vmem:[%s4085_s2 + $0x2b8] sm:$0xff] }
 0x1b3   :  { %1817 = vmatpush.xpose.msk.msra.mxu2 %vm803_vm2, %v1963_v63  ;;  %1834 = vmatpush.xpose.msk.msra.mxu3 %vm803_vm2, %v1964_v1  ;;  %v2023_v53 = vld [vmem:[%s4085_s2 + $0x338] sm:$0xff]  ;;  %v2025_v1 = vld [vmem:[%s4085_s2 + $0x230] sm:$0xff] }
 0x1b4   :  { %v2024_v63 = vld [vmem:[%s4085_s2 + $0x3b8] sm:$0xff] }
 0x1b6   :  { %1784 = vmatpush.xpose.msk.msra.mxu0 %vm803_vm2, %v1965_v40  ;;  %1801 = vmatpush.xpose.msk.msra.mxu1 %vm803_vm2, %v1966_v24  ;;  %v2026_v40 = vld [vmem:[%s4085_s2 + $0x2b0] sm:$0xff] }
 0x1b7   :  { %1818 = vmatpush.xpose.msk.msra.mxu2 %vm803_vm2, %v1967_v55  ;;  %1835 = vmatpush.xpose.msk.msra.mxu3 %vm803_vm2, %v1968_v61  ;;  %v2027_v24 = vld [vmem:[%s4085_s2 + $0x330] sm:$0xff]  ;;  %v2029_v61 = vld [vmem:[%s4085_s2 + $0x228] sm:$0xff] }
 0x1b8   :  { %v2028_v55 = vld [vmem:[%s4085_s2 + $0x3b0] sm:$0xff] }
 0x1ba   :  { %1785 = vmatpush.xpose.msk.msra.mxu0 %vm803_vm2, %v1969_v48  ;;  %1802 = vmatpush.xpose.msk.msra.mxu1 %vm803_vm2, %v1970_v34  ;;  %v2030_v48 = vld [vmem:[%s4085_s2 + $0x2a8] sm:$0xff] }
 0x1bb   :  { %1819 = vmatpush.xpose.msk.msra.mxu2 %vm803_vm2, %v1971_v15  ;;  %1836 = vmatpush.xpose.msk.msra.mxu3 %vm803_vm2, %v1972_v5  ;;  %v2031_v34 = vld [vmem:[%s4085_s2 + $0x328] sm:$0xff]  ;;  %v2033_v5 = vld [vmem:[%s4085_s2 + $0x220] sm:$0xff] }
 0x1bc   :  { %v2032_v15 = vld [vmem:[%s4085_s2 + $0x3a8] sm:$0xff] }
 0x1be   :  { %1786 = vmatpush.xpose.msk.msra.mxu0 %vm803_vm2, %v1973_v19  ;;  %1803 = vmatpush.xpose.msk.msra.mxu1 %vm803_vm2, %v1974_v38  ;;  %v2034_v19 = vld [vmem:[%s4085_s2 + $0x2a0] sm:$0xff] }
 0x1bf   :  { %1820 = vmatpush.xpose.msk.msra.mxu2 %vm803_vm2, %v1975_v22  ;;  %1837 = vmatpush.xpose.msk.msra.mxu3 %vm803_vm2, %v1976_v29  ;;  %v2035_v38 = vld [vmem:[%s4085_s2 + $0x320] sm:$0xff]  ;;  %v2037_v29 = vld [vmem:[%s4085_s2 + $0x218] sm:$0xff] }
 0x1c0   :  { %v2036_v22 = vld [vmem:[%s4085_s2 + $0x3a0] sm:$0xff] }
 0x1c2   :  { %1787 = vmatpush.xpose.msk.msra.mxu0 %vm803_vm2, %v1977_v9  ;;  %1804 = vmatpush.xpose.msk.msra.mxu1 %vm803_vm2, %v1978_v17  ;;  %v2038_v9 = vld [vmem:[%s4085_s2 + $0x298] sm:$0xff] }
 0x1c3   :  { %1821 = vmatpush.xpose.msk.msra.mxu2 %vm803_vm2, %v1979_v7  ;;  %1838 = vmatpush.xpose.msk.msra.mxu3 %vm803_vm2, %v1980_v31  ;;  %v2039_v17 = vld [vmem:[%s4085_s2 + $0x318] sm:$0xff]  ;;  %v2041_v31 = vld [vmem:[%s4085_s2 + $0x210] sm:$0xff] }
 0x1c4   :  { %v2040_v7 = vld [vmem:[%s4085_s2 + $0x398] sm:$0xff] }
 0x1c6   :  { %1788 = vmatpush.xpose.msk.msra.mxu0 %vm803_vm2, %v1981_v18  ;;  %1805 = vmatpush.xpose.msk.msra.mxu1 %vm803_vm2, %v1982_v16  ;;  %v2042_v18 = vld [vmem:[%s4085_s2 + $0x290] sm:$0xff] }
 0x1c7   :  { %1822 = vmatpush.xpose.msk.msra.mxu2 %vm803_vm2, %v1983_v33  ;;  %1839 = vmatpush.xpose.msk.msra.mxu3 %vm803_vm2, %v1984_v44  ;;  %v2043_v16 = vld [vmem:[%s4085_s2 + $0x310] sm:$0xff]  ;;  %v2045_v44 = vld [vmem:[%s4085_s2 + $0x208] sm:$0xff] }
 0x1c8   :  { %v2044_v33 = vld [vmem:[%s4085_s2 + $0x390] sm:$0xff] }
 0x1ca   :  { %1789 = vmatpush.xpose.msk.msra.mxu0 %vm803_vm2, %v1985_v37  ;;  %1806 = vmatpush.xpose.msk.msra.mxu1 %vm803_vm2, %v1986_v49  ;;  %v2048_v37 = vld [vmem:[%s4085_s2 + $0x388] sm:$0xff]  ;;  %v2049_v49 = vld [vmem:[%s4085_s2 + $0x200] sm:$0xff] }
 0x1cb   :  { %1823 = vmatpush.xpose.msk.msra.mxu2 %vm803_vm2, %v1987_v50  ;;  %1840 = vmatpush.xpose.msk.msra.mxu3 %vm803_vm2, %v1988_v42  ;;  %v2050_v50 = vld [vmem:[%s4085_s2 + $0x280] sm:$0xff] }
 0x1cc   :  { %v2051_v42 = vld [vmem:[%s4085_s2 + $0x300] sm:$0xff] }
 0x1cd   :  { %1790 = vmatmul.msk.f32.vlgmr.msra.gmra.mxu0 %vm803_vm2, %v3805_v52  ;;  %1807 = vmatmul.msk.f32.vlgmr.msra.gmra.mxu1 %vm803_vm2, %v3805_v52 }
 0x1ce   :  { %1842 = vmatpush.xpose.msk.msrb.mxu0 %vm803_vm2, %v1989_v25  ;;  %1859 = vmatpush.xpose.msk.msrb.mxu1 %vm803_vm2, %v1990_v39  ;;  %v2052_v25 = vld [vmem:[%s4085_s2 + $0x380] sm:$0xff] }
 0x1cf   :  { %1876 = vmatpush.xpose.msk.msrb.mxu2 %vm803_vm2, %v1991_v59  ;;  %1893 = vmatpush.xpose.msk.msrb.mxu3 %vm803_vm2, %v1992_v43 }
 0x1d0   :  { %1824 = vmatmul.msk.f32.vlgmr.msra.gmra.mxu2 %vm803_vm2, %v3805_v52  ;;  %1841 = vmatmul.msk.f32.vlgmr.msra.gmra.mxu3 %vm803_vm2, %v3805_v52 }
 0x1d2   :  { %1843 = vmatpush.xpose.msk.msrb.mxu0 %vm803_vm2, %v1993_v45  ;;  %1860 = vmatpush.xpose.msk.msrb.mxu1 %vm803_vm2, %v1994_v14 }
 0x1d3   :  { %1877 = vmatpush.xpose.msk.msrb.mxu2 %vm803_vm2, %v1995_v47  ;;  %1894 = vmatpush.xpose.msk.msrb.mxu3 %vm803_vm2, %v1996_v30 }
 0x1d6   :  { %1844 = vmatpush.xpose.msk.msrb.mxu0 %vm803_vm2, %v1997_v13  ;;  %1861 = vmatpush.xpose.msk.msrb.mxu1 %vm803_vm2, %v1998_v11 }
 0x1d7   :  { %1878 = vmatpush.xpose.msk.msrb.mxu2 %vm803_vm2, %v1999_v54  ;;  %1895 = vmatpush.xpose.msk.msrb.mxu3 %vm803_vm2, %v2000_v8 }
 0x1da   :  { %1845 = vmatpush.xpose.msk.msrb.mxu0 %vm803_vm2, %v2001_v21  ;;  %1862 = vmatpush.xpose.msk.msrb.mxu1 %vm803_vm2, %v2002_v32 }
 0x1db   :  { %1879 = vmatpush.xpose.msk.msrb.mxu2 %vm803_vm2, %v2003_v20  ;;  %1896 = vmatpush.xpose.msk.msrb.mxu3 %vm803_vm2, %v2004_v12 }
 0x1de   :  { %1846 = vmatpush.xpose.msk.msrb.mxu0 %vm803_vm2, %v2005_v26  ;;  %1863 = vmatpush.xpose.msk.msrb.mxu1 %vm803_vm2, %v2006_v10 }
 0x1df   :  { %1880 = vmatpush.xpose.msk.msrb.mxu2 %vm803_vm2, %v2007_v57  ;;  %1897 = vmatpush.xpose.msk.msrb.mxu3 %vm803_vm2, %v2008_v58 }
 0x1e2   :  { %1847 = vmatpush.xpose.msk.msrb.mxu0 %vm803_vm2, %v2009_v60  ;;  %1864 = vmatpush.xpose.msk.msrb.mxu1 %vm803_vm2, %v2010_v36  ;;  %v4569_v60 = vld [vmem:[#allocation98_spill] sm:$0xff] }
 0x1e3   :  { %1881 = vmatpush.xpose.msk.msrb.mxu2 %vm803_vm2, %v2011_v56  ;;  %1898 = vmatpush.xpose.msk.msrb.mxu3 %vm803_vm2, %v2012_v62  ;;  %v4570_v56 = vld [vmem:[#allocation99_spill] sm:$0xff] }
 0x1e6   :  { %1848 = vmatpush.xpose.msk.msrb.mxu0 %vm803_vm2, %v2013_v0  ;;  %1865 = vmatpush.xpose.msk.msrb.mxu1 %vm803_vm2, %v2014_v2 }
 0x1e7   :  { %1882 = vmatpush.xpose.msk.msrb.mxu2 %vm803_vm2, %v2015_v4  ;;  %1899 = vmatpush.xpose.msk.msrb.mxu3 %vm803_vm2, %v2016_v41  ;;  %v4571_v4 = vld [vmem:[#allocation96_spill] sm:$0xff] }
 0x1ea   :  { %1849 = vmatpush.xpose.msk.msrb.mxu0 %vm803_vm2, %v2017_v3  ;;  %1866 = vmatpush.xpose.msk.msrb.mxu1 %vm803_vm2, %v2018_v6  ;;  %v4572_v3 = vld [vmem:[#allocation97_spill] sm:$0xff] }
 0x1eb   :  { %1883 = vmatpush.xpose.msk.msrb.mxu2 %vm803_vm2, %v2019_v51  ;;  %1900 = vmatpush.xpose.msk.msrb.mxu3 %vm803_vm2, %v2020_v23 }
 0x1ee   :  { %1850 = vmatpush.xpose.msk.msrb.mxu0 %vm803_vm2, %v2021_v28  ;;  %1867 = vmatpush.xpose.msk.msrb.mxu1 %vm803_vm2, %v2022_v27 }
 0x1ef   :  { %1884 = vmatpush.xpose.msk.msrb.mxu2 %vm803_vm2, %v2023_v53  ;;  %1901 = vmatpush.xpose.msk.msrb.mxu3 %vm803_vm2, %v2024_v63  ;;  %v4573_v53 = vld [vmem:[#allocation100_spill] sm:$0xff] }
 0x1f2   :  { %1851 = vmatpush.xpose.msk.msrb.mxu0 %vm803_vm2, %v2025_v1  ;;  %1868 = vmatpush.xpose.msk.msrb.mxu1 %vm803_vm2, %v2026_v40  ;;  %v4574_v1 = vld [vmem:[#allocation101_spill] sm:$0xff] }
 0x1f3   :  { %1885 = vmatpush.xpose.msk.msrb.mxu2 %vm803_vm2, %v2027_v24  ;;  %1902 = vmatpush.xpose.msk.msrb.mxu3 %vm803_vm2, %v2028_v55 }
 0x1f6   :  { %1852 = vmatpush.xpose.msk.msrb.mxu0 %vm803_vm2, %v2029_v61  ;;  %1869 = vmatpush.xpose.msk.msrb.mxu1 %vm803_vm2, %v2030_v48 }
 0x1f7   :  { %1886 = vmatpush.xpose.msk.msrb.mxu2 %vm803_vm2, %v2031_v34  ;;  %1903 = vmatpush.xpose.msk.msrb.mxu3 %vm803_vm2, %v2032_v15 }
 0x1fa   :  { %1853 = vmatpush.xpose.msk.msrb.mxu0 %vm803_vm2, %v2033_v5  ;;  %1870 = vmatpush.xpose.msk.msrb.mxu1 %vm803_vm2, %v2034_v19 }
 0x1fb   :  { %1887 = vmatpush.xpose.msk.msrb.mxu2 %vm803_vm2, %v2035_v38  ;;  %1904 = vmatpush.xpose.msk.msrb.mxu3 %vm803_vm2, %v2036_v22 }
 0x1fe   :  { %1854 = vmatpush.xpose.msk.msrb.mxu0 %vm803_vm2, %v2037_v29  ;;  %1871 = vmatpush.xpose.msk.msrb.mxu1 %vm803_vm2, %v2038_v9 }
 0x1ff   :  { %1888 = vmatpush.xpose.msk.msrb.mxu2 %vm803_vm2, %v2039_v17  ;;  %1905 = vmatpush.xpose.msk.msrb.mxu3 %vm803_vm2, %v2040_v7 }
 0x202   :  { %1855 = vmatpush.xpose.msk.msrb.mxu0 %vm803_vm2, %v2041_v31  ;;  %1872 = vmatpush.xpose.msk.msrb.mxu1 %vm803_vm2, %v2042_v18  ;;  %v4575_v31 = vld [vmem:[#allocation102_spill] sm:$0xff] }
 0x203   :  { %1889 = vmatpush.xpose.msk.msrb.mxu2 %vm803_vm2, %v2043_v16  ;;  %1906 = vmatpush.xpose.msk.msrb.mxu3 %vm803_vm2, %v2044_v33 }
 0x206   :  { %1856 = vmatpush.xpose.msk.msrb.mxu0 %vm803_vm2, %v2045_v44  ;;  %1873 = vmatpush.xpose.msk.msrb.mxu1 %vm803_vm2, %v2046_v35  ;;  %v4576_v44 = vld [vmem:[#allocation103_spill] sm:$0xff] }
 0x207   :  { %1890 = vmatpush.xpose.msk.msrb.mxu2 %vm803_vm2, %v2047_v46  ;;  %1907 = vmatpush.xpose.msk.msrb.mxu3 %vm803_vm2, %v2048_v37 }
 0x209   :  { %v1208_v39 = vpop.f32.mrf.mxu0  ;;  %v1228_v59 = vpop.f32.mrf.mxu1 }
 0x20a   :  { %1857 = vmatpush.xpose.msk.msrb.mxu0 %vm803_vm2, %v2049_v49  ;;  %1874 = vmatpush.xpose.msk.msrb.mxu1 %vm803_vm2, %v2050_v50  ;;  %v1351_v12 = vperm.slane %v1208_v39, 0  ;;  %v1352_v26 = vperm.slane %v1228_v59, 0 }
 0x20b   :  { %1891 = vmatpush.xpose.msk.msrb.mxu2 %vm803_vm2, %v2051_v42  ;;  %1908 = vmatpush.xpose.msk.msrb.mxu3 %vm803_vm2, %v2052_v25 }
 0x20c   :  { %v1359_v41 = vmul.f32 %v1351_v12, %v4571_v4  ;;  %v1360_v6 = vmul.f32 %v1352_v26, %v4572_v3 }
 0x20d   :  { %1858 = vmatmul.msk.f32.vlgmr.msrb.gmra.mxu0 %vm803_vm2, %v3805_v52  ;;  %1875 = vmatmul.msk.f32.vlgmr.msrb.gmra.mxu1 %vm803_vm2, %v3805_v52 }
 0x20e   :  { %1892 = vmatmul.msk.f32.vlgmr.msrb.gmra.mxu2 %vm803_vm2, %v3805_v52  ;;  %1909 = vmatmul.msk.f32.vlgmr.msrb.gmra.mxu3 %vm803_vm2, %v3805_v52 }
 0x210   :  { %v1248_v43 = vpop.f32.mrf.mxu2  ;;  %v1268_v45 = vpop.f32.mrf.mxu3 }
 0x211   :  { %v1288_v14 = vpop.f32.mrf.mxu0  ;;  %v1308_v47 = vpop.f32.mrf.mxu1  ;;  %v1353_v32 = vperm.slane %v1248_v43, 0  ;;  %v1354_v20 = vperm.slane %v1268_v45, 0 }
 0x212   :  { %v1355_v58 = vperm.slane %v1288_v14, 0  ;;  %v1356_v52 = vperm.slane %v1308_v47, 0 }
 0x213   :  { %v1361_v36 = vmul.f32 %v1353_v32, %v4569_v60  ;;  %v1362_v62 = vmul.f32 %v1354_v20, %v4570_v56 }
 0x214   :  { %v1363_v63 = vmul.f32 %v1355_v58, %v4573_v53  ;;  %v1364_v40 = vmul.f32 %v1356_v52, %v4574_v1 }
 0x218   :  { %v1328_v30 = vpop.f32.mrf.mxu2  ;;  %v1348_v13 = vpop.f32.mrf.mxu3 }
 0x219   :  { %v1357_v34 = vperm.slane %v1328_v30, 0  ;;  %v1358_v19 = vperm.slane %v1348_v13, 0 }
 0x21b   :  { %v1365_v18 = vmul.f32 %v1357_v34, %v4575_v31  ;;  %v1366_v35 = vmul.f32 %v1358_v19, %v4576_v44 }
 0x24a   :  { %v1387_v11 = vpop.f32.mrf.mxu0  ;;  %v1407_v54 = vpop.f32.mrf.mxu1 }
 0x24b   :  { %v1530_v0 = vperm.slane %v1387_v11, 0  ;;  %v1531_v2 = vperm.slane %v1407_v54, 0 }
 0x24d   :  { %v1538_v61 = vadd.f32 %v1530_v0, %v1359_v41  ;;  %v1539_v48 = vadd.f32 %v1531_v2, %v1360_v6 }
 0x24f   :  { %v1546_v29 = vmax.f32 %v1538_v61, 0.0  ;;  %v1547_v9 = vmax.f32 %v1539_v48, 0.0 }
 0x251   :  { %v1554_v50 = vpack.c.bf16 %v1547_v9, %v1546_v29 }
 0x253   :  { %v1427_v8 = vpop.f32.mrf.mxu2  ;;  %v1447_v21 = vpop.f32.mrf.mxu3  ;;  %v1562_v47 = vrot.slane %v1554_v50, 3 }
 0x254   :  { %v1532_v10 = vperm.slane %v1427_v8, 0  ;;  %v1533_v57 = vperm.slane %v1447_v21, 0 }
 0x255   :  { %v1572_v32 = vsel %vm1569_vm8, %v1554_v50, %v1562_v47 }
 0x256   :  { %v1540_v51 = vadd.f32 %v1532_v10, %v1361_v36  ;;  %v1541_v23 = vadd.f32 %v1533_v57, %v1362_v62 }
 0x258   :  { %v1548_v38 = vmax.f32 %v1540_v51, 0.0  ;;  %v1549_v22 = vmax.f32 %v1541_v23, 0.0 }
 0x25a   :  { %v1555_v46 = vpack.c.bf16 %v1549_v22, %v1548_v38 }
 0x25c   :  { %v1563_v59 = vrot.slane %v1555_v46, 6  ;;  %v1564_v43 = vrot.slane %v1555_v46, 1 }
 0x25e   :  { %v1576_v54 = vsel %vm1573_vm7, %v1563_v59, %v1564_v43 }
 0x25f   :  { %v1577_v26 = vsel %vm206_vm1, %v1572_v32, %v1576_v54 }
 0x28a   :  { %v1467_v28 = vpop.f32.mrf.mxu0  ;;  %v1487_v27 = vpop.f32.mrf.mxu1 }
 0x28b   :  { %v1534_v24 = vperm.slane %v1467_v28, 0  ;;  %v1535_v55 = vperm.slane %v1487_v27, 0 }
 0x28d   :  { %v1542_v15 = vadd.f32 %v1534_v24, %v1363_v63  ;;  %v1543_v5 = vadd.f32 %v1535_v55, %v1364_v40 }
 0x28f   :  { %v1550_v17 = vmax.f32 %v1542_v15, 0.0  ;;  %v1551_v7 = vmax.f32 %v1543_v5, 0.0 }
 0x291   :  { %v1507_v16 = vpop.f32.mrf.mxu2  ;;  %v1527_v33 = vpop.f32.mrf.mxu3  ;;  %v1556_v42 = vpack.c.bf16 %v1551_v7, %v1550_v17 }
 0x292   :  { %v1536_v37 = vperm.slane %v1507_v16, 0  ;;  %v1537_v49 = vperm.slane %v1527_v33, 0 }
 0x293   :  { %v1565_v30 = vrot.slane %v1556_v42, 4  ;;  %v1566_v13 = vrot.slane %v1556_v42, 7 }
 0x294   :  { %v1544_v25 = vadd.f32 %v1536_v37, %v1365_v18  ;;  %v1545_v39 = vadd.f32 %v1537_v49, %v1366_v35 }
 0x295   :  { %v1581_v20 = vsel %vm1578_vm9, %v1565_v30, %v1566_v13 }
 0x296   :  { %v1552_v45 = vmax.f32 %v1544_v25, 0.0  ;;  %v1553_v14 = vmax.f32 %v1545_v39, 0.0 }
 0x298   :  { %v1557_v11 = vpack.c.bf16 %v1553_v14, %v1552_v45 }
 0x29a   :  { %v1567_v8 = vrot.slane %v1557_v11, 2  ;;  %v1568_v21 = vrot.slane %v1557_v11, 5 }
 0x29c   :  { %v1585_v12 = vsel %vm1582_vm10, %v1567_v8, %v1568_v21 }
 0x29d   :  { %v1587_v10 = vsel %vm1586_vm11, %v1581_v20, %v1585_v12 }
 0x29e   :  { %v1589_v57 = vsel %vm1588_vm12, %v1577_v26, %v1587_v10 }
 0x29f   :  { %1591 = vst [vmem:[%s4088_s5] sm:$0xff] %v1589_v57 }
 0x2a0   :  { %1596 = vsyncpa [#allocation3], 1 }
 0x2a1   :  { %1597 = vsyncpa [#allocation5], 1 }

// kernel: generator_forward.9
= control target key start
LH: loop header
LB: loop body
LE: loop exit
PB: predicated region body
PF: predicated region fallthrough
CT: control target
= control target key end

     0   :  { %vm74_vm0 = vcmask 523264   ;;  %vm338_vm1 = vcmask 130112   ;;  %vm342_vm2 = vcmask 195712   ;;  %vm346_vm3 = vcmask 261312   ;;  %s2661_s1 = inlined_call_operand.vmem [shape: bf16[9,64,128], index: 1, kind: input, shape index: {}]   ;;  %s2662_s0 = inlined_call_operand.vmem [shape: bf16[16,32,64], index: 0, kind: input, shape index: {}]   ;;  %s2663_s2 = inlined_call_operand.vmem [shape: bf16[4,32,128], index: 2, kind: output, shape index: {0}]   ;;  %s2664_s3 = inlined_call_operand.vmem [shape: f32[1,2,4,32], index: 3, kind: output, shape index: {1}]  }
   0x1   :  { %v2066_v0 = vld [vmem:[%s2661_s1 + $0x38] sm:$0xff]  ;;  %v2065_v4 = vld [vmem:[%s2661_s1 + $0x30] sm:$0xff]  ;;  %v2064_v8 = vld [vmem:[%s2661_s1 + $0x28] sm:$0xff]  ;;  %vm349_vm4 = vcmask 253952  }
   0x2   :  { %v2060_v1 = vld [vmem:[%s2661_s1 + $0x18] sm:$0xff]  ;;  %85 = vmatpush.bf16.msra.mxu0 %v2066_v0  ;;  %v2059_v5 = vld [vmem:[%s2661_s1 + $0x10] sm:$0xff]  ;;  %v2058_v9 = vld [vmem:[%s2661_s1 + $0x8] sm:$0xff] }
   0x3   :  { %v2072_v2 = vld [vmem:[%s2661_s1 + $0x78] sm:$0xff]  ;;  %144 = vmatpush.bf16.msra.mxu1 %v2060_v1  ;;  %v2071_v6 = vld [vmem:[%s2661_s1 + $0x70] sm:$0xff]  ;;  %v2070_v10 = vld [vmem:[%s2661_s1 + $0x68] sm:$0xff] }
   0x4   :  { %v2078_v3 = vld [vmem:[%s2661_s1 + $0x98] sm:$0xff]  ;;  %217 = vmatpush.bf16.msra.mxu2 %v2072_v2  ;;  %v2077_v7 = vld [vmem:[%s2661_s1 + $0x90] sm:$0xff]  ;;  %v2076_v11 = vld [vmem:[%s2661_s1 + $0x88] sm:$0xff] }
   0x5   :  { %294 = vmatpush.bf16.msra.mxu3 %v2078_v3  ;;  %v2063_v12 = vld [vmem:[%s2661_s1 + $0x20] sm:$0xff]  ;;  %v2096_v16 = vld [vmem:[%s2661_s1 + $0x98] sm:$0xff]  ;;  %v2061_v18 = vld [vmem:[%s2662_s0 + $0x10] sm:$0xff] }
   0x6   :  { %86 = vmatpush.bf16.msra.mxu0 %v2065_v4  ;;  %v2057_v13 = vld [vmem:[%s2661_s1] sm:$0xff]  ;;  %v2102_v17 = vld [vmem:[%s2661_s1 + $0xb8] sm:$0xff]  ;;  %v2073_v21 = vld [vmem:[%s2662_s0 + $0x30] sm:$0xff] }
   0x7   :  { %145 = vmatpush.bf16.msra.mxu1 %v2059_v5  ;;  %v2069_v14 = vld [vmem:[%s2661_s1 + $0x60] sm:$0xff]  ;;  %v2090_v22 = vld [vmem:[%s2661_s1 + $0x58] sm:$0xff]  ;;  %v2095_v24 = vld [vmem:[%s2661_s1 + $0x90] sm:$0xff] }
   0x8   :  { %218 = vmatpush.bf16.msra.mxu2 %v2071_v6  ;;  %v2075_v15 = vld [vmem:[%s2661_s1 + $0x80] sm:$0xff]  ;;  %v2084_v23 = vld [vmem:[%s2661_s1 + $0x38] sm:$0xff]  ;;  %v2101_v25 = vld [vmem:[%s2661_s1 + $0xb0] sm:$0xff] }
   0x9   :  { %295 = vmatpush.bf16.msra.mxu3 %v2077_v7  ;;  %v2055_v19 = vld [vmem:[%s2662_s0] sm:$0xff]  ;;  %v2089_v26 = vld [vmem:[%s2661_s1 + $0x50] sm:$0xff]  ;;  %v2094_v28 = vld [vmem:[%s2661_s1 + $0x88] sm:$0xff] }
   0xa   :  { %87 = vmatpush.bf16.msra.mxu0 %v2064_v8  ;;  %v2067_v20 = vld [vmem:[%s2662_s0 + $0x20] sm:$0xff]  ;;  %v2083_v27 = vld [vmem:[%s2661_s1 + $0x30] sm:$0xff]  ;;  %v2100_v29 = vld [vmem:[%s2661_s1 + $0xa8] sm:$0xff] }
   0xb   :  { %146 = vmatpush.bf16.msra.mxu1 %v2058_v9  ;;  %v2088_v30 = vld [vmem:[%s2661_s1 + $0x48] sm:$0xff]  ;;  %v2093_v32 = vld [vmem:[%s2661_s1 + $0x80] sm:$0xff]  ;;  %v2120_v34 = vld [vmem:[%s2661_s1 + $0xd8] sm:$0xff] }
   0xc   :  { %219 = vmatpush.bf16.msra.mxu2 %v2070_v10  ;;  %v2082_v31 = vld [vmem:[%s2661_s1 + $0x28] sm:$0xff]  ;;  %v2099_v33 = vld [vmem:[%s2661_s1 + $0xa0] sm:$0xff]  ;;  %v2126_v35 = vld [vmem:[%s2661_s1 + $0xf8] sm:$0xff] }
   0xd   :  { %296 = vmatpush.bf16.msra.mxu3 %v2076_v11  ;;  %v2087_v36 = vld [vmem:[%s2661_s1 + $0x40] sm:$0xff]  ;;  %v2114_v38 = vld [vmem:[%s2661_s1 + $0x98] sm:$0xff]  ;;  %v2056_v41 = vld [vmem:[%s2662_s0 + $0x8] sm:$0xff] }
   0xe   :  { %88 = vmatpush.bf16.msra.mxu0 %v2063_v12  ;;  %v2081_v37 = vld [vmem:[%s2661_s1 + $0x20] sm:$0xff]  ;;  %v2108_v39 = vld [vmem:[%s2661_s1 + $0x78] sm:$0xff]  ;;  %v2068_v42 = vld [vmem:[%s2662_s0 + $0x28] sm:$0xff] }
   0xf   :  { %147 = vmatpush.bf16.msra.mxu1 %v2057_v13  ;;  %v2062_v40 = vld [vmem:[%s2662_s0 + $0x18] sm:$0xff]  ;;  %v2119_v44 = vld [vmem:[%s2661_s1 + $0xd0] sm:$0xff]  ;;  %v2118_v48 = vld [vmem:[%s2661_s1 + $0xc8] sm:$0xff] }
  0x10   :  { %220 = vmatpush.bf16.msra.mxu2 %v2069_v14  ;;  %v2074_v43 = vld [vmem:[%s2662_s0 + $0x38] sm:$0xff]  ;;  %v2125_v45 = vld [vmem:[%s2661_s1 + $0xf0] sm:$0xff]  ;;  %v2124_v49 = vld [vmem:[%s2661_s1 + $0xe8] sm:$0xff] }
  0x11   :  { %297 = vmatpush.bf16.msra.mxu3 %v2075_v15  ;;  %1479 = vmatmul.msk.bf16.vlgmr.msra.gmra.mxu0 %vm74_vm0, %v2061_v18  ;;  %v2113_v46 = vld [vmem:[%s2661_s1 + $0x90] sm:$0xff]  ;;  %v2112_v50 = vld [vmem:[%s2661_s1 + $0x88] sm:$0xff]  ;;  %v2117_v52 = vld [vmem:[%s2661_s1 + $0xc0] sm:$0xff] }
  0x12   :  { %1505 = vmatmul.msk.bf16.vlgmr.msra.gmra.mxu1 %vm74_vm0, %v2055_v19  ;;  %448 = vmatpush.bf16.msrb.mxu0 %v2090_v22  ;;  %v2107_v47 = vld [vmem:[%s2661_s1 + $0x70] sm:$0xff]  ;;  %v2106_v51 = vld [vmem:[%s2661_s1 + $0x68] sm:$0xff]  ;;  %v2123_v53 = vld [vmem:[%s2661_s1 + $0xe0] sm:$0xff] }
  0x13   :  { %1543 = vmatmul.msk.bf16.vlgmr.msra.gmra.mxu2 %vm74_vm0, %v2067_v20  ;;  %507 = vmatpush.bf16.msrb.mxu1 %v2084_v23  ;;  %v2111_v54 = vld [vmem:[%s2661_s1 + $0x80] sm:$0xff]  ;;  %v2085_v56 = vld [vmem:[%s2662_s0 + $0x50] sm:$0xff]  ;;  %v2144_v60 = vld [vmem:[%s2661_s1 + $0xf8] sm:$0xff] }
  0x14   :  { %579 = vmatpush.bf16.msrb.mxu2 %v2096_v16  ;;  %1581 = vmatmul.msk.bf16.vlgmr.msra.gmra.mxu3 %vm74_vm0, %v2073_v21  ;;  %v2105_v55 = vld [vmem:[%s2661_s1 + $0x60] sm:$0xff]  ;;  %v2097_v59 = vld [vmem:[%s2662_s0 + $0x70] sm:$0xff]  ;;  %v2150_v61 = vld [vmem:[%s2661_s1 + $0x118] sm:$0xff] }
  0x15   :  { %656 = vmatpush.bf16.msrb.mxu3 %v2102_v17  ;;  %v2079_v57 = vld [vmem:[%s2662_s0 + $0x40] sm:$0xff]  ;;  %v2138_v62 = vld [vmem:[%s2661_s1 + $0xb8] sm:$0xff]  ;;  %v2143_v0 = vld [vmem:[%s2661_s1 + $0xf0] sm:$0xff] }
  0x16   :  { %449 = vmatpush.bf16.msrb.mxu0 %v2089_v26  ;;  %v2091_v58 = vld [vmem:[%s2662_s0 + $0x60] sm:$0xff]  ;;  %v2132_v63 = vld [vmem:[%s2661_s1 + $0x98] sm:$0xff]  ;;  %v2149_v1 = vld [vmem:[%s2661_s1 + $0x110] sm:$0xff] }
  0x17   :  { %508 = vmatpush.bf16.msrb.mxu1 %v2083_v27  ;;  %v2137_v2 = vld [vmem:[%s2661_s1 + $0xb0] sm:$0xff]  ;;  %v2086_v4 = vld [vmem:[%s2662_s0 + $0x58] sm:$0xff]  ;;  %v2080_v5 = vld [vmem:[%s2662_s0 + $0x48] sm:$0xff] }
  0x18   :  { %580 = vmatpush.bf16.msrb.mxu2 %v2095_v24  ;;  %v2131_v3 = vld [vmem:[%s2661_s1 + $0x90] sm:$0xff]  ;;  %v2092_v6 = vld [vmem:[%s2662_s0 + $0x68] sm:$0xff]  ;;  %v2098_v7 = vld [vmem:[%s2662_s0 + $0x78] sm:$0xff] }
  0x19   :  { %657 = vmatpush.bf16.msrb.mxu3 %v2101_v25  ;;  %v2142_v8 = vld [vmem:[%s2661_s1 + $0xe8] sm:$0xff]  ;;  %v2141_v12 = vld [vmem:[%s2661_s1 + $0xe0] sm:$0xff]  ;;  %v2109_v16 = vld [vmem:[%s2662_s0 + $0x90] sm:$0xff] }
  0x1a   :  { %450 = vmatpush.bf16.msrb.mxu0 %v2088_v30  ;;  %v2148_v9 = vld [vmem:[%s2661_s1 + $0x108] sm:$0xff]  ;;  %v2147_v13 = vld [vmem:[%s2661_s1 + $0x100] sm:$0xff]  ;;  %v2121_v19 = vld [vmem:[%s2662_s0 + $0xb0] sm:$0xff] }
  0x1b   :  { %509 = vmatpush.bf16.msrb.mxu1 %v2082_v31  ;;  %v2136_v10 = vld [vmem:[%s2661_s1 + $0xa8] sm:$0xff]  ;;  %v2135_v14 = vld [vmem:[%s2661_s1 + $0xa0] sm:$0xff]  ;;  %v2110_v20 = vld [vmem:[%s2662_s0 + $0x98] sm:$0xff] }
  0x1c   :  { %581 = vmatpush.bf16.msrb.mxu2 %v2094_v28  ;;  %v2130_v11 = vld [vmem:[%s2661_s1 + $0x88] sm:$0xff]  ;;  %v2129_v15 = vld [vmem:[%s2661_s1 + $0x80] sm:$0xff]  ;;  %v2122_v23 = vld [vmem:[%s2662_s0 + $0xb8] sm:$0xff] }
  0x1d   :  { %658 = vmatpush.bf16.msrb.mxu3 %v2100_v29  ;;  %v2103_v17 = vld [vmem:[%s2662_s0 + $0x80] sm:$0xff]  ;;  %v2104_v21 = vld [vmem:[%s2662_s0 + $0x88] sm:$0xff]  ;;  %v2133_v24 = vld [vmem:[%s2662_s0 + $0xd0] sm:$0xff] }
  0x1e   :  { %451 = vmatpush.bf16.msrb.mxu0 %v2087_v36  ;;  %v2115_v18 = vld [vmem:[%s2662_s0 + $0xa0] sm:$0xff]  ;;  %v2116_v22 = vld [vmem:[%s2662_s0 + $0xa8] sm:$0xff]  ;;  %v2145_v27 = vld [vmem:[%s2662_s0 + $0xf0] sm:$0xff] }
  0x1f   :  { %510 = vmatpush.bf16.msrb.mxu1 %v2081_v37  ;;  %v2127_v25 = vld [vmem:[%s2662_s0 + $0xc0] sm:$0xff]  ;;  %v2134_v28 = vld [vmem:[%s2662_s0 + $0xd8] sm:$0xff]  ;;  %v2128_v29 = vld [vmem:[%s2662_s0 + $0xc8] sm:$0xff] }
  0x20   :  { %582 = vmatpush.bf16.msrb.mxu2 %v2093_v32  ;;  %v2139_v26 = vld [vmem:[%s2662_s0 + $0xe0] sm:$0xff]  ;;  %v2140_v30 = vld [vmem:[%s2662_s0 + $0xe8] sm:$0xff]  ;;  %v2146_v31 = vld [vmem:[%s2662_s0 + $0xf8] sm:$0xff] }
  0x21   :  { %659 = vmatpush.bf16.msrb.mxu3 %v2099_v33  ;;  %1480 = vmatmul.msk.bf16.gmra.mxu0 %vm74_vm0, %v2062_v40 }
  0x22   :  { %800 = vmatpush.bf16.msra.mxu0 %v2114_v38  ;;  %1506 = vmatmul.msk.bf16.gmra.mxu1 %vm74_vm0, %v2056_v41 }
  0x23   :  { %859 = vmatpush.bf16.msra.mxu1 %v2108_v39  ;;  %1544 = vmatmul.msk.bf16.gmra.mxu2 %vm74_vm0, %v2068_v42 }
  0x24   :  { %932 = vmatpush.bf16.msra.mxu2 %v2120_v34  ;;  %1582 = vmatmul.msk.bf16.gmra.mxu3 %vm74_vm0, %v2074_v43 }
  0x25   :  { %1009 = vmatpush.bf16.msra.mxu3 %v2126_v35 }
  0x26   :  { %801 = vmatpush.bf16.msra.mxu0 %v2113_v46 }
  0x27   :  { %860 = vmatpush.bf16.msra.mxu1 %v2107_v47 }
  0x28   :  { %933 = vmatpush.bf16.msra.mxu2 %v2119_v44 }
  0x29   :  { %1010 = vmatpush.bf16.msra.mxu3 %v2125_v45 }
  0x2a   :  { %802 = vmatpush.bf16.msra.mxu0 %v2112_v50 }
  0x2b   :  { %861 = vmatpush.bf16.msra.mxu1 %v2106_v51 }
  0x2c   :  { %934 = vmatpush.bf16.msra.mxu2 %v2118_v48 }
  0x2d   :  { %1011 = vmatpush.bf16.msra.mxu3 %v2124_v49 }
  0x2e   :  { %803 = vmatpush.bf16.msra.mxu0 %v2111_v54 }
  0x2f   :  { %862 = vmatpush.bf16.msra.mxu1 %v2105_v55 }
  0x30   :  { %935 = vmatpush.bf16.msra.mxu2 %v2117_v52 }
  0x31   :  { %1012 = vmatpush.bf16.msra.mxu3 %v2123_v53  ;;  %1632 = vmatmul.msk.bf16.vlgmr.msrb.gmra.mxu0 %vm74_vm0, %v2085_v56 }
  0x32   :  { %1658 = vmatmul.msk.bf16.vlgmr.msrb.gmra.mxu1 %vm74_vm0, %v2079_v57  ;;  %1153 = vmatpush.bf16.msrb.mxu0 %v2138_v62 }
  0x33   :  { %1696 = vmatmul.msk.bf16.vlgmr.msrb.gmra.mxu2 %vm74_vm0, %v2091_v58  ;;  %1212 = vmatpush.bf16.msrb.mxu1 %v2132_v63 }
  0x34   :  { %1734 = vmatmul.msk.bf16.vlgmr.msrb.gmra.mxu3 %vm74_vm0, %v2097_v59  ;;  %1284 = vmatpush.bf16.msrb.mxu2 %v2144_v60 }
  0x35   :  { %1361 = vmatpush.bf16.msrb.mxu3 %v2150_v61 }
  0x36   :  { %1154 = vmatpush.bf16.msrb.mxu0 %v2137_v2 }
  0x37   :  { %1213 = vmatpush.bf16.msrb.mxu1 %v2131_v3 }
  0x38   :  { %1285 = vmatpush.bf16.msrb.mxu2 %v2143_v0 }
  0x39   :  { %1362 = vmatpush.bf16.msrb.mxu3 %v2149_v1 }
  0x3a   :  { %1155 = vmatpush.bf16.msrb.mxu0 %v2136_v10 }
  0x3b   :  { %1214 = vmatpush.bf16.msrb.mxu1 %v2130_v11 }
  0x3c   :  { %1286 = vmatpush.bf16.msrb.mxu2 %v2142_v8 }
  0x3d   :  { %1363 = vmatpush.bf16.msrb.mxu3 %v2148_v9 }
  0x3e   :  { %1156 = vmatpush.bf16.msrb.mxu0 %v2135_v14 }
  0x3f   :  { %1215 = vmatpush.bf16.msrb.mxu1 %v2129_v15 }
  0x40   :  { %1287 = vmatpush.bf16.msrb.mxu2 %v2141_v12 }
  0x41   :  { %1633 = vmatmul.msk.bf16.gmra.mxu0 %vm74_vm0, %v2086_v4  ;;  %1364 = vmatpush.bf16.msrb.mxu3 %v2147_v13 }
  0x42   :  { %1659 = vmatmul.msk.bf16.gmra.mxu1 %vm74_vm0, %v2080_v5 }
  0x43   :  { %1697 = vmatmul.msk.bf16.gmra.mxu2 %vm74_vm0, %v2092_v6 }
  0x44   :  { %1735 = vmatmul.msk.bf16.gmra.mxu3 %vm74_vm0, %v2098_v7 }
  0x51   :  { %1789 = vmatmul.msk.bf16.vlgmr.msra.gmra.mxu0 %vm74_vm0, %v2109_v16 }
  0x52   :  { %1815 = vmatmul.msk.bf16.vlgmr.msra.gmra.mxu1 %vm74_vm0, %v2103_v17 }
  0x53   :  { %1853 = vmatmul.msk.bf16.vlgmr.msra.gmra.mxu2 %vm74_vm0, %v2115_v18 }
  0x54   :  { %1891 = vmatmul.msk.bf16.vlgmr.msra.gmra.mxu3 %vm74_vm0, %v2121_v19 }
  0x61   :  { %1790 = vmatmul.msk.bf16.gmra.mxu0 %vm74_vm0, %v2110_v20 }
  0x62   :  { %1816 = vmatmul.msk.bf16.gmra.mxu1 %vm74_vm0, %v2104_v21 }
  0x63   :  { %1854 = vmatmul.msk.bf16.gmra.mxu2 %vm74_vm0, %v2116_v22 }
  0x64   :  { %1892 = vmatmul.msk.bf16.gmra.mxu3 %vm74_vm0, %v2122_v23 }
  0x71   :  { %1946 = vmatmul.msk.bf16.vlgmr.msrb.gmra.mxu0 %vm74_vm0, %v2133_v24 }
  0x72   :  { %1972 = vmatmul.msk.bf16.vlgmr.msrb.gmra.mxu1 %vm74_vm0, %v2127_v25 }
  0x73   :  { %2010 = vmatmul.msk.bf16.vlgmr.msrb.gmra.mxu2 %vm74_vm0, %v2139_v26 }
  0x74   :  { %2048 = vmatmul.msk.bf16.vlgmr.msrb.gmra.mxu3 %vm74_vm0, %v2145_v27 }
  0x81   :  { %1947 = vmatmul.msk.bf16.gmra.mxu0 %vm74_vm0, %v2134_v28 }
  0x82   :  { %1973 = vmatmul.msk.bf16.gmra.mxu1 %vm74_vm0, %v2128_v29 }
  0x83   :  { %2011 = vmatmul.msk.bf16.gmra.mxu2 %vm74_vm0, %v2140_v30 }
  0x84   :  { %2049 = vmatmul.msk.bf16.gmra.mxu3 %vm74_vm0, %v2146_v31 }
  0x8e   :  { %v90_v32 = vpop.f32.mrf.mxu0 }
  0x8f   :  { %v149_v33 = vpop.f32.mrf.mxu1 }
  0x90   :  { %v150_v34 = vadd.f32 %v149_v33, %v90_v32 }
  0x96   :  { %v222_v35 = vpop.f32.mrf.mxu2  ;;  %v92_v38 = vpop.f32.mrf.mxu0 }
  0x97   :  { %v299_v36 = vpop.f32.mrf.mxu3  ;;  %v232_v37 = vadd.f32 %v222_v35, %v150_v34  ;;  %v151_v39 = vpop.f32.mrf.mxu1 }
  0x98   :  { %v152_v42 = vadd.f32 %v151_v39, %v92_v38 }
  0x99   :  { %v309_v40 = vadd.f32 %v299_v36, %v232_v37 }
  0x9b   :  { %321 = vadd.xlane.f32.xlu0 %v309_v40  ;;  %v351_v41 = vmul.f32 %v309_v40, %v309_v40 }
  0x9d   :  { %355 = vadd.xlane.f32.xlu2 %v351_v41 }
  0x9e   :  { %v224_v43 = vpop.f32.mrf.mxu2  ;;  %v95_v46 = vpop.f32.mrf.mxu0 }
  0x9f   :  { %v301_v44 = vpop.f32.mrf.mxu3  ;;  %v233_v45 = vadd.f32 %v224_v43, %v152_v42  ;;  %v154_v47 = vpop.f32.mrf.mxu1 }
  0xa0   :  { %v155_v50 = vadd.f32 %v154_v47, %v95_v46 }
  0xa1   :  { %v310_v48 = vadd.f32 %v301_v44, %v233_v45 }
  0xa3   :  { %v2154_v49 = vpack.c.bf16 %v310_v48, %v309_v40  ;;  %323 = vadd.xlane.f32.xlu0 %v310_v48  ;;  %v352_v51 = vmul.f32 %v310_v48, %v310_v48 }
  0xa5   :  { %2155 = vst [vmem:[%s2663_s2] sm:$0xff] %v2154_v49   ;;  %357 = vadd.xlane.f32.xlu2 %v352_v51 }
  0xa6   :  { %v227_v52 = vpop.f32.mrf.mxu2  ;;  %v97_v55 = vpop.f32.mrf.mxu0 }
  0xa7   :  { %v304_v53 = vpop.f32.mrf.mxu3  ;;  %v234_v54 = vadd.f32 %v227_v52, %v155_v50  ;;  %v156_v56 = vpop.f32.mrf.mxu1 }
  0xa8   :  { %v157_v59 = vadd.f32 %v156_v56, %v97_v55 }
  0xa9   :  { %v311_v57 = vadd.f32 %v304_v53, %v234_v54 }
  0xab   :  { %325 = vadd.xlane.f32.xlu1 %v311_v57  ;;  %v353_v58 = vmul.f32 %v311_v57, %v311_v57 }
  0xad   :  { %359 = vadd.xlane.f32.xlu0 %v353_v58 }
  0xae   :  { %v229_v60 = vpop.f32.mrf.mxu2  ;;  %v453_v63 = vpop.f32.mrf.mxu0 }
  0xaf   :  { %v306_v61 = vpop.f32.mrf.mxu3  ;;  %v235_v62 = vadd.f32 %v229_v60, %v157_v59  ;;  %v512_v0 = vpop.f32.mrf.mxu1 }
  0xb0   :  { %v513_v3 = vadd.f32 %v512_v0, %v453_v63 }
  0xb1   :  { %v312_v1 = vadd.f32 %v306_v61, %v235_v62 }
  0xb3   :  { %v2159_v2 = vpack.c.bf16 %v312_v1, %v311_v57  ;;  %327 = vadd.xlane.f32.xlu1 %v312_v1  ;;  %v354_v10 = vmul.f32 %v312_v1, %v312_v1 }
  0xb5   :  { %2191 = vst [vmem:[%s2663_s2 + $0x8] sm:$0xff] %v2159_v2  }
  0xb6   :  { %v584_v4 = vpop.f32.mrf.mxu2  ;;  %v455_v7 = vpop.f32.mrf.mxu0 }
  0xb7   :  { %v661_v5 = vpop.f32.mrf.mxu3  ;;  %v594_v6 = vadd.f32 %v584_v4, %v513_v3  ;;  %v514_v8 = vpop.f32.mrf.mxu1 }
  0xb8   :  { %v515_v12 = vadd.f32 %v514_v8, %v455_v7 }
  0xb9   :  { %v671_v9 = vadd.f32 %v661_v5, %v594_v6 }
  0xbb   :  { %361 = vadd.xlane.f32.xlu1 %v354_v10  ;;  %684 = vadd.xlane.f32.xlu2 %v671_v9  ;;  %v705_v11 = vmul.f32 %v671_v9, %v671_v9 }
  0xbd   :  { %709 = vadd.xlane.f32.xlu0 %v705_v11 }
  0xbe   :  { %v586_v13 = vpop.f32.mrf.mxu2  ;;  %v458_v16 = vpop.f32.mrf.mxu0 }
  0xbf   :  { %v663_v14 = vpop.f32.mrf.mxu3  ;;  %v595_v15 = vadd.f32 %v586_v13, %v515_v12  ;;  %v517_v17 = vpop.f32.mrf.mxu1 }
  0xc0   :  { %v518_v20 = vadd.f32 %v517_v17, %v458_v16 }
  0xc1   :  { %v672_v18 = vadd.f32 %v663_v14, %v595_v15 }
  0xc3   :  { %v2164_v19 = vpack.c.bf16 %v672_v18, %v671_v9  ;;  %v706_v21 = vmul.f32 %v672_v18, %v672_v18 }
  0xc5   :  { %2192 = vst [vmem:[%s2663_s2 + $0x10] sm:$0xff] %v2164_v19   ;;  %711 = vadd.xlane.f32.xlu1 %v706_v21  ;;  %686 = vadd.xlane.f32.xlu0 %v672_v18 }
  0xc6   :  { %v589_v22 = vpop.f32.mrf.mxu2  ;;  %v460_v25 = vpop.f32.mrf.mxu0 }
  0xc7   :  { %v666_v23 = vpop.f32.mrf.mxu3  ;;  %v596_v24 = vadd.f32 %v589_v22, %v518_v20  ;;  %v519_v26 = vpop.f32.mrf.mxu1 }
  0xc8   :  { %v520_v29 = vadd.f32 %v519_v26, %v460_v25 }
  0xc9   :  { %v673_v27 = vadd.f32 %v666_v23, %v596_v24 }
  0xcb   :  { %v707_v28 = vmul.f32 %v673_v27, %v673_v27 }
  0xcd   :  { %688 = vadd.xlane.f32.xlu1 %v673_v27  ;;  %713 = vadd.xlane.f32.xlu2 %v707_v28 }
  0xce   :  { %v591_v30 = vpop.f32.mrf.mxu2  ;;  %v805_v33 = vpop.f32.mrf.mxu0 }
  0xcf   :  { %v668_v31 = vpop.f32.mrf.mxu3  ;;  %v597_v32 = vadd.f32 %v591_v30, %v520_v29  ;;  %v864_v34 = vpop.f32.mrf.mxu1 }
  0xd0   :  { %v865_v37 = vadd.f32 %v864_v34, %v805_v33 }
  0xd1   :  { %v674_v35 = vadd.f32 %v668_v31, %v597_v32 }
  0xd3   :  { %v2169_v36 = vpack.c.bf16 %v674_v35, %v673_v27  ;;  %v708_v38 = vmul.f32 %v674_v35, %v674_v35 }
  0xd5   :  { %2193 = vst [vmem:[%s2663_s2 + $0x18] sm:$0xff] %v2169_v36   ;;  %715 = vadd.xlane.f32.xlu0 %v708_v38  ;;  %690 = vadd.xlane.f32.xlu2 %v674_v35 }
  0xd6   :  { %v937_v39 = vpop.f32.mrf.mxu2  ;;  %v807_v42 = vpop.f32.mrf.mxu0 }
  0xd7   :  { %v1014_v40 = vpop.f32.mrf.mxu3  ;;  %v947_v41 = vadd.f32 %v937_v39, %v865_v37  ;;  %v866_v43 = vpop.f32.mrf.mxu1 }
  0xd8   :  { %v867_v46 = vadd.f32 %v866_v43, %v807_v42 }
  0xd9   :  { %v1024_v44 = vadd.f32 %v1014_v40, %v947_v41  ;;  %v333_v41 = vlaneseq }
  0xdb   :  { %1037 = vadd.xlane.f32.xlu1 %v1024_v44  ;;  %v1058_v45 = vmul.f32 %v1024_v44, %v1024_v44  ;;  %v2562_v42 = vand.u32 127, %v333_v41 }
  0xdd   :  { %1062 = vadd.xlane.f32.xlu0 %v1058_v45  ;;  %v2565_v45 = vadd.s32 4294967288, %v2562_v42 }
  0xde   :  { %v939_v47 = vpop.f32.mrf.mxu2  ;;  %v810_v50 = vpop.f32.mrf.mxu0 }
  0xdf   :  { %v1016_v48 = vpop.f32.mrf.mxu3  ;;  %v948_v49 = vadd.f32 %v939_v47, %v867_v46  ;;  %v869_v51 = vpop.f32.mrf.mxu1  ;;  %v2568_v47 = vadd.s32 4294967280, %v2562_v42 }
  0xe0   :  { %v870_v54 = vadd.f32 %v869_v51, %v810_v50 }
  0xe1   :  { %v1025_v52 = vadd.f32 %v1016_v48, %v948_v49  ;;  %v2572_v49 = vadd.s32 4294967272, %v2562_v42 }
  0xe3   :  { %v2174_v53 = vpack.c.bf16 %v1025_v52, %v1024_v44  ;;  %1039 = vadd.xlane.f32.xlu2 %v1025_v52  ;;  %v1059_v55 = vmul.f32 %v1025_v52, %v1025_v52 }
  0xe5   :  { %2194 = vst [vmem:[%s2663_s2 + $0x20] sm:$0xff] %v2174_v53   ;;  %1064 = vadd.xlane.f32.xlu1 %v1059_v55 }
  0xe6   :  { %v942_v56 = vpop.f32.mrf.mxu2  ;;  %v812_v59 = vpop.f32.mrf.mxu0 }
  0xe7   :  { %v1019_v57 = vpop.f32.mrf.mxu3  ;;  %v949_v58 = vadd.f32 %v942_v56, %v870_v54  ;;  %v871_v60 = vpop.f32.mrf.mxu1 }
  0xe8   :  { %v872_v63 = vadd.f32 %v871_v60, %v812_v59 }
  0xe9   :  { %v1026_v61 = vadd.f32 %v1019_v57, %v949_v58 }
  0xeb   :  { %1041 = vadd.xlane.f32.xlu0 %v1026_v61  ;;  %v1060_v62 = vmul.f32 %v1026_v61, %v1026_v61 }
  0xed   :  { %1066 = vadd.xlane.f32.xlu1 %v1060_v62 }
  0xee   :  { %v944_v0 = vpop.f32.mrf.mxu2  ;;  %v1158_v3 = vpop.f32.mrf.mxu0 }
  0xef   :  { %v1021_v1 = vpop.f32.mrf.mxu3  ;;  %v950_v2 = vadd.f32 %v944_v0, %v872_v63  ;;  %v1217_v4 = vpop.f32.mrf.mxu1 }
  0xf0   :  { %v1218_v7 = vadd.f32 %v1217_v4, %v1158_v3 }
  0xf1   :  { %v1027_v5 = vadd.f32 %v1021_v1, %v950_v2 }
  0xf3   :  { %v2179_v6 = vpack.c.bf16 %v1027_v5, %v1026_v61  ;;  %v1061_v39 = vmul.f32 %v1027_v5, %v1027_v5 }
  0xf5   :  { %2195 = vst [vmem:[%s2663_s2 + $0x28] sm:$0xff] %v2179_v6   ;;  %1043 = vadd.xlane.f32.xlu1 %v1027_v5 }
  0xf6   :  { %v1289_v8 = vpop.f32.mrf.mxu2  ;;  %v1160_v11 = vpop.f32.mrf.mxu0 }
  0xf7   :  { %v1366_v9 = vpop.f32.mrf.mxu3  ;;  %v1299_v10 = vadd.f32 %v1289_v8, %v1218_v7  ;;  %v1219_v12 = vpop.f32.mrf.mxu1 }
  0xf8   :  { %v1220_v15 = vadd.f32 %v1219_v12, %v1160_v11 }
  0xf9   :  { %v1376_v13 = vadd.f32 %v1366_v9, %v1299_v10 }
  0xfb   :  { %1389 = vadd.xlane.f32.xlu2 %v1376_v13  ;;  %v1410_v14 = vmul.f32 %v1376_v13, %v1376_v13 }
  0xfd   :  { %1414 = vadd.xlane.f32.xlu1 %v1410_v14 }
  0xfe   :  { %v1291_v16 = vpop.f32.mrf.mxu2  ;;  %v1163_v19 = vpop.f32.mrf.mxu0 }
  0xff   :  { %v1368_v17 = vpop.f32.mrf.mxu3  ;;  %v1300_v18 = vadd.f32 %v1291_v16, %v1220_v15  ;;  %v1222_v20 = vpop.f32.mrf.mxu1 }
 0x100   :  { %v1223_v23 = vadd.f32 %v1222_v20, %v1163_v19 }
 0x101   :  { %v1377_v21 = vadd.f32 %v1368_v17, %v1300_v18 }
 0x103   :  { %v2184_v22 = vpack.c.bf16 %v1377_v21, %v1376_v13  ;;  %1391 = vadd.xlane.f32.xlu0 %v1377_v21  ;;  %v1411_v24 = vmul.f32 %v1377_v21, %v1377_v21 }
 0x105   :  { %2196 = vst [vmem:[%s2663_s2 + $0x30] sm:$0xff] %v2184_v22   ;;  %1416 = vadd.xlane.f32.xlu2 %v1411_v24 }
 0x106   :  { %v1294_v25 = vpop.f32.mrf.mxu2  ;;  %v1165_v29 = vpop.f32.mrf.mxu0 }
 0x107   :  { %v1371_v26 = vpop.f32.mrf.mxu3  ;;  %v1301_v27 = vadd.f32 %v1294_v25, %v1223_v23  ;;  %v1224_v30 = vpop.f32.mrf.mxu1 }
 0x108   :  { %v1225_v32 = vadd.f32 %v1224_v30, %v1165_v29 }
 0x109   :  { %v1378_v28 = vadd.f32 %v1371_v26, %v1301_v27 }
 0x10b   :  { %v1412_v31 = vmul.f32 %v1378_v28, %v1378_v28 }
 0x10d   :  { %1418 = vadd.xlane.f32.xlu0 %v1412_v31  ;;  %1393 = vadd.xlane.f32.xlu2 %v1378_v28 }
 0x10e   :  { %v1296_v33 = vpop.f32.mrf.mxu2  ;;  %v322_v40 = vpop.xlane.xlu0 %321 }
 0x10f   :  { %v1302_v34 = vadd.f32 %v1296_v33, %v1225_v32  ;;  %v1373_v35 = vpop.f32.mrf.mxu3  ;;  %v335_v51 = vperm.slane %v322_v40, %v2562_v42 }
 0x110   :  { %v356_v43 = vpop.xlane.xlu2 %355 }
 0x111   :  { %v1379_v36 = vadd.f32 %v1373_v35, %v1302_v34  ;;  %v367_v61 = vperm.slane %v356_v43, %v2562_v42 }
 0x113   :  { %v2189_v37 = vpack.c.bf16 %v1379_v36, %v1378_v28  ;;  %v1413_v38 = vmul.f32 %v1379_v36, %v1379_v36 }
 0x115   :  { %2197 = vst [vmem:[%s2663_s2 + $0x38] sm:$0xff] %v2189_v37   ;;  %1420 = vadd.xlane.f32.xlu1 %v1413_v38  ;;  %1395 = vadd.xlane.f32.xlu0 %v1379_v36 }
 0x116   :  { %1068 = vadd.xlane.f32.xlu2 %v1061_v39  ;;  %v324_v46 = vpop.xlane.xlu0 %323 }
 0x117   :  { %v337_v48 = vperm.slane %v324_v46, %v2565_v45 }
 0x118   :  { %v358_v55 = vpop.xlane.xlu2 %357 }
 0x119   :  { %v339_v53 = vsel %vm338_vm1, %v337_v48, %v335_v51  ;;  %v368_v59 = vperm.slane %v358_v55, %v2565_v45 }
 0x11b   :  { %v369_v63 = vsel %vm338_vm1, %v368_v59, %v367_v61 }
 0x11e   :  { %v326_v44 = vpop.xlane.xlu1 %325 }
 0x11f   :  { %v341_v50 = vperm.slane %v326_v44, %v2568_v47 }
 0x120   :  { %v360_v57 = vpop.xlane.xlu0 %359 }
 0x121   :  { %v343_v56 = vsel %vm342_vm2, %v341_v50, %v339_v53  ;;  %v370_v60 = vperm.slane %v360_v57, %v2568_v47 }
 0x123   :  { %v371_v1 = vsel %vm342_vm2, %v370_v60, %v369_v63 }
 0x126   :  { %v328_v52 = vpop.xlane.xlu1 %327 }
 0x127   :  { %v345_v54 = vperm.slane %v328_v52, %v2572_v49 }
 0x129   :  { %v347_v58 = vsel %vm346_vm3, %v345_v54, %v343_v56 }
 0x12a   :  { %350 = vst.msk [vmem:[%s2664_s3] sm:$0x1] %vm349_vm4, %v347_v58 }
 0x12e   :  { %v362_v62 = vpop.xlane.xlu1 %361  ;;  %v685_v4 = vpop.xlane.xlu2 %684 }
 0x12f   :  { %v372_v0 = vperm.slane %v362_v62, %v2572_v49  ;;  %v696_v13 = vperm.slane %v685_v4, %v2562_v42 }
 0x130   :  { %v710_v3 = vpop.xlane.xlu0 %709 }
 0x131   :  { %v373_v2 = vsel %vm346_vm3, %v372_v0, %v371_v1  ;;  %v721_v14 = vperm.slane %v710_v3, %v2562_v42 }
 0x132   :  { %1583 = vst.msk [vmem:[%s2664_s3 + $0x4] sm:$0x1] %vm349_vm4, %v373_v2 }
 0x138   :  { %v712_v5 = vpop.xlane.xlu1 %711  ;;  %v687_v6 = vpop.xlane.xlu0 %686 }
 0x139   :  { %v722_v9 = vperm.slane %v712_v5, %v2565_v45  ;;  %v697_v10 = vperm.slane %v687_v6, %v2565_v45 }
 0x13b   :  { %v723_v17 = vsel %vm338_vm1, %v722_v9, %v721_v14  ;;  %v698_v18 = vsel %vm338_vm1, %v697_v10, %v696_v13 }
 0x140   :  { %v714_v7 = vpop.xlane.xlu2 %713  ;;  %v689_v8 = vpop.xlane.xlu1 %688 }
 0x141   :  { %v699_v11 = vperm.slane %v689_v8, %v2568_v47  ;;  %v724_v12 = vperm.slane %v714_v7, %v2568_v47 }
 0x143   :  { %v700_v21 = vsel %vm342_vm2, %v699_v11, %v698_v18  ;;  %v725_v22 = vsel %vm342_vm2, %v724_v12, %v723_v17 }
 0x148   :  { %v716_v15 = vpop.xlane.xlu0 %715  ;;  %v691_v16 = vpop.xlane.xlu2 %690 }
 0x149   :  { %v726_v19 = vperm.slane %v716_v15, %v2572_v49  ;;  %v701_v20 = vperm.slane %v691_v16, %v2572_v49 }
 0x14b   :  { %v727_v23 = vsel %vm346_vm3, %v726_v19, %v725_v22  ;;  %v702_v24 = vsel %vm346_vm3, %v701_v20, %v700_v21 }
 0x14c   :  { %1740 = vst.msk [vmem:[%s2664_s3 + $0x5] sm:$0x1] %vm349_vm4, %v727_v23 }
 0x14d   :  { %704 = vst.msk [vmem:[%s2664_s3 + $0x1] sm:$0x1] %vm349_vm4, %v702_v24 }
 0x14e   :  { %v1038_v25 = vpop.xlane.xlu1 %1037 }
 0x14f   :  { %v1049_v33 = vperm.slane %v1038_v25, %v2562_v42 }
 0x150   :  { %v1063_v27 = vpop.xlane.xlu0 %1062 }
 0x151   :  { %v1074_v57 = vperm.slane %v1063_v27, %v2562_v42 }
 0x156   :  { %v1040_v29 = vpop.xlane.xlu2 %1039 }
 0x157   :  { %v1050_v31 = vperm.slane %v1040_v29, %v2565_v45 }
 0x158   :  { %v1065_v26 = vpop.xlane.xlu1 %1064 }
 0x159   :  { %v1051_v35 = vsel %vm338_vm1, %v1050_v31, %v1049_v33  ;;  %v1075_v51 = vperm.slane %v1065_v26, %v2565_v45 }
 0x15b   :  { %v1076_v0 = vsel %vm338_vm1, %v1075_v51, %v1074_v57 }
 0x15e   :  { %v1042_v30 = vpop.xlane.xlu0 %1041 }
 0x15f   :  { %v1052_v32 = vperm.slane %v1042_v30, %v2568_v47 }
 0x160   :  { %v1067_v28 = vpop.xlane.xlu1 %1066 }
 0x161   :  { %v1053_v37 = vsel %vm342_vm2, %v1052_v32, %v1051_v35  ;;  %v1077_v54 = vperm.slane %v1067_v28, %v2568_v47 }
 0x168   :  { %v1044_v34 = vpop.xlane.xlu1 %1043 }
 0x169   :  { %v1054_v36 = vperm.slane %v1044_v34, %v2572_v49 }
 0x16b   :  { %v1055_v38 = vsel %vm346_vm3, %v1054_v36, %v1053_v37 }
 0x16c   :  { %1057 = vst.msk [vmem:[%s2664_s3 + $0x2] sm:$0x1] %vm349_vm4, %v1055_v38 }
 0x16e   :  { %v1390_v39 = vpop.xlane.xlu2 %1389 }
 0x16f   :  { %v1401_v55 = vperm.slane %v1390_v39, %v2562_v42 }
 0x170   :  { %v1415_v43 = vpop.xlane.xlu1 %1414 }
 0x171   :  { %v1426_v56 = vperm.slane %v1415_v43, %v2562_v42  ;;  %v1078_v42 = vsel %vm342_vm2, %v1077_v54, %v1076_v0 }
 0x176   :  { %v1392_v40 = vpop.xlane.xlu0 %1391 }
 0x177   :  { %v1402_v48 = vperm.slane %v1392_v40, %v2565_v45 }
 0x178   :  { %v1417_v41 = vpop.xlane.xlu2 %1416 }
 0x179   :  { %v1427_v50 = vperm.slane %v1417_v41, %v2565_v45  ;;  %v1403_v60 = vsel %vm338_vm1, %v1402_v48, %v1401_v55 }
 0x17b   :  { %v1428_v61 = vsel %vm338_vm1, %v1427_v50, %v1426_v56 }
 0x180   :  { %v1419_v44 = vpop.xlane.xlu0 %1418  ;;  %v1394_v46 = vpop.xlane.xlu2 %1393 }
 0x181   :  { %v1429_v52 = vperm.slane %v1419_v44, %v2568_v47  ;;  %v1404_v53 = vperm.slane %v1394_v46, %v2568_v47 }
 0x183   :  { %v1430_v47 = vsel %vm342_vm2, %v1429_v52, %v1428_v61  ;;  %v1405_v1 = vsel %vm342_vm2, %v1404_v53, %v1403_v60 }
 0x188   :  { %v1421_v58 = vpop.xlane.xlu1 %1420  ;;  %v1396_v59 = vpop.xlane.xlu0 %1395 }
 0x189   :  { %v1431_v45 = vperm.slane %v1421_v58, %v2572_v49  ;;  %v1406_v62 = vperm.slane %v1396_v59, %v2572_v49  ;;  %v1069_v63 = vpop.xlane.xlu2 %1068 }
 0x18a   :  { %v1079_v2 = vperm.slane %v1069_v63, %v2572_v49 }
 0x18b   :  { %v1432_v3 = vsel %vm346_vm3, %v1431_v45, %v1430_v47  ;;  %v1407_v4 = vsel %vm346_vm3, %v1406_v62, %v1405_v1 }
 0x18c   :  { %2054 = vst.msk [vmem:[%s2664_s3 + $0x7] sm:$0x1] %vm349_vm4, %v1432_v3  ;;  %v1080_v5 = vsel %vm346_vm3, %v1079_v2, %v1078_v42 }
 0x18d   :  { %1409 = vst.msk [vmem:[%s2664_s3 + $0x3] sm:$0x1] %vm349_vm4, %v1407_v4 }
 0x18e   :  { %1897 = vst.msk [vmem:[%s2664_s3 + $0x6] sm:$0x1] %vm349_vm4, %v1080_v5 }

// kernel: generator_forward.12
= control target key start
LH: loop header
LB: loop body
LE: loop exit
PB: predicated region body
PF: predicated region fallthrough
CT: control target
= control target key end

     0   :  { %v143_v0 = vmov 0   ;;  %s200_s2 = inlined_call_operand.vmem [shape: f32[16,1], index: 2, kind: input, shape index: {}]   ;;  %s201_s1 = inlined_call_operand.vmem [shape: f32[16,1], index: 1, kind: input, shape index: {}]   ;;  %s202_s0 = inlined_call_operand.vmem [shape: bf16[4,16,128], index: 0, kind: input, shape index: {}]   ;;  %s203_s3 = inlined_call_operand.vmem [shape: bf16[4,16,128], index: 3, kind: output, shape index: {}]  }
   0x1   :  { %142 = vset.pattern.permute.xlu1 %v143_v0  ;;  %141 = vset.pattern.permute.xlu0 %v143_v0  ;;  %v50_v1 = vld [vmem:[%s200_s2] sm:$0xff]  ;;  %v51_v3 = vld [vmem:[%s200_s2 + $0x8] sm:$0xff]  ;;  %v135_v7 = vld [vmem:[%s202_s0 + $0x10] sm:$0xff]  }
   0x2   :  { %v30_v2 = vld [vmem:[%s201_s1] sm:$0xff]  ;;  %54 = vperm.xlu1 %142, %v50_v1   ;;  %v31_v4 = vld [vmem:[%s201_s1 + $0x8] sm:$0xff]  ;;  %v136_v8 = vld [vmem:[%s202_s0 + $0x18] sm:$0xff]   ;;  %v108_v13 = vunpack.c.l.bf16 %v135_v7  ;;  %v109_v20 = vunpack.c.h.bf16 %v135_v7 }
   0x3   :  { %34 = vperm.xlu0 %141, %v30_v2   ;;  %v99_v5 = vld [vmem:[%s202_s0] sm:$0xff]   ;;  %v134_v6 = vld [vmem:[%s202_s0 + $0x8] sm:$0xff]   ;;  %v112_v14 = vunpack.c.l.bf16 %v136_v8  ;;  %v113_v21 = vunpack.c.h.bf16 %v136_v8 }
   0x4   :  { %v100_v11 = vunpack.c.l.bf16 %v99_v5  ;;  %v104_v12 = vunpack.c.l.bf16 %v134_v6  ;;  %v101_v18 = vunpack.c.h.bf16 %v99_v5  ;;  %v105_v19 = vunpack.c.h.bf16 %v134_v6 }
   0xa   :  { %59 = vperm.xlu1 %142, %v51_v3  }
   0xb   :  { %39 = vperm.xlu0 %141, %v31_v4  }
  0x74   :  { %v55_v9 = vpop.permute.xlu1 %54 }
  0x75   :  { %v35_v10 = vpop.permute.xlu0 %34 }
  0x76   :  { %v42_v15 = vmul.f32 %v100_v11, %v35_v10  ;;  %v44_v16 = vmul.f32 %v104_v12, %v35_v10  ;;  %v46_v17 = vmul.f32 %v108_v13, %v35_v10  ;;  %v48_v22 = vmul.f32 %v112_v14, %v35_v10 }
  0x78   :  { %v62_v23 = vadd.f32 %v55_v9, %v42_v15  ;;  %v64_v24 = vadd.f32 %v55_v9, %v44_v16  ;;  %v66_v25 = vadd.f32 %v55_v9, %v46_v17  ;;  %v68_v31 = vadd.f32 %v55_v9, %v48_v22 }
  0x7a   :  { %v70_v37 = vmax.f32 %v62_v23, 0.0  ;;  %v72_v38 = vmax.f32 %v64_v24, 0.0  ;;  %v74_v39 = vmax.f32 %v66_v25, 0.0  ;;  %v76_v44 = vmax.f32 %v68_v31, 0.0 }
  0x7c   :  { %v60_v32 = vpop.permute.xlu1 %59 }
  0x7d   :  { %v40_v26 = vpop.permute.xlu0 %39 }
  0x7e   :  { %v43_v27 = vmul.f32 %v101_v18, %v40_v26  ;;  %v45_v28 = vmul.f32 %v105_v19, %v40_v26  ;;  %v47_v29 = vmul.f32 %v109_v20, %v40_v26  ;;  %v49_v30 = vmul.f32 %v113_v21, %v40_v26 }
  0x80   :  { %v63_v33 = vadd.f32 %v60_v32, %v43_v27  ;;  %v65_v34 = vadd.f32 %v60_v32, %v45_v28  ;;  %v67_v35 = vadd.f32 %v60_v32, %v47_v29  ;;  %v69_v36 = vadd.f32 %v60_v32, %v49_v30 }
  0x82   :  { %v71_v40 = vmax.f32 %v63_v33, 0.0  ;;  %v73_v41 = vmax.f32 %v65_v34, 0.0  ;;  %v75_v42 = vmax.f32 %v67_v35, 0.0  ;;  %v77_v43 = vmax.f32 %v69_v36, 0.0 }
  0x84   :  { %v117_v45 = vpack.c.bf16 %v71_v40, %v70_v37  ;;  %v122_v46 = vpack.c.bf16 %v73_v41, %v72_v38  ;;  %v127_v47 = vpack.c.bf16 %v75_v42, %v74_v39  ;;  %v132_v48 = vpack.c.bf16 %v77_v43, %v76_v44 }
  0x86   :  { %118 = vst [vmem:[%s203_s3] sm:$0xff] %v117_v45  }
  0x87   :  { %137 = vst [vmem:[%s203_s3 + $0x8] sm:$0xff] %v122_v46  }
  0x88   :  { %138 = vst [vmem:[%s203_s3 + $0x10] sm:$0xff] %v127_v47  }
  0x89   :  { %139 = vst [vmem:[%s203_s3 + $0x18] sm:$0xff] %v132_v48  }

// kernel: generator_forward.11
= control target key start
LH: loop header
LB: loop body
LE: loop exit
PB: predicated region body
PF: predicated region fallthrough
CT: control target
= control target key end

     0   :  { %vm45_vm0 = vcmask 261120   ;;  %vm200_vm1 = vcmask 130112   ;;  %vm203_vm2 = vcmask 122880   ;;  %s1434_s1 = inlined_call_operand.vmem [shape: bf16[9,32,128], index: 1, kind: input, shape index: {}]   ;;  %s1435_s0 = inlined_call_operand.vmem [shape: bf16[16,16,32], index: 0, kind: input, shape index: {}]   ;;  %s1436_s2 = inlined_call_operand.vmem [shape: bf16[4,16,128], index: 2, kind: output, shape index: {0}]   ;;  %s1437_s3 = inlined_call_operand.vmem [shape: f32[1,2,4,16], index: 3, kind: output, shape index: {1}]  }
   0x1   :  { %v1136_v0 = vld [vmem:[%s1434_s1 + $0x18] sm:$0xff]  ;;  %v1133_v1 = vld [vmem:[%s1434_s1 + $0x8] sm:$0xff]  ;;  %v1135_v4 = vld [vmem:[%s1434_s1 + $0x10] sm:$0xff] }
   0x2   :  { %v1139_v2 = vld [vmem:[%s1434_s1 + $0x38] sm:$0xff]  ;;  %v1142_v3 = vld [vmem:[%s1434_s1 + $0x48] sm:$0xff]  ;;  %55 = vmatpush.bf16.msra.mxu0 %v1136_v0  ;;  %89 = vmatpush.bf16.msra.mxu1 %v1133_v1  ;;  %v1132_v5 = vld [vmem:[%s1434_s1] sm:$0xff] }
   0x3   :  { %131 = vmatpush.bf16.msra.mxu2 %v1139_v2  ;;  %175 = vmatpush.bf16.msra.mxu3 %v1142_v3  ;;  %v1138_v6 = vld [vmem:[%s1434_s1 + $0x30] sm:$0xff]  ;;  %v1141_v7 = vld [vmem:[%s1434_s1 + $0x40] sm:$0xff]  ;;  %v1151_v8 = vld [vmem:[%s1434_s1 + $0x48] sm:$0xff] }
   0x4   :  { %v1154_v9 = vld [vmem:[%s1434_s1 + $0x58] sm:$0xff]  ;;  %v1134_v10 = vld [vmem:[%s1435_s0 + $0x8] sm:$0xff]  ;;  %v1131_v11 = vld [vmem:[%s1435_s0] sm:$0xff] }
   0x5   :  { %v1137_v12 = vld [vmem:[%s1435_s0 + $0x10] sm:$0xff]  ;;  %v1140_v13 = vld [vmem:[%s1435_s0 + $0x18] sm:$0xff]  ;;  %v1148_v14 = vld [vmem:[%s1434_s1 + $0x28] sm:$0xff] }
   0x6   :  { %56 = vmatpush.bf16.msra.mxu0 %v1135_v4  ;;  %90 = vmatpush.bf16.msra.mxu1 %v1132_v5  ;;  %v1145_v15 = vld [vmem:[%s1434_s1 + $0x18] sm:$0xff]  ;;  %v1150_v16 = vld [vmem:[%s1434_s1 + $0x40] sm:$0xff]  ;;  %v1153_v17 = vld [vmem:[%s1434_s1 + $0x50] sm:$0xff] }
   0x7   :  { %132 = vmatpush.bf16.msra.mxu2 %v1138_v6  ;;  %176 = vmatpush.bf16.msra.mxu3 %v1141_v7  ;;  %v1163_v18 = vld [vmem:[%s1434_s1 + $0x68] sm:$0xff]  ;;  %v1166_v19 = vld [vmem:[%s1434_s1 + $0x78] sm:$0xff]  ;;  %v1147_v20 = vld [vmem:[%s1434_s1 + $0x20] sm:$0xff] }
   0x8   :  { %v1144_v21 = vld [vmem:[%s1434_s1 + $0x10] sm:$0xff]  ;;  %v1160_v22 = vld [vmem:[%s1434_s1 + $0x48] sm:$0xff]  ;;  %v1157_v23 = vld [vmem:[%s1434_s1 + $0x38] sm:$0xff] }
   0x9   :  { %841 = vmatmul.msk.bf16.vlgmr.msra.gmra.mxu0 %vm45_vm0, %v1134_v10  ;;  %854 = vmatmul.msk.bf16.vlgmr.msra.gmra.mxu1 %vm45_vm0, %v1131_v11  ;;  %v1162_v24 = vld [vmem:[%s1434_s1 + $0x60] sm:$0xff]  ;;  %v1165_v25 = vld [vmem:[%s1434_s1 + $0x70] sm:$0xff]  ;;  %v1146_v28 = vld [vmem:[%s1435_s0 + $0x28] sm:$0xff] }
   0xa   :  { %873 = vmatmul.msk.bf16.vlgmr.msra.gmra.mxu2 %vm45_vm0, %v1137_v12  ;;  %892 = vmatmul.msk.bf16.vlgmr.msra.gmra.mxu3 %vm45_vm0, %v1140_v13  ;;  %v1159_v26 = vld [vmem:[%s1434_s1 + $0x40] sm:$0xff]  ;;  %v1156_v27 = vld [vmem:[%s1434_s1 + $0x30] sm:$0xff]  ;;  %v1152_v31 = vld [vmem:[%s1435_s0 + $0x38] sm:$0xff] }
   0xb   :  { %335 = vmatpush.bf16.msrb.mxu2 %v1151_v8  ;;  %379 = vmatpush.bf16.msrb.mxu3 %v1154_v9  ;;  %v1143_v29 = vld [vmem:[%s1435_s0 + $0x20] sm:$0xff]  ;;  %v1149_v30 = vld [vmem:[%s1435_s0 + $0x30] sm:$0xff]  ;;  %v1175_v32 = vld [vmem:[%s1434_s1 + $0x78] sm:$0xff] }
   0xc   :  { %260 = vmatpush.bf16.msrb.mxu0 %v1148_v14  ;;  %294 = vmatpush.bf16.msrb.mxu1 %v1145_v15  ;;  %v1178_v33 = vld [vmem:[%s1434_s1 + $0x88] sm:$0xff]  ;;  %v1172_v34 = vld [vmem:[%s1434_s1 + $0x58] sm:$0xff]  ;;  %v1174_v36 = vld [vmem:[%s1434_s1 + $0x70] sm:$0xff] }
   0xd   :  { %v1169_v35 = vld [vmem:[%s1434_s1 + $0x48] sm:$0xff]  ;;  %v1177_v37 = vld [vmem:[%s1434_s1 + $0x80] sm:$0xff]  ;;  %v1171_v38 = vld [vmem:[%s1434_s1 + $0x50] sm:$0xff] }
   0xe   :  { %v1168_v39 = vld [vmem:[%s1434_s1 + $0x40] sm:$0xff]  ;;  %v1158_v40 = vld [vmem:[%s1435_s0 + $0x48] sm:$0xff]  ;;  %v1161_v42 = vld [vmem:[%s1435_s0 + $0x50] sm:$0xff] }
   0xf   :  { %336 = vmatpush.bf16.msrb.mxu2 %v1150_v16  ;;  %380 = vmatpush.bf16.msrb.mxu3 %v1153_v17  ;;  %v1155_v41 = vld [vmem:[%s1435_s0 + $0x40] sm:$0xff]  ;;  %v1164_v43 = vld [vmem:[%s1435_s0 + $0x58] sm:$0xff]  ;;  %v1170_v44 = vld [vmem:[%s1435_s0 + $0x68] sm:$0xff] }
  0x10   :  { %261 = vmatpush.bf16.msrb.mxu0 %v1147_v20  ;;  %295 = vmatpush.bf16.msrb.mxu1 %v1144_v21  ;;  %v1167_v45 = vld [vmem:[%s1435_s0 + $0x60] sm:$0xff]  ;;  %v1173_v46 = vld [vmem:[%s1435_s0 + $0x70] sm:$0xff]  ;;  %v1176_v47 = vld [vmem:[%s1435_s0 + $0x78] sm:$0xff] }
  0x13   :  { %534 = vmatpush.bf16.msra.mxu2 %v1163_v18  ;;  %578 = vmatpush.bf16.msra.mxu3 %v1166_v19 }
  0x14   :  { %458 = vmatpush.bf16.msra.mxu0 %v1160_v22  ;;  %492 = vmatpush.bf16.msra.mxu1 %v1157_v23 }
  0x17   :  { %535 = vmatpush.bf16.msra.mxu2 %v1162_v24  ;;  %579 = vmatpush.bf16.msra.mxu3 %v1165_v25 }
  0x18   :  { %459 = vmatpush.bf16.msra.mxu0 %v1159_v26  ;;  %493 = vmatpush.bf16.msra.mxu1 %v1156_v27 }
  0x19   :  { %918 = vmatmul.msk.bf16.vlgmr.msrb.gmra.mxu0 %vm45_vm0, %v1146_v28  ;;  %931 = vmatmul.msk.bf16.vlgmr.msrb.gmra.mxu1 %vm45_vm0, %v1143_v29 }
  0x1a   :  { %950 = vmatmul.msk.bf16.vlgmr.msrb.gmra.mxu2 %vm45_vm0, %v1149_v30  ;;  %969 = vmatmul.msk.bf16.vlgmr.msrb.gmra.mxu3 %vm45_vm0, %v1152_v31 }
  0x1b   :  { %732 = vmatpush.bf16.msrb.mxu2 %v1175_v32  ;;  %776 = vmatpush.bf16.msrb.mxu3 %v1178_v33 }
  0x1c   :  { %657 = vmatpush.bf16.msrb.mxu0 %v1172_v34  ;;  %691 = vmatpush.bf16.msrb.mxu1 %v1169_v35 }
  0x1f   :  { %733 = vmatpush.bf16.msrb.mxu2 %v1174_v36  ;;  %777 = vmatpush.bf16.msrb.mxu3 %v1177_v37 }
  0x20   :  { %658 = vmatpush.bf16.msrb.mxu0 %v1171_v38  ;;  %692 = vmatpush.bf16.msrb.mxu1 %v1168_v39 }
  0x29   :  { %997 = vmatmul.msk.bf16.vlgmr.msra.gmra.mxu0 %vm45_vm0, %v1158_v40  ;;  %1010 = vmatmul.msk.bf16.vlgmr.msra.gmra.mxu1 %vm45_vm0, %v1155_v41 }
  0x2a   :  { %1029 = vmatmul.msk.bf16.vlgmr.msra.gmra.mxu2 %vm45_vm0, %v1161_v42  ;;  %1048 = vmatmul.msk.bf16.vlgmr.msra.gmra.mxu3 %vm45_vm0, %v1164_v43 }
  0x39   :  { %1076 = vmatmul.msk.bf16.vlgmr.msrb.gmra.mxu0 %vm45_vm0, %v1170_v44  ;;  %1089 = vmatmul.msk.bf16.vlgmr.msrb.gmra.mxu1 %vm45_vm0, %v1167_v45 }
  0x3a   :  { %1108 = vmatmul.msk.bf16.vlgmr.msrb.gmra.mxu2 %vm45_vm0, %v1173_v46  ;;  %1127 = vmatmul.msk.bf16.vlgmr.msrb.gmra.mxu3 %vm45_vm0, %v1176_v47 }
  0x86   :  { %v58_v48 = vpop.f32.mrf.mxu0  ;;  %v92_v49 = vpop.f32.mrf.mxu1 }
  0x87   :  { %v93_v50 = vadd.f32 %v92_v49, %v58_v48 }
  0x8d   :  { %v134_v51 = vpop.f32.mrf.mxu2  ;;  %v178_v52 = vpop.f32.mrf.mxu3 }
  0x8e   :  { %v139_v53 = vadd.f32 %v134_v51, %v93_v50  ;;  %v60_v54 = vpop.f32.mrf.mxu0  ;;  %v94_v55 = vpop.f32.mrf.mxu1 }
  0x8f   :  { %v95_v58 = vadd.f32 %v94_v55, %v60_v54 }
  0x90   :  { %v183_v56 = vadd.f32 %v178_v52, %v139_v53  ;;  %v195_v52 = vlaneseq }
  0x92   :  { %189 = vadd.xlane.f32.xlu0 %v183_v56  ;;  %v205_v57 = vmul.f32 %v183_v56, %v183_v56  ;;  %v196_v55 = vand.u32 127, %v195_v52 }
  0x94   :  { %207 = vadd.xlane.f32.xlu1 %v205_v57 }
  0x95   :  { %v136_v59 = vpop.f32.mrf.mxu2  ;;  %v180_v60 = vpop.f32.mrf.mxu3 }
  0x96   :  { %v140_v61 = vadd.f32 %v136_v59, %v95_v58  ;;  %v263_v62 = vpop.f32.mrf.mxu0  ;;  %v297_v63 = vpop.f32.mrf.mxu1 }
  0x97   :  { %v298_v2 = vadd.f32 %v297_v63, %v263_v62 }
  0x98   :  { %v184_v0 = vadd.f32 %v180_v60, %v140_v61 }
  0x9a   :  { %v1182_v1 = vpack.c.bf16 %v184_v0, %v183_v56  ;;  %191 = vadd.xlane.f32.xlu0 %v184_v0  ;;  %v206_v3 = vmul.f32 %v184_v0, %v184_v0  ;;  %v198_v56 = vadd.s32 4294967288, %v196_v55 }
  0x9c   :  { %1183 = vst [vmem:[%s1436_s2] sm:$0xff] %v1182_v1   ;;  %209 = vadd.xlane.f32.xlu1 %v206_v3 }
  0x9d   :  { %v338_v4 = vpop.f32.mrf.mxu2  ;;  %v382_v5 = vpop.f32.mrf.mxu3 }
  0x9e   :  { %v343_v6 = vadd.f32 %v338_v4, %v298_v2  ;;  %v265_v7 = vpop.f32.mrf.mxu0  ;;  %v299_v8 = vpop.f32.mrf.mxu1 }
  0x9f   :  { %v300_v11 = vadd.f32 %v299_v8, %v265_v7 }
  0xa0   :  { %v387_v9 = vadd.f32 %v382_v5, %v343_v6 }
  0xa2   :  { %394 = vadd.xlane.f32.xlu2 %v387_v9  ;;  %v405_v10 = vmul.f32 %v387_v9, %v387_v9 }
  0xa4   :  { %407 = vadd.xlane.f32.xlu0 %v405_v10 }
  0xa5   :  { %v340_v12 = vpop.f32.mrf.mxu2  ;;  %v384_v13 = vpop.f32.mrf.mxu3 }
  0xa6   :  { %v344_v14 = vadd.f32 %v340_v12, %v300_v11  ;;  %v461_v15 = vpop.f32.mrf.mxu0  ;;  %v495_v16 = vpop.f32.mrf.mxu1 }
  0xa7   :  { %v496_v19 = vadd.f32 %v495_v16, %v461_v15 }
  0xa8   :  { %v388_v17 = vadd.f32 %v384_v13, %v344_v14 }
  0xaa   :  { %v1187_v18 = vpack.c.bf16 %v388_v17, %v387_v9  ;;  %396 = vadd.xlane.f32.xlu2 %v388_v17  ;;  %v406_v20 = vmul.f32 %v388_v17, %v388_v17 }
  0xac   :  { %1199 = vst [vmem:[%s1436_s2 + $0x8] sm:$0xff] %v1187_v18   ;;  %409 = vadd.xlane.f32.xlu1 %v406_v20 }
  0xad   :  { %v537_v21 = vpop.f32.mrf.mxu2  ;;  %v581_v22 = vpop.f32.mrf.mxu3 }
  0xae   :  { %v542_v23 = vadd.f32 %v537_v21, %v496_v19  ;;  %v463_v24 = vpop.f32.mrf.mxu0  ;;  %v497_v25 = vpop.f32.mrf.mxu1 }
  0xaf   :  { %v498_v28 = vadd.f32 %v497_v25, %v463_v24 }
  0xb0   :  { %v586_v26 = vadd.f32 %v581_v22, %v542_v23 }
  0xb2   :  { %593 = vadd.xlane.f32.xlu2 %v586_v26  ;;  %v604_v27 = vmul.f32 %v586_v26, %v586_v26 }
  0xb4   :  { %606 = vadd.xlane.f32.xlu1 %v604_v27 }
  0xb5   :  { %v539_v29 = vpop.f32.mrf.mxu2  ;;  %v583_v30 = vpop.f32.mrf.mxu3 }
  0xb6   :  { %v543_v31 = vadd.f32 %v539_v29, %v498_v28  ;;  %v660_v32 = vpop.f32.mrf.mxu0  ;;  %v694_v33 = vpop.f32.mrf.mxu1 }
  0xb7   :  { %v695_v36 = vadd.f32 %v694_v33, %v660_v32 }
  0xb8   :  { %v587_v34 = vadd.f32 %v583_v30, %v543_v31 }
  0xba   :  { %v1192_v35 = vpack.c.bf16 %v587_v34, %v586_v26  ;;  %595 = vadd.xlane.f32.xlu0 %v587_v34  ;;  %v605_v37 = vmul.f32 %v587_v34, %v587_v34 }
  0xbc   :  { %1200 = vst [vmem:[%s1436_s2 + $0x10] sm:$0xff] %v1192_v35   ;;  %608 = vadd.xlane.f32.xlu2 %v605_v37 }
  0xbd   :  { %v735_v38 = vpop.f32.mrf.mxu2  ;;  %v779_v39 = vpop.f32.mrf.mxu3 }
  0xbe   :  { %v740_v40 = vadd.f32 %v735_v38, %v695_v36  ;;  %v662_v42 = vpop.f32.mrf.mxu0  ;;  %v696_v43 = vpop.f32.mrf.mxu1 }
  0xbf   :  { %v697_v45 = vadd.f32 %v696_v43, %v662_v42 }
  0xc0   :  { %v784_v41 = vadd.f32 %v779_v39, %v740_v40 }
  0xc2   :  { %791 = vadd.xlane.f32.xlu0 %v784_v41  ;;  %v802_v44 = vmul.f32 %v784_v41, %v784_v41 }
  0xc4   :  { %804 = vadd.xlane.f32.xlu2 %v802_v44 }
  0xc5   :  { %v737_v46 = vpop.f32.mrf.mxu2  ;;  %v781_v48 = vpop.f32.mrf.mxu3 }
  0xc6   :  { %v741_v47 = vadd.f32 %v737_v46, %v697_v45 }
  0xc8   :  { %v785_v49 = vadd.f32 %v781_v48, %v741_v47 }
  0xca   :  { %v1197_v50 = vpack.c.bf16 %v785_v49, %v784_v41  ;;  %793 = vadd.xlane.f32.xlu1 %v785_v49  ;;  %v803_v51 = vmul.f32 %v785_v49, %v785_v49 }
  0xcc   :  { %1201 = vst [vmem:[%s1436_s2 + $0x18] sm:$0xff] %v1197_v50   ;;  %806 = vadd.xlane.f32.xlu0 %v803_v51 }
 0x105   :  { %v190_v53 = vpop.xlane.xlu0 %189 }
 0x106   :  { %v197_v58 = vperm.slane %v190_v53, %v196_v55 }
 0x107   :  { %v208_v54 = vpop.xlane.xlu1 %207 }
 0x108   :  { %v213_v61 = vperm.slane %v208_v54, %v196_v55 }
 0x10d   :  { %v192_v57 = vpop.xlane.xlu0 %191 }
 0x10e   :  { %v199_v59 = vperm.slane %v192_v57, %v198_v56 }
 0x10f   :  { %v210_v60 = vpop.xlane.xlu1 %209 }
 0x110   :  { %v201_v62 = vsel %vm200_vm1, %v199_v59, %v197_v58  ;;  %v214_v63 = vperm.slane %v210_v60, %v198_v56 }
 0x111   :  { %204 = vst.msk [vmem:[%s1437_s3] sm:$0x1] %vm203_vm2, %v201_v62 }
 0x112   :  { %v215_v0 = vsel %vm200_vm1, %v214_v63, %v213_v61 }
 0x113   :  { %893 = vst.msk [vmem:[%s1437_s3 + $0x4] sm:$0x1] %vm203_vm2, %v215_v0 }
 0x115   :  { %v395_v1 = vpop.xlane.xlu2 %394 }
 0x116   :  { %v400_v4 = vperm.slane %v395_v1, %v196_v55 }
 0x117   :  { %v408_v2 = vpop.xlane.xlu0 %407 }
 0x118   :  { %v413_v7 = vperm.slane %v408_v2, %v196_v55 }
 0x11d   :  { %v397_v3 = vpop.xlane.xlu2 %396 }
 0x11e   :  { %v401_v5 = vperm.slane %v397_v3, %v198_v56 }
 0x11f   :  { %v410_v6 = vpop.xlane.xlu1 %409 }
 0x120   :  { %v402_v8 = vsel %vm200_vm1, %v401_v5, %v400_v4  ;;  %v414_v9 = vperm.slane %v410_v6, %v198_v56 }
 0x121   :  { %404 = vst.msk [vmem:[%s1437_s3 + $0x1] sm:$0x1] %vm203_vm2, %v402_v8 }
 0x122   :  { %v415_v10 = vsel %vm200_vm1, %v414_v9, %v413_v7 }
 0x123   :  { %972 = vst.msk [vmem:[%s1437_s3 + $0x5] sm:$0x1] %vm203_vm2, %v415_v10 }
 0x125   :  { %v594_v11 = vpop.xlane.xlu2 %593 }
 0x126   :  { %v599_v14 = vperm.slane %v594_v11, %v196_v55 }
 0x127   :  { %v607_v12 = vpop.xlane.xlu1 %606 }
 0x128   :  { %v612_v17 = vperm.slane %v607_v12, %v196_v55 }
 0x12d   :  { %v596_v13 = vpop.xlane.xlu0 %595 }
 0x12e   :  { %v600_v15 = vperm.slane %v596_v13, %v198_v56 }
 0x12f   :  { %v609_v16 = vpop.xlane.xlu2 %608 }
 0x130   :  { %v601_v18 = vsel %vm200_vm1, %v600_v15, %v599_v14  ;;  %v613_v19 = vperm.slane %v609_v16, %v198_v56 }
 0x131   :  { %603 = vst.msk [vmem:[%s1437_s3 + $0x2] sm:$0x1] %vm203_vm2, %v601_v18 }
 0x132   :  { %v614_v20 = vsel %vm200_vm1, %v613_v19, %v612_v17 }
 0x133   :  { %1051 = vst.msk [vmem:[%s1437_s3 + $0x6] sm:$0x1] %vm203_vm2, %v614_v20 }
 0x135   :  { %v792_v21 = vpop.xlane.xlu0 %791 }
 0x136   :  { %v797_v24 = vperm.slane %v792_v21, %v196_v55 }
 0x137   :  { %v805_v22 = vpop.xlane.xlu2 %804 }
 0x138   :  { %v810_v27 = vperm.slane %v805_v22, %v196_v55 }
 0x13d   :  { %v794_v23 = vpop.xlane.xlu1 %793 }
 0x13e   :  { %v798_v25 = vperm.slane %v794_v23, %v198_v56 }
 0x13f   :  { %v807_v26 = vpop.xlane.xlu0 %806 }
 0x140   :  { %v799_v28 = vsel %vm200_vm1, %v798_v25, %v797_v24  ;;  %v811_v29 = vperm.slane %v807_v26, %v198_v56 }
 0x141   :  { %801 = vst.msk [vmem:[%s1437_s3 + $0x3] sm:$0x1] %vm203_vm2, %v799_v28 }
 0x142   :  { %v812_v30 = vsel %vm200_vm1, %v811_v29, %v810_v27 }
 0x143   :  { %1130 = vst.msk [vmem:[%s1437_s3 + $0x7] sm:$0x1] %vm203_vm2, %v812_v30 }

// kernel: generator_forward.14
= control target key start
LH: loop header
LB: loop body
LE: loop exit
PB: predicated region body
PF: predicated region fallthrough
CT: control target
= control target key end

     0   :  { %s470_s12 = smov 0   ;;  %s472_s13 = smov 0   ;;  %s540_s0 = inlined_call_operand.vmem [shape: bf16[4,8,512], index: 0, kind: input, shape index: {}]   ;;  %s541_s1 = inlined_call_operand.vmem [shape: f32[8,1], index: 1, kind: input, shape index: {}]   ;;  %s542_s2 = inlined_call_operand.vmem [shape: f32[8,1], index: 2, kind: input, shape index: {}]   ;;  %s543_s3 = inlined_call_operand.vmem [shape: bf16[4,8,512], index: 3, kind: output, shape index: {}]  }
   0x1   :  { %s474_s14 = smov 0  }
   0x2 LB: > { %s382_s15 = sadd.s32 4294967295, %s447_s14   ;;  %s487_s16 = sadd.s32 1, %s447_s14   ;;  %s447_s14 = sphi %s474_s14, %s547_s14   ;;  %s443_s13 = sphi %s472_s13, %s546_s13   ;;  %s439_s12 = sphi %s470_s12, %s545_s12  }
   0x3   : > { %s17_s17 = ssub.s32 %s447_s14, %s487_s16  ;;  %s20_s18 = sadd.s32 1, %s443_s13 }
   0x4   : > { %p18_p0 = scmp.eq.s32.totalorder %s17_s17, 0  ;;  %p27_p1 = scmp.ne.s32.totalorder %s443_s13, %s439_s12 }
   0x5   : > { %p28_p2 = scmp.eq.s32.totalorder %s447_s14, 0  ;;  %p99_p3 = scmp.eq.s32.totalorder %s382_s15, 1 }
   0x6   : > { %s498_s19 = scalar_select %p18_p0, %s443_s13, %s20_s18  }
   0x7   : > { %p29_p4 = por %p28_p2, %p27_p1  ;;  %p500_p5 = por %p99_p3, %p27_p1 }
   0x8   : > { %p385_p6 = scmp.ge.s32.totalorder %s447_s14, 2 }
   0xa   : > { %127 = sbr.rel (%p385_p6) target bundleno = 23 (0x17), region = 24 }
   0xf   : > { %130 = sbr.rel (!%p29_p4) target bundleno = 23 (0x17), region = 28  ;;  %s132_s21 = sand.u32 (%p29_p4), 1, %s443_s13  }
  0x10   : > { %s397_s22 = sshll.u32 (%p29_p4), %s447_s14, 3  ;;  %s386_s23 = sshll.u32 (%p29_p4), %s132_s21, 5 }
  0x11   : > { %s137_s26 = scalar_lea.vmem (%p29_p4), %s540_s0, %s397_s22  ;;  %s134_s27 = scalar_lea.vmem (%p29_p4), [#allocation2], %s386_s23 }
  0x12   : > { %v172_v0 = vld [vmem:[%s137_s26] sm:$0xff] (%p29_p4)  ;;  %v174_v1 = vld [vmem:[%s137_s26 + $0x10] sm:$0xff] (%p29_p4) }
  0x13   : > { %v176_v2 = vld [vmem:[%s137_s26 + $0x20] sm:$0xff] (%p29_p4)  ;;  %173 = vst [vmem:[%s134_s27] sm:$0xff] (%p29_p4), %v172_v0  ;;  %v178_v3 = vld [vmem:[%s137_s26 + $0x30] sm:$0xff] (%p29_p4) }
  0x14   : > { %175 = vst [vmem:[%s134_s27 + $0x8] sm:$0xff] %v174_v1 }
  0x15   : > { %177 = vst [vmem:[%s134_s27 + $0x10] sm:$0xff] %v176_v2 }
  0x16   : > { %179 = vst [vmem:[%s134_s27 + $0x18] sm:$0xff] %v178_v3 }
  0x17 PF: > { %p389_p7 = scmp.ge.s32.totalorder %s447_s14, 1  ;;  %p184_p8 = scmp.lt.s32.totalorder %s447_s14, 3 }
  0x19   : > { %p185_p9 = pnand %p389_p7, %p184_p8 }
  0x1a   : > { %s191_s5 = sand.u32 (!%p185_p9), 1, %s439_s12  }
  0x1b   : > { %188 = sbr.rel (%p185_p9) target bundleno = 175 (0xaf), region = 66  ;;  %s519_s6 = sshll.u32 (!%p185_p9), %s191_s5, 5 }
  0x1c   : > { %s193_s7 = scalar_lea.vmem (!%p185_p9), [#allocation2], %s519_s6  ;;  %s212_s8 = scalar_lea.vmem (!%p185_p9), [#allocation3], %s519_s6 }
  0x20   : > { %v227_v4 = vld [vmem:[%s541_s1] sm:$0xff]  ;;  %v449_v5 = vmov 0   ;;  %v216_v9 = vld [vmem:[%s193_s7 + $0x8] sm:$0xff]  ;;  %v217_v10 = vld [vmem:[%s193_s7 + $0x10] sm:$0xff]  ;;  %s398_s9 = sshll.u32 (%p500_p5), %s382_s15, 3 }
  0x21   : > { %424 = vset.pattern.permute.xlu0 %v449_v5  ;;  %v241_v6 = vld [vmem:[%s542_s2] sm:$0xff]  ;;  %v218_v11 = vld [vmem:[%s193_s7 + $0x18] sm:$0xff]  ;;  %v221_v14 = vunpack.c.l.bf16 %v216_v9  ;;  %v222_v15 = vunpack.c.h.bf16 %v216_v9  ;;  %v223_v16 = vunpack.c.l.bf16 %v217_v10  ;;  %v224_v17 = vunpack.c.h.bf16 %v217_v10  ;;  %s280_s12 = scalar_lea.vmem (%p500_p5), %s543_s3, %s398_s9 }
  0x22   : > { %230 = vperm.xlu0 %424, %v227_v4   ;;  %v215_v8 = vld [vmem:[%s193_s7] sm:$0xff]  ;;  %v225_v18 = vunpack.c.l.bf16 %v218_v11  ;;  %v226_v19 = vunpack.c.h.bf16 %v218_v11 }
  0x23   : > { %v219_v12 = vunpack.c.l.bf16 %v215_v8  ;;  %v220_v13 = vunpack.c.h.bf16 %v215_v8 }
  0x2a   : > { %244 = vperm.xlu0 %424, %v241_v6  }
  0x94   : > { %v231_v7 = vpop.permute.xlu0 %230 }
  0x95   : > { %v233_v20 = vmul.f32 %v231_v7, %v219_v12  ;;  %v234_v21 = vmul.f32 %v231_v7, %v220_v13  ;;  %v235_v22 = vmul.f32 %v231_v7, %v221_v14  ;;  %v236_v23 = vmul.f32 %v231_v7, %v222_v15 }
  0x96   : > { %v237_v25 = vmul.f32 %v231_v7, %v223_v16  ;;  %v238_v26 = vmul.f32 %v231_v7, %v224_v17  ;;  %v239_v27 = vmul.f32 %v231_v7, %v225_v18  ;;  %v240_v28 = vmul.f32 %v231_v7, %v226_v19 }
  0x9c   : > { %v245_v24 = vpop.permute.xlu0 %244 }
  0x9d   : > { %v247_v29 = vadd.f32 %v245_v24, %v233_v20  ;;  %v248_v30 = vadd.f32 %v245_v24, %v234_v21  ;;  %v249_v31 = vadd.f32 %v245_v24, %v235_v22  ;;  %v250_v32 = vadd.f32 %v245_v24, %v236_v23 }
  0x9e   : > { %v251_v33 = vadd.f32 %v245_v24, %v237_v25  ;;  %v252_v34 = vadd.f32 %v245_v24, %v238_v26  ;;  %v253_v35 = vadd.f32 %v245_v24, %v239_v27  ;;  %v254_v36 = vadd.f32 %v245_v24, %v240_v28 }
  0x9f   : > { %v255_v37 = vmax.f32 %v247_v29, 0.0  ;;  %v256_v38 = vmax.f32 %v248_v30, 0.0  ;;  %v257_v39 = vmax.f32 %v249_v31, 0.0  ;;  %v258_v40 = vmax.f32 %v250_v32, 0.0 }
  0xa0   : > { %v259_v41 = vmax.f32 %v251_v33, 0.0  ;;  %v260_v42 = vmax.f32 %v252_v34, 0.0  ;;  %v261_v43 = vmax.f32 %v253_v35, 0.0  ;;  %v262_v44 = vmax.f32 %v254_v36, 0.0 }
  0xa1   : > { %v263_v45 = vpack.c.bf16 %v256_v38, %v255_v37  ;;  %v264_v46 = vpack.c.bf16 %v258_v40, %v257_v39 }
  0xa2   : > { %v265_v47 = vpack.c.bf16 %v260_v42, %v259_v41  ;;  %v266_v48 = vpack.c.bf16 %v262_v44, %v261_v43  ;;  %277 = sbr.rel (!%p500_p5) target bundleno = 175 (0xaf), region = 74 }
  0xa3   : > { %267 = vst [vmem:[%s212_s8] sm:$0xff] %v263_v45 }
  0xa4   : > { %268 = vst [vmem:[%s212_s8 + $0x8] sm:$0xff] %v264_v46 }
  0xa5   : > { %269 = vst [vmem:[%s212_s8 + $0x10] sm:$0xff] %v265_v47 }
  0xa6   : > { %270 = vst [vmem:[%s212_s8 + $0x18] sm:$0xff] %v266_v48 }
  0xaa   : > { %v315_v49 = vld [vmem:[%s212_s8] sm:$0xff] }
  0xab   : > { %v317_v50 = vld [vmem:[%s212_s8 + $0x8] sm:$0xff]  ;;  %316 = vst [vmem:[%s280_s12] sm:$0xff] %v315_v49 }
  0xac   : > { %v319_v51 = vld [vmem:[%s212_s8 + $0x10] sm:$0xff]  ;;  %318 = vst [vmem:[%s280_s12 + $0x10] sm:$0xff] %v317_v50 }
  0xad   : > { %v321_v52 = vld [vmem:[%s212_s8 + $0x18] sm:$0xff]  ;;  %320 = vst [vmem:[%s280_s12 + $0x20] sm:$0xff] %v319_v51 }
  0xae   : > { %322 = vst [vmem:[%s280_s12 + $0x30] sm:$0xff] %v321_v52 }
  0xaf PF: > { %p10_p10 = scmp.ge.s32.totalorder %s487_s16, 4   ;;  %s545_s12 = smov %s443_s13 }
  0xb0   : > { %s546_s13 = smov %s498_s19  ;;  %s547_s14 = smov %s487_s16 }
  0xb1   :  { %12 = sbr.rel (!%p10_p10) target bundleno = 2 (0x2), region = 143 }

// kernel: generator_forward.13
= control target key start
LH: loop header
LB: loop body
LE: loop exit
PB: predicated region body
PF: predicated region fallthrough
CT: control target
= control target key end

     0   :  { %s1552_s12 = smov 0   ;;  %s1554_s13 = smov 0   ;;  %s1825_s0 = inlined_call_operand.vmem [shape: bf16[16,8,16], index: 0, kind: input, shape index: {}]   ;;  %s1826_s1 = inlined_call_operand.vmem [shape: bf16[9,16,512], index: 1, kind: input, shape index: {}]   ;;  %s1827_s2 = inlined_call_operand.vmem [shape: bf16[4,8,512], index: 2, kind: output, shape index: {0}]   ;;  %s1828_s3 = inlined_call_operand.vmem [shape: f32[2,2,4,8], index: 3, kind: output, shape index: {1}]  }
   0x1   :  { %s1556_s14 = smov 0  }
   0x2 LB: > { %s1568_s15 = sadd.s32 4294967295, %s1530_s14   ;;  %s1571_s16 = sadd.s32 1, %s1530_s14   ;;  %s1530_s14 = sphi %s1556_s14, %s1832_s14   ;;  %s1526_s13 = sphi %s1554_s13, %s1831_s13   ;;  %s1522_s12 = sphi %s1552_s12, %s1830_s12  }
   0x3   : > { %s39_s17 = ssub.s32 %s1530_s14, %s1571_s16  ;;  %s42_s18 = sadd.s32 1, %s1526_s13 }
   0x4   : > { %p40_p0 = scmp.eq.s32.totalorder %s39_s17, 0  ;;  %p49_p1 = scmp.ne.s32.totalorder %s1526_s13, %s1522_s12 }
   0x5   : > { %p50_p2 = scmp.eq.s32.totalorder %s1530_s14, 0  ;;  %p79_p3 = scmp.eq.s32.totalorder %s1568_s15, 1 }
   0x6   : > { %s1581_s19 = scalar_select %p40_p0, %s1526_s13, %s42_s18  }
   0x7   : > { %p51_p4 = por %p50_p2, %p49_p1  ;;  %p1583_p5 = por %p79_p3, %p49_p1 }
   0x8   : > { %p1223_p6 = scmp.ge.s32.totalorder %s1530_s14, 2 }
   0xa   : > { %130 = sbr.rel (%p1223_p6) target bundleno = 37 (0x25), region = 20 }
   0xf   : > { %133 = sbr.rel (!%p51_p4) target bundleno = 37 (0x25), region = 24  ;;  %s135_s21 = sand.u32 (%p51_p4), 1, %s1526_s13  }
  0x10   : > { %s1447_s22 = sshll.u32 (%p51_p4), %s1530_s14, 3  ;;  %s1482_s23 = smul.u32 (%p51_p4), 144, %s135_s21 }
  0x11   : > { %s1593_s26 = scalar_lea.vmem (%p51_p4), %s1826_s1, %s1447_s22 }
  0x12   : > { %v203_v0 = vld [vmem:[%s1593_s26] sm:$0xff] (%p51_p4)  ;;  %v205_v1 = vld [vmem:[%s1593_s26 + $0x10] sm:$0xff] (%p51_p4)  ;;  %s1598_s27 = scalar_lea.vmem (%p51_p4), [#allocation2], %s1482_s23 }
  0x13   : > { %v207_v2 = vld [vmem:[%s1593_s26 + $0x20] sm:$0xff] (%p51_p4)  ;;  %204 = vst [vmem:[%s1598_s27] sm:$0xff] (%p51_p4), %v203_v0  ;;  %v209_v3 = vld [vmem:[%s1593_s26 + $0x30] sm:$0xff] (%p51_p4) }
  0x14   : > { %206 = vst [vmem:[%s1598_s27 + $0x8] sm:$0xff] %v205_v1  ;;  %v211_v4 = vld [vmem:[%s1593_s26 + $0x40] sm:$0xff]  ;;  %v213_v5 = vld [vmem:[%s1593_s26 + $0x50] sm:$0xff] }
  0x15   : > { %208 = vst [vmem:[%s1598_s27 + $0x10] sm:$0xff] %v207_v2  ;;  %v215_v6 = vld [vmem:[%s1593_s26 + $0x60] sm:$0xff]  ;;  %v217_v7 = vld [vmem:[%s1593_s26 + $0x70] sm:$0xff] }
  0x16   : > { %210 = vst [vmem:[%s1598_s27 + $0x18] sm:$0xff] %v209_v3  ;;  %v219_v8 = vld [vmem:[%s1593_s26 + $0x80] sm:$0xff]  ;;  %v221_v9 = vld [vmem:[%s1593_s26 + $0x90] sm:$0xff] }
  0x17   : > { %212 = vst [vmem:[%s1598_s27 + $0x20] sm:$0xff] %v211_v4  ;;  %v223_v10 = vld [vmem:[%s1593_s26 + $0xa0] sm:$0xff]  ;;  %v225_v11 = vld [vmem:[%s1593_s26 + $0xb0] sm:$0xff] }
  0x18   : > { %214 = vst [vmem:[%s1598_s27 + $0x28] sm:$0xff] %v213_v5  ;;  %v227_v12 = vld [vmem:[%s1593_s26 + $0xc0] sm:$0xff]  ;;  %v229_v13 = vld [vmem:[%s1593_s26 + $0xd0] sm:$0xff] }
  0x19   : > { %216 = vst [vmem:[%s1598_s27 + $0x30] sm:$0xff] %v215_v6  ;;  %v231_v14 = vld [vmem:[%s1593_s26 + $0xe0] sm:$0xff]  ;;  %v233_v15 = vld [vmem:[%s1593_s26 + $0xf0] sm:$0xff] }
  0x1a   : > { %218 = vst [vmem:[%s1598_s27 + $0x38] sm:$0xff] %v217_v7  ;;  %v235_v16 = vld [vmem:[%s1593_s26 + $0x100] sm:$0xff]  ;;  %v237_v17 = vld [vmem:[%s1593_s26 + $0x110] sm:$0xff] }
  0x1b   : > { %220 = vst [vmem:[%s1598_s27 + $0x40] sm:$0xff] %v219_v8 }
  0x1c   : > { %222 = vst [vmem:[%s1598_s27 + $0x48] sm:$0xff] %v221_v9 }
  0x1d   : > { %224 = vst [vmem:[%s1598_s27 + $0x50] sm:$0xff] %v223_v10 }
  0x1e   : > { %226 = vst [vmem:[%s1598_s27 + $0x58] sm:$0xff] %v225_v11 }
  0x1f   : > { %228 = vst [vmem:[%s1598_s27 + $0x60] sm:$0xff] %v227_v12 }
  0x20   : > { %230 = vst [vmem:[%s1598_s27 + $0x68] sm:$0xff] %v229_v13 }
  0x21   : > { %232 = vst [vmem:[%s1598_s27 + $0x70] sm:$0xff] %v231_v14 }
  0x22   : > { %234 = vst [vmem:[%s1598_s27 + $0x78] sm:$0xff] %v233_v15 }
  0x23   : > { %236 = vst [vmem:[%s1598_s27 + $0x80] sm:$0xff] %v235_v16 }
  0x24   : > { %238 = vst [vmem:[%s1598_s27 + $0x88] sm:$0xff] %v237_v17 }
  0x25 PF: > { %p1226_p7 = scmp.ge.s32.totalorder %s1530_s14, 1  ;;  %p243_p8 = scmp.lt.s32.totalorder %s1530_s14, 3 }
  0x27   : > { %p244_p9 = pnand %p1226_p7, %p243_p8 }
  0x28   : > { %s250_s28 = sand.u32 (!%p244_p9), 1, %s1522_s12   ;;  %p279_p10 = scmp.lt.s32.totalorder (!%p244_p9), %s1568_s15, 1 }
  0x29   : > { %247 = sbr.rel (%p244_p9) target bundleno = 424 (0x1a8), region = 62  ;;  %s1227_s22 = sshll.u32 (!%p244_p9), %s250_s28, 5 }
  0x2a   : > { %s1483_s29 = smul.u32 (!%p244_p9), 144, %s250_s28  ;;  %s1786_s23 = scalar_lea.vmem (!%p244_p9), [#allocation3], %s1227_s22 }
  0x2c   : > { %s1638_s30 = scalar_lea.vmem (!%p244_p9), [#allocation2], %s1483_s29 }
  0x2e   : > { %vm303_vm0 = vcmask 130048   ;;  %v1235_v18 = vld [vmem:[%s1638_s30 + $0x10] sm:$0xf]  ;;  %v1452_v19 = vld [vmem:[%s1638_s30 + $0x14] sm:$0xf0]  ;;  %s280_s12 = scalar_select %p279_p10, %s1568_s15, 1 }
  0x2f   : > { %v1451_v20 = vld [vmem:[%s1638_s30 + $0x14] sm:$0xf]  ;;  %v1236_v21 = vor.u32 %v1452_v19, %v1235_v18  ;;  %v1237_v22 = vld [vmem:[%s1638_s30 + $0x18] sm:$0xf0]  ;;  %v1245_v23 = vld [vmem:[%s1638_s30] sm:$0xf] }
  0x30   : > { %v1450_v24 = vld [vmem:[%s1638_s30 + $0x4] sm:$0xf0]  ;;  %v1230_v25 = vld [vmem:[%s1825_s0 + $0x4] sm:$0xf]  ;;  %v1240_v26 = vor.u32 %v1451_v20, %v1237_v22  ;;  %v1247_v29 = vld [vmem:[%s1638_s30 + $0x8] sm:$0xf0] }
  0x31   : > { %v1246_v27 = vor.u32 %v1450_v24, %v1245_v23  ;;  %v1449_v28 = vld [vmem:[%s1638_s30 + $0x4] sm:$0xf]  ;;  %v285_v30 = vld [vmem:[%s1825_s0] sm:$0xf]  ;;  %314 = vmatpush.bf16.msra.mxu0 %v1236_v21  ;;  %v1456_v33 = vld [vmem:[%s1638_s30 + $0x44] sm:$0xf0] }
  0x32   : > { %v1271_v31 = vld [vmem:[%s1638_s30 + $0x40] sm:$0xf]  ;;  %v1250_v32 = vor.u32 %v1449_v28, %v1247_v29  ;;  %v1455_v34 = vld [vmem:[%s1638_s30 + $0x44] sm:$0xf]  ;;  %v1273_v35 = vld [vmem:[%s1638_s30 + $0x48] sm:$0xf0]  ;;  %327 = vmatpush.bf16.msra.mxu1 %v1240_v26 }
  0x33   : > { %353 = vmatpush.bf16.msra.mxu2 %v1246_v27  ;;  %v1272_v36 = vor.u32 %v1456_v33, %v1271_v31  ;;  %v1258_v37 = vld [vmem:[%s1638_s30 + $0x30] sm:$0xf]  ;;  %v1454_v38 = vld [vmem:[%s1638_s30 + $0x34] sm:$0xf0]  ;;  %v1453_v39 = vld [vmem:[%s1638_s30 + $0x34] sm:$0xf]  ;;  %v1276_v40 = vor.u32 %v1455_v34, %v1273_v35 }
  0x34   : > { %366 = vmatpush.bf16.msra.mxu3 %v1250_v32  ;;  %v1259_v41 = vor.u32 %v1454_v38, %v1258_v37  ;;  %v1260_v42 = vld [vmem:[%s1638_s30 + $0x38] sm:$0xf0]  ;;  %v1298_v43 = vld [vmem:[%s1638_s30 + $0x10] sm:$0xf]  ;;  %v1458_v44 = vld [vmem:[%s1638_s30 + $0x14] sm:$0xf0]  ;;  %1241 = vmatmul.msk.bf16.vlgmr.msra.gmra.mxu0 %vm303_vm0, %v1230_v25 }
  0x35   : > { %v1263_v45 = vor.u32 %v1453_v39, %v1260_v42  ;;  %v1299_v46 = vor.u32 %v1458_v44, %v1298_v43  ;;  %v1457_v47 = vld [vmem:[%s1638_s30 + $0x14] sm:$0xf]  ;;  %v1300_v48 = vld [vmem:[%s1638_s30 + $0x18] sm:$0xf0]  ;;  %v1288_v49 = vld [vmem:[%s1638_s30 + $0x20] sm:$0xf]  ;;  %1242 = vmatmul.msk.bf16.vlgmr.msra.gmra.mxu1 %vm303_vm0, %v1230_v25 }
  0x36   : > { %1251 = vmatmul.msk.bf16.vlgmr.msra.gmra.mxu2 %vm303_vm0, %v285_v30  ;;  %v1303_v50 = vor.u32 %v1457_v47, %v1300_v48  ;;  %v1460_v51 = vld [vmem:[%s1638_s30 + $0x24] sm:$0xf0]  ;;  %v1459_v52 = vld [vmem:[%s1638_s30 + $0x24] sm:$0xf]  ;;  %v1290_v53 = vld [vmem:[%s1638_s30 + $0x28] sm:$0xf0]  ;;  %397 = vmatpush.bf16.msrb.mxu0 %v1259_v41 }
  0x37   : > { %443 = vmatpush.bf16.msrb.mxu2 %v1272_v36  ;;  %1252 = vmatmul.msk.bf16.vlgmr.msra.gmra.mxu3 %vm303_vm0, %v285_v30  ;;  %v1289_v54 = vor.u32 %v1460_v51, %v1288_v49  ;;  %v1293_v55 = vor.u32 %v1459_v52, %v1290_v53  ;;  %v1324_v56 = vld [vmem:[%s1638_s30 + $0x50] sm:$0xf]  ;;  %v1464_v57 = vld [vmem:[%s1638_s30 + $0x54] sm:$0xf0]  ;;  %v1463_v58 = vld [vmem:[%s1638_s30 + $0x54] sm:$0xf] }
  0x38   : > { %456 = vmatpush.bf16.msrb.mxu3 %v1276_v40  ;;  %410 = vmatpush.bf16.msrb.mxu1 %v1263_v45  ;;  %v1326_v59 = vld [vmem:[%s1638_s30 + $0x58] sm:$0xf0]  ;;  %v1311_v60 = vld [vmem:[%s1638_s30 + $0x40] sm:$0xf]  ;;  %v1462_v61 = vld [vmem:[%s1638_s30 + $0x44] sm:$0xf0]  ;;  %v1325_v2 = vor.u32 %v1464_v57, %v1324_v56 }
  0x39   : > { %v1253_v62 = vld [vmem:[%s1825_s0 + $0x8] sm:$0xf]  ;;  %v1461_v63 = vld [vmem:[%s1638_s30 + $0x44] sm:$0xf]  ;;  %v1313_v0 = vld [vmem:[%s1638_s30 + $0x48] sm:$0xf0]  ;;  %v1329_v3 = vor.u32 %v1463_v58, %v1326_v59  ;;  %v1312_v4 = vor.u32 %v1462_v61, %v1311_v60 }
  0x3a   : > { %515 = vmatpush.bf16.msra.mxu0 %v1289_v54  ;;  %v1266_v1 = vld [vmem:[%s1825_s0 + $0xc] sm:$0xf]  ;;  %v1316_v5 = vor.u32 %v1461_v63, %v1313_v0  ;;  %v1352_v6 = vld [vmem:[%s1638_s30 + $0x30] sm:$0xf]  ;;  %v1466_v7 = vld [vmem:[%s1638_s30 + $0x34] sm:$0xf0] }
  0x3b   : > { %554 = vmatpush.bf16.msra.mxu2 %v1299_v46  ;;  %v1465_v8 = vld [vmem:[%s1638_s30 + $0x34] sm:$0xf]  ;;  %v1354_v9 = vld [vmem:[%s1638_s30 + $0x38] sm:$0xf0]  ;;  %v1342_v10 = vld [vmem:[%s1638_s30 + $0x40] sm:$0xf]  ;;  %v1353_v16 = vor.u32 %v1466_v7, %v1352_v6 }
  0x3c   : > { %567 = vmatpush.bf16.msra.mxu3 %v1303_v50  ;;  %528 = vmatpush.bf16.msra.mxu1 %v1293_v55  ;;  %v1468_v11 = vld [vmem:[%s1638_s30 + $0x44] sm:$0xf0]  ;;  %v1283_v12 = vld [vmem:[%s1825_s0 + $0x14] sm:$0xf]  ;;  %v1344_v14 = vld [vmem:[%s1638_s30 + $0x48] sm:$0xf0]  ;;  %v1357_v17 = vor.u32 %v1465_v8, %v1354_v9 }
  0x3d   : > { %v1467_v13 = vld [vmem:[%s1638_s30 + $0x44] sm:$0xf]  ;;  %v1280_v15 = vld [vmem:[%s1825_s0 + $0x10] sm:$0xf]  ;;  %v1343_v18 = vor.u32 %v1468_v11, %v1342_v10  ;;  %v1472_v21 = vld [vmem:[%s1638_s30 + $0x74] sm:$0xf0] }
  0x3e   : > { %v1347_v19 = vor.u32 %v1467_v13, %v1344_v14  ;;  %v1378_v20 = vld [vmem:[%s1638_s30 + $0x70] sm:$0xf]  ;;  %v1471_v22 = vld [vmem:[%s1638_s30 + $0x74] sm:$0xf]  ;;  %v1380_v23 = vld [vmem:[%s1638_s30 + $0x78] sm:$0xf0] }
  0x3f   : > { %v1365_v24 = vld [vmem:[%s1638_s30 + $0x60] sm:$0xf]  ;;  %v1470_v25 = vld [vmem:[%s1638_s30 + $0x64] sm:$0xf0]  ;;  %v1469_v27 = vld [vmem:[%s1638_s30 + $0x64] sm:$0xf]  ;;  %v1379_v30 = vor.u32 %v1472_v21, %v1378_v20  ;;  %v1383_v31 = vor.u32 %v1471_v22, %v1380_v23 }
  0x40   : > { %v1306_v26 = vld [vmem:[%s1825_s0 + $0x18] sm:$0xf]  ;;  %v1367_v28 = vld [vmem:[%s1638_s30 + $0x68] sm:$0xf0]  ;;  %v1366_v32 = vor.u32 %v1470_v25, %v1365_v24  ;;  %v1406_v34 = vld [vmem:[%s1638_s30 + $0x40] sm:$0xf] }
  0x41   : > { %v1319_v29 = vld [vmem:[%s1825_s0 + $0x1c] sm:$0xf]  ;;  %v1370_v33 = vor.u32 %v1469_v27, %v1367_v28  ;;  %v1474_v35 = vld [vmem:[%s1638_s30 + $0x44] sm:$0xf0]  ;;  %v1473_v36 = vld [vmem:[%s1638_s30 + $0x44] sm:$0xf] }
  0x42   : > { %v1408_v37 = vld [vmem:[%s1638_s30 + $0x48] sm:$0xf0]  ;;  %v1396_v38 = vld [vmem:[%s1638_s30 + $0x50] sm:$0xf]  ;;  %v1476_v39 = vld [vmem:[%s1638_s30 + $0x54] sm:$0xf0]  ;;  %v1407_v44 = vor.u32 %v1474_v35, %v1406_v34 }
  0x43   : > { %v1337_v40 = vld [vmem:[%s1825_s0 + $0x24] sm:$0xf]  ;;  %v1398_v42 = vld [vmem:[%s1638_s30 + $0x58] sm:$0xf0]  ;;  %v1334_v43 = vld [vmem:[%s1825_s0 + $0x20] sm:$0xf]  ;;  %v1411_v45 = vor.u32 %v1473_v36, %v1408_v37  ;;  %v1397_v46 = vor.u32 %v1476_v39, %v1396_v38 }
  0x44   : > { %1264 = vmatmul.msk.bf16.vlgmr.msrb.gmra.mxu0 %vm303_vm0, %v1253_v62  ;;  %v1475_v41 = vld [vmem:[%s1638_s30 + $0x54] sm:$0xf]  ;;  %v1432_v48 = vld [vmem:[%s1638_s30 + $0x80] sm:$0xf]  ;;  %v1480_v49 = vld [vmem:[%s1638_s30 + $0x84] sm:$0xf0] }
  0x45   : > { %1265 = vmatmul.msk.bf16.vlgmr.msrb.gmra.mxu1 %vm303_vm0, %v1253_v62  ;;  %597 = vmatpush.bf16.msrb.mxu0 %v1312_v4  ;;  %v1401_v47 = vor.u32 %v1475_v41, %v1398_v42  ;;  %v1479_v50 = vld [vmem:[%s1638_s30 + $0x84] sm:$0xf]  ;;  %v1434_v51 = vld [vmem:[%s1638_s30 + $0x88] sm:$0xf0]  ;;  %v1419_v52 = vld [vmem:[%s1638_s30 + $0x70] sm:$0xf]  ;;  %v1433_v58 = vor.u32 %v1480_v49, %v1432_v48 }
  0x46   : > { %1277 = vmatmul.msk.bf16.vlgmr.msrb.gmra.mxu2 %vm303_vm0, %v1266_v1  ;;  %610 = vmatpush.bf16.msrb.mxu1 %v1316_v5  ;;  %v1478_v53 = vld [vmem:[%s1638_s30 + $0x74] sm:$0xf0]  ;;  %v1477_v55 = vld [vmem:[%s1638_s30 + $0x74] sm:$0xf]  ;;  %v1421_v56 = vld [vmem:[%s1638_s30 + $0x78] sm:$0xf0]  ;;  %v1437_v59 = vor.u32 %v1479_v50, %v1434_v51 }
  0x47   : > { %1278 = vmatmul.msk.bf16.vlgmr.msrb.gmra.mxu3 %vm303_vm0, %v1266_v1  ;;  %643 = vmatpush.bf16.msrb.mxu2 %v1325_v2  ;;  %v1360_v54 = vld [vmem:[%s1825_s0 + $0x28] sm:$0xf]  ;;  %v1373_v57 = vld [vmem:[%s1825_s0 + $0x2c] sm:$0xf]  ;;  %v1420_v60 = vor.u32 %v1478_v53, %v1419_v52  ;;  %v1424_v61 = vor.u32 %v1477_v55, %v1421_v56  ;;  %v1391_v62 = vld [vmem:[%s1825_s0 + $0x34] sm:$0xf] }
  0x48   : > { %656 = vmatpush.bf16.msrb.mxu3 %v1329_v3  ;;  %v1388_v63 = vld [vmem:[%s1825_s0 + $0x30] sm:$0xf]  ;;  %v1414_v0 = vld [vmem:[%s1825_s0 + $0x38] sm:$0xf]  ;;  %v1427_v1 = vld [vmem:[%s1825_s0 + $0x3c] sm:$0xf] }
  0x49   : > { %s1448_s28 = sshll.u32 %s280_s12, 3  ;;  %vm474_vm1 = vcmask 57344   ;;  %s1481_s27 = sshll.u32 (%p1583_p5), %s1568_s15, 3 }
  0x4a   : > { %s283_s26 = scalar_lea.vmem %s1828_s3, %s1448_s28  ;;  %s1090_s5 = scalar_lea.vmem (%p1583_p5), %s1827_s2, %s1481_s27 }
  0x54   : > { %1294 = vmatmul.msk.bf16.vlgmr.msra.gmra.mxu0 %vm303_vm0, %v1283_v12 }
  0x55   : > { %1295 = vmatmul.msk.bf16.vlgmr.msra.gmra.mxu1 %vm303_vm0, %v1283_v12  ;;  %711 = vmatpush.bf16.msra.mxu0 %v1343_v18 }
  0x56   : > { %1304 = vmatmul.msk.bf16.vlgmr.msra.gmra.mxu2 %vm303_vm0, %v1280_v15  ;;  %724 = vmatpush.bf16.msra.mxu1 %v1347_v19 }
  0x57   : > { %1305 = vmatmul.msk.bf16.vlgmr.msra.gmra.mxu3 %vm303_vm0, %v1280_v15  ;;  %750 = vmatpush.bf16.msra.mxu2 %v1353_v16 }
  0x58   : > { %763 = vmatpush.bf16.msra.mxu3 %v1357_v17 }
  0x64   : > { %1317 = vmatmul.msk.bf16.vlgmr.msrb.gmra.mxu0 %vm303_vm0, %v1306_v26 }
  0x65   : > { %1318 = vmatmul.msk.bf16.vlgmr.msrb.gmra.mxu1 %vm303_vm0, %v1306_v26  ;;  %794 = vmatpush.bf16.msrb.mxu0 %v1366_v32 }
  0x66   : > { %1330 = vmatmul.msk.bf16.vlgmr.msrb.gmra.mxu2 %vm303_vm0, %v1319_v29  ;;  %807 = vmatpush.bf16.msrb.mxu1 %v1370_v33 }
  0x67   : > { %1331 = vmatmul.msk.bf16.vlgmr.msrb.gmra.mxu3 %vm303_vm0, %v1319_v29  ;;  %840 = vmatpush.bf16.msrb.mxu2 %v1379_v30 }
  0x68   : > { %853 = vmatpush.bf16.msrb.mxu3 %v1383_v31 }
  0x74   : > { %1348 = vmatmul.msk.bf16.vlgmr.msra.gmra.mxu0 %vm303_vm0, %v1337_v40 }
  0x75   : > { %1349 = vmatmul.msk.bf16.vlgmr.msra.gmra.mxu1 %vm303_vm0, %v1337_v40  ;;  %908 = vmatpush.bf16.msra.mxu0 %v1397_v46 }
  0x76   : > { %1358 = vmatmul.msk.bf16.vlgmr.msra.gmra.mxu2 %vm303_vm0, %v1334_v43  ;;  %921 = vmatpush.bf16.msra.mxu1 %v1401_v47 }
  0x77   : > { %1359 = vmatmul.msk.bf16.vlgmr.msra.gmra.mxu3 %vm303_vm0, %v1334_v43  ;;  %947 = vmatpush.bf16.msra.mxu2 %v1407_v44 }
  0x78   : > { %960 = vmatpush.bf16.msra.mxu3 %v1411_v45 }
  0x84   : > { %1371 = vmatmul.msk.bf16.vlgmr.msrb.gmra.mxu0 %vm303_vm0, %v1360_v54 }
  0x85   : > { %1372 = vmatmul.msk.bf16.vlgmr.msrb.gmra.mxu1 %vm303_vm0, %v1360_v54  ;;  %990 = vmatpush.bf16.msrb.mxu0 %v1420_v60 }
  0x86   : > { %1384 = vmatmul.msk.bf16.vlgmr.msrb.gmra.mxu2 %vm303_vm0, %v1373_v57  ;;  %1003 = vmatpush.bf16.msrb.mxu1 %v1424_v61 }
  0x87   : > { %1385 = vmatmul.msk.bf16.vlgmr.msrb.gmra.mxu3 %vm303_vm0, %v1373_v57  ;;  %1036 = vmatpush.bf16.msrb.mxu2 %v1433_v58 }
  0x88   : > { %1049 = vmatpush.bf16.msrb.mxu3 %v1437_v59 }
  0x94   : > { %1402 = vmatmul.msk.bf16.vlgmr.msra.gmra.mxu0 %vm303_vm0, %v1391_v62 }
  0x95   : > { %1403 = vmatmul.msk.bf16.vlgmr.msra.gmra.mxu1 %vm303_vm0, %v1391_v62 }
  0x96   : > { %1412 = vmatmul.msk.bf16.vlgmr.msra.gmra.mxu2 %vm303_vm0, %v1388_v63 }
  0x97   : > { %1413 = vmatmul.msk.bf16.vlgmr.msra.gmra.mxu3 %vm303_vm0, %v1388_v63 }
  0xa4   : > { %1425 = vmatmul.msk.bf16.vlgmr.msrb.gmra.mxu0 %vm303_vm0, %v1414_v0 }
  0xa5   : > { %1426 = vmatmul.msk.bf16.vlgmr.msrb.gmra.mxu1 %vm303_vm0, %v1414_v0 }
  0xa6   : > { %1438 = vmatmul.msk.bf16.vlgmr.msrb.gmra.mxu2 %vm303_vm0, %v1427_v1 }
  0xa7   : > { %1439 = vmatmul.msk.bf16.vlgmr.msrb.gmra.mxu3 %vm303_vm0, %v1427_v1 }
  0xb1   : > { %v316_v2 = vpop.f32.mrf.mxu0 }
  0xb2   : > { %v329_v3 = vpop.f32.mrf.mxu1 }
  0xb9   : > { %v355_v4 = vpop.f32.mrf.mxu2  ;;  %v318_v6 = vpop.f32.mrf.mxu0 }
  0xba   : > { %v368_v5 = vpop.f32.mrf.mxu3  ;;  %v331_v7 = vpop.f32.mrf.mxu1  ;;  %v356_v12 = vadd.f32 %v355_v4, %v316_v2 }
  0xbb   : > { %v369_v13 = vadd.f32 %v368_v5, %v329_v3 }
  0xc1   : > { %v357_v8 = vpop.f32.mrf.mxu2  ;;  %v399_v10 = vpop.f32.mrf.mxu0 }
  0xc2   : > { %v370_v9 = vpop.f32.mrf.mxu3  ;;  %v412_v11 = vpop.f32.mrf.mxu1  ;;  %v416_v14 = vadd.f32 %v399_v10, %v356_v12 }
  0xc3   : > { %v417_v15 = vadd.f32 %v412_v11, %v369_v13 }
  0xc9   : > { %v445_v16 = vpop.f32.mrf.mxu2  ;;  %v401_v19 = vpop.f32.mrf.mxu0 }
  0xca   : > { %v462_v17 = vadd.f32 %v445_v16, %v416_v14  ;;  %v458_v18 = vpop.f32.mrf.mxu3  ;;  %v414_v21 = vpop.f32.mrf.mxu1 }
  0xcb   : > { %v463_v20 = vadd.f32 %v458_v18, %v417_v15 }
  0xcc   : > { %v476_v25 = vmul.f32 %v462_v17, %v462_v17 }
  0xcd   : > { %v464_v22 = vpack.c.bf16 %v463_v20, %v462_v17  ;;  %v466_v23 = vadd.f32 %v463_v20, %v462_v17  ;;  %v477_v26 = vmul.f32 %v463_v20, %v463_v20 }
  0xcf   : > { %465 = vst [vmem:[%s1786_s23] sm:$0xff] %v464_v22  ;;  %467 = vadd.xlane.f32.xlu0 %v466_v23  ;;  %v478_v30 = vadd.f32 %v477_v26, %v476_v25 }
  0xd1   : > { %v447_v24 = vpop.f32.mrf.mxu2  ;;  %v517_v28 = vpop.f32.mrf.mxu0 }
  0xd2   : > { %v460_v27 = vpop.f32.mrf.mxu3  ;;  %v530_v29 = vpop.f32.mrf.mxu1 }
  0xd7   : > { %479 = vadd.xlane.f32.xlu0 %v478_v30 }
  0xd9   : > { %v556_v31 = vpop.f32.mrf.mxu2  ;;  %v519_v33 = vpop.f32.mrf.mxu0 }
  0xda   : > { %v569_v32 = vpop.f32.mrf.mxu3  ;;  %v532_v34 = vpop.f32.mrf.mxu1  ;;  %v557_v39 = vadd.f32 %v556_v31, %v517_v28 }
  0xdb   : > { %v570_v40 = vadd.f32 %v569_v32, %v530_v29 }
  0xe1   : > { %v558_v35 = vpop.f32.mrf.mxu2  ;;  %v599_v37 = vpop.f32.mrf.mxu0 }
  0xe2   : > { %v571_v36 = vpop.f32.mrf.mxu3  ;;  %v612_v38 = vpop.f32.mrf.mxu1  ;;  %v616_v41 = vadd.f32 %v599_v37, %v557_v39 }
  0xe3   : > { %v617_v42 = vadd.f32 %v612_v38, %v570_v40 }
  0xe9   : > { %v645_v43 = vpop.f32.mrf.mxu2  ;;  %v601_v46 = vpop.f32.mrf.mxu0 }
  0xea   : > { %v662_v44 = vadd.f32 %v645_v43, %v616_v41  ;;  %v658_v45 = vpop.f32.mrf.mxu3  ;;  %v614_v48 = vpop.f32.mrf.mxu1  ;;  %v470_v46 = vlaneseq }
  0xeb   : > { %v663_v47 = vadd.f32 %v658_v45, %v617_v42 }
  0xec   : > { %v674_v52 = vmul.f32 %v662_v44, %v662_v44 }
  0xed   : > { %v664_v49 = vpack.c.bf16 %v663_v47, %v662_v44  ;;  %v667_v50 = vadd.f32 %v663_v47, %v662_v44  ;;  %v675_v53 = vmul.f32 %v663_v47, %v663_v47  ;;  %v471_v47 = vand.u32 127, %v470_v46 }
  0xef   : > { %1332 = vst [vmem:[%s1786_s23 + $0x8] sm:$0xff] %v664_v49  ;;  %668 = vadd.xlane.f32.xlu1 %v667_v50  ;;  %v676_v57 = vadd.f32 %v675_v53, %v674_v52 }
  0xf1   : > { %v647_v51 = vpop.f32.mrf.mxu2  ;;  %v713_v55 = vpop.f32.mrf.mxu0 }
  0xf2   : > { %v660_v54 = vpop.f32.mrf.mxu3  ;;  %v726_v56 = vpop.f32.mrf.mxu1 }
  0xf7   : > { %677 = vadd.xlane.f32.xlu1 %v676_v57 }
  0xf9   : > { %v752_v58 = vpop.f32.mrf.mxu2  ;;  %v715_v60 = vpop.f32.mrf.mxu0 }
  0xfa   : > { %v765_v59 = vpop.f32.mrf.mxu3  ;;  %v728_v61 = vpop.f32.mrf.mxu1  ;;  %v753_v2 = vadd.f32 %v752_v58, %v713_v55 }
  0xfb   : > { %v766_v3 = vadd.f32 %v765_v59, %v726_v56 }
 0x101   : > { %v754_v62 = vpop.f32.mrf.mxu2  ;;  %v796_v0 = vpop.f32.mrf.mxu0 }
 0x102   : > { %v767_v63 = vpop.f32.mrf.mxu3  ;;  %v809_v1 = vpop.f32.mrf.mxu1  ;;  %v813_v4 = vadd.f32 %v796_v0, %v753_v2  ;;  %v1125_v0 = vld [vmem:[%s1786_s23] sm:$0xff] (%p1583_p5) }
 0x103   : > { %v814_v5 = vadd.f32 %v809_v1, %v766_v3  ;;  %v1127_v1 = vld [vmem:[%s1786_s23 + $0x8] sm:$0xff] (%p1583_p5)  ;;  %1126 = vst [vmem:[%s1090_s5] sm:$0xff] (%p1583_p5), %v1125_v0 }
 0x104   : > { %1128 = vst [vmem:[%s1090_s5 + $0x10] sm:$0xff] (%p1583_p5), %v1127_v1 }
 0x109   : > { %v842_v6 = vpop.f32.mrf.mxu2  ;;  %v798_v9 = vpop.f32.mrf.mxu0 }
 0x10a   : > { %v859_v7 = vadd.f32 %v842_v6, %v813_v4  ;;  %v855_v8 = vpop.f32.mrf.mxu3  ;;  %v811_v11 = vpop.f32.mrf.mxu1 }
 0x10b   : > { %v860_v10 = vadd.f32 %v855_v8, %v814_v5 }
 0x10c   : > { %v871_v15 = vmul.f32 %v859_v7, %v859_v7 }
 0x10d   : > { %v861_v12 = vpack.c.bf16 %v860_v10, %v859_v7  ;;  %v864_v13 = vadd.f32 %v860_v10, %v859_v7  ;;  %v872_v16 = vmul.f32 %v860_v10, %v860_v10 }
 0x10f   : > { %1386 = vst [vmem:[%s1786_s23 + $0x10] sm:$0xff] %v861_v12  ;;  %865 = vadd.xlane.f32.xlu2 %v864_v13  ;;  %v873_v20 = vadd.f32 %v872_v16, %v871_v15 }
 0x111   : > { %v844_v14 = vpop.f32.mrf.mxu2  ;;  %v910_v18 = vpop.f32.mrf.mxu0 }
 0x112   : > { %v857_v17 = vpop.f32.mrf.mxu3  ;;  %v923_v19 = vpop.f32.mrf.mxu1 }
 0x116   : > { %v1129_v2 = vld [vmem:[%s1786_s23 + $0x10] sm:$0xff] (%p1583_p5) }
 0x117   : > { %874 = vadd.xlane.f32.xlu2 %v873_v20  ;;  %1130 = vst [vmem:[%s1090_s5 + $0x20] sm:$0xff] (%p1583_p5), %v1129_v2 }
 0x119   : > { %v949_v21 = vpop.f32.mrf.mxu2  ;;  %v912_v23 = vpop.f32.mrf.mxu0 }
 0x11a   : > { %v962_v22 = vpop.f32.mrf.mxu3  ;;  %v925_v24 = vpop.f32.mrf.mxu1  ;;  %v950_v29 = vadd.f32 %v949_v21, %v910_v18 }
 0x11b   : > { %v963_v30 = vadd.f32 %v962_v22, %v923_v19 }
 0x121   : > { %v951_v25 = vpop.f32.mrf.mxu2  ;;  %v992_v27 = vpop.f32.mrf.mxu0 }
 0x122   : > { %v964_v26 = vpop.f32.mrf.mxu3  ;;  %v1005_v28 = vpop.f32.mrf.mxu1  ;;  %v1009_v31 = vadd.f32 %v992_v27, %v950_v29 }
 0x123   : > { %v1010_v32 = vadd.f32 %v1005_v28, %v963_v30 }
 0x129   : > { %v1038_v33 = vpop.f32.mrf.mxu2  ;;  %v994_v36 = vpop.f32.mrf.mxu0 }
 0x12a   : > { %v1055_v34 = vadd.f32 %v1038_v33, %v1009_v31  ;;  %v1051_v35 = vpop.f32.mrf.mxu3  ;;  %v1007_v38 = vpop.f32.mrf.mxu1 }
 0x12b   : > { %v1056_v37 = vadd.f32 %v1051_v35, %v1010_v32 }
 0x12c   : > { %v1067_v39 = vmul.f32 %v1055_v34, %v1055_v34 }
 0x12d   : > { %v1057_v40 = vpack.c.bf16 %v1056_v37, %v1055_v34  ;;  %v1060_v41 = vadd.f32 %v1056_v37, %v1055_v34  ;;  %v1068_v42 = vmul.f32 %v1056_v37, %v1056_v37 }
 0x12f   : > { %1440 = vst [vmem:[%s1786_s23 + $0x18] sm:$0xff] %v1057_v40  ;;  %1061 = vadd.xlane.f32.xlu0 %v1060_v41  ;;  %v1069_v43 = vadd.f32 %v1068_v42, %v1067_v39 }
 0x131   : > { %1070 = vadd.xlane.f32.xlu1 %v1069_v43  ;;  %v1040_v44 = vpop.f32.mrf.mxu2 }
 0x132   : > { %v1053_v45 = vpop.f32.mrf.mxu3 }
 0x136   : > { %v1131_v3 = vld [vmem:[%s1786_s23 + $0x18] sm:$0xff] (%p1583_p5) }
 0x137   : > { %1132 = vst [vmem:[%s1090_s5 + $0x30] sm:$0xff] (%p1583_p5), %v1131_v3 }
 0x142   : > { %v468_v48 = vpop.xlane.xlu0 %467 }
 0x143   : > { %v472_v49 = vperm.slane %v468_v48, %v471_v47 }
 0x145   : > { %475 = vst.msk [vmem:[%s283_s26] sm:$0x1] %vm474_vm1, %v472_v49 }
 0x14a   : > { %v480_v50 = vpop.xlane.xlu0 %479 }
 0x14b   : > { %v482_v51 = vperm.slane %v480_v50, %v471_v47 }
 0x14d   : > { %1279 = vst.msk [vmem:[%s283_s26 + $0x4] sm:$0x1] %vm474_vm1, %v482_v51 }
 0x162   : > { %v669_v52 = vpop.xlane.xlu1 %668 }
 0x163   : > { %v671_v53 = vperm.slane %v669_v52, %v471_v47 }
 0x165   : > { %673 = vst.msk [vmem:[%s283_s26 + $0x1] sm:$0x1] %vm474_vm1, %v671_v53 }
 0x16a   : > { %v678_v54 = vpop.xlane.xlu1 %677 }
 0x16b   : > { %v680_v55 = vperm.slane %v678_v54, %v471_v47 }
 0x16d   : > { %1333 = vst.msk [vmem:[%s283_s26 + $0x5] sm:$0x1] %vm474_vm1, %v680_v55 }
 0x182   : > { %v866_v56 = vpop.xlane.xlu2 %865 }
 0x183   : > { %v868_v57 = vperm.slane %v866_v56, %v471_v47 }
 0x185   : > { %870 = vst.msk [vmem:[%s283_s26 + $0x2] sm:$0x1] %vm474_vm1, %v868_v57 }
 0x18a   : > { %v875_v58 = vpop.xlane.xlu2 %874 }
 0x18b   : > { %v877_v59 = vperm.slane %v875_v58, %v471_v47 }
 0x18d   : > { %1387 = vst.msk [vmem:[%s283_s26 + $0x6] sm:$0x1] %vm474_vm1, %v877_v59 }
 0x1a2   : > { %v1062_v60 = vpop.xlane.xlu0 %1061 }
 0x1a3   : > { %v1064_v61 = vperm.slane %v1062_v60, %v471_v47  ;;  %1087 = sbr.rel (!%p1583_p5) target bundleno = 424 (0x1a8), region = 70 }
 0x1a4   : > { %v1071_v62 = vpop.xlane.xlu1 %1070 }
 0x1a5   : > { %1066 = vst.msk [vmem:[%s283_s26 + $0x3] sm:$0x1] %vm474_vm1, %v1064_v61  ;;  %v1073_v63 = vperm.slane %v1071_v62, %v471_v47 }
 0x1a7   : > { %1441 = vst.msk [vmem:[%s283_s26 + $0x7] sm:$0x1] %vm474_vm1, %v1073_v63 }
 0x1a8 PF: > { %p11_p11 = scmp.ge.s32.totalorder %s1571_s16, 4   ;;  %s1830_s12 = smov %s1526_s13 }
 0x1a9   : > { %s1831_s13 = smov %s1581_s19  ;;  %s1832_s14 = smov %s1571_s16 }
 0x1aa   :  { %13 = sbr.rel (!%p11_p11) target bundleno = 2 (0x2), region = 178 }

// kernel: generator_forward.15
= control target key start
LH: loop header
LB: loop body
LE: loop exit
PB: predicated region body
PF: predicated region fallthrough
CT: control target
= control target key end

     0   :  { %s3468_s9 = smov 0   ;;  %s3470_s10 = smov 0   ;;  %s4303_s0 = inlined_call_operand.vmem [shape: bf16[16,3,8], index: 0, kind: input, shape index: {}]   ;;  %s4304_s1 = inlined_call_operand.vmem [shape: bf16[9,8,2048], index: 1, kind: input, shape index: {}]   ;;  %s4305_s2 = inlined_call_operand.vmem [shape: bf16[4,3,2048], index: 2, kind: output, shape index: {}]  }
   0x1   :  { %s3472_s11 = smov 0  }
   0x2 LB: > { %s3109_s12 = sadd.s32 4294967295, %s3451_s11   ;;  %s3485_s13 = sadd.s32 1, %s3451_s11   ;;  %s3451_s11 = sphi %s3472_s11, %s4317_s11   ;;  %s3447_s10 = sphi %s3470_s10, %s4316_s10   ;;  %s3443_s9 = sphi %s3468_s9, %s4315_s9  }
   0x3   : > { %s37_s14 = ssub.s32 %s3451_s11, %s3485_s13  ;;  %s40_s15 = sadd.s32 1, %s3447_s10 }
   0x4   : > { %p38_p0 = scmp.eq.s32.totalorder %s37_s14, 0  ;;  %p47_p1 = scmp.ne.s32.totalorder %s3447_s10, %s3443_s9 }
   0x5   : > { %p48_p2 = scmp.eq.s32.totalorder %s3451_s11, 0  ;;  %p77_p3 = scmp.eq.s32.totalorder %s3109_s12, 1 }
   0x6   : > { %s3496_s16 = scalar_select %p38_p0, %s3447_s10, %s40_s15  }
   0x7   : > { %p49_p4 = por %p48_p2, %p47_p1  ;;  %p3498_p5 = por %p77_p3, %p47_p1 }
   0x8   : > { %p3112_p6 = scmp.ge.s32.totalorder %s3451_s11, 2 }
   0xa   : > { %102 = sbr.rel (%p3112_p6) target bundleno = 55 (0x37), region = 20 }
   0xf   : > { %105 = sbr.rel (!%p49_p4) target bundleno = 55 (0x37), region = 24  ;;  %s107_s18 = sand.u32 (%p49_p4), 1, %s3447_s10  }
  0x10   : > { %s3337_s19 = sshll.u32 (%p49_p4), %s3451_s11, 5  ;;  %s3339_s20 = smul.u32 (%p49_p4), 288, %s107_s18 }
  0x11   : > { %s3508_s23 = scalar_lea.vmem (%p49_p4), %s4304_s1, %s3337_s19 }
  0x12   : > { %v125_v0 = vld [vmem:[%s3508_s23] sm:$0xff] (%p49_p4)  ;;  %v127_v1 = vld [vmem:[%s3508_s23 + $0x8] sm:$0xff] (%p49_p4)  ;;  %v129_v2 = vld [vmem:[%s3508_s23 + $0x10] sm:$0xff] (%p49_p4)  ;;  %s3513_s24 = scalar_lea.vmem (%p49_p4), [#allocation2], %s3339_s20 }
  0x13   : > { %126 = vst [vmem:[%s3513_s24] sm:$0xff] (%p49_p4), %v125_v0  ;;  %v131_v3 = vld [vmem:[%s3508_s23 + $0x18] sm:$0xff] (%p49_p4)  ;;  %v133_v4 = vld [vmem:[%s3508_s23 + $0x40] sm:$0xff] (%p49_p4)  ;;  %v135_v5 = vld [vmem:[%s3508_s23 + $0x48] sm:$0xff] (%p49_p4) }
  0x14   : > { %128 = vst [vmem:[%s3513_s24 + $0x8] sm:$0xff] %v127_v1  ;;  %v137_v6 = vld [vmem:[%s3508_s23 + $0x50] sm:$0xff]  ;;  %v139_v7 = vld [vmem:[%s3508_s23 + $0x58] sm:$0xff]  ;;  %v141_v8 = vld [vmem:[%s3508_s23 + $0x80] sm:$0xff] }
  0x15   : > { %130 = vst [vmem:[%s3513_s24 + $0x10] sm:$0xff] %v129_v2  ;;  %v143_v9 = vld [vmem:[%s3508_s23 + $0x88] sm:$0xff]  ;;  %v145_v10 = vld [vmem:[%s3508_s23 + $0x90] sm:$0xff]  ;;  %v147_v11 = vld [vmem:[%s3508_s23 + $0x98] sm:$0xff] }
  0x16   : > { %132 = vst [vmem:[%s3513_s24 + $0x18] sm:$0xff] %v131_v3  ;;  %v149_v12 = vld [vmem:[%s3508_s23 + $0xc0] sm:$0xff]  ;;  %v151_v13 = vld [vmem:[%s3508_s23 + $0xc8] sm:$0xff]  ;;  %v153_v14 = vld [vmem:[%s3508_s23 + $0xd0] sm:$0xff] }
  0x17   : > { %134 = vst [vmem:[%s3513_s24 + $0x20] sm:$0xff] %v133_v4  ;;  %v155_v15 = vld [vmem:[%s3508_s23 + $0xd8] sm:$0xff]  ;;  %v157_v16 = vld [vmem:[%s3508_s23 + $0x100] sm:$0xff]  ;;  %v159_v17 = vld [vmem:[%s3508_s23 + $0x108] sm:$0xff] }
  0x18   : > { %136 = vst [vmem:[%s3513_s24 + $0x28] sm:$0xff] %v135_v5  ;;  %v161_v18 = vld [vmem:[%s3508_s23 + $0x110] sm:$0xff]  ;;  %v163_v19 = vld [vmem:[%s3508_s23 + $0x118] sm:$0xff]  ;;  %v165_v20 = vld [vmem:[%s3508_s23 + $0x140] sm:$0xff] }
  0x19   : > { %138 = vst [vmem:[%s3513_s24 + $0x30] sm:$0xff] %v137_v6  ;;  %v167_v21 = vld [vmem:[%s3508_s23 + $0x148] sm:$0xff]  ;;  %v169_v22 = vld [vmem:[%s3508_s23 + $0x150] sm:$0xff]  ;;  %v171_v23 = vld [vmem:[%s3508_s23 + $0x158] sm:$0xff] }
  0x1a   : > { %140 = vst [vmem:[%s3513_s24 + $0x38] sm:$0xff] %v139_v7  ;;  %v173_v24 = vld [vmem:[%s3508_s23 + $0x180] sm:$0xff]  ;;  %v175_v25 = vld [vmem:[%s3508_s23 + $0x188] sm:$0xff]  ;;  %v177_v26 = vld [vmem:[%s3508_s23 + $0x190] sm:$0xff] }
  0x1b   : > { %142 = vst [vmem:[%s3513_s24 + $0x40] sm:$0xff] %v141_v8  ;;  %v179_v27 = vld [vmem:[%s3508_s23 + $0x198] sm:$0xff]  ;;  %v181_v28 = vld [vmem:[%s3508_s23 + $0x1c0] sm:$0xff]  ;;  %v183_v29 = vld [vmem:[%s3508_s23 + $0x1c8] sm:$0xff] }
  0x1c   : > { %144 = vst [vmem:[%s3513_s24 + $0x48] sm:$0xff] %v143_v9  ;;  %v185_v30 = vld [vmem:[%s3508_s23 + $0x1d0] sm:$0xff]  ;;  %v187_v31 = vld [vmem:[%s3508_s23 + $0x1d8] sm:$0xff]  ;;  %v189_v32 = vld [vmem:[%s3508_s23 + $0x200] sm:$0xff] }
  0x1d   : > { %146 = vst [vmem:[%s3513_s24 + $0x50] sm:$0xff] %v145_v10  ;;  %v191_v33 = vld [vmem:[%s3508_s23 + $0x208] sm:$0xff]  ;;  %v193_v34 = vld [vmem:[%s3508_s23 + $0x210] sm:$0xff]  ;;  %v195_v35 = vld [vmem:[%s3508_s23 + $0x218] sm:$0xff] }
  0x1e   : > { %148 = vst [vmem:[%s3513_s24 + $0x58] sm:$0xff] %v147_v11 }
  0x1f   : > { %150 = vst [vmem:[%s3513_s24 + $0x60] sm:$0xff] %v149_v12 }
  0x20   : > { %152 = vst [vmem:[%s3513_s24 + $0x68] sm:$0xff] %v151_v13 }
  0x21   : > { %154 = vst [vmem:[%s3513_s24 + $0x70] sm:$0xff] %v153_v14 }
  0x22   : > { %156 = vst [vmem:[%s3513_s24 + $0x78] sm:$0xff] %v155_v15 }
  0x23   : > { %158 = vst [vmem:[%s3513_s24 + $0x80] sm:$0xff] %v157_v16 }
  0x24   : > { %160 = vst [vmem:[%s3513_s24 + $0x88] sm:$0xff] %v159_v17 }
  0x25   : > { %162 = vst [vmem:[%s3513_s24 + $0x90] sm:$0xff] %v161_v18 }
  0x26   : > { %164 = vst [vmem:[%s3513_s24 + $0x98] sm:$0xff] %v163_v19 }
  0x27   : > { %166 = vst [vmem:[%s3513_s24 + $0xa0] sm:$0xff] %v165_v20 }
  0x28   : > { %168 = vst [vmem:[%s3513_s24 + $0xa8] sm:$0xff] %v167_v21 }
  0x29   : > { %170 = vst [vmem:[%s3513_s24 + $0xb0] sm:$0xff] %v169_v22 }
  0x2a   : > { %172 = vst [vmem:[%s3513_s24 + $0xb8] sm:$0xff] %v171_v23 }
  0x2b   : > { %174 = vst [vmem:[%s3513_s24 + $0xc0] sm:$0xff] %v173_v24 }
  0x2c   : > { %176 = vst [vmem:[%s3513_s24 + $0xc8] sm:$0xff] %v175_v25 }
  0x2d   : > { %178 = vst [vmem:[%s3513_s24 + $0xd0] sm:$0xff] %v177_v26 }
  0x2e   : > { %180 = vst [vmem:[%s3513_s24 + $0xd8] sm:$0xff] %v179_v27 }
  0x2f   : > { %182 = vst [vmem:[%s3513_s24 + $0xe0] sm:$0xff] %v181_v28 }
  0x30   : > { %184 = vst [vmem:[%s3513_s24 + $0xe8] sm:$0xff] %v183_v29 }
  0x31   : > { %186 = vst [vmem:[%s3513_s24 + $0xf0] sm:$0xff] %v185_v30 }
  0x32   : > { %188 = vst [vmem:[%s3513_s24 + $0xf8] sm:$0xff] %v187_v31 }
  0x33   : > { %190 = vst [vmem:[%s3513_s24 + $0x100] sm:$0xff] %v189_v32 }
  0x34   : > { %192 = vst [vmem:[%s3513_s24 + $0x108] sm:$0xff] %v191_v33 }
  0x35   : > { %194 = vst [vmem:[%s3513_s24 + $0x110] sm:$0xff] %v193_v34 }
  0x36   : > { %196 = vst [vmem:[%s3513_s24 + $0x118] sm:$0xff] %v195_v35 }
  0x37 PF: > { %p3115_p7 = scmp.ge.s32.totalorder %s3451_s11, 1  ;;  %p201_p8 = scmp.lt.s32.totalorder %s3451_s11, 3 }
  0x39   : > { %p202_p9 = pnand %p3115_p7, %p201_p8 }
  0x3a   : > { %s208_s25 = sand.u32 (!%p202_p9), 1, %s3443_s9  }
  0x3b   : > { %205 = sbr.rel (%p202_p9) target bundleno = 728 (0x2d8), region = 47  ;;  %s3116_s23 = sshll.u32 (!%p202_p9), %s208_s25, 6 }
  0x3c   : > { %s3340_s26 = smul.u32 (!%p202_p9), 288, %s208_s25  ;;  %s3944_s9 = scalar_lea.vmem (!%p202_p9), [#allocation3], %s3116_s23 }
  0x3e   : > { %s3589_s27 = scalar_lea.vmem (!%p202_p9), [#allocation2], %s3340_s26 }
  0x40   : > { %v3118_v36 = vld [vmem:[%s3589_s27 + $0x20] sm:$0xff]  ;;  %vm267_vm0 = vcmask 1043456   ;;  %v3119_v37 = vld [vmem:[%s3589_s27 + $0x28] sm:$0xff]  ;;  %v3121_v38 = vld [vmem:[%s3589_s27 + $0x38] sm:$0xff]  ;;  %vm263_vm1 = vcmask 64512   ;;  %vm922_vm3 = vcmask 1043458  }
  0x41   : > { %v247_v39 = vunpack.c.l.b16 %v3118_v36  ;;  %v248_v40 = vunpack.c.h.b16 %v3118_v36  ;;  %v249_v41 = vunpack.c.l.b16 %v3119_v37  ;;  %v250_v42 = vunpack.c.h.b16 %v3119_v37  ;;  %v3120_v43 = vld [vmem:[%s3589_s27 + $0x30] sm:$0xff]  ;;  %v233_v56 = vld [vmem:[%s3589_s27 + $0x8] sm:$0xff]  ;;  %v232_v57 = vld [vmem:[%s3589_s27] sm:$0xff]  ;;  %s3338_s19 = sshll.u32 (%p3498_p5), %s3109_s12, 4 }
  0x42   : > { %v253_v44 = vunpack.c.l.b16 %v3121_v38  ;;  %v254_v45 = vunpack.c.h.b16 %v3121_v38  ;;  %v251_v46 = vunpack.c.l.b16 %v3120_v43  ;;  %v252_v47 = vunpack.c.h.b16 %v3120_v43  ;;  %v3117_v62 = vld [vmem:[%s4303_s0 + $0x2] sm:$0x3]  ;;  %v235_v15 = vld [vmem:[%s3589_s27 + $0x18] sm:$0xff]  ;;  %v234_v16 = vld [vmem:[%s3589_s27 + $0x10] sm:$0xff]  ;;  %s3021_s22 = scalar_lea.vmem (%p3498_p5), %s4305_s2, %s3338_s19 }
  0x43   : > { %v255_v48 = vpack.c.b16 %v247_v39, %v247_v39  ;;  %v256_v49 = vpack.c.b16 %v248_v40, %v248_v40  ;;  %v257_v50 = vpack.c.b16 %v249_v41, %v249_v41  ;;  %v258_v51 = vpack.c.b16 %v250_v42, %v250_v42  ;;  %v3140_v29 = vld [vmem:[%s3589_s27 + $0x68] sm:$0xff]  ;;  %v3139_v30 = vld [vmem:[%s3589_s27 + $0x60] sm:$0xff] }
  0x44   : > { %v261_v52 = vpack.c.b16 %v253_v44, %v253_v44  ;;  %v262_v53 = vpack.c.b16 %v254_v45, %v254_v45  ;;  %v259_v54 = vpack.c.b16 %v251_v46, %v251_v46  ;;  %v260_v55 = vpack.c.b16 %v252_v47, %v252_v47  ;;  %v231_v39 = vld [vmem:[%s4303_s0] sm:$0x3]  ;;  %v3142_v44 = vld [vmem:[%s3589_s27 + $0x78] sm:$0xff]  ;;  %v3141_v45 = vld [vmem:[%s3589_s27 + $0x70] sm:$0xff] }
  0x45   : > { %v3598_v58 = vsel %vm267_vm0, %v255_v48, 0  ;;  %v3601_v59 = vsel %vm267_vm0, %v256_v49, 0  ;;  %v3604_v60 = vsel %vm267_vm0, %v257_v50, 0  ;;  %v3607_v61 = vsel %vm267_vm0, %v258_v51, 0 }
  0x46   : > { %299 = vmatpush.bf16.msra.mxu0 %v3598_v58  ;;  %312 = vmatpush.bf16.msra.mxu1 %v3601_v59  ;;  %v3615_v63 = vsel %vm267_vm0, %v261_v52, 0  ;;  %v3618_v0 = vsel %vm267_vm0, %v262_v53, 0  ;;  %v402_v1 = vunpack.c.l.b16 %v233_v56  ;;  %v403_v2 = vunpack.c.h.b16 %v233_v56 }
  0x47   : > { %325 = vmatpush.bf16.msra.mxu2 %v3604_v60  ;;  %338 = vmatpush.bf16.msra.mxu3 %v3607_v61  ;;  %v400_v3 = vunpack.c.l.b16 %v232_v57  ;;  %v401_v4 = vunpack.c.h.b16 %v232_v57  ;;  %v3625_v5 = vsel %vm267_vm0, %v259_v54, 0  ;;  %v3628_v6 = vsel %vm267_vm0, %v260_v55, 0 }
  0x48   : > { %v410_v7 = vpack.c.b16 %v402_v1, %v402_v1  ;;  %v411_v8 = vpack.c.b16 %v403_v2, %v403_v2  ;;  %v406_v17 = vunpack.c.l.b16 %v235_v15  ;;  %v407_v18 = vunpack.c.h.b16 %v235_v15  ;;  %v3152_v1 = vld [vmem:[%s3589_s27 + $0x80] sm:$0xff] }
  0x49   : > { %3122 = vmatmul.msk.bf16.vlgmr.msra.gmra.mxu0 %vm263_vm1, %v3117_v62  ;;  %3123 = vmatmul.msk.bf16.vlgmr.msra.gmra.mxu1 %vm263_vm1, %v3117_v62  ;;  %v408_v9 = vpack.c.b16 %v400_v3, %v400_v3  ;;  %v409_v10 = vpack.c.b16 %v401_v4, %v401_v4  ;;  %v404_v19 = vunpack.c.l.b16 %v234_v16  ;;  %v405_v20 = vunpack.c.h.b16 %v234_v16 }
  0x4a   : > { %3124 = vmatmul.msk.bf16.vlgmr.msra.gmra.mxu2 %vm263_vm1, %v3117_v62  ;;  %3125 = vmatmul.msk.bf16.vlgmr.msra.gmra.mxu3 %vm263_vm1, %v3117_v62  ;;  %v426_v11 = vsel %vm267_vm0, %v410_v7, 0  ;;  %v429_v12 = vsel %vm267_vm0, %v411_v8, 0  ;;  %v414_v21 = vpack.c.b16 %v406_v17, %v406_v17  ;;  %v415_v22 = vpack.c.b16 %v407_v18, %v407_v18  ;;  %v3155_v17 = vld [vmem:[%s3589_s27 + $0x98] sm:$0xff]  ;;  %v3154_v18 = vld [vmem:[%s3589_s27 + $0x90] sm:$0xff] }
  0x4b   : > { %377 = vmatpush.bf16.msrb.mxu2 %v3615_v63  ;;  %390 = vmatpush.bf16.msrb.mxu3 %v3618_v0  ;;  %v420_v13 = vsel %vm267_vm0, %v408_v9, 0  ;;  %v423_v14 = vsel %vm267_vm0, %v409_v10, 0  ;;  %v412_v23 = vpack.c.b16 %v404_v19, %v404_v19  ;;  %v413_v24 = vpack.c.b16 %v405_v20, %v405_v20 }
  0x4c   : > { %351 = vmatpush.bf16.msrb.mxu0 %v3625_v5  ;;  %364 = vmatpush.bf16.msrb.mxu1 %v3628_v6  ;;  %v438_v25 = vsel %vm267_vm0, %v414_v21, 0  ;;  %v441_v26 = vsel %vm267_vm0, %v415_v22, 0  ;;  %v560_v31 = vunpack.c.l.b16 %v3140_v29  ;;  %v561_v32 = vunpack.c.h.b16 %v3140_v29 }
  0x4d   : > { %v432_v27 = vsel %vm267_vm0, %v412_v23, 0  ;;  %v435_v28 = vsel %vm267_vm0, %v413_v24, 0  ;;  %v558_v33 = vunpack.c.l.b16 %v3139_v30  ;;  %v559_v34 = vunpack.c.h.b16 %v3139_v30 }
  0x4e   : > { %v568_v35 = vpack.c.b16 %v560_v31, %v560_v31  ;;  %v569_v36 = vpack.c.b16 %v561_v32, %v561_v32  ;;  %v564_v46 = vunpack.c.l.b16 %v3142_v44  ;;  %v565_v47 = vunpack.c.h.b16 %v3142_v44  ;;  %v3171_v31 = vld [vmem:[%s3589_s27 + $0x48] sm:$0xff]  ;;  %v3170_v32 = vld [vmem:[%s3589_s27 + $0x40] sm:$0xff] }
  0x4f   : > { %476 = vmatpush.bf16.msra.mxu2 %v426_v11  ;;  %489 = vmatpush.bf16.msra.mxu3 %v429_v12  ;;  %v566_v37 = vpack.c.b16 %v558_v33, %v558_v33  ;;  %v567_v38 = vpack.c.b16 %v559_v34, %v559_v34  ;;  %v562_v48 = vunpack.c.l.b16 %v3141_v45  ;;  %v563_v49 = vunpack.c.h.b16 %v3141_v45  ;;  %v3138_v12 = vld [vmem:[%s4303_s0 + $0x4] sm:$0x3]  ;;  %v3151_v45 = vld [vmem:[%s4303_s0 + $0x6] sm:$0x3] }
  0x50   : > { %450 = vmatpush.bf16.msra.mxu0 %v420_v13  ;;  %463 = vmatpush.bf16.msra.mxu1 %v423_v14  ;;  %v3656_v40 = vsel %vm267_vm0, %v568_v35, 0  ;;  %v3659_v41 = vsel %vm267_vm0, %v569_v36, 0  ;;  %v572_v50 = vpack.c.b16 %v564_v46, %v564_v46  ;;  %v573_v51 = vpack.c.b16 %v565_v47, %v565_v47 }
  0x51   : > { %v3664_v42 = vsel %vm267_vm0, %v566_v37, 0  ;;  %v3667_v43 = vsel %vm267_vm0, %v567_v38, 0  ;;  %v570_v52 = vpack.c.b16 %v562_v48, %v562_v48  ;;  %v571_v53 = vpack.c.b16 %v563_v49, %v563_v49 }
  0x52   : > { %v3678_v54 = vsel %vm267_vm0, %v572_v50, 0  ;;  %v3681_v55 = vsel %vm267_vm0, %v573_v51, 0  ;;  %v724_v4 = vunpack.c.l.b16 %v3152_v1  ;;  %v725_v7 = vunpack.c.h.b16 %v3152_v1  ;;  %v3173_v50 = vld [vmem:[%s3589_s27 + $0x58] sm:$0xff]  ;;  %v3172_v51 = vld [vmem:[%s3589_s27 + $0x50] sm:$0xff] }
  0x53   : > { %v3686_v56 = vsel %vm267_vm0, %v570_v52, 0  ;;  %v3689_v57 = vsel %vm267_vm0, %v571_v53, 0  ;;  %v730_v19 = vunpack.c.l.b16 %v3155_v17  ;;  %v731_v20 = vunpack.c.h.b16 %v3155_v17 }
  0x54   : > { %v732_v10 = vpack.c.b16 %v724_v4, %v724_v4  ;;  %v733_v11 = vpack.c.b16 %v725_v7, %v725_v7  ;;  %v728_v21 = vunpack.c.l.b16 %v3154_v18  ;;  %v729_v22 = vunpack.c.h.b16 %v3154_v18  ;;  %v3169_v18 = vld [vmem:[%s4303_s0 + $0xa] sm:$0x3] }
  0x55   : > { %v738_v23 = vpack.c.b16 %v730_v19, %v730_v19  ;;  %v739_v24 = vpack.c.b16 %v731_v20, %v731_v20  ;;  %v959_v33 = vunpack.c.l.b16 %v3171_v31  ;;  %v960_v34 = vunpack.c.h.b16 %v3171_v31 }
  0x56   : > { %v3711_v15 = vsel %vm267_vm0, %v732_v10, 0  ;;  %v3714_v16 = vsel %vm267_vm0, %v733_v11, 0  ;;  %v957_v35 = vunpack.c.l.b16 %v3170_v32  ;;  %v958_v36 = vunpack.c.h.b16 %v3170_v32 }
  0x57   : > { %v967_v37 = vpack.c.b16 %v959_v33, %v959_v33  ;;  %v968_v38 = vpack.c.b16 %v960_v34, %v960_v34  ;;  %v963_v52 = vunpack.c.l.b16 %v3173_v50  ;;  %v964_v53 = vunpack.c.h.b16 %v3173_v50  ;;  %v3205_v50 = vld [vmem:[%s3589_s27 + $0xa8] sm:$0xff] }
  0x58   : > { %v966_v44 = vpack.c.b16 %v958_v36, %v958_v36  ;;  %v962_v1 = vunpack.c.h.b16 %v3172_v51  ;;  %vm920_vm2 = vsmask.f32 1280  ;;  %vm923_vm4 = vsmask.f32 3328 }
  0x59   : > { %3126 = vmatmul.msk.bf16.vlgmr.msrb.gmra.mxu0 %vm263_vm1, %v3117_v62  ;;  %3127 = vmatmul.msk.bf16.vlgmr.msrb.gmra.mxu1 %vm263_vm1, %v3117_v62  ;;  %v983_v46 = vsel %vm267_vm0, %v967_v37, 0  ;;  %v986_v47 = vsel %vm267_vm0, %v968_v38, 0  ;;  %vm901_vm5 = vcmask 1041408   ;;  %vm3908_vm7 = vmand %vm922_vm3, %vm923_vm4  ;;  %vm905_vm8 = vcmask 1045508  }
  0x5a   : > { %3128 = vmatmul.msk.bf16.vlgmr.msrb.gmra.mxu2 %vm263_vm1, %v3117_v62  ;;  %3129 = vmatmul.msk.bf16.vlgmr.msrb.gmra.mxu3 %vm263_vm1, %v3117_v62  ;;  %v3153_v62 = vld [vmem:[%s3589_s27 + $0x88] sm:$0xff]  ;;  %v980_v49 = vsel %vm267_vm0, %v966_v44, 0  ;;  %v970_v7 = vpack.c.b16 %v962_v1, %v962_v1  ;;  %v1434_v1 = vunpack.c.h.b16 %v3205_v50  ;;  %vm3904_vm6 = vmand %vm901_vm5, %vm920_vm2  ;;  %vm927_vm9 = vsmask.f32 5376 }
  0x5b   : > { %528 = vmatpush.bf16.msrb.mxu2 %v438_v25  ;;  %541 = vmatpush.bf16.msrb.mxu3 %v441_v26  ;;  %v726_v2 = vunpack.c.l.b16 %v3153_v62  ;;  %v727_v3 = vunpack.c.h.b16 %v3153_v62  ;;  %v736_v25 = vpack.c.b16 %v728_v21, %v728_v21  ;;  %v737_v26 = vpack.c.b16 %v729_v22, %v729_v22  ;;  %vm925_vm10 = vmor %vm3908_vm7, %vm3904_vm6 }
  0x5c   : > { %502 = vmatpush.bf16.msrb.mxu0 %v432_v27  ;;  %515 = vmatpush.bf16.msrb.mxu1 %v435_v28  ;;  %v3725_v27 = vsel %vm267_vm0, %v738_v23, 0  ;;  %v3728_v28 = vsel %vm267_vm0, %v739_v24, 0  ;;  %v961_v62 = vunpack.c.l.b16 %v3172_v51  ;;  %v992_v11 = vsel %vm267_vm0, %v970_v7, 0  ;;  %vm928_vm11 = vmand %vm905_vm8, %vm927_vm9 }
  0x5d   : > { %v734_v8 = vpack.c.b16 %v726_v2, %v726_v2  ;;  %v735_v9 = vpack.c.b16 %v727_v3, %v727_v3  ;;  %v3733_v29 = vsel %vm267_vm0, %v736_v25, 0  ;;  %v3736_v30 = vsel %vm267_vm0, %v737_v26, 0  ;;  %vm3921_vm14 = vmor %vm928_vm11, %vm925_vm10 }
  0x5e   : > { %v971_v2 = vpack.c.b16 %v963_v52, %v963_v52  ;;  %v972_v3 = vpack.c.b16 %v964_v53, %v964_v53  ;;  %v969_v4 = vpack.c.b16 %v961_v62, %v961_v62  ;;  %v3204_v53 = vld [vmem:[%s3589_s27 + $0xa0] sm:$0xff]  ;;  %v1433_v62 = vunpack.c.l.b16 %v3205_v50 }
  0x5f   : > { %v3703_v13 = vsel %vm267_vm0, %v734_v8, 0  ;;  %v3706_v14 = vsel %vm267_vm0, %v735_v9, 0  ;;  %v1442_v7 = vpack.c.b16 %v1434_v1, %v1434_v1  ;;  %vm930_vm12 = vcmask 1047558  }
  0x60   : > { %v995_v8 = vsel %vm267_vm0, %v971_v2, 0  ;;  %v998_v9 = vsel %vm267_vm0, %v972_v3, 0  ;;  %v989_v10 = vsel %vm267_vm0, %v969_v4, 0  ;;  %v1431_v2 = vunpack.c.l.b16 %v3204_v53 }
  0x61   : > { %v1432_v3 = vunpack.c.h.b16 %v3204_v53  ;;  %v1441_v4 = vpack.c.b16 %v1433_v62, %v1433_v62  ;;  %vm931_vm13 = vsmask.f32 7424 }
  0x62   : > { %vm932_vm15 = vmand %vm930_vm12, %vm931_vm13 }
  0x63   : > { %vm3940_vm2 = vmor %vm932_vm15, %vm3921_vm14 }
  0x69   : > { %3130 = vmatmul.msk.bf16.vlgmr.msra.gmra.mxu0 %vm263_vm1, %v231_v39  ;;  %3131 = vmatmul.msk.bf16.vlgmr.msra.gmra.mxu1 %vm263_vm1, %v231_v39 }
  0x6a   : > { %3132 = vmatmul.msk.bf16.vlgmr.msra.gmra.mxu2 %vm263_vm1, %v231_v39  ;;  %3133 = vmatmul.msk.bf16.vlgmr.msra.gmra.mxu3 %vm263_vm1, %v231_v39 }
  0x6b   : > { %634 = vmatpush.bf16.msra.mxu2 %v3656_v40  ;;  %647 = vmatpush.bf16.msra.mxu3 %v3659_v41 }
  0x6c   : > { %608 = vmatpush.bf16.msra.mxu0 %v3664_v42  ;;  %621 = vmatpush.bf16.msra.mxu1 %v3667_v43 }
  0x79   : > { %3134 = vmatmul.msk.bf16.vlgmr.msrb.gmra.mxu0 %vm263_vm1, %v231_v39  ;;  %3135 = vmatmul.msk.bf16.vlgmr.msrb.gmra.mxu1 %vm263_vm1, %v231_v39 }
  0x7a   : > { %3136 = vmatmul.msk.bf16.vlgmr.msrb.gmra.mxu2 %vm263_vm1, %v231_v39  ;;  %3137 = vmatmul.msk.bf16.vlgmr.msrb.gmra.mxu3 %vm263_vm1, %v231_v39  ;;  %v965_v39 = vpack.c.b16 %v957_v35, %v957_v35 }
  0x7b   : > { %686 = vmatpush.bf16.msrb.mxu2 %v3678_v54  ;;  %699 = vmatpush.bf16.msrb.mxu3 %v3681_v55 }
  0x7c   : > { %660 = vmatpush.bf16.msrb.mxu0 %v3686_v56  ;;  %673 = vmatpush.bf16.msrb.mxu1 %v3689_v57  ;;  %v977_v48 = vsel %vm267_vm0, %v965_v39, 0 }
  0x89   : > { %3143 = vmatmul.msk.bf16.vlgmr.msra.gmra.mxu0 %vm263_vm1, %v3138_v12  ;;  %3144 = vmatmul.msk.bf16.vlgmr.msra.gmra.mxu1 %vm263_vm1, %v3138_v12 }
  0x8a   : > { %3145 = vmatmul.msk.bf16.vlgmr.msra.gmra.mxu2 %vm263_vm1, %v3138_v12  ;;  %3146 = vmatmul.msk.bf16.vlgmr.msra.gmra.mxu3 %vm263_vm1, %v3138_v12 }
  0x8b   : > { %800 = vmatpush.bf16.msra.mxu2 %v3703_v13  ;;  %813 = vmatpush.bf16.msra.mxu3 %v3706_v14 }
  0x8c   : > { %774 = vmatpush.bf16.msra.mxu0 %v3711_v15  ;;  %787 = vmatpush.bf16.msra.mxu1 %v3714_v16 }
  0x99   : > { %3147 = vmatmul.msk.bf16.vlgmr.msrb.gmra.mxu0 %vm263_vm1, %v3138_v12  ;;  %3148 = vmatmul.msk.bf16.vlgmr.msrb.gmra.mxu1 %vm263_vm1, %v3138_v12 }
  0x9a   : > { %3149 = vmatmul.msk.bf16.vlgmr.msrb.gmra.mxu2 %vm263_vm1, %v3138_v12  ;;  %3150 = vmatmul.msk.bf16.vlgmr.msrb.gmra.mxu3 %vm263_vm1, %v3138_v12 }
  0x9b   : > { %852 = vmatpush.bf16.msrb.mxu2 %v3725_v27  ;;  %865 = vmatpush.bf16.msrb.mxu3 %v3728_v28 }
  0x9c   : > { %826 = vmatpush.bf16.msrb.mxu0 %v3733_v29  ;;  %839 = vmatpush.bf16.msrb.mxu1 %v3736_v30 }
  0xa9   : > { %3156 = vmatmul.msk.bf16.vlgmr.msra.gmra.mxu0 %vm263_vm1, %v3151_v45  ;;  %3157 = vmatmul.msk.bf16.vlgmr.msra.gmra.mxu1 %vm263_vm1, %v3151_v45 }
  0xaa   : > { %3158 = vmatmul.msk.bf16.vlgmr.msra.gmra.mxu2 %vm263_vm1, %v3151_v45  ;;  %3159 = vmatmul.msk.bf16.vlgmr.msra.gmra.mxu3 %vm263_vm1, %v3151_v45 }
  0xab   : > { %1033 = vmatpush.bf16.msra.mxu2 %v983_v46  ;;  %1046 = vmatpush.bf16.msra.mxu3 %v986_v47 }
  0xac   : > { %1007 = vmatpush.bf16.msra.mxu0 %v977_v48  ;;  %1020 = vmatpush.bf16.msra.mxu1 %v980_v49 }
  0xb9   : > { %3160 = vmatmul.msk.bf16.vlgmr.msrb.gmra.mxu0 %vm263_vm1, %v3151_v45  ;;  %3161 = vmatmul.msk.bf16.vlgmr.msrb.gmra.mxu1 %vm263_vm1, %v3151_v45 }
  0xba   : > { %3162 = vmatmul.msk.bf16.vlgmr.msrb.gmra.mxu2 %vm263_vm1, %v3151_v45  ;;  %3163 = vmatmul.msk.bf16.vlgmr.msrb.gmra.mxu3 %vm263_vm1, %v3151_v45 }
  0xbb   : > { %1085 = vmatpush.bf16.msrb.mxu2 %v995_v8  ;;  %1098 = vmatpush.bf16.msrb.mxu3 %v998_v9 }
  0xbc   : > { %1059 = vmatpush.bf16.msrb.mxu0 %v989_v10  ;;  %1072 = vmatpush.bf16.msrb.mxu1 %v992_v11  ;;  %v1439_v10 = vpack.c.b16 %v1431_v2, %v1431_v2  ;;  %v1440_v11 = vpack.c.b16 %v1432_v3, %v1432_v3 }
  0xc6   : > { %v301_v12 = vpop.f32.mrf.mxu0  ;;  %v314_v17 = vpop.f32.mrf.mxu1 }
  0xc9   : > { %3174 = vmatmul.msk.bf16.vlgmr.msra.gmra.mxu0 %vm263_vm1, %v3169_v18  ;;  %3175 = vmatmul.msk.bf16.vlgmr.msra.gmra.mxu1 %vm263_vm1, %v3169_v18 }
  0xca   : > { %3176 = vmatmul.msk.bf16.vlgmr.msra.gmra.mxu2 %vm263_vm1, %v3169_v18  ;;  %3177 = vmatmul.msk.bf16.vlgmr.msra.gmra.mxu3 %vm263_vm1, %v3169_v18 }
  0xcb   : > { %1184 = vmatpush.bf16.msra.mxu2 %v3604_v60  ;;  %1197 = vmatpush.bf16.msra.mxu3 %v3607_v61 }
  0xcc   : > { %1158 = vmatpush.bf16.msra.mxu0 %v3598_v58  ;;  %1171 = vmatpush.bf16.msra.mxu1 %v3601_v59 }
  0xcd   : > { %v3778_v19 = vpop.f32.mrf.mxu2  ;;  %v3780_v20 = vpop.f32.mrf.mxu3 }
  0xce   : > { %v303_v21 = vpop.f32.mrf.mxu0  ;;  %v316_v22 = vpop.f32.mrf.mxu1 }
  0xcf   : > { %v3835_v21 = vsel %vm267_vm0, %v1441_v4, 0  ;;  %v3838_v22 = vsel %vm267_vm0, %v1442_v7, 0 }
  0xd5   : > { %v329_v23 = vpop.f32.mrf.mxu2  ;;  %v342_v24 = vpop.f32.mrf.mxu3 }
  0xd6   : > { %v353_v25 = vpop.f32.mrf.mxu0  ;;  %v366_v26 = vpop.f32.mrf.mxu1  ;;  %v3843_v23 = vsel %vm267_vm0, %v1439_v10, 0  ;;  %v3846_v24 = vsel %vm267_vm0, %v1440_v11, 0 }
  0xd9   : > { %3178 = vmatmul.msk.bf16.vlgmr.msrb.gmra.mxu0 %vm263_vm1, %v3169_v18  ;;  %3179 = vmatmul.msk.bf16.vlgmr.msrb.gmra.mxu1 %vm263_vm1, %v3169_v18 }
  0xda   : > { %3180 = vmatmul.msk.bf16.vlgmr.msrb.gmra.mxu2 %vm263_vm1, %v3169_v18  ;;  %3181 = vmatmul.msk.bf16.vlgmr.msrb.gmra.mxu3 %vm263_vm1, %v3169_v18  ;;  %v3190_v18 = vld [vmem:[%s4303_s0 + $0xc] sm:$0x3] }
  0xdb   : > { %1236 = vmatpush.bf16.msrb.mxu2 %v3615_v63  ;;  %1249 = vmatpush.bf16.msrb.mxu3 %v3618_v0  ;;  %v3164_v63 = vld [vmem:[%s4303_s0 + $0x8] sm:$0x3] }
  0xdc   : > { %1210 = vmatpush.bf16.msrb.mxu0 %v3625_v5  ;;  %1223 = vmatpush.bf16.msrb.mxu1 %v3628_v6 }
  0xdd   : > { %v3790_v58 = vpop.f32.mrf.mxu2  ;;  %v3792_v59 = vpop.f32.mrf.mxu3 }
  0xde   : > { %v355_v60 = vpop.f32.mrf.mxu0  ;;  %v368_v61 = vpop.f32.mrf.mxu1 }
  0xe5   : > { %v381_v31 = vpop.f32.mrf.mxu2  ;;  %v394_v32 = vpop.f32.mrf.mxu3 }
  0xe6   : > { %v452_v33 = vpop.f32.mrf.mxu0  ;;  %v465_v34 = vpop.f32.mrf.mxu1  ;;  %v3207_v31 = vld [vmem:[%s3589_s27 + $0xb8] sm:$0xff] }
  0xe7   : > { %v3797_v35 = vadd.f32 %v452_v33, %v301_v12  ;;  %v3799_v0 = vadd.f32 %v465_v34, %v314_v17  ;;  %v1437_v32 = vunpack.c.l.b16 %v3207_v31  ;;  %v1438_v33 = vunpack.c.h.b16 %v3207_v31  ;;  %v3206_v34 = vld [vmem:[%s3589_s27 + $0xb0] sm:$0xff]  ;;  %v3885_v31 = vld [vmem:[%s4303_s0 + $0xe] sm:$0x3] }
  0xe9   : > { %3182 = vmatmul.msk.bf16.vlgmr.msra.gmra.mxu0 %vm263_vm1, %v3164_v63  ;;  %3183 = vmatmul.msk.bf16.vlgmr.msra.gmra.mxu1 %vm263_vm1, %v3164_v63 }
  0xea   : > { %3184 = vmatmul.msk.bf16.vlgmr.msra.gmra.mxu2 %vm263_vm1, %v3164_v63  ;;  %3185 = vmatmul.msk.bf16.vlgmr.msra.gmra.mxu3 %vm263_vm1, %v3164_v63 }
  0xeb   : > { %1341 = vmatpush.bf16.msra.mxu2 %v3703_v13  ;;  %1354 = vmatpush.bf16.msra.mxu3 %v3706_v14 }
  0xec   : > { %1315 = vmatpush.bf16.msra.mxu0 %v3711_v15  ;;  %1328 = vmatpush.bf16.msra.mxu1 %v3714_v16 }
  0xed   : > { %v3809_v5 = vpop.f32.mrf.mxu2  ;;  %v3811_v6 = vpop.f32.mrf.mxu3 }
  0xee   : > { %v454_v36 = vpop.f32.mrf.mxu0  ;;  %v467_v37 = vpop.f32.mrf.mxu1 }
  0xef   : > { %v1436_v36 = vunpack.c.h.b16 %v3206_v34  ;;  %v1445_v37 = vpack.c.b16 %v1437_v32, %v1437_v32 }
  0xf1   : > { %v1444_v50 = vpack.c.b16 %v1436_v36, %v1436_v36  ;;  %v3857_v53 = vsel %vm267_vm0, %v1445_v37, 0 }
  0xf3   : > { %v3868_v2 = vsel %vm267_vm0, %v1444_v50, 0 }
  0xf5   : > { %v480_v38 = vpop.f32.mrf.mxu2  ;;  %v493_v39 = vpop.f32.mrf.mxu3 }
  0xf6   : > { %v504_v44 = vpop.f32.mrf.mxu0  ;;  %v517_v45 = vpop.f32.mrf.mxu1  ;;  %v1446_v38 = vpack.c.b16 %v1438_v33, %v1438_v33 }
  0xf7   : > { %v3813_v46 = vadd.f32 %v504_v44, %v353_v25  ;;  %v3815_v47 = vadd.f32 %v517_v45, %v366_v26 }
  0xf8   : > { %v3860_v62 = vsel %vm267_vm0, %v1446_v38, 0 }
  0xf9   : > { %3186 = vmatmul.msk.bf16.vlgmr.msrb.gmra.mxu0 %vm263_vm1, %v3164_v63  ;;  %3187 = vmatmul.msk.bf16.vlgmr.msrb.gmra.mxu1 %vm263_vm1, %v3164_v63 }
  0xfa   : > { %3188 = vmatmul.msk.bf16.vlgmr.msrb.gmra.mxu2 %vm263_vm1, %v3164_v63  ;;  %3189 = vmatmul.msk.bf16.vlgmr.msrb.gmra.mxu3 %vm263_vm1, %v3164_v63  ;;  %v1435_v63 = vunpack.c.l.b16 %v3206_v34 }
  0xfb   : > { %1393 = vmatpush.bf16.msrb.mxu2 %v3725_v27  ;;  %1406 = vmatpush.bf16.msrb.mxu3 %v3728_v28 }
  0xfc   : > { %1367 = vmatpush.bf16.msrb.mxu0 %v3733_v29  ;;  %1380 = vmatpush.bf16.msrb.mxu1 %v3736_v30  ;;  %v1443_v45 = vpack.c.b16 %v1435_v63, %v1435_v63 }
  0xfd   : > { %v3825_v48 = vpop.f32.mrf.mxu2  ;;  %v3827_v49 = vpop.f32.mrf.mxu3 }
  0xfe   : > { %v506_v51 = vpop.f32.mrf.mxu0  ;;  %v519_v52 = vpop.f32.mrf.mxu1  ;;  %v3865_v1 = vsel %vm267_vm0, %v1443_v45, 0 }
 0x105   : > { %v532_v8 = vpop.f32.mrf.mxu2  ;;  %v545_v9 = vpop.f32.mrf.mxu3 }
 0x106   : > { %v610_v12 = vpop.f32.mrf.mxu0  ;;  %v623_v17 = vpop.f32.mrf.mxu1 }
 0x107   : > { %v705_v9 = vadd.f32 %v610_v12, %v3797_v35  ;;  %v706_v10 = vadd.f32 %v623_v17, %v3799_v0  ;;  %v479_v35 = vadd.f32 %v3809_v5, %v3778_v19  ;;  %v492_v0 = vadd.f32 %v3811_v6, %v3780_v20 }
 0x109   : > { %3195 = vmatmul.msk.bf16.vlgmr.msra.gmra.mxu0 %vm263_vm1, %v3190_v18  ;;  %3196 = vmatmul.msk.bf16.vlgmr.msra.gmra.mxu1 %vm263_vm1, %v3190_v18 }
 0x10a   : > { %3197 = vmatmul.msk.bf16.vlgmr.msra.gmra.mxu2 %vm263_vm1, %v3190_v18  ;;  %3198 = vmatmul.msk.bf16.vlgmr.msra.gmra.mxu3 %vm263_vm1, %v3190_v18 }
 0x10b   : > { %1507 = vmatpush.bf16.msra.mxu2 %v3835_v21  ;;  %1520 = vmatpush.bf16.msra.mxu3 %v3838_v22 }
 0x10c   : > { %1481 = vmatpush.bf16.msra.mxu0 %v3843_v23  ;;  %1494 = vmatpush.bf16.msra.mxu1 %v3846_v24 }
 0x10d   : > { %v636_v25 = vpop.f32.mrf.mxu2  ;;  %v649_v26 = vpop.f32.mrf.mxu3 }
 0x10e   : > { %v612_v60 = vpop.f32.mrf.mxu0  ;;  %v625_v61 = vpop.f32.mrf.mxu1  ;;  %v707_v12 = vadd.f32 %v636_v25, %v479_v35  ;;  %v708_v17 = vadd.f32 %v649_v26, %v492_v0 }
 0x115   : > { %v638_v39 = vpop.f32.mrf.mxu2  ;;  %v651_v44 = vpop.f32.mrf.mxu3 }
 0x116   : > { %v662_v51 = vpop.f32.mrf.mxu0  ;;  %v675_v52 = vpop.f32.mrf.mxu1 }
 0x117   : > { %v709_v26 = vadd.f32 %v662_v51, %v3813_v46  ;;  %v710_v36 = vadd.f32 %v675_v52, %v3815_v47  ;;  %v531_v47 = vadd.f32 %v3825_v48, %v3790_v58  ;;  %v544_v51 = vadd.f32 %v3827_v49, %v3792_v59  ;;  %v934_v59 = vld [vmem:[%s3944_s9] sm:$0xff] }
 0x119   : > { %3199 = vmatmul.msk.bf16.vlgmr.msrb.gmra.mxu0 %vm263_vm1, %v3190_v18  ;;  %3200 = vmatmul.msk.bf16.vlgmr.msrb.gmra.mxu1 %vm263_vm1, %v3190_v18 }
 0x11a   : > { %3201 = vmatmul.msk.bf16.vlgmr.msrb.gmra.mxu2 %vm263_vm1, %v3190_v18  ;;  %3202 = vmatmul.msk.bf16.vlgmr.msrb.gmra.mxu3 %vm263_vm1, %v3190_v18 }
 0x11b   : > { %1559 = vmatpush.bf16.msrb.mxu2 %v3857_v53  ;;  %1572 = vmatpush.bf16.msrb.mxu3 %v3860_v62 }
 0x11c   : > { %1533 = vmatpush.bf16.msrb.mxu0 %v3865_v1  ;;  %1546 = vmatpush.bf16.msrb.mxu1 %v3868_v2 }
 0x11d   : > { %v3876_v3 = vpop.f32.mrf.mxu2  ;;  %v3878_v4 = vpop.f32.mrf.mxu3 }
 0x11e   : > { %v664_v7 = vpop.f32.mrf.mxu0  ;;  %v677_v8 = vpop.f32.mrf.mxu1  ;;  %v711_v58 = vadd.f32 %v3876_v3, %v531_v47  ;;  %v712_v49 = vadd.f32 %v3878_v4, %v544_v51 }
 0x11f   : > { %v3248_v7 = vld [vmem:[%s3589_s27 + $0xc8] sm:$0xff] }
 0x120   : > { %v1959_v47 = vunpack.c.h.b16 %v3248_v7 }
 0x125   : > { %v690_v11 = vpop.f32.mrf.mxu2  ;;  %v703_v18 = vpop.f32.mrf.mxu3 }
 0x126   : > { %v776_v60 = vpop.f32.mrf.mxu0  ;;  %v789_v61 = vpop.f32.mrf.mxu1 }
 0x127   : > { %v871_v32 = vadd.f32 %v776_v60, %v705_v9  ;;  %v872_v33 = vadd.f32 %v789_v61, %v706_v10 }
 0x129   : > { %3365 = vtanh.f32 %v871_v32  ;;  %3208 = vmatmul.msk.bf16.vlgmr.msra.gmra.mxu0 %vm263_vm1, %v3885_v31  ;;  %3209 = vmatmul.msk.bf16.vlgmr.msra.gmra.mxu1 %vm263_vm1, %v3885_v31 }
 0x12a   : > { %3367 = vtanh.f32 %v872_v33  ;;  %3210 = vmatmul.msk.bf16.vlgmr.msra.gmra.mxu2 %vm263_vm1, %v3885_v31  ;;  %3211 = vmatmul.msk.bf16.vlgmr.msra.gmra.mxu3 %vm263_vm1, %v3885_v31 }
 0x12b   : > { %1723 = vmatpush.bf16.msra.mxu2 %v3703_v13  ;;  %1736 = vmatpush.bf16.msra.mxu3 %v3706_v14 }
 0x12c   : > { %1697 = vmatpush.bf16.msra.mxu0 %v3711_v15  ;;  %1710 = vmatpush.bf16.msra.mxu1 %v3714_v16 }
 0x12d   : > { %v802_v19 = vpop.f32.mrf.mxu2  ;;  %v815_v20 = vpop.f32.mrf.mxu3 }
 0x12e   : > { %v873_v5 = vadd.f32 %v802_v19, %v707_v12  ;;  %v874_v6 = vadd.f32 %v815_v20, %v708_v17  ;;  %v778_v34 = vpop.f32.mrf.mxu0  ;;  %v791_v63 = vpop.f32.mrf.mxu1 }
 0x12f   : > { %v3366_v13 = vpop.eup %3365 }
 0x130   : > { %v3368_v25 = vpop.eup %3367  ;;  %3369 = vtanh.f32 %v873_v5  ;;  %v3225_v5 = vld [vmem:[%s4303_s0 + $0x12] sm:$0x3] }
 0x131   : > { %v887_v16 = vpack.c.bf16 %v3368_v25, %v3366_v13  ;;  %3371 = vtanh.f32 %v874_v6  ;;  %v937_v25 = vld [vmem:[%s3944_s9 + $0x8] sm:$0xff] }
 0x133   : > { %v895_v10 = vrot.slane %v887_v16, 2 }
 0x135   : > { %v804_v37 = vpop.f32.mrf.mxu2  ;;  %v817_v38 = vpop.f32.mrf.mxu3  ;;  %v904_v18 = vsel %vm901_vm5, %v887_v16, %v895_v10  ;;  %v3247_v10 = vld [vmem:[%s3589_s27 + $0xc0] sm:$0xff] }
 0x136   : > { %v3370_v39 = vpop.eup %3369  ;;  %v828_v44 = vpop.f32.mrf.mxu0  ;;  %v1956_v51 = vunpack.c.l.b16 %v3247_v10 }
 0x137   : > { %v841_v45 = vpop.f32.mrf.mxu1  ;;  %v3372_v50 = vpop.eup %3371  ;;  %v875_v8 = vadd.f32 %v828_v44, %v709_v26 }
 0x138   : > { %v876_v9 = vadd.f32 %v841_v45, %v710_v36  ;;  %v888_v46 = vpack.c.bf16 %v3372_v50, %v3370_v39 }
 0x139   : > { %3373 = vtanh.f32 %v875_v8  ;;  %3212 = vmatmul.msk.bf16.vlgmr.msrb.gmra.mxu0 %vm263_vm1, %v3885_v31  ;;  %3213 = vmatmul.msk.bf16.vlgmr.msrb.gmra.mxu1 %vm263_vm1, %v3885_v31 }
 0x13a   : > { %v896_v52 = vrot.slane %v888_v46, 4  ;;  %v897_v11 = vrot.slane %v888_v46, 6  ;;  %3375 = vtanh.f32 %v876_v9  ;;  %3214 = vmatmul.msk.bf16.vlgmr.msrb.gmra.mxu2 %vm263_vm1, %v3885_v31  ;;  %3215 = vmatmul.msk.bf16.vlgmr.msrb.gmra.mxu3 %vm263_vm1, %v3885_v31  ;;  %v1958_v46 = vunpack.c.l.b16 %v3248_v7 }
 0x13b   : > { %1775 = vmatpush.bf16.msrb.mxu2 %v3725_v27  ;;  %1788 = vmatpush.bf16.msrb.mxu3 %v3728_v28 }
 0x13c   : > { %v908_v3 = vsel %vm905_vm8, %v896_v52, %v897_v11  ;;  %1749 = vmatpush.bf16.msrb.mxu0 %v3733_v29  ;;  %1762 = vmatpush.bf16.msrb.mxu1 %v3736_v30  ;;  %v1957_v52 = vunpack.c.h.b16 %v3247_v10  ;;  %v1966_v11 = vpack.c.b16 %v1958_v46, %v1958_v46 }
 0x13d   : > { %v909_v60 = vsel %vm267_vm0, %v904_v18, %v908_v3  ;;  %v854_v61 = vpop.f32.mrf.mxu2  ;;  %v867_v31 = vpop.f32.mrf.mxu3  ;;  %v3220_v18 = vld [vmem:[%s4303_s0 + $0x10] sm:$0x3] }
 0x13e   : > { %v935_v27 = vsel %vm3940_vm2, %v909_v60, %v934_v59  ;;  %v877_v32 = vadd.f32 %v854_v61, %v711_v58  ;;  %v878_v33 = vadd.f32 %v867_v31, %v712_v49  ;;  %v830_v28 = vpop.f32.mrf.mxu0  ;;  %v1964_v59 = vpack.c.b16 %v1956_v51, %v1956_v51 }
 0x13f   : > { %v843_v35 = vpop.f32.mrf.mxu1  ;;  %v3374_v4 = vpop.eup %3373  ;;  %936 = vst [vmem:[%s3944_s9] sm:$0xff] %v935_v27  ;;  %v1982_v61 = vsel %vm267_vm0, %v1966_v11, 0 }
 0x140   : > { %v3376_v0 = vpop.eup %3375  ;;  %3377 = vtanh.f32 %v877_v32  ;;  %v1976_v27 = vsel %vm267_vm0, %v1964_v59, 0  ;;  %v3250_v35 = vld [vmem:[%s3589_s27 + $0xd8] sm:$0xff] }
 0x141   : > { %v889_v12 = vpack.c.bf16 %v3376_v0, %v3374_v4  ;;  %3379 = vtanh.f32 %v878_v33 }
 0x143   : > { %v898_v34 = vrot.slane %v889_v12, 2 }
 0x145   : > { %v856_v29 = vpop.f32.mrf.mxu2  ;;  %v869_v30 = vpop.f32.mrf.mxu3  ;;  %v912_v15 = vsel %vm901_vm5, %v889_v12, %v898_v34  ;;  %v3249_v12 = vld [vmem:[%s3589_s27 + $0xd0] sm:$0xff] }
 0x146   : > { %v3378_v17 = vpop.eup %3377  ;;  %v1009_v19 = vpop.f32.mrf.mxu0  ;;  %v1962_v29 = vunpack.c.l.b16 %v3250_v35  ;;  %v1963_v30 = vunpack.c.h.b16 %v3250_v35 }
 0x147   : > { %v1022_v20 = vpop.f32.mrf.mxu1  ;;  %v3380_v6 = vpop.eup %3379 }
 0x148   : > { %v890_v63 = vpack.c.bf16 %v3380_v6, %v3378_v17  ;;  %v1960_v17 = vunpack.c.l.b16 %v3249_v12 }
 0x149   : > { %3230 = vmatmul.msk.bf16.vlgmr.msra.gmra.mxu0 %vm263_vm1, %v3225_v5  ;;  %3231 = vmatmul.msk.bf16.vlgmr.msra.gmra.mxu1 %vm263_vm1, %v3225_v5 }
 0x14a   : > { %v899_v13 = vrot.slane %v890_v63, 4  ;;  %v900_v14 = vrot.slane %v890_v63, 6  ;;  %3232 = vmatmul.msk.bf16.vlgmr.msra.gmra.mxu2 %vm263_vm1, %v3225_v5  ;;  %3233 = vmatmul.msk.bf16.vlgmr.msra.gmra.mxu3 %vm263_vm1, %v3225_v5  ;;  %v1968_v63 = vpack.c.b16 %v1960_v17, %v1960_v17 }
 0x14b   : > { %1874 = vmatpush.bf16.msra.mxu2 %v3656_v40  ;;  %1887 = vmatpush.bf16.msra.mxu3 %v3659_v41 }
 0x14c   : > { %v915_v16 = vsel %vm905_vm8, %v899_v13, %v900_v14  ;;  %1848 = vmatpush.bf16.msra.mxu0 %v3664_v42  ;;  %1861 = vmatpush.bf16.msra.mxu1 %v3667_v43 }
 0x14d   : > { %v916_v26 = vsel %vm267_vm0, %v912_v15, %v915_v16  ;;  %v3973_v36 = vpop.f32.mrf.mxu2  ;;  %v3975_v37 = vpop.f32.mrf.mxu3 }
 0x14e   : > { %v938_v38 = vsel %vm3940_vm2, %v916_v26, %v937_v25  ;;  %v1011_v40 = vpop.f32.mrf.mxu0 }
 0x14f   : > { %v1024_v39 = vpop.f32.mrf.mxu1  ;;  %939 = vst [vmem:[%s3944_s9 + $0x8] sm:$0xff] %v938_v38  ;;  %v1988_v40 = vsel %vm267_vm0, %v1968_v63, 0 }
 0x155   : > { %v1037_v41 = vpop.f32.mrf.mxu2  ;;  %v1050_v44 = vpop.f32.mrf.mxu3 }
 0x156   : > { %v1061_v45 = vpop.f32.mrf.mxu0 }
 0x157   : > { %v1074_v42 = vpop.f32.mrf.mxu1 }
 0x159   : > { %3234 = vmatmul.msk.bf16.vlgmr.msrb.gmra.mxu0 %vm263_vm1, %v3225_v5  ;;  %3235 = vmatmul.msk.bf16.vlgmr.msrb.gmra.mxu1 %vm263_vm1, %v3225_v5 }
 0x15a   : > { %3236 = vmatmul.msk.bf16.vlgmr.msrb.gmra.mxu2 %vm263_vm1, %v3225_v5  ;;  %3237 = vmatmul.msk.bf16.vlgmr.msrb.gmra.mxu3 %vm263_vm1, %v3225_v5  ;;  %v1971_v5 = vpack.c.b16 %v1963_v30, %v1963_v30 }
 0x15b   : > { %1926 = vmatpush.bf16.msrb.mxu2 %v3678_v54  ;;  %1939 = vmatpush.bf16.msrb.mxu3 %v3681_v55  ;;  %v1967_v54 = vpack.c.b16 %v1959_v47, %v1959_v47 }
 0x15c   : > { %1900 = vmatpush.bf16.msrb.mxu0 %v3686_v56  ;;  %1913 = vmatpush.bf16.msrb.mxu1 %v3689_v57  ;;  %v1965_v56 = vpack.c.b16 %v1957_v52, %v1957_v52  ;;  %v1997_v38 = vsel %vm267_vm0, %v1971_v5, 0 }
 0x15d   : > { %v3988_v43 = vpop.f32.mrf.mxu2  ;;  %v3990_v50 = vpop.f32.mrf.mxu3  ;;  %v1985_v31 = vsel %vm267_vm0, %v1967_v54, 0 }
 0x15e   : > { %v1063_v8 = vpop.f32.mrf.mxu0  ;;  %v1979_v32 = vsel %vm267_vm0, %v1965_v56, 0 }
 0x15f   : > { %v1076_v9 = vpop.f32.mrf.mxu1  ;;  %v3260_v8 = vld [vmem:[%s3589_s27 + $0xe0] sm:$0xff] }
 0x160   : > { %v2122_v46 = vunpack.c.l.b16 %v3260_v8  ;;  %v2123_v47 = vunpack.c.h.b16 %v3260_v8 }
 0x165   : > { %v1089_v58 = vpop.f32.mrf.mxu2  ;;  %v1102_v55 = vpop.f32.mrf.mxu3 }
 0x166   : > { %v1160_v49 = vpop.f32.mrf.mxu0  ;;  %v2130_v58 = vpack.c.b16 %v2122_v46, %v2122_v46  ;;  %v2131_v55 = vpack.c.b16 %v2123_v47, %v2123_v47 }
 0x167   : > { %v1173_v57 = vpop.f32.mrf.mxu1  ;;  %v3997_v3 = vadd.f32 %v1160_v49, %v1009_v19  ;;  %v1961_v19 = vunpack.c.h.b16 %v3249_v12  ;;  %v3246_v49 = vld [vmem:[%s4303_s0 + $0x14] sm:$0x3] }
 0x168   : > { %v3999_v60 = vadd.f32 %v1173_v57, %v1022_v20  ;;  %v1970_v20 = vpack.c.b16 %v1962_v29, %v1962_v29  ;;  %v3262_v12 = vld [vmem:[%s3589_s27 + $0xf0] sm:$0xff] }
 0x169   : > { %3238 = vmatmul.msk.bf16.vlgmr.msra.gmra.mxu0 %vm263_vm1, %v3220_v18  ;;  %3239 = vmatmul.msk.bf16.vlgmr.msra.gmra.mxu1 %vm263_vm1, %v3220_v18  ;;  %v1969_v13 = vpack.c.b16 %v1961_v19, %v1961_v19  ;;  %v2126_v17 = vunpack.c.l.b16 %v3262_v12  ;;  %v2127_v19 = vunpack.c.h.b16 %v3262_v12 }
 0x16a   : > { %3240 = vmatmul.msk.bf16.vlgmr.msra.gmra.mxu2 %vm263_vm1, %v3220_v18  ;;  %3241 = vmatmul.msk.bf16.vlgmr.msra.gmra.mxu3 %vm263_vm1, %v3220_v18  ;;  %v1994_v26 = vsel %vm267_vm0, %v1970_v20, 0 }
 0x16b   : > { %2032 = vmatpush.bf16.msra.mxu2 %v1982_v61  ;;  %2045 = vmatpush.bf16.msra.mxu3 %v1985_v31  ;;  %v1991_v39 = vsel %vm267_vm0, %v1969_v13, 0  ;;  %v4045_v61 = vsel %vm267_vm0, %v2130_v58, 0  ;;  %v4048_v31 = vsel %vm267_vm0, %v2131_v55, 0  ;;  %v2134_v63 = vpack.c.b16 %v2126_v17, %v2126_v17 }
 0x16c   : > { %2006 = vmatpush.bf16.msra.mxu0 %v1976_v27  ;;  %2019 = vmatpush.bf16.msra.mxu1 %v1979_v32  ;;  %v2135_v13 = vpack.c.b16 %v2127_v19, %v2127_v19 }
 0x16d   : > { %v4009_v33 = vpop.f32.mrf.mxu2  ;;  %v4011_v28 = vpop.f32.mrf.mxu3 }
 0x16e   : > { %v1162_v4 = vpop.f32.mrf.mxu0 }
 0x16f   : > { %v1175_v0 = vpop.f32.mrf.mxu1 }
 0x170   : > { %v3263_v0 = vld [vmem:[%s3589_s27 + $0xf8] sm:$0xff] }
 0x171   : > { %v2128_v29 = vunpack.c.l.b16 %v3263_v0  ;;  %v2129_v30 = vunpack.c.h.b16 %v3263_v0 }
 0x175   : > { %v1188_v6 = vpop.f32.mrf.mxu2  ;;  %v1201_v34 = vpop.f32.mrf.mxu3 }
 0x176   : > { %v1212_v14 = vpop.f32.mrf.mxu0  ;;  %v2136_v6 = vpack.c.b16 %v2128_v29, %v2128_v29  ;;  %v2137_v34 = vpack.c.b16 %v2129_v30, %v2129_v30 }
 0x177   : > { %v1225_v25 = vpop.f32.mrf.mxu1  ;;  %v4015_v15 = vadd.f32 %v1212_v14, %v1061_v45  ;;  %v3261_v45 = vld [vmem:[%s3589_s27 + $0xe8] sm:$0xff] }
 0x178   : > { %v4017_v16 = vadd.f32 %v1225_v25, %v1074_v42  ;;  %v2124_v9 = vunpack.c.l.b16 %v3261_v45  ;;  %v2125_v10 = vunpack.c.h.b16 %v3261_v45 }
 0x179   : > { %3242 = vmatmul.msk.bf16.vlgmr.msrb.gmra.mxu0 %vm263_vm1, %v3220_v18  ;;  %3243 = vmatmul.msk.bf16.vlgmr.msrb.gmra.mxu1 %vm263_vm1, %v3220_v18 }
 0x17a   : > { %3244 = vmatmul.msk.bf16.vlgmr.msrb.gmra.mxu2 %vm263_vm1, %v3220_v18  ;;  %3245 = vmatmul.msk.bf16.vlgmr.msrb.gmra.mxu3 %vm263_vm1, %v3220_v18  ;;  %v2132_v51 = vpack.c.b16 %v2124_v9, %v2124_v9  ;;  %v2133_v52 = vpack.c.b16 %v2125_v10, %v2125_v10 }
 0x17b   : > { %2084 = vmatpush.bf16.msrb.mxu2 %v1994_v26  ;;  %2097 = vmatpush.bf16.msrb.mxu3 %v1997_v38  ;;  %v4059_v26 = vsel %vm267_vm0, %v2136_v6, 0  ;;  %v4062_v38 = vsel %vm267_vm0, %v2137_v34, 0 }
 0x17c   : > { %2058 = vmatpush.bf16.msrb.mxu0 %v1988_v40  ;;  %2071 = vmatpush.bf16.msrb.mxu1 %v1991_v39  ;;  %v4037_v57 = vsel %vm267_vm0, %v2132_v51, 0  ;;  %v4040_v18 = vsel %vm267_vm0, %v2133_v52, 0  ;;  %v4067_v40 = vsel %vm267_vm0, %v2134_v63, 0  ;;  %v4070_v39 = vsel %vm267_vm0, %v2135_v13, 0  ;;  %v3216_v63 = vld [vmem:[%s3944_s9 + $0x10] sm:$0xff] }
 0x17d   : > { %v4027_v41 = vpop.f32.mrf.mxu2  ;;  %v4029_v44 = vpop.f32.mrf.mxu3 }
 0x17e   : > { %v1214_v42 = vpop.f32.mrf.mxu0 }
 0x17f   : > { %v1227_v7 = vpop.f32.mrf.mxu1 }
 0x185   : > { %v1240_v11 = vpop.f32.mrf.mxu2  ;;  %v1253_v54 = vpop.f32.mrf.mxu3 }
 0x186   : > { %v1317_v59 = vpop.f32.mrf.mxu0  ;;  %v3259_v11 = vld [vmem:[%s4303_s0 + $0x16] sm:$0x3] }
 0x187   : > { %v1330_v56 = vpop.f32.mrf.mxu1  ;;  %v1412_v9 = vadd.f32 %v1317_v59, %v3997_v3  ;;  %v1187_v3 = vadd.f32 %v4009_v33, %v3973_v36 }
 0x188   : > { %v1413_v10 = vadd.f32 %v1330_v56, %v3999_v60  ;;  %v1200_v60 = vadd.f32 %v4011_v28, %v3975_v37 }
 0x189   : > { %3251 = vmatmul.msk.bf16.vlgmr.msra.gmra.mxu0 %vm263_vm1, %v3246_v49  ;;  %3252 = vmatmul.msk.bf16.vlgmr.msra.gmra.mxu1 %vm263_vm1, %v3246_v49 }
 0x18a   : > { %3253 = vmatmul.msk.bf16.vlgmr.msra.gmra.mxu2 %vm263_vm1, %v3246_v49  ;;  %3254 = vmatmul.msk.bf16.vlgmr.msra.gmra.mxu3 %vm263_vm1, %v3246_v49 }
 0x18b   : > { %2198 = vmatpush.bf16.msra.mxu2 %v4037_v57  ;;  %2211 = vmatpush.bf16.msra.mxu3 %v4040_v18 }
 0x18c   : > { %2172 = vmatpush.bf16.msra.mxu0 %v4045_v61  ;;  %2185 = vmatpush.bf16.msra.mxu1 %v4048_v31 }
 0x18d   : > { %v1343_v27 = vpop.f32.mrf.mxu2  ;;  %v1356_v32 = vpop.f32.mrf.mxu3 }
 0x18e   : > { %v1319_v35 = vpop.f32.mrf.mxu0  ;;  %v1414_v55 = vadd.f32 %v1343_v27, %v1187_v3  ;;  %v1415_v59 = vadd.f32 %v1356_v32, %v1200_v60 }
 0x18f   : > { %v1332_v4 = vpop.f32.mrf.mxu1 }
 0x195   : > { %v1345_v20 = vpop.f32.mrf.mxu2  ;;  %v1358_v5 = vpop.f32.mrf.mxu3 }
 0x196   : > { %v1369_v14 = vpop.f32.mrf.mxu0  ;;  %v1239_v5 = vadd.f32 %v4027_v41, %v3988_v43 }
 0x197   : > { %v1382_v25 = vpop.f32.mrf.mxu1 }
 0x199   : > { %3255 = vmatmul.msk.bf16.vlgmr.msrb.gmra.mxu0 %vm263_vm1, %v3246_v49  ;;  %3256 = vmatmul.msk.bf16.vlgmr.msrb.gmra.mxu1 %vm263_vm1, %v3246_v49 }
 0x19a   : > { %3257 = vmatmul.msk.bf16.vlgmr.msrb.gmra.mxu2 %vm263_vm1, %v3246_v49  ;;  %3258 = vmatmul.msk.bf16.vlgmr.msrb.gmra.mxu3 %vm263_vm1, %v3246_v49 }
 0x19b   : > { %2250 = vmatpush.bf16.msrb.mxu2 %v4059_v26  ;;  %2263 = vmatpush.bf16.msrb.mxu3 %v4062_v38 }
 0x19c   : > { %2224 = vmatpush.bf16.msrb.mxu0 %v4067_v40  ;;  %2237 = vmatpush.bf16.msrb.mxu1 %v4070_v39 }
 0x19d   : > { %v1395_v45 = vpop.f32.mrf.mxu2  ;;  %v4078_v42 = vpop.f32.mrf.mxu3 }
 0x19e   : > { %v1371_v7 = vpop.f32.mrf.mxu0  ;;  %v1418_v34 = vadd.f32 %v1395_v45, %v1239_v5  ;;  %v3279_v5 = vld [vmem:[%s3589_s27 + $0x90] sm:$0xff] }
 0x19f   : > { %v1384_v8 = vpop.f32.mrf.mxu1 }
 0x1a0   : > { %v3277_v8 = vld [vmem:[%s3589_s27 + $0x80] sm:$0xff] }
 0x1a5   : > { %v1397_v46 = vpop.f32.mrf.mxu2  ;;  %v1410_v47 = vpop.f32.mrf.mxu3 }
 0x1a6   : > { %v1483_v51 = vpop.f32.mrf.mxu0  ;;  %v2489_v47 = vunpack.c.l.b16 %v3277_v8 }
 0x1a7   : > { %v1496_v52 = vpop.f32.mrf.mxu1  ;;  %v1578_v54 = vadd.f32 %v1483_v51, %v1412_v9  ;;  %v2490_v51 = vunpack.c.h.b16 %v3277_v8 }
 0x1a8   : > { %v1579_v58 = vadd.f32 %v1496_v52, %v1413_v10  ;;  %v2497_v3 = vpack.c.b16 %v2489_v47, %v2489_v47 }
 0x1a9   : > { %3381 = vtanh.f32 %v1578_v54  ;;  %3264 = vmatmul.msk.bf16.vlgmr.msra.gmra.mxu0 %vm263_vm1, %v3259_v11  ;;  %3265 = vmatmul.msk.bf16.vlgmr.msra.gmra.mxu1 %vm263_vm1, %v3259_v11  ;;  %v2498_v60 = vpack.c.b16 %v2490_v51, %v2490_v51  ;;  %v3276_v51 = vld [vmem:[%s4303_s0 + $0x18] sm:$0x3] }
 0x1aa   : > { %3383 = vtanh.f32 %v1579_v58  ;;  %3266 = vmatmul.msk.bf16.vlgmr.msra.gmra.mxu2 %vm263_vm1, %v3259_v11  ;;  %3267 = vmatmul.msk.bf16.vlgmr.msra.gmra.mxu3 %vm263_vm1, %v3259_v11 }
 0x1ab   : > { %2414 = vmatpush.bf16.msra.mxu2 %v3835_v21  ;;  %2427 = vmatpush.bf16.msra.mxu3 %v3838_v22  ;;  %v1416_v21 = vadd.f32 %v1369_v14, %v4015_v15  ;;  %v1417_v22 = vadd.f32 %v1382_v25, %v4017_v16  ;;  %v1252_v15 = vadd.f32 %v4029_v44, %v3990_v50  ;;  %v3278_v25 = vld [vmem:[%s3589_s27 + $0x88] sm:$0xff] }
 0x1ac   : > { %2388 = vmatpush.bf16.msra.mxu0 %v3843_v23  ;;  %2401 = vmatpush.bf16.msra.mxu1 %v3846_v24  ;;  %v2492_v46 = vunpack.c.h.b16 %v3278_v25 }
 0x1ad   : > { %v1509_v56 = vpop.f32.mrf.mxu2  ;;  %v1522_v36 = vpop.f32.mrf.mxu3  ;;  %v1419_v43 = vadd.f32 %v4078_v42, %v1252_v15 }
 0x1ae   : > { %v1580_v33 = vadd.f32 %v1509_v56, %v1414_v55  ;;  %v1581_v49 = vadd.f32 %v1522_v36, %v1415_v59  ;;  %v1485_v37 = vpop.f32.mrf.mxu0  ;;  %v3281_v36 = vld [vmem:[%s4303_s0 + $0x1a] sm:$0x3] }
 0x1af   : > { %v1498_v28 = vpop.f32.mrf.mxu1  ;;  %v3382_v35 = vpop.eup %3381 }
 0x1b0   : > { %v3384_v4 = vpop.eup %3383  ;;  %3385 = vtanh.f32 %v1580_v33 }
 0x1b1   : > { %v1594_v0 = vpack.c.bf16 %v3384_v4, %v3382_v35  ;;  %3387 = vtanh.f32 %v1581_v49  ;;  %v2509_v4 = vsel %vm267_vm0, %v2497_v3, 0 }
 0x1b3   : > { %v1602_v19 = vrot.slane %v1594_v0, 2 }
 0x1b5   : > { %v1511_v27 = vpop.f32.mrf.mxu2  ;;  %v1524_v32 = vpop.f32.mrf.mxu3  ;;  %v1610_v50 = vsel %vm901_vm5, %v1594_v0, %v1602_v19  ;;  %v2512_v0 = vsel %vm267_vm0, %v2498_v60, 0 }
 0x1b6   : > { %v3386_v23 = vpop.eup %3385  ;;  %v1535_v12 = vpop.f32.mrf.mxu0  ;;  %v3218_v27 = vld [vmem:[%s3944_s9 + $0x18] sm:$0xff] }
 0x1b7   : > { %v1548_v24 = vpop.f32.mrf.mxu1  ;;  %v3388_v29 = vpop.eup %3387  ;;  %v1582_v30 = vadd.f32 %v1535_v12, %v1416_v21 }
 0x1b8   : > { %v1583_v17 = vadd.f32 %v1548_v24, %v1417_v22  ;;  %v1595_v20 = vpack.c.bf16 %v3388_v29, %v3386_v23 }
 0x1b9   : > { %3389 = vtanh.f32 %v1582_v30  ;;  %3268 = vmatmul.msk.bf16.vlgmr.msrb.gmra.mxu0 %vm263_vm1, %v3259_v11  ;;  %3269 = vmatmul.msk.bf16.vlgmr.msrb.gmra.mxu1 %vm263_vm1, %v3259_v11  ;;  %v3280_v30 = vld [vmem:[%s3589_s27 + $0x98] sm:$0xff] }
 0x1ba   : > { %v1603_v16 = vrot.slane %v1595_v20, 4  ;;  %v1604_v6 = vrot.slane %v1595_v20, 6  ;;  %3391 = vtanh.f32 %v1583_v17  ;;  %3270 = vmatmul.msk.bf16.vlgmr.msrb.gmra.mxu2 %vm263_vm1, %v3259_v11  ;;  %3271 = vmatmul.msk.bf16.vlgmr.msrb.gmra.mxu3 %vm263_vm1, %v3259_v11  ;;  %v2500_v11 = vpack.c.b16 %v2492_v46, %v2492_v46 }
 0x1bb   : > { %2466 = vmatpush.bf16.msrb.mxu2 %v3857_v53  ;;  %2479 = vmatpush.bf16.msrb.mxu3 %v3860_v62  ;;  %v2495_v15 = vunpack.c.l.b16 %v3280_v30 }
 0x1bc   : > { %v1613_v41 = vsel %vm905_vm8, %v1603_v16, %v1604_v6  ;;  %2440 = vmatpush.bf16.msrb.mxu0 %v3865_v1  ;;  %2453 = vmatpush.bf16.msrb.mxu1 %v3868_v2  ;;  %v2491_v1 = vunpack.c.l.b16 %v3278_v25  ;;  %v2518_v35 = vsel %vm267_vm0, %v2500_v11, 0  ;;  %v2496_v16 = vunpack.c.h.b16 %v3280_v30 }
 0x1bd   : > { %v1614_v44 = vsel %vm267_vm0, %v1610_v50, %v1613_v41  ;;  %v1561_v13 = vpop.f32.mrf.mxu2  ;;  %v1574_v14 = vpop.f32.mrf.mxu3  ;;  %v2493_v6 = vunpack.c.l.b16 %v3279_v5 }
 0x1be   : > { %v1626_v53 = vsel %vm3940_vm2, %v1614_v44, %v3216_v63  ;;  %v1584_v62 = vadd.f32 %v1561_v13, %v1418_v34  ;;  %v1585_v45 = vadd.f32 %v1574_v14, %v1419_v43  ;;  %v1537_v42 = vpop.f32.mrf.mxu0  ;;  %v2499_v52 = vpack.c.b16 %v2491_v1, %v2491_v1 }
 0x1bf   : > { %v1550_v7 = vpop.f32.mrf.mxu1  ;;  %v3390_v9 = vpop.eup %3389  ;;  %3217 = vst [vmem:[%s3944_s9 + $0x10] sm:$0xff] %v1626_v53  ;;  %v2494_v34 = vunpack.c.h.b16 %v3279_v5  ;;  %v2503_v63 = vpack.c.b16 %v2495_v15, %v2495_v15  ;;  %v2504_v43 = vpack.c.b16 %v2496_v16, %v2496_v16  ;;  %v2501_v44 = vpack.c.b16 %v2493_v6, %v2493_v6 }
 0x1c0   : > { %v3392_v10 = vpop.eup %3391  ;;  %3393 = vtanh.f32 %v1584_v62  ;;  %v2515_v28 = vsel %vm267_vm0, %v2499_v52, 0 }
 0x1c1   : > { %v1596_v2 = vpack.c.bf16 %v3392_v10, %v3390_v9  ;;  %3395 = vtanh.f32 %v1585_v45  ;;  %v2502_v13 = vpack.c.b16 %v2494_v34, %v2494_v34  ;;  %v2527_v53 = vsel %vm267_vm0, %v2503_v63, 0  ;;  %v3319_v34 = vld [vmem:[%s3589_s27 + $0x118] sm:$0xff]  ;;  %v3318_v63 = vld [vmem:[%s3589_s27 + $0x110] sm:$0xff] }
 0x1c2   : > { %v2530_v62 = vsel %vm267_vm0, %v2504_v43, 0  ;;  %v2521_v45 = vsel %vm267_vm0, %v2501_v44, 0  ;;  %v2818_v43 = vunpack.c.l.b16 %v3319_v34  ;;  %v2817_v44 = vunpack.c.h.b16 %v3318_v63 }
 0x1c3   : > { %v1605_v49 = vrot.slane %v1596_v2, 2  ;;  %v2524_v42 = vsel %vm267_vm0, %v2502_v13, 0 }
 0x1c5   : > { %v1563_v54 = vpop.f32.mrf.mxu2  ;;  %v1576_v58 = vpop.f32.mrf.mxu3  ;;  %v1617_v32 = vsel %vm901_vm5, %v1596_v2, %v1605_v49 }
 0x1c6   : > { %v3394_v55 = vpop.eup %3393  ;;  %v4121_v59 = vpop.f32.mrf.mxu0  ;;  %v3038_v48 = vld [vmem:[%s3944_s9 + $0x10] sm:$0xff] (%p3498_p5) }
 0x1c7   : > { %v4123_v56 = vpop.f32.mrf.mxu1  ;;  %v3396_v33 = vpop.eup %3395  ;;  %3039 = vst [vmem:[%s3021_s22 + $0x20] sm:$0xff] (%p3498_p5), %v3038_v48 }
 0x1c8   : > { %v1597_v37 = vpack.c.bf16 %v3396_v33, %v3394_v55 }
 0x1c9   : > { %3286 = vmatmul.msk.bf16.vlgmr.msra.gmra.mxu0 %vm263_vm1, %v3281_v36  ;;  %3287 = vmatmul.msk.bf16.vlgmr.msra.gmra.mxu1 %vm263_vm1, %v3281_v36 }
 0x1ca   : > { %v1606_v21 = vrot.slane %v1597_v37, 4  ;;  %v1607_v22 = vrot.slane %v1597_v37, 6  ;;  %3288 = vmatmul.msk.bf16.vlgmr.msra.gmra.mxu2 %vm263_vm1, %v3281_v36  ;;  %3289 = vmatmul.msk.bf16.vlgmr.msra.gmra.mxu3 %vm263_vm1, %v3281_v36 }
 0x1cb   : > { %2565 = vmatpush.bf16.msra.mxu2 %v2515_v28  ;;  %2578 = vmatpush.bf16.msra.mxu3 %v2518_v35  ;;  %v3316_v28 = vld [vmem:[%s3589_s27 + $0x100] sm:$0xff] }
 0x1cc   : > { %v1620_v23 = vsel %vm905_vm8, %v1606_v21, %v1607_v22  ;;  %2539 = vmatpush.bf16.msra.mxu0 %v2509_v4  ;;  %2552 = vmatpush.bf16.msra.mxu1 %v2512_v0  ;;  %v2812_v0 = vunpack.c.l.b16 %v3316_v28  ;;  %v2813_v21 = vunpack.c.h.b16 %v3316_v28 }
 0x1cd   : > { %v1621_v12 = vsel %vm267_vm0, %v1617_v32, %v1620_v23  ;;  %v4140_v24 = vpop.f32.mrf.mxu2  ;;  %v4142_v29 = vpop.f32.mrf.mxu3 }
 0x1ce   : > { %v1629_v17 = vsel %vm3940_vm2, %v1621_v12, %v3218_v27  ;;  %v1701_v19 = vpop.f32.mrf.mxu0  ;;  %v2820_v32 = vpack.c.b16 %v2812_v0, %v2812_v0  ;;  %v3302_v12 = vld [vmem:[%s4303_s0 + $0x1c] sm:$0x3] }
 0x1cf   : > { %v1714_v20 = vpop.f32.mrf.mxu1  ;;  %3219 = vst [vmem:[%s3944_s9 + $0x18] sm:$0xff] %v1629_v17 }
 0x1d0   : > { %v2832_v19 = vsel %vm267_vm0, %v2820_v32, 0 }
 0x1d5   : > { %v1727_v50 = vpop.f32.mrf.mxu2  ;;  %v1740_v41 = vpop.f32.mrf.mxu3 }
 0x1d6   : > { %v1751_v14 = vpop.f32.mrf.mxu0  ;;  %v2819_v50 = vunpack.c.h.b16 %v3319_v34  ;;  %v2816_v41 = vunpack.c.l.b16 %v3318_v63  ;;  %v3272_v63 = vld [vmem:[%s3944_s9 + $0x20] sm:$0xff] }
 0x1d7   : > { %v1764_v25 = vpop.f32.mrf.mxu1 }
 0x1d9   : > { %3290 = vmatmul.msk.bf16.vlgmr.msrb.gmra.mxu0 %vm263_vm1, %v3281_v36  ;;  %3291 = vmatmul.msk.bf16.vlgmr.msrb.gmra.mxu1 %vm263_vm1, %v3281_v36 }
 0x1da   : > { %3292 = vmatmul.msk.bf16.vlgmr.msrb.gmra.mxu2 %vm263_vm1, %v3281_v36  ;;  %3293 = vmatmul.msk.bf16.vlgmr.msrb.gmra.mxu3 %vm263_vm1, %v3281_v36 }
 0x1db   : > { %2617 = vmatpush.bf16.msrb.mxu2 %v2527_v53  ;;  %2630 = vmatpush.bf16.msrb.mxu3 %v2530_v62  ;;  %v2827_v53 = vpack.c.b16 %v2819_v50, %v2819_v50  ;;  %v2824_v62 = vpack.c.b16 %v2816_v41, %v2816_v41 }
 0x1dc   : > { %2591 = vmatpush.bf16.msrb.mxu0 %v2521_v45  ;;  %2604 = vmatpush.bf16.msrb.mxu1 %v2524_v42  ;;  %v2825_v45 = vpack.c.b16 %v2817_v44, %v2817_v44 }
 0x1dd   : > { %v4157_v7 = vpop.f32.mrf.mxu2  ;;  %v4159_v8 = vpop.f32.mrf.mxu3 }
 0x1de   : > { %v1753_v9 = vpop.f32.mrf.mxu0 }
 0x1df   : > { %v1766_v10 = vpop.f32.mrf.mxu1 }
 0x1e5   : > { %v1779_v1 = vpop.f32.mrf.mxu2  ;;  %v1792_v46 = vpop.f32.mrf.mxu3 }
 0x1e6   : > { %v1850_v2 = vpop.f32.mrf.mxu0  ;;  %v2853_v1 = vsel %vm267_vm0, %v2827_v53, 0  ;;  %v2844_v46 = vsel %vm267_vm0, %v2824_v62, 0 }
 0x1e7   : > { %v1863_v47 = vpop.f32.mrf.mxu1  ;;  %v4165_v52 = vadd.f32 %v1850_v2, %v4121_v59  ;;  %v2847_v2 = vsel %vm267_vm0, %v2825_v45, 0 }
 0x1e8   : > { %v4168_v11 = vadd.f32 %v1863_v47, %v4123_v56 }
 0x1e9   : > { %3294 = vmatmul.msk.bf16.vlgmr.msra.gmra.mxu0 %vm263_vm1, %v3276_v51  ;;  %3295 = vmatmul.msk.bf16.vlgmr.msra.gmra.mxu1 %vm263_vm1, %v3276_v51 }
 0x1ea   : > { %3296 = vmatmul.msk.bf16.vlgmr.msra.gmra.mxu2 %vm263_vm1, %v3276_v51  ;;  %3297 = vmatmul.msk.bf16.vlgmr.msra.gmra.mxu3 %vm263_vm1, %v3276_v51 }
 0x1eb   : > { %2722 = vmatpush.bf16.msra.mxu2 %v4037_v57  ;;  %2735 = vmatpush.bf16.msra.mxu3 %v4040_v18 }
 0x1ec   : > { %2696 = vmatpush.bf16.msra.mxu0 %v4045_v61  ;;  %2709 = vmatpush.bf16.msra.mxu1 %v4048_v31  ;;  %v3317_v31 = vld [vmem:[%s3589_s27 + $0x108] sm:$0xff] }
 0x1ed   : > { %v4178_v54 = vpop.f32.mrf.mxu2  ;;  %v4180_v58 = vpop.f32.mrf.mxu3  ;;  %v2814_v35 = vunpack.c.l.b16 %v3317_v31  ;;  %v2815_v4 = vunpack.c.h.b16 %v3317_v31 }
 0x1ee   : > { %v1852_v3 = vpop.f32.mrf.mxu0 }
 0x1ef   : > { %v1865_v60 = vpop.f32.mrf.mxu1  ;;  %v2822_v22 = vpack.c.b16 %v2814_v35, %v2814_v35 }
 0x1f1   : > { %v2838_v30 = vsel %vm267_vm0, %v2822_v22, 0 }
 0x1f5   : > { %v1878_v55 = vpop.f32.mrf.mxu2  ;;  %v1891_v59 = vpop.f32.mrf.mxu3 }
 0x1f6   : > { %v1902_v56 = vpop.f32.mrf.mxu0 }
 0x1f7   : > { %v1915_v36 = vpop.f32.mrf.mxu1  ;;  %v4182_v33 = vadd.f32 %v1902_v56, %v1751_v14 }
 0x1f8   : > { %v4184_v57 = vadd.f32 %v1915_v36, %v1764_v25  ;;  %v2826_v25 = vpack.c.b16 %v2818_v43, %v2818_v43 }
 0x1f9   : > { %3298 = vmatmul.msk.bf16.vlgmr.msrb.gmra.mxu0 %vm263_vm1, %v3276_v51  ;;  %3299 = vmatmul.msk.bf16.vlgmr.msrb.gmra.mxu1 %vm263_vm1, %v3276_v51 }
 0x1fa   : > { %3300 = vmatmul.msk.bf16.vlgmr.msrb.gmra.mxu2 %vm263_vm1, %v3276_v51  ;;  %3301 = vmatmul.msk.bf16.vlgmr.msrb.gmra.mxu3 %vm263_vm1, %v3276_v51  ;;  %v2850_v10 = vsel %vm267_vm0, %v2826_v25, 0 }
 0x1fb   : > { %2774 = vmatpush.bf16.msrb.mxu2 %v4059_v26  ;;  %2787 = vmatpush.bf16.msrb.mxu3 %v4062_v38  ;;  %v2823_v26 = vpack.c.b16 %v2815_v4, %v2815_v4 }
 0x1fc   : > { %2748 = vmatpush.bf16.msrb.mxu0 %v4067_v40  ;;  %2761 = vmatpush.bf16.msrb.mxu1 %v4070_v39  ;;  %v2821_v40 = vpack.c.b16 %v2813_v21, %v2813_v21 }
 0x1fd   : > { %v4194_v18 = vpop.f32.mrf.mxu2  ;;  %v4196_v61 = vpop.f32.mrf.mxu3  ;;  %v2841_v17 = vsel %vm267_vm0, %v2823_v26, 0 }
 0x1fe   : > { %v1904_v49 = vpop.f32.mrf.mxu0  ;;  %v2835_v20 = vsel %vm267_vm0, %v2821_v40, 0 }
 0x1ff   : > { %v1917_v37 = vpop.f32.mrf.mxu1 }
 0x200   : > { %v3315_v37 = vld [vmem:[%s4303_s0 + $0x1e] sm:$0x3] }
 0x205   : > { %v1930_v27 = vpop.f32.mrf.mxu2  ;;  %v1943_v38 = vpop.f32.mrf.mxu3 }
 0x206   : > { %v2008_v23 = vpop.f32.mrf.mxu0 }
 0x207   : > { %v2021_v39 = vpop.f32.mrf.mxu1  ;;  %v2103_v55 = vadd.f32 %v2008_v23, %v4165_v52  ;;  %v1877_v52 = vadd.f32 %v4178_v54, %v4140_v24 }
 0x208   : > { %v2104_v59 = vadd.f32 %v2021_v39, %v4168_v11  ;;  %v1890_v11 = vadd.f32 %v4180_v58, %v4142_v29 }
 0x209   : > { %3307 = vmatmul.msk.bf16.vlgmr.msra.gmra.mxu0 %vm263_vm1, %v3302_v12  ;;  %3308 = vmatmul.msk.bf16.vlgmr.msra.gmra.mxu1 %vm263_vm1, %v3302_v12 }
 0x20a   : > { %3309 = vmatmul.msk.bf16.vlgmr.msra.gmra.mxu2 %vm263_vm1, %v3302_v12  ;;  %3310 = vmatmul.msk.bf16.vlgmr.msra.gmra.mxu3 %vm263_vm1, %v3302_v12 }
 0x20b   : > { %2888 = vmatpush.bf16.msra.mxu2 %v2838_v30  ;;  %2901 = vmatpush.bf16.msra.mxu3 %v2841_v17 }
 0x20c   : > { %2862 = vmatpush.bf16.msra.mxu0 %v2832_v19  ;;  %2875 = vmatpush.bf16.msra.mxu1 %v2835_v20 }
 0x20d   : > { %v2034_v5 = vpop.f32.mrf.mxu2  ;;  %v2047_v15 = vpop.f32.mrf.mxu3 }
 0x20e   : > { %v2010_v16 = vpop.f32.mrf.mxu0  ;;  %v2105_v4 = vadd.f32 %v2034_v5, %v1877_v52  ;;  %v2106_v0 = vadd.f32 %v2047_v15, %v1890_v11 }
 0x20f   : > { %v2023_v6 = vpop.f32.mrf.mxu1 }
 0x210   : > { %v1929_v6 = vadd.f32 %v4194_v18, %v4157_v7 }
 0x215   : > { %v2036_v13 = vpop.f32.mrf.mxu2  ;;  %v2049_v14 = vpop.f32.mrf.mxu3 }
 0x216   : > { %v2060_v42 = vpop.f32.mrf.mxu0 }
 0x217   : > { %v2073_v9 = vpop.f32.mrf.mxu1  ;;  %v2107_v29 = vadd.f32 %v2060_v42, %v4182_v33  ;;  %v1942_v33 = vadd.f32 %v4196_v61, %v4159_v8 }
 0x218   : > { %v2108_v54 = vadd.f32 %v2073_v9, %v4184_v57 }
 0x219   : > { %3311 = vmatmul.msk.bf16.vlgmr.msrb.gmra.mxu0 %vm263_vm1, %v3302_v12  ;;  %3312 = vmatmul.msk.bf16.vlgmr.msrb.gmra.mxu1 %vm263_vm1, %v3302_v12 }
 0x21a   : > { %3313 = vmatmul.msk.bf16.vlgmr.msrb.gmra.mxu2 %vm263_vm1, %v3302_v12  ;;  %3314 = vmatmul.msk.bf16.vlgmr.msrb.gmra.mxu3 %vm263_vm1, %v3302_v12 }
 0x21b   : > { %2940 = vmatpush.bf16.msrb.mxu2 %v2850_v10  ;;  %2953 = vmatpush.bf16.msrb.mxu3 %v2853_v1 }
 0x21c   : > { %2914 = vmatpush.bf16.msrb.mxu0 %v2844_v46  ;;  %2927 = vmatpush.bf16.msrb.mxu1 %v2847_v2 }
 0x21d   : > { %v2086_v47 = vpop.f32.mrf.mxu2  ;;  %v2099_v51 = vpop.f32.mrf.mxu3 }
 0x21e   : > { %v2062_v3 = vpop.f32.mrf.mxu0  ;;  %v2109_v43 = vadd.f32 %v2086_v47, %v1929_v6  ;;  %v2110_v50 = vadd.f32 %v2099_v51, %v1942_v33 }
 0x21f   : > { %v2075_v60 = vpop.f32.mrf.mxu1 }
 0x225   : > { %v2088_v56 = vpop.f32.mrf.mxu2  ;;  %v2101_v36 = vpop.f32.mrf.mxu3 }
 0x226   : > { %v2174_v31 = vpop.f32.mrf.mxu0 }
 0x227   : > { %v2187_v49 = vpop.f32.mrf.mxu1  ;;  %v2269_v28 = vadd.f32 %v2174_v31, %v2103_v55 }
 0x228   : > { %v2270_v35 = vadd.f32 %v2187_v49, %v2104_v59  ;;  %v3274_v59 = vld [vmem:[%s3944_s9 + $0x28] sm:$0xff] }
 0x229   : > { %3397 = vtanh.f32 %v2269_v28  ;;  %3320 = vmatmul.msk.bf16.vlgmr.msra.gmra.mxu0 %vm263_vm1, %v3315_v37  ;;  %3321 = vmatmul.msk.bf16.vlgmr.msra.gmra.mxu1 %vm263_vm1, %v3315_v37 }
 0x22a   : > { %3399 = vtanh.f32 %v2270_v35  ;;  %3322 = vmatmul.msk.bf16.vlgmr.msra.gmra.mxu2 %vm263_vm1, %v3315_v37  ;;  %3323 = vmatmul.msk.bf16.vlgmr.msra.gmra.mxu3 %vm263_vm1, %v3315_v37 }
 0x22d   : > { %v2200_v21 = vpop.f32.mrf.mxu2  ;;  %v2213_v22 = vpop.f32.mrf.mxu3 }
 0x22e   : > { %v2271_v26 = vadd.f32 %v2200_v21, %v2105_v4  ;;  %v2272_v27 = vadd.f32 %v2213_v22, %v2106_v0  ;;  %v2176_v38 = vpop.f32.mrf.mxu0 }
 0x22f   : > { %v2189_v32 = vpop.f32.mrf.mxu1  ;;  %v3398_v40 = vpop.eup %3397 }
 0x230   : > { %v3400_v23 = vpop.eup %3399  ;;  %3401 = vtanh.f32 %v2271_v26 }
 0x231   : > { %v2285_v24 = vpack.c.bf16 %v3400_v23, %v3398_v40  ;;  %3403 = vtanh.f32 %v2272_v27 }
 0x233   : > { %v2293_v15 = vrot.slane %v2285_v24, 2 }
 0x235   : > { %v2202_v58 = vpop.f32.mrf.mxu2  ;;  %v2215_v39 = vpop.f32.mrf.mxu3  ;;  %v2301_v7 = vsel %vm901_vm5, %v2285_v24, %v2293_v15 }
 0x236   : > { %v3402_v12 = vpop.eup %3401  ;;  %v2226_v30 = vpop.f32.mrf.mxu0 }
 0x237   : > { %v2239_v17 = vpop.f32.mrf.mxu1  ;;  %v3404_v19 = vpop.eup %3403  ;;  %v2273_v20 = vadd.f32 %v2226_v30, %v2107_v29 }
 0x238   : > { %v2274_v5 = vadd.f32 %v2239_v17, %v2108_v54  ;;  %v2286_v16 = vpack.c.bf16 %v3404_v19, %v3402_v12 }
 0x239   : > { %3405 = vtanh.f32 %v2273_v20  ;;  %3324 = vmatmul.msk.bf16.vlgmr.msrb.gmra.mxu0 %vm263_vm1, %v3315_v37  ;;  %3325 = vmatmul.msk.bf16.vlgmr.msrb.gmra.mxu1 %vm263_vm1, %v3315_v37 }
 0x23a   : > { %v2294_v57 = vrot.slane %v2286_v16, 4  ;;  %v2295_v34 = vrot.slane %v2286_v16, 6  ;;  %3407 = vtanh.f32 %v2274_v5  ;;  %3326 = vmatmul.msk.bf16.vlgmr.msrb.gmra.mxu2 %vm263_vm1, %v3315_v37  ;;  %3327 = vmatmul.msk.bf16.vlgmr.msrb.gmra.mxu3 %vm263_vm1, %v3315_v37 }
 0x23c   : > { %v2304_v18 = vsel %vm905_vm8, %v2294_v57, %v2295_v34 }
 0x23d   : > { %v2305_v41 = vsel %vm267_vm0, %v2301_v7, %v2304_v18  ;;  %v2252_v44 = vpop.f32.mrf.mxu2  ;;  %v2265_v13 = vpop.f32.mrf.mxu3 }
 0x23e   : > { %v2317_v8 = vsel %vm3940_vm2, %v2305_v41, %v3272_v63  ;;  %v2275_v61 = vadd.f32 %v2252_v44, %v2109_v43  ;;  %v2276_v14 = vadd.f32 %v2265_v13, %v2110_v50  ;;  %v2228_v25 = vpop.f32.mrf.mxu0 }
 0x23f   : > { %v2241_v53 = vpop.f32.mrf.mxu1  ;;  %v3406_v62 = vpop.eup %3405  ;;  %3273 = vst [vmem:[%s3944_s9 + $0x20] sm:$0xff] %v2317_v8 }
 0x240   : > { %v3408_v45 = vpop.eup %3407  ;;  %3409 = vtanh.f32 %v2275_v61 }
 0x241   : > { %v2287_v42 = vpack.c.bf16 %v3408_v45, %v3406_v62  ;;  %3411 = vtanh.f32 %v2276_v14 }
 0x243   : > { %v2296_v51 = vrot.slane %v2287_v42, 2 }
 0x245   : > { %v2254_v9 = vpop.f32.mrf.mxu2  ;;  %v2267_v10 = vpop.f32.mrf.mxu3  ;;  %v2308_v56 = vsel %vm901_vm5, %v2287_v42, %v2296_v51 }
 0x246   : > { %v3410_v1 = vpop.eup %3409  ;;  %v2390_v46 = vpop.f32.mrf.mxu0 }
 0x247   : > { %v2403_v2 = vpop.f32.mrf.mxu1  ;;  %v3412_v47 = vpop.eup %3411 }
 0x248   : > { %v2288_v3 = vpack.c.bf16 %v3412_v47, %v3410_v1 }
 0x24a   : > { %v2297_v60 = vrot.slane %v2288_v3, 4  ;;  %v2298_v55 = vrot.slane %v2288_v3, 6 }
 0x24c   : > { %v2311_v36 = vsel %vm905_vm8, %v2297_v60, %v2298_v55 }
 0x24d   : > { %v2312_v31 = vsel %vm267_vm0, %v2308_v56, %v2311_v36  ;;  %v2416_v49 = vpop.f32.mrf.mxu2  ;;  %v2429_v37 = vpop.f32.mrf.mxu3 }
 0x24e   : > { %v2320_v28 = vsel %vm3940_vm2, %v2312_v31, %v3274_v59  ;;  %v2392_v35 = vpop.f32.mrf.mxu0 }
 0x24f   : > { %v2405_v52 = vpop.f32.mrf.mxu1  ;;  %3275 = vst [vmem:[%s3944_s9 + $0x28] sm:$0xff] %v2320_v28 }
 0x255   : > { %v2418_v11 = vpop.f32.mrf.mxu2  ;;  %v2431_v4 = vpop.f32.mrf.mxu3 }
 0x256   : > { %v2442_v0 = vpop.f32.mrf.mxu0 }
 0x257   : > { %v2455_v21 = vpop.f32.mrf.mxu1 }
 0x25d   : > { %v4258_v22 = vpop.f32.mrf.mxu2  ;;  %v4260_v26 = vpop.f32.mrf.mxu3 }
 0x25e   : > { %v2444_v27 = vpop.f32.mrf.mxu0 }
 0x25f   : > { %v2457_v38 = vpop.f32.mrf.mxu1 }
 0x265   : > { %v2470_v32 = vpop.f32.mrf.mxu2  ;;  %v2483_v40 = vpop.f32.mrf.mxu3 }
 0x266   : > { %v2541_v23 = vpop.f32.mrf.mxu0 }
 0x267   : > { %v2554_v24 = vpop.f32.mrf.mxu1  ;;  %v2542_v29 = vadd.f32 %v2541_v23, %v2390_v46 }
 0x268   : > { %v2555_v54 = vadd.f32 %v2554_v24, %v2403_v2 }
 0x26d   : > { %v2567_v58 = vpop.f32.mrf.mxu2  ;;  %v2580_v39 = vpop.f32.mrf.mxu3 }
 0x26e   : > { %v2543_v12 = vpop.f32.mrf.mxu0  ;;  %v2568_v60 = vadd.f32 %v2567_v58, %v2416_v49  ;;  %v2581_v55 = vadd.f32 %v2580_v39, %v2429_v37 }
 0x26f   : > { %v2556_v30 = vpop.f32.mrf.mxu1 }
 0x275   : > { %v2569_v17 = vpop.f32.mrf.mxu2  ;;  %v2582_v19 = vpop.f32.mrf.mxu3 }
 0x276   : > { %v2593_v20 = vpop.f32.mrf.mxu0 }
 0x277   : > { %v2606_v5 = vpop.f32.mrf.mxu1  ;;  %v2594_v15 = vadd.f32 %v2593_v20, %v2442_v0  ;;  %v3328_v20 = vld [vmem:[%s3944_s9 + $0x30] sm:$0xff] }
 0x278   : > { %v2607_v16 = vadd.f32 %v2606_v5, %v2455_v21 }
 0x27d   : > { %v2619_v6 = vpop.f32.mrf.mxu2  ;;  %v2632_v33 = vpop.f32.mrf.mxu3 }
 0x27e   : > { %v2595_v57 = vpop.f32.mrf.mxu0  ;;  %v2620_v12 = vadd.f32 %v2619_v6, %v4258_v22  ;;  %v2633_v30 = vadd.f32 %v2632_v33, %v4260_v26 }
 0x27f   : > { %v2608_v34 = vpop.f32.mrf.mxu1 }
 0x285   : > { %v2621_v63 = vpop.f32.mrf.mxu2  ;;  %v2634_v43 = vpop.f32.mrf.mxu3 }
 0x286   : > { %v2698_v50 = vpop.f32.mrf.mxu0 }
 0x287   : > { %v2711_v7 = vpop.f32.mrf.mxu1  ;;  %v2793_v9 = vadd.f32 %v2698_v50, %v2542_v29 }
 0x288   : > { %v2794_v10 = vadd.f32 %v2711_v7, %v2555_v54 }
 0x28d   : > { %v2724_v18 = vpop.f32.mrf.mxu2  ;;  %v2737_v41 = vpop.f32.mrf.mxu3 }
 0x28e   : > { %v2700_v44 = vpop.f32.mrf.mxu0  ;;  %v2795_v59 = vadd.f32 %v2724_v18, %v2568_v60  ;;  %v2796_v56 = vadd.f32 %v2737_v41, %v2581_v55 }
 0x28f   : > { %v2713_v13 = vpop.f32.mrf.mxu1 }
 0x295   : > { %v2726_v8 = vpop.f32.mrf.mxu2  ;;  %v2739_v61 = vpop.f32.mrf.mxu3 }
 0x296   : > { %v2750_v14 = vpop.f32.mrf.mxu0 }
 0x297   : > { %v2763_v25 = vpop.f32.mrf.mxu1  ;;  %v2797_v27 = vadd.f32 %v2750_v14, %v2594_v15 }
 0x298   : > { %v2798_v38 = vadd.f32 %v2763_v25, %v2607_v16 }
 0x29d   : > { %v2776_v53 = vpop.f32.mrf.mxu2  ;;  %v2789_v62 = vpop.f32.mrf.mxu3 }
 0x29e   : > { %v2752_v45 = vpop.f32.mrf.mxu0  ;;  %v2799_v5 = vadd.f32 %v2776_v53, %v2620_v12  ;;  %v2800_v15 = vadd.f32 %v2789_v62, %v2633_v30 }
 0x29f   : > { %v2765_v42 = vpop.f32.mrf.mxu1  ;;  %v3330_v45 = vld [vmem:[%s3944_s9 + $0x38] sm:$0xff] }
 0x2a5   : > { %v2778_v1 = vpop.f32.mrf.mxu2  ;;  %v2791_v46 = vpop.f32.mrf.mxu3 }
 0x2a6   : > { %v2864_v2 = vpop.f32.mrf.mxu0  ;;  %v3034_v46 = vld [vmem:[%s3944_s9] sm:$0xff] (%p3498_p5) }
 0x2a7   : > { %v2877_v47 = vpop.f32.mrf.mxu1  ;;  %v2959_v51 = vadd.f32 %v2864_v2, %v2793_v9  ;;  %v3036_v2 = vld [vmem:[%s3944_s9 + $0x8] sm:$0xff] (%p3498_p5)  ;;  %3035 = vst [vmem:[%s3021_s22] sm:$0xff] (%p3498_p5), %v3034_v46 }
 0x2a8   : > { %v2960_v3 = vadd.f32 %v2877_v47, %v2794_v10  ;;  %v3040_v47 = vld [vmem:[%s3944_s9 + $0x18] sm:$0xff] (%p3498_p5)  ;;  %3037 = vst [vmem:[%s3021_s22 + $0x8] sm:$0xff] (%p3498_p5), %v3036_v2 }
 0x2a9   : > { %3413 = vtanh.f32 %v2959_v51  ;;  %v3042_v51 = vld [vmem:[%s3944_s9 + $0x20] sm:$0xff] (%p3498_p5)  ;;  %3041 = vst [vmem:[%s3021_s22 + $0x28] sm:$0xff] (%p3498_p5), %v3040_v47 }
 0x2aa   : > { %3415 = vtanh.f32 %v2960_v3  ;;  %v3044_v3 = vld [vmem:[%s3944_s9 + $0x28] sm:$0xff] (%p3498_p5)  ;;  %3043 = vst [vmem:[%s3021_s22 + $0x40] sm:$0xff] (%p3498_p5), %v3042_v51 }
 0x2ab   : > { %3045 = vst [vmem:[%s3021_s22 + $0x48] sm:$0xff] (%p3498_p5), %v3044_v3 }
 0x2ad   : > { %v2890_v36 = vpop.f32.mrf.mxu2  ;;  %v2903_v31 = vpop.f32.mrf.mxu3 }
 0x2ae   : > { %v2961_v28 = vadd.f32 %v2890_v36, %v2795_v59  ;;  %v2962_v35 = vadd.f32 %v2903_v31, %v2796_v56  ;;  %v2866_v52 = vpop.f32.mrf.mxu0 }
 0x2af   : > { %v2879_v11 = vpop.f32.mrf.mxu1  ;;  %v3414_v4 = vpop.eup %3413 }
 0x2b0   : > { %v3416_v0 = vpop.eup %3415  ;;  %3417 = vtanh.f32 %v2961_v28 }
 0x2b1   : > { %v2975_v21 = vpack.c.bf16 %v3416_v0, %v3414_v4  ;;  %3419 = vtanh.f32 %v2962_v35 }
 0x2b3   : > { %v2983_v58 = vrot.slane %v2975_v21, 2 }
 0x2b5   : > { %v2892_v32 = vpop.f32.mrf.mxu2  ;;  %v2905_v49 = vpop.f32.mrf.mxu3  ;;  %v2991_v16 = vsel %vm901_vm5, %v2975_v21, %v2983_v58 }
 0x2b6   : > { %v3418_v37 = vpop.eup %3417  ;;  %v2916_v40 = vpop.f32.mrf.mxu0 }
 0x2b7   : > { %v2929_v23 = vpop.f32.mrf.mxu1  ;;  %v3420_v24 = vpop.eup %3419  ;;  %v2963_v29 = vadd.f32 %v2916_v40, %v2797_v27 }
 0x2b8   : > { %v2964_v54 = vadd.f32 %v2929_v23, %v2798_v38  ;;  %v2976_v39 = vpack.c.bf16 %v3420_v24, %v3418_v37 }
 0x2b9   : > { %3421 = vtanh.f32 %v2963_v29 }
 0x2ba   : > { %v2984_v17 = vrot.slane %v2976_v39, 4  ;;  %v2985_v19 = vrot.slane %v2976_v39, 6  ;;  %3423 = vtanh.f32 %v2964_v54 }
 0x2bc   : > { %v2994_v57 = vsel %vm905_vm8, %v2984_v17, %v2985_v19 }
 0x2bd   : > { %v2995_v34 = vsel %vm267_vm0, %v2991_v16, %v2994_v57  ;;  %v2942_v63 = vpop.f32.mrf.mxu2  ;;  %v2955_v43 = vpop.f32.mrf.mxu3 }
 0x2be   : > { %v3007_v22 = vsel %vm3940_vm2, %v2995_v34, %v3328_v20  ;;  %v2965_v6 = vadd.f32 %v2942_v63, %v2799_v5  ;;  %v2966_v26 = vadd.f32 %v2955_v43, %v2800_v15  ;;  %v2918_v33 = vpop.f32.mrf.mxu0 }
 0x2bf   : > { %v2931_v50 = vpop.f32.mrf.mxu1  ;;  %v3422_v7 = vpop.eup %3421  ;;  %3329 = vst [vmem:[%s3944_s9 + $0x30] sm:$0xff] %v3007_v22 }
 0x2c0   : > { %v3424_v18 = vpop.eup %3423  ;;  %3425 = vtanh.f32 %v2965_v6 }
 0x2c1   : > { %v2977_v41 = vpack.c.bf16 %v3424_v18, %v3422_v7  ;;  %3427 = vtanh.f32 %v2966_v26 }
 0x2c3   : > { %v2986_v14 = vrot.slane %v2977_v41, 2 }
 0x2c5   : > { %v2944_v44 = vpop.f32.mrf.mxu2  ;;  %v2957_v13 = vpop.f32.mrf.mxu3  ;;  %v2998_v42 = vsel %vm901_vm5, %v2977_v41, %v2986_v14 }
 0x2c6   : > { %v3426_v8 = vpop.eup %3425  ;;  %v3046_v60 = vld [vmem:[%s3944_s9 + $0x30] sm:$0xff] (%p3498_p5) }
 0x2c7   : > { %v3428_v61 = vpop.eup %3427  ;;  %3047 = vst [vmem:[%s3021_s22 + $0x60] sm:$0xff] (%p3498_p5), %v3046_v60 }
 0x2c8   : > { %v2978_v25 = vpack.c.bf16 %v3428_v61, %v3426_v8 }
 0x2ca   : > { %v2987_v53 = vrot.slane %v2978_v25, 4  ;;  %v2988_v62 = vrot.slane %v2978_v25, 6 }
 0x2cb   : > { %3018 = sbr.rel (!%p3498_p5) target bundleno = 728 (0x2d8), region = 55 }
 0x2cc   : > { %v3001_v9 = vsel %vm905_vm8, %v2987_v53, %v2988_v62 }
 0x2cd   : > { %v3002_v10 = vsel %vm267_vm0, %v2998_v42, %v3001_v9 }
 0x2ce   : > { %v3010_v1 = vsel %vm3940_vm2, %v3002_v10, %v3330_v45 }
 0x2cf   : > { %3331 = vst [vmem:[%s3944_s9 + $0x38] sm:$0xff] %v3010_v1 }
 0x2d6   : > { %v3048_v55 = vld [vmem:[%s3944_s9 + $0x38] sm:$0xff] }
 0x2d7   : > { %3049 = vst [vmem:[%s3021_s22 + $0x68] sm:$0xff] %v3048_v55 }
 0x2d8 PF: > { %p9_p10 = scmp.ge.s32.totalorder %s3485_s13, 4   ;;  %s4315_s9 = smov %s3447_s10 }
 0x2d9   : > { %s4316_s10 = smov %s3496_s16  ;;  %s4317_s11 = smov %s3485_s13 }
 0x2da   :  { %11 = sbr.rel (!%p9_p10) target bundleno = 2 (0x2), region = 135 }

</bundles_post_ra>
